<compile_context>
chip_gen: v6e
topology: v6e:2x2x1
jax: 0.10.0
libtpu: 0.0.40
codegen_flags: <defaults>
</compile_context>

<pallas_src>
import math
import functools

import jax
import jax.numpy as jnp
from jax import lax
from jax.experimental import pallas as pl
from jax.experimental.pallas import tpu as pltpu


# -----------------------------------------------------------------------------
# Helpers
# -----------------------------------------------------------------------------
def _layer_norm(x, gamma, beta, eps):
    mu = jnp.mean(x, axis=-1, keepdims=True)
    var = jnp.mean((x - mu) ** 2, axis=-1, keepdims=True)
    return (x - mu) * lax.rsqrt(var + eps) * gamma + beta


# -----------------------------------------------------------------------------
# Pallas kernels
# -----------------------------------------------------------------------------
def encoder_stack_kernel(x_ref,
                         wqkv_ref, bqkv_ref, wo_ref, bo_ref,
                         w1_ref, b1_ref, w2_ref, b2_ref,
                         g1_ref, be1_ref, g2_ref, be2_ref,
                         *rest, num_layers, nhead, eps, with_final_norm):
    """Entire encoder stack (all layers + optional final LN) for one batch row."""
    if with_final_norm:
        gf_ref, bf_ref, o_ref, ctx_scr = rest
    else:
        o_ref, ctx_scr = rest
        gf_ref = bf_ref = None

    bf16 = jnp.bfloat16
    x = x_ref[0].astype(jnp.float32)            # (S, H) fp32 activations
    S, H = x.shape
    dh = H // nhead

    for l in range(num_layers):                 # static unrolled; weights resident
        xb = x.astype(bf16)

        # ---- fused QKV projection: one lane-dense (S,H)@(H,3H) MXU matmul ----
        # (1/sqrt(dh) is pre-folded into the Q columns of wqkv / bqkv.)
        qkv = jnp.dot(xb, wqkv_ref[l],
                      preferred_element_type=jnp.float32) + bqkv_ref[l]   # (S,3H)

        q_b = qkv[:, :H].astype(bf16)                          # (S, H)
        kT_b = jnp.transpose(qkv[:, H:2 * H]).astype(bf16)     # (H, S), one 2-D xpose
        v_b = qkv[:, 2 * H:].astype(bf16)                      # (S, H)

        # ---- per-head attention core (K=dh is inherently small) --------------
        for h in range(nhead):                  # small static loop over heads
            sl = slice(h * dh, (h + 1) * dh)
            s_h = jnp.dot(q_b[:, sl], kT_b[sl, :],
                          preferred_element_type=jnp.float32)  # (S, S) fp32
            s_h = s_h - jnp.max(s_h, axis=-1, keepdims=True)
            p_h = jnp.exp(s_h)                                  # fp32 (v5e-safe)
            l_h = jnp.sum(p_h, axis=-1, keepdims=True)          # (S, 1)
            c_h = jnp.dot(p_h.astype(bf16), v_b[:, sl],
                          preferred_element_type=jnp.float32)   # (S, dh)
            # normalize ctx (S*dh) instead of p (S*S); reciprocal on EUP slot
            ctx_scr[:, sl] = (c_h * pl.reciprocal(l_h, approx=True)).astype(bf16)

        # ---- single K=H output projection (head merge already staged) --------
        attn = jnp.dot(ctx_scr[...], wo_ref[l],
                       preferred_element_type=jnp.float32) + bo_ref[l]

        # ---- residual + LayerNorm 1 (post-norm, PyTorch default) -------------
        y = _layer_norm(x + attn, g1_ref[l], be1_ref[l], eps)

        # ---- feed-forward (ReLU), bf16 MXU operands --------------------------
        h1 = jnp.dot(y.astype(bf16), w1_ref[l],
                     preferred_element_type=jnp.float32) + b1_ref[l]
        h1 = jnp.maximum(h1, 0.0)
        f = jnp.dot(h1.astype(bf16), w2_ref[l],
                    preferred_element_type=jnp.float32) + b2_ref[l]

        # ---- residual + LayerNorm 2 -------------------------------------------
        x = _layer_norm(y + f, g2_ref[l], be2_ref[l], eps)

    # ---- optional fused final encoder LayerNorm -------------------------------
    if with_final_norm:
        x = _layer_norm(x, gf_ref[...], bf_ref[...], eps)

    o_ref[0] = x.astype(o_ref.dtype)


def layernorm_kernel(x_ref, g_ref, b_ref, o_ref, *, eps):
    # Only used if the encoder has zero layers but a final norm.
    x = x_ref[0].astype(jnp.float32)
    o_ref[0] = _layer_norm(x, g_ref[...], b_ref[...], eps).astype(o_ref.dtype)


# -----------------------------------------------------------------------------
# One-time parameter preparation (hoisted out of the forward path)
# -----------------------------------------------------------------------------
_PARAM_ORDER = ("wqkv", "bqkv", "wo", "bo", "w1", "b1", "w2", "b2",
                "g1", "be1", "g2", "be2")


def prepare_encoder_params(layer_params, *, nhead):
    """Fuse QKV weights, fold in the attention scale, cast matmul weights to
    bf16, and stack across layers. Runs once; NOT per forward call."""
    if not layer_params:
        return None
    H = layer_params[0]["wq"].shape[0]
    dh = H // nhead
    scale = 1.0 / math.sqrt(dh)
    bf16 = jnp.bfloat16

    def one(p):
        wqkv = jnp.concatenate([p["wq"] * scale, p["wk"], p["wv"]],
                               axis=1).astype(bf16)                 # (H, 3H)
        bqkv = jnp.concatenate([p["bq"] * scale, p["bk"], p["bv"]], axis=1)
        return {
            "wqkv": wqkv, "bqkv": bqkv,
            "wo": p["wo"].astype(bf16), "bo": p["bo"],
            "w1": p["w1"].astype(bf16), "b1": p["b1"],
            "w2": p["w2"].astype(bf16), "b2": p["b2"],
            "g1": p["g1"], "be1": p["be1"], "g2": p["g2"], "be2": p["be2"],
        }

    per_layer = [one(p) for p in layer_params]
    return {k: jnp.stack([d[k] for d in per_layer], axis=0) for k in _PARAM_ORDER}


# -----------------------------------------------------------------------------
# Python wrappers around pallas_call
# -----------------------------------------------------------------------------
def _param_spec(a):
    nd = a.ndim
    # whole-array (un-tiled) BlockSpec for a parameter; block index never changes.
    return pl.BlockSpec(a.shape, lambda b, _nd=nd: (0,) * _nd)


def transformer_encoder_forward(src, prepared, final_norm, *, nhead, eps=1e-5):
    """Mirrors TransformerEncoder.forward: all layers + optional final norm,
    fused into one pallas_call (grid over the batch dim only)."""
    B, S, H = src.shape

    if prepared is None:
        if final_norm is None:
            return src
        return final_norm_forward(src, final_norm["g"], final_norm["b"], eps=eps)

    num_layers = prepared["wqkv"].shape[0]
    ordered = [prepared[k] for k in _PARAM_ORDER]
    if final_norm is not None:
        ordered += [final_norm["g"], final_norm["b"]]

    in_specs = [pl.BlockSpec((1, S, H), lambda b: (b, 0, 0))]
    in_specs += [_param_spec(a) for a in ordered]

    kernel = functools.partial(encoder_stack_kernel, num_layers=num_layers,
                               nhead=nhead, eps=eps,
                               with_final_norm=final_norm is not None)
    return pl.pallas_call(
        kernel,
        out_shape=jax.ShapeDtypeStruct((B, S, H), src.dtype),
        grid=(B,),
        in_specs=in_specs,
        out_specs=pl.BlockSpec((1, S, H), lambda b: (b, 0, 0)),
        # lane-dense (S, H) bf16 staging buffer for the merged attention heads
        scratch_shapes=[pltpu.VMEM((S, H), jnp.bfloat16)],
        compiler_params=pltpu.CompilerParams(dimension_semantics=("parallel",)),
    )(src, *ordered)


def final_norm_forward(x, gamma, beta, *, eps=1e-5):
    B, S, H = x.shape
    kernel = functools.partial(layernorm_kernel, eps=eps)
    return pl.pallas_call(
        kernel,
        out_shape=jax.ShapeDtypeStruct((B, S, H), x.dtype),
        grid=(B,),
        in_specs=[pl.BlockSpec((1, S, H), lambda b: (b, 0, 0)),
                  _param_spec(gamma), _param_spec(beta)],
        out_specs=pl.BlockSpec((1, S, H), lambda b: (b, 0, 0)),
        compiler_params=pltpu.CompilerParams(dimension_semantics=("parallel",)),
    )(x, gamma, beta)


# -----------------------------------------------------------------------------
# Pure-JAX reference (raw fp32 params; bf16-operand / fp32-accumulate math)
# -----------------------------------------------------------------------------
def _ln_ref(x, g, b, eps=1e-5):
    mu = jnp.mean(x, axis=-1, keepdims=True)
    var = jnp.mean((x - mu) ** 2, axis=-1, keepdims=True)
    return (x - mu) / jnp.sqrt(var + eps) * g + b


def _layer_ref(x, p, nhead, eps=1e-5):
    B, S, H = x.shape
    dh = H // nhead
    bf16 = jnp.bfloat16

    def mm(a, w):
        return jnp.dot(a.astype(bf16), w.astype(bf16),
                       preferred_element_type=jnp.float32)

    q = mm(x, p["wq"]) + p["bq"]
    k = mm(x, p["wk"]) + p["bk"]
    v = mm(x, p["wv"]) + p["bv"]
    q = q.reshape(B, S, nhead, dh).transpose(0, 2, 1, 3)
    k = k.reshape(B, S, nhead, dh).transpose(0, 2, 1, 3)
    v = v.reshape(B, S, nhead, dh).transpose(0, 2, 1, 3)
    s = jnp.einsum("bhqd,bhkd->bhqk", q.astype(bf16), k.astype(bf16),
                   preferred_element_type=jnp.float32) / math.sqrt(dh)
    pm = jax.nn.softmax(s, axis=-1)
    a = jnp.einsum("bhqk,bhkd->bhqd", pm.astype(bf16), v.astype(bf16),
                   preferred_element_type=jnp.float32)
    a = a.transpose(0, 2, 1, 3).reshape(B, S, H)
    a = mm(a, p["wo"]) + p["bo"]
    y = _ln_ref(x + a, p["g1"], p["be1"], eps)
    h1 = jnp.maximum(mm(y, p["w1"]) + p["b1"], 0.0)
    f = mm(h1, p["w2"]) + p["b2"]
    return _ln_ref(y + f, p["g2"], p["be2"], eps)


def _encoder_ref(x, layer_params, final_norm, nhead):
    out = x
    for p in layer_params:
        out = _layer_ref(out, p, nhead)
    if final_norm is not None:
        out = _ln_ref(out, final_norm["g"], final_norm["b"])
    return out


# -----------------------------------------------------------------------------
# Deterministic parameter init (fp32 "module" params, like the PyTorch spec)
# -----------------------------------------------------------------------------
def make_layer_params(key, H, F):
    ks = jax.random.split(key, 6)
    scale_h = 1.0 / math.sqrt(H)
    scale_f = 1.0 / math.sqrt(F)
    return {
        "wq": jax.random.normal(ks[0], (H, H), jnp.float32) * scale_h,
        "bq": jnp.zeros((1, H), jnp.float32),
        "wk": jax.random.normal(ks[1], (H, H), jnp.float32) * scale_h,
        "bk": jnp.zeros((1, H), jnp.float32),
        "wv": jax.random.normal(ks[2], (H, H), jnp.float32) * scale_h,
        "bv": jnp.zeros((1, H), jnp.float32),
        "wo": jax.random.normal(ks[3], (H, H), jnp.float32) * scale_h,
        "bo": jnp.zeros((1, H), jnp.float32),
        "w1": jax.random.normal(ks[4], (H, F), jnp.float32) * scale_h,
        "b1": jnp.zeros((1, F), jnp.float32),
        "w2": jax.random.normal(ks[5], (F, H), jnp.float32) * scale_f,
        "b2": jnp.zeros((1, H), jnp.float32),
        "g1": jnp.ones((1, H), jnp.float32),
        "be1": jnp.zeros((1, H), jnp.float32),
        "g2": jnp.ones((1, H), jnp.float32),
        "be2": jnp.zeros((1, H), jnp.float32),
    }


if __name__ == "__main__":
    # Small but lane-dense shapes: S and H are multiples of 128 so every
    # activation store (and the QKV / FFN matmul outputs) is full-lane.
    B, S, H = 2, 128, 128           # [batch, seq_len, H]
    NHEAD, FFN, NUM_LAYERS = 4, 256, 2

    root = jax.random.PRNGKey(0)
    k_x, k_layers = jax.random.split(root, 2)

    src = jax.random.normal(k_x, (B, S, H), jnp.float32)
    layer_keys = jax.random.split(k_layers, NUM_LAYERS)
    layer_params = [make_layer_params(k, H, FFN) for k in layer_keys]
    final_norm = {"g": jnp.ones((1, H), jnp.float32),
                  "b": jnp.zeros((1, H), jnp.float32)}

    # One-time weight preparation (fused QKV + scale fold + bf16 + stacking),
    # hoisted out of the forward path per perf feedback.
    prepared = prepare_encoder_params(layer_params, nhead=NHEAD)

    out = transformer_encoder_forward(src, prepared, final_norm, nhead=NHEAD)
    out = jax.block_until_ready(out)

    ref = _encoder_ref(src, layer_params, final_norm, NHEAD)
    assert out.shape == (B, S, H)
    # bf16 MXU operands + approximate softmax reciprocal -> modest tolerance
    assert jnp.allclose(out, ref, atol=2e-2, rtol=2e-2), "mismatch vs reference"

    print("KERNEL_OK")
</pallas_src>

<mosaic_0001>
module attributes {stable_mosaic.version = 11 : i64} {
  func.func @encoder_stack_kernel(%arg0: i32, %arg1: memref<1x128x128xf32, #tpu.memory_space<vmem>>, %arg2: memref<2x128x384xbf16, #tpu.memory_space<vmem>>, %arg3: memref<2x1x384xf32, #tpu.memory_space<vmem>>, %arg4: memref<2x128x128xbf16, #tpu.memory_space<vmem>>, %arg5: memref<2x1x128xf32, #tpu.memory_space<vmem>>, %arg6: memref<2x128x256xbf16, #tpu.memory_space<vmem>>, %arg7: memref<2x1x256xf32, #tpu.memory_space<vmem>>, %arg8: memref<2x256x128xbf16, #tpu.memory_space<vmem>>, %arg9: memref<2x1x128xf32, #tpu.memory_space<vmem>>, %arg10: memref<2x1x128xf32, #tpu.memory_space<vmem>>, %arg11: memref<2x1x128xf32, #tpu.memory_space<vmem>>, %arg12: memref<2x1x128xf32, #tpu.memory_space<vmem>>, %arg13: memref<2x1x128xf32, #tpu.memory_space<vmem>>, %arg14: memref<1x128xf32, #tpu.memory_space<vmem>>, %arg15: memref<1x128xf32, #tpu.memory_space<vmem>>, %arg16: memref<1x128x128xf32, #tpu.memory_space<vmem>>, %arg17: memref<128x128xbf16, #tpu.memory_space<vmem>>) attributes {dimension_semantics = [#tpu.dimension_semantics<parallel>], iteration_bounds = array<i64: 2>, scalar_prefetch = 0 : i64, scratch_operands = 1 : i64, tpu.core_type = #tpu.core_type<tc>, window_params = [{transform_indices = @transform_0, window_bounds = array<i64: 1, 128, 128>}, {pipeline_mode = #tpu.pipeline_mode<synchronous>, transform_indices = @transform_1, window_bounds = array<i64: 2, 128, 384>}, {pipeline_mode = #tpu.pipeline_mode<synchronous>, transform_indices = @transform_2, window_bounds = array<i64: 2, 1, 384>}, {pipeline_mode = #tpu.pipeline_mode<synchronous>, transform_indices = @transform_3, window_bounds = array<i64: 2, 128, 128>}, {pipeline_mode = #tpu.pipeline_mode<synchronous>, transform_indices = @transform_4, window_bounds = array<i64: 2, 1, 128>}, {pipeline_mode = #tpu.pipeline_mode<synchronous>, transform_indices = @transform_5, window_bounds = array<i64: 2, 128, 256>}, {pipeline_mode = #tpu.pipeline_mode<synchronous>, transform_indices = @transform_6, window_bounds = array<i64: 2, 1, 256>}, {pipeline_mode = #tpu.pipeline_mode<synchronous>, transform_indices = @transform_7, window_bounds = array<i64: 2, 256, 128>}, {pipeline_mode = #tpu.pipeline_mode<synchronous>, transform_indices = @transform_8, window_bounds = array<i64: 2, 1, 128>}, {pipeline_mode = #tpu.pipeline_mode<synchronous>, transform_indices = @transform_9, window_bounds = array<i64: 2, 1, 128>}, {pipeline_mode = #tpu.pipeline_mode<synchronous>, transform_indices = @transform_10, window_bounds = array<i64: 2, 1, 128>}, {pipeline_mode = #tpu.pipeline_mode<synchronous>, transform_indices = @transform_11, window_bounds = array<i64: 2, 1, 128>}, {pipeline_mode = #tpu.pipeline_mode<synchronous>, transform_indices = @transform_12, window_bounds = array<i64: 2, 1, 128>}, {pipeline_mode = #tpu.pipeline_mode<synchronous>, transform_indices = @transform_13, window_bounds = array<i64: 1, 128>}, {pipeline_mode = #tpu.pipeline_mode<synchronous>, transform_indices = @transform_14, window_bounds = array<i64: 1, 128>}, {transform_indices = @transform_15, window_bounds = array<i64: 1, 128, 128>}]} {
    %c0 = arith.constant 0 : index
    %c0_0 = arith.constant 0 : index
    %c0_1 = arith.constant 0 : index
    %0 = vector.load %arg1[%c0, %c0_0, %c0_1] : memref<1x128x128xf32, #tpu.memory_space<vmem>>, vector<1x128x128xf32>
    %1 = vector.shape_cast %0 : vector<1x128x128xf32> to vector<128x128xf32>
    %2 = arith.truncf %1 : vector<128x128xf32> to vector<128x128xbf16>
    %c0_2 = arith.constant 0 : index
    %c0_3 = arith.constant 0 : index
    %c0_4 = arith.constant 0 : index
    %3 = vector.load %arg2[%c0_2, %c0_3, %c0_4] : memref<2x128x384xbf16, #tpu.memory_space<vmem>>, vector<1x128x384xbf16>
    %4 = vector.shape_cast %3 : vector<1x128x384xbf16> to vector<128x384xbf16>
    %cst = arith.constant dense<0.000000e+00> : vector<128x384xf32>
    %5 = tpu.matmul %2, %4, %cst {dimension_numbers = #tpu.dot_dimension_numbers<[1], [0], [0], [1], [0, 0, 1, 1], [], []>} : vector<128x128xbf16>, vector<128x384xbf16>, vector<128x384xf32> -> vector<128x384xf32>
    %c0_5 = arith.constant 0 : index
    %c0_6 = arith.constant 0 : index
    %c0_7 = arith.constant 0 : index
    %6 = vector.load %arg3[%c0_5, %c0_6, %c0_7] : memref<2x1x384xf32, #tpu.memory_space<vmem>>, vector<1x1x384xf32>
    %7 = vector.shape_cast %6 : vector<1x1x384xf32> to vector<1x384xf32>
    %8 = vector.broadcast %7 : vector<1x384xf32> to vector<128x384xf32>
    %9 = arith.addf %5, %8 : vector<128x384xf32>
    %10 = vector.extract_strided_slice %9 {offsets = [0, 0], sizes = [128, 128], strides = [1, 1]} : vector<128x384xf32> to vector<128x128xf32>
    %11 = arith.truncf %10 : vector<128x128xf32> to vector<128x128xbf16>
    %12 = vector.extract_strided_slice %9 {offsets = [0, 128], sizes = [128, 128], strides = [1, 1]} : vector<128x384xf32> to vector<128x128xf32>
    %13 = tpu.transpose %12, [1, 0] : vector<128x128xf32> -> vector<128x128xf32>
    %14 = arith.truncf %13 : vector<128x128xf32> to vector<128x128xbf16>
    %15 = vector.extract_strided_slice %9 {offsets = [0, 256], sizes = [128, 128], strides = [1, 1]} : vector<128x384xf32> to vector<128x128xf32>
    %16 = arith.truncf %15 : vector<128x128xf32> to vector<128x128xbf16>
    %17 = vector.extract_strided_slice %11 {offsets = [0, 0], sizes = [128, 32], strides = [1, 1]} : vector<128x128xbf16> to vector<128x32xbf16>
    %18 = vector.extract_strided_slice %14 {offsets = [0, 0], sizes = [32, 128], strides = [1, 1]} : vector<128x128xbf16> to vector<32x128xbf16>
    %cst_8 = arith.constant dense<0.000000e+00> : vector<128x128xf32>
    %19 = tpu.matmul %17, %18, %cst_8 {dimension_numbers = #tpu.dot_dimension_numbers<[1], [0], [0], [1], [0, 0, 1, 1], [], []>} : vector<128x32xbf16>, vector<32x128xbf16>, vector<128x128xf32> -> vector<128x128xf32>
    %cst_9 = arith.constant dense<0xFF800000> : vector<128xf32>
    %20 = vector.multi_reduction <maximumf>, %19, %cst_9 [1] : vector<128x128xf32> to vector<128xf32>
    %21 = vector.shape_cast %20 : vector<128xf32> to vector<128x1xf32>
    %22 = vector.broadcast %21 : vector<128x1xf32> to vector<128x128xf32>
    %23 = arith.subf %19, %22 : vector<128x128xf32>
    %24 = math.exp %23 : vector<128x128xf32>
    %cst_10 = arith.constant dense<0.000000e+00> : vector<128xf32>
    %25 = vector.multi_reduction <add>, %24, %cst_10 [1] : vector<128x128xf32> to vector<128xf32>
    %26 = vector.shape_cast %25 : vector<128xf32> to vector<128x1xf32>
    %27 = arith.truncf %24 : vector<128x128xf32> to vector<128x128xbf16>
    %28 = vector.extract_strided_slice %16 {offsets = [0, 0], sizes = [128, 32], strides = [1, 1]} : vector<128x128xbf16> to vector<128x32xbf16>
    %cst_11 = arith.constant dense<0.000000e+00> : vector<128x32xf32>
    %29 = tpu.matmul %27, %28, %cst_11 {dimension_numbers = #tpu.dot_dimension_numbers<[1], [0], [0], [1], [0, 0, 1, 1], [], []>} : vector<128x128xbf16>, vector<128x32xbf16>, vector<128x32xf32> -> vector<128x32xf32>
    %30 = tpu.reciprocal %26 {approx = true} : vector<128x1xf32> -> vector<128x1xf32>
    %31 = vector.broadcast %30 : vector<128x1xf32> to vector<128x32xf32>
    %32 = arith.mulf %29, %31 : vector<128x32xf32>
    %33 = arith.truncf %32 : vector<128x32xf32> to vector<128x32xbf16>
    %c0_12 = arith.constant 0 : index
    %c0_13 = arith.constant 0 : index
    %34 = vector.load %arg17[%c0_12, %c0_13] : memref<128x128xbf16, #tpu.memory_space<vmem>>, vector<128x32xbf16>
    tpu.vector_store %arg17[%c0_12, %c0_13], %33 {strides = array<i32>} : memref<128x128xbf16, #tpu.memory_space<vmem>>, vector<128x32xbf16>,
    %35 = vector.extract_strided_slice %11 {offsets = [0, 32], sizes = [128, 32], strides = [1, 1]} : vector<128x128xbf16> to vector<128x32xbf16>
    %36 = vector.extract_strided_slice %14 {offsets = [32, 0], sizes = [32, 128], strides = [1, 1]} : vector<128x128xbf16> to vector<32x128xbf16>
    %cst_14 = arith.constant dense<0.000000e+00> : vector<128x128xf32>
    %37 = tpu.matmul %35, %36, %cst_14 {dimension_numbers = #tpu.dot_dimension_numbers<[1], [0], [0], [1], [0, 0, 1, 1], [], []>} : vector<128x32xbf16>, vector<32x128xbf16>, vector<128x128xf32> -> vector<128x128xf32>
    %cst_15 = arith.constant dense<0xFF800000> : vector<128xf32>
    %38 = vector.multi_reduction <maximumf>, %37, %cst_15 [1] : vector<128x128xf32> to vector<128xf32>
    %39 = vector.shape_cast %38 : vector<128xf32> to vector<128x1xf32>
    %40 = vector.broadcast %39 : vector<128x1xf32> to vector<128x128xf32>
    %41 = arith.subf %37, %40 : vector<128x128xf32>
    %42 = math.exp %41 : vector<128x128xf32>
    %cst_16 = arith.constant dense<0.000000e+00> : vector<128xf32>
    %43 = vector.multi_reduction <add>, %42, %cst_16 [1] : vector<128x128xf32> to vector<128xf32>
    %44 = vector.shape_cast %43 : vector<128xf32> to vector<128x1xf32>
    %45 = arith.truncf %42 : vector<128x128xf32> to vector<128x128xbf16>
    %46 = vector.extract_strided_slice %16 {offsets = [0, 32], sizes = [128, 32], strides = [1, 1]} : vector<128x128xbf16> to vector<128x32xbf16>
    %cst_17 = arith.constant dense<0.000000e+00> : vector<128x32xf32>
    %47 = tpu.matmul %45, %46, %cst_17 {dimension_numbers = #tpu.dot_dimension_numbers<[1], [0], [0], [1], [0, 0, 1, 1], [], []>} : vector<128x128xbf16>, vector<128x32xbf16>, vector<128x32xf32> -> vector<128x32xf32>
    %48 = tpu.reciprocal %44 {approx = true} : vector<128x1xf32> -> vector<128x1xf32>
    %49 = vector.broadcast %48 : vector<128x1xf32> to vector<128x32xf32>
    %50 = arith.mulf %47, %49 : vector<128x32xf32>
    %51 = arith.truncf %50 : vector<128x32xf32> to vector<128x32xbf16>
    %c0_18 = arith.constant 0 : index
    %c32 = arith.constant 32 : index
    %52 = vector.load %arg17[%c0_18, %c32] : memref<128x128xbf16, #tpu.memory_space<vmem>>, vector<128x32xbf16>
    tpu.vector_store %arg17[%c0_18, %c32], %51 {strides = array<i32>} : memref<128x128xbf16, #tpu.memory_space<vmem>>, vector<128x32xbf16>,
    %53 = vector.extract_strided_slice %11 {offsets = [0, 64], sizes = [128, 32], strides = [1, 1]} : vector<128x128xbf16> to vector<128x32xbf16>
    %54 = vector.extract_strided_slice %14 {offsets = [64, 0], sizes = [32, 128], strides = [1, 1]} : vector<128x128xbf16> to vector<32x128xbf16>
    %cst_19 = arith.constant dense<0.000000e+00> : vector<128x128xf32>
    %55 = tpu.matmul %53, %54, %cst_19 {dimension_numbers = #tpu.dot_dimension_numbers<[1], [0], [0], [1], [0, 0, 1, 1], [], []>} : vector<128x32xbf16>, vector<32x128xbf16>, vector<128x128xf32> -> vector<128x128xf32>
    %cst_20 = arith.constant dense<0xFF800000> : vector<128xf32>
    %56 = vector.multi_reduction <maximumf>, %55, %cst_20 [1] : vector<128x128xf32> to vector<128xf32>
    %57 = vector.shape_cast %56 : vector<128xf32> to vector<128x1xf32>
    %58 = vector.broadcast %57 : vector<128x1xf32> to vector<128x128xf32>
    %59 = arith.subf %55, %58 : vector<128x128xf32>
    %60 = math.exp %59 : vector<128x128xf32>
    %cst_21 = arith.constant dense<0.000000e+00> : vector<128xf32>
    %61 = vector.multi_reduction <add>, %60, %cst_21 [1] : vector<128x128xf32> to vector<128xf32>
    %62 = vector.shape_cast %61 : vector<128xf32> to vector<128x1xf32>
    %63 = arith.truncf %60 : vector<128x128xf32> to vector<128x128xbf16>
    %64 = vector.extract_strided_slice %16 {offsets = [0, 64], sizes = [128, 32], strides = [1, 1]} : vector<128x128xbf16> to vector<128x32xbf16>
    %cst_22 = arith.constant dense<0.000000e+00> : vector<128x32xf32>
    %65 = tpu.matmul %63, %64, %cst_22 {dimension_numbers = #tpu.dot_dimension_numbers<[1], [0], [0], [1], [0, 0, 1, 1], [], []>} : vector<128x128xbf16>, vector<128x32xbf16>, vector<128x32xf32> -> vector<128x32xf32>
    %66 = tpu.reciprocal %62 {approx = true} : vector<128x1xf32> -> vector<128x1xf32>
    %67 = vector.broadcast %66 : vector<128x1xf32> to vector<128x32xf32>
    %68 = arith.mulf %65, %67 : vector<128x32xf32>
    %69 = arith.truncf %68 : vector<128x32xf32> to vector<128x32xbf16>
    %c0_23 = arith.constant 0 : index
    %c64 = arith.constant 64 : index
    %70 = vector.load %arg17[%c0_23, %c64] : memref<128x128xbf16, #tpu.memory_space<vmem>>, vector<128x32xbf16>
    tpu.vector_store %arg17[%c0_23, %c64], %69 {strides = array<i32>} : memref<128x128xbf16, #tpu.memory_space<vmem>>, vector<128x32xbf16>,
    %71 = vector.extract_strided_slice %11 {offsets = [0, 96], sizes = [128, 32], strides = [1, 1]} : vector<128x128xbf16> to vector<128x32xbf16>
    %72 = vector.extract_strided_slice %14 {offsets = [96, 0], sizes = [32, 128], strides = [1, 1]} : vector<128x128xbf16> to vector<32x128xbf16>
    %cst_24 = arith.constant dense<0.000000e+00> : vector<128x128xf32>
    %73 = tpu.matmul %71, %72, %cst_24 {dimension_numbers = #tpu.dot_dimension_numbers<[1], [0], [0], [1], [0, 0, 1, 1], [], []>} : vector<128x32xbf16>, vector<32x128xbf16>, vector<128x128xf32> -> vector<128x128xf32>
    %cst_25 = arith.constant dense<0xFF800000> : vector<128xf32>
    %74 = vector.multi_reduction <maximumf>, %73, %cst_25 [1] : vector<128x128xf32> to vector<128xf32>
    %75 = vector.shape_cast %74 : vector<128xf32> to vector<128x1xf32>
    %76 = vector.broadcast %75 : vector<128x1xf32> to vector<128x128xf32>
    %77 = arith.subf %73, %76 : vector<128x128xf32>
    %78 = math.exp %77 : vector<128x128xf32>
    %cst_26 = arith.constant dense<0.000000e+00> : vector<128xf32>
    %79 = vector.multi_reduction <add>, %78, %cst_26 [1] : vector<128x128xf32> to vector<128xf32>
    %80 = vector.shape_cast %79 : vector<128xf32> to vector<128x1xf32>
    %81 = arith.truncf %78 : vector<128x128xf32> to vector<128x128xbf16>
    %82 = vector.extract_strided_slice %16 {offsets = [0, 96], sizes = [128, 32], strides = [1, 1]} : vector<128x128xbf16> to vector<128x32xbf16>
    %cst_27 = arith.constant dense<0.000000e+00> : vector<128x32xf32>
    %83 = tpu.matmul %81, %82, %cst_27 {dimension_numbers = #tpu.dot_dimension_numbers<[1], [0], [0], [1], [0, 0, 1, 1], [], []>} : vector<128x128xbf16>, vector<128x32xbf16>, vector<128x32xf32> -> vector<128x32xf32>
    %84 = tpu.reciprocal %80 {approx = true} : vector<128x1xf32> -> vector<128x1xf32>
    %85 = vector.broadcast %84 : vector<128x1xf32> to vector<128x32xf32>
    %86 = arith.mulf %83, %85 : vector<128x32xf32>
    %87 = arith.truncf %86 : vector<128x32xf32> to vector<128x32xbf16>
    %c0_28 = arith.constant 0 : index
    %c96 = arith.constant 96 : index
    %88 = vector.load %arg17[%c0_28, %c96] : memref<128x128xbf16, #tpu.memory_space<vmem>>, vector<128x32xbf16>
    tpu.vector_store %arg17[%c0_28, %c96], %87 {strides = array<i32>} : memref<128x128xbf16, #tpu.memory_space<vmem>>, vector<128x32xbf16>,
    %c0_29 = arith.constant 0 : index
    %c0_30 = arith.constant 0 : index
    %89 = vector.load %arg17[%c0_29, %c0_30] : memref<128x128xbf16, #tpu.memory_space<vmem>>, vector<128x128xbf16>
    %c0_31 = arith.constant 0 : index
    %c0_32 = arith.constant 0 : index
    %c0_33 = arith.constant 0 : index
    %90 = vector.load %arg4[%c0_31, %c0_32, %c0_33] : memref<2x128x128xbf16, #tpu.memory_space<vmem>>, vector<1x128x128xbf16>
    %91 = vector.shape_cast %90 : vector<1x128x128xbf16> to vector<128x128xbf16>
    %cst_34 = arith.constant dense<0.000000e+00> : vector<128x128xf32>
    %92 = tpu.matmul %89, %91, %cst_34 {dimension_numbers = #tpu.dot_dimension_numbers<[1], [0], [0], [1], [0, 0, 1, 1], [], []>} : vector<128x128xbf16>, vector<128x128xbf16>, vector<128x128xf32> -> vector<128x128xf32>
    %c0_35 = arith.constant 0 : index
    %c0_36 = arith.constant 0 : index
    %c0_37 = arith.constant 0 : index
    %93 = vector.load %arg5[%c0_35, %c0_36, %c0_37] : memref<2x1x128xf32, #tpu.memory_space<vmem>>, vector<1x1x128xf32>
    %94 = vector.shape_cast %93 : vector<1x1x128xf32> to vector<1x128xf32>
    %95 = vector.broadcast %94 : vector<1x128xf32> to vector<128x128xf32>
    %96 = arith.addf %92, %95 : vector<128x128xf32>
    %97 = arith.addf %1, %96 : vector<128x128xf32>
    %c0_38 = arith.constant 0 : index
    %c0_39 = arith.constant 0 : index
    %c0_40 = arith.constant 0 : index
    %98 = vector.load %arg10[%c0_38, %c0_39, %c0_40] : memref<2x1x128xf32, #tpu.memory_space<vmem>>, vector<1x1x128xf32>
    %99 = vector.shape_cast %98 : vector<1x1x128xf32> to vector<1x128xf32>
    %c0_41 = arith.constant 0 : index
    %c0_42 = arith.constant 0 : index
    %c0_43 = arith.constant 0 : index
    %100 = vector.load %arg11[%c0_41, %c0_42, %c0_43] : memref<2x1x128xf32, #tpu.memory_space<vmem>>, vector<1x1x128xf32>
    %101 = vector.shape_cast %100 : vector<1x1x128xf32> to vector<1x128xf32>
    %cst_44 = arith.constant dense<0.000000e+00> : vector<128xf32>
    %102 = vector.multi_reduction <add>, %97, %cst_44 [1] : vector<128x128xf32> to vector<128xf32>
    %103 = vector.shape_cast %102 : vector<128xf32> to vector<128x1xf32>
    %cst_45 = arith.constant 1.280000e+02 : f32
    %104 = vector.broadcast %cst_45 : f32 to vector<128x1xf32>
    %105 = arith.divf %103, %104 : vector<128x1xf32>
    %106 = vector.broadcast %105 : vector<128x1xf32> to vector<128x128xf32>
    %107 = arith.subf %97, %106 : vector<128x128xf32>
    %108 = arith.mulf %107, %107 : vector<128x128xf32>
    %cst_46 = arith.constant dense<0.000000e+00> : vector<128xf32>
    %109 = vector.multi_reduction <add>, %108, %cst_46 [1] : vector<128x128xf32> to vector<128xf32>
    %110 = vector.shape_cast %109 : vector<128xf32> to vector<128x1xf32>
    %cst_47 = arith.constant 1.280000e+02 : f32
    %111 = vector.broadcast %cst_47 : f32 to vector<128x1xf32>
    %112 = arith.divf %110, %111 : vector<128x1xf32>
    %113 = vector.broadcast %105 : vector<128x1xf32> to vector<128x128xf32>
    %114 = arith.subf %97, %113 : vector<128x128xf32>
    %cst_48 = arith.constant 9.99999974E-6 : f32
    %115 = vector.broadcast %cst_48 : f32 to vector<128x1xf32>
    %116 = arith.addf %112, %115 : vector<128x1xf32>
    %117 = math.rsqrt %116 : vector<128x1xf32>
    %118 = vector.broadcast %117 : vector<128x1xf32> to vector<128x128xf32>
    %119 = arith.mulf %114, %118 : vector<128x128xf32>
    %120 = vector.broadcast %99 : vector<1x128xf32> to vector<128x128xf32>
    %121 = arith.mulf %119, %120 : vector<128x128xf32>
    %122 = vector.broadcast %101 : vector<1x128xf32> to vector<128x128xf32>
    %123 = arith.addf %121, %122 : vector<128x128xf32>
    %124 = arith.truncf %123 : vector<128x128xf32> to vector<128x128xbf16>
    %c0_49 = arith.constant 0 : index
    %c0_50 = arith.constant 0 : index
    %c0_51 = arith.constant 0 : index
    %125 = vector.load %arg6[%c0_49, %c0_50, %c0_51] : memref<2x128x256xbf16, #tpu.memory_space<vmem>>, vector<1x128x256xbf16>
    %126 = vector.shape_cast %125 : vector<1x128x256xbf16> to vector<128x256xbf16>
    %cst_52 = arith.constant dense<0.000000e+00> : vector<128x256xf32>
    %127 = tpu.matmul %124, %126, %cst_52 {dimension_numbers = #tpu.dot_dimension_numbers<[1], [0], [0], [1], [0, 0, 1, 1], [], []>} : vector<128x128xbf16>, vector<128x256xbf16>, vector<128x256xf32> -> vector<128x256xf32>
    %c0_53 = arith.constant 0 : index
    %c0_54 = arith.constant 0 : index
    %c0_55 = arith.constant 0 : index
    %128 = vector.load %arg7[%c0_53, %c0_54, %c0_55] : memref<2x1x256xf32, #tpu.memory_space<vmem>>, vector<1x1x256xf32>
    %129 = vector.shape_cast %128 : vector<1x1x256xf32> to vector<1x256xf32>
    %130 = vector.broadcast %129 : vector<1x256xf32> to vector<128x256xf32>
    %131 = arith.addf %127, %130 : vector<128x256xf32>
    %cst_56 = arith.constant 0.000000e+00 : f32
    %132 = vector.broadcast %cst_56 : f32 to vector<128x256xf32>
    %133 = arith.maximumf %131, %132 : vector<128x256xf32>
    %134 = arith.truncf %133 : vector<128x256xf32> to vector<128x256xbf16>
    %c0_57 = arith.constant 0 : index
    %c0_58 = arith.constant 0 : index
    %c0_59 = arith.constant 0 : index
    %135 = vector.load %arg8[%c0_57, %c0_58, %c0_59] : memref<2x256x128xbf16, #tpu.memory_space<vmem>>, vector<1x256x128xbf16>
    %136 = vector.shape_cast %135 : vector<1x256x128xbf16> to vector<256x128xbf16>
    %cst_60 = arith.constant dense<0.000000e+00> : vector<128x128xf32>
    %137 = tpu.matmul %134, %136, %cst_60 {dimension_numbers = #tpu.dot_dimension_numbers<[1], [0], [0], [1], [0, 0, 1, 1], [], []>} : vector<128x256xbf16>, vector<256x128xbf16>, vector<128x128xf32> -> vector<128x128xf32>
    %c0_61 = arith.constant 0 : index
    %c0_62 = arith.constant 0 : index
    %c0_63 = arith.constant 0 : index
    %138 = vector.load %arg9[%c0_61, %c0_62, %c0_63] : memref<2x1x128xf32, #tpu.memory_space<vmem>>, vector<1x1x128xf32>
    %139 = vector.shape_cast %138 : vector<1x1x128xf32> to vector<1x128xf32>
    %140 = vector.broadcast %139 : vector<1x128xf32> to vector<128x128xf32>
    %141 = arith.addf %137, %140 : vector<128x128xf32>
    %142 = arith.addf %123, %141 : vector<128x128xf32>
    %c0_64 = arith.constant 0 : index
    %c0_65 = arith.constant 0 : index
    %c0_66 = arith.constant 0 : index
    %143 = vector.load %arg12[%c0_64, %c0_65, %c0_66] : memref<2x1x128xf32, #tpu.memory_space<vmem>>, vector<1x1x128xf32>
    %144 = vector.shape_cast %143 : vector<1x1x128xf32> to vector<1x128xf32>
    %c0_67 = arith.constant 0 : index
    %c0_68 = arith.constant 0 : index
    %c0_69 = arith.constant 0 : index
    %145 = vector.load %arg13[%c0_67, %c0_68, %c0_69] : memref<2x1x128xf32, #tpu.memory_space<vmem>>, vector<1x1x128xf32>
    %146 = vector.shape_cast %145 : vector<1x1x128xf32> to vector<1x128xf32>
    %cst_70 = arith.constant dense<0.000000e+00> : vector<128xf32>
    %147 = vector.multi_reduction <add>, %142, %cst_70 [1] : vector<128x128xf32> to vector<128xf32>
    %148 = vector.shape_cast %147 : vector<128xf32> to vector<128x1xf32>
    %cst_71 = arith.constant 1.280000e+02 : f32
    %149 = vector.broadcast %cst_71 : f32 to vector<128x1xf32>
    %150 = arith.divf %148, %149 : vector<128x1xf32>
    %151 = vector.broadcast %150 : vector<128x1xf32> to vector<128x128xf32>
    %152 = arith.subf %142, %151 : vector<128x128xf32>
    %153 = arith.mulf %152, %152 : vector<128x128xf32>
    %cst_72 = arith.constant dense<0.000000e+00> : vector<128xf32>
    %154 = vector.multi_reduction <add>, %153, %cst_72 [1] : vector<128x128xf32> to vector<128xf32>
    %155 = vector.shape_cast %154 : vector<128xf32> to vector<128x1xf32>
    %cst_73 = arith.constant 1.280000e+02 : f32
    %156 = vector.broadcast %cst_73 : f32 to vector<128x1xf32>
    %157 = arith.divf %155, %156 : vector<128x1xf32>
    %158 = vector.broadcast %150 : vector<128x1xf32> to vector<128x128xf32>
    %159 = arith.subf %142, %158 : vector<128x128xf32>
    %cst_74 = arith.constant 9.99999974E-6 : f32
    %160 = vector.broadcast %cst_74 : f32 to vector<128x1xf32>
    %161 = arith.addf %157, %160 : vector<128x1xf32>
    %162 = math.rsqrt %161 : vector<128x1xf32>
    %163 = vector.broadcast %162 : vector<128x1xf32> to vector<128x128xf32>
    %164 = arith.mulf %159, %163 : vector<128x128xf32>
    %165 = vector.broadcast %144 : vector<1x128xf32> to vector<128x128xf32>
    %166 = arith.mulf %164, %165 : vector<128x128xf32>
    %167 = vector.broadcast %146 : vector<1x128xf32> to vector<128x128xf32>
    %168 = arith.addf %166, %167 : vector<128x128xf32>
    %169 = arith.truncf %168 : vector<128x128xf32> to vector<128x128xbf16>
    %c1 = arith.constant 1 : index
    %c0_75 = arith.constant 0 : index
    %c0_76 = arith.constant 0 : index
    %170 = vector.load %arg2[%c1, %c0_75, %c0_76] : memref<2x128x384xbf16, #tpu.memory_space<vmem>>, vector<1x128x384xbf16>
    %171 = vector.shape_cast %170 : vector<1x128x384xbf16> to vector<128x384xbf16>
    %cst_77 = arith.constant dense<0.000000e+00> : vector<128x384xf32>
    %172 = tpu.matmul %169, %171, %cst_77 {dimension_numbers = #tpu.dot_dimension_numbers<[1], [0], [0], [1], [0, 0, 1, 1], [], []>} : vector<128x128xbf16>, vector<128x384xbf16>, vector<128x384xf32> -> vector<128x384xf32>
    %c1_78 = arith.constant 1 : index
    %c0_79 = arith.constant 0 : index
    %c0_80 = arith.constant 0 : index
    %173 = vector.load %arg3[%c1_78, %c0_79, %c0_80] : memref<2x1x384xf32, #tpu.memory_space<vmem>>, vector<1x1x384xf32>
    %174 = vector.shape_cast %173 : vector<1x1x384xf32> to vector<1x384xf32>
    %175 = vector.broadcast %174 : vector<1x384xf32> to vector<128x384xf32>
    %176 = arith.addf %172, %175 : vector<128x384xf32>
    %177 = vector.extract_strided_slice %176 {offsets = [0, 0], sizes = [128, 128], strides = [1, 1]} : vector<128x384xf32> to vector<128x128xf32>
    %178 = arith.truncf %177 : vector<128x128xf32> to vector<128x128xbf16>
    %179 = vector.extract_strided_slice %176 {offsets = [0, 128], sizes = [128, 128], strides = [1, 1]} : vector<128x384xf32> to vector<128x128xf32>
    %180 = tpu.transpose %179, [1, 0] : vector<128x128xf32> -> vector<128x128xf32>
    %181 = arith.truncf %180 : vector<128x128xf32> to vector<128x128xbf16>
    %182 = vector.extract_strided_slice %176 {offsets = [0, 256], sizes = [128, 128], strides = [1, 1]} : vector<128x384xf32> to vector<128x128xf32>
    %183 = arith.truncf %182 : vector<128x128xf32> to vector<128x128xbf16>
    %184 = vector.extract_strided_slice %178 {offsets = [0, 0], sizes = [128, 32], strides = [1, 1]} : vector<128x128xbf16> to vector<128x32xbf16>
    %185 = vector.extract_strided_slice %181 {offsets = [0, 0], sizes = [32, 128], strides = [1, 1]} : vector<128x128xbf16> to vector<32x128xbf16>
    %cst_81 = arith.constant dense<0.000000e+00> : vector<128x128xf32>
    %186 = tpu.matmul %184, %185, %cst_81 {dimension_numbers = #tpu.dot_dimension_numbers<[1], [0], [0], [1], [0, 0, 1, 1], [], []>} : vector<128x32xbf16>, vector<32x128xbf16>, vector<128x128xf32> -> vector<128x128xf32>
    %cst_82 = arith.constant dense<0xFF800000> : vector<128xf32>
    %187 = vector.multi_reduction <maximumf>, %186, %cst_82 [1] : vector<128x128xf32> to vector<128xf32>
    %188 = vector.shape_cast %187 : vector<128xf32> to vector<128x1xf32>
    %189 = vector.broadcast %188 : vector<128x1xf32> to vector<128x128xf32>
    %190 = arith.subf %186, %189 : vector<128x128xf32>
    %191 = math.exp %190 : vector<128x128xf32>
    %cst_83 = arith.constant dense<0.000000e+00> : vector<128xf32>
    %192 = vector.multi_reduction <add>, %191, %cst_83 [1] : vector<128x128xf32> to vector<128xf32>
    %193 = vector.shape_cast %192 : vector<128xf32> to vector<128x1xf32>
    %194 = arith.truncf %191 : vector<128x128xf32> to vector<128x128xbf16>
    %195 = vector.extract_strided_slice %183 {offsets = [0, 0], sizes = [128, 32], strides = [1, 1]} : vector<128x128xbf16> to vector<128x32xbf16>
    %cst_84 = arith.constant dense<0.000000e+00> : vector<128x32xf32>
    %196 = tpu.matmul %194, %195, %cst_84 {dimension_numbers = #tpu.dot_dimension_numbers<[1], [0], [0], [1], [0, 0, 1, 1], [], []>} : vector<128x128xbf16>, vector<128x32xbf16>, vector<128x32xf32> -> vector<128x32xf32>
    %197 = tpu.reciprocal %193 {approx = true} : vector<128x1xf32> -> vector<128x1xf32>
    %198 = vector.broadcast %197 : vector<128x1xf32> to vector<128x32xf32>
    %199 = arith.mulf %196, %198 : vector<128x32xf32>
    %200 = arith.truncf %199 : vector<128x32xf32> to vector<128x32xbf16>
    %c0_85 = arith.constant 0 : index
    %c0_86 = arith.constant 0 : index
    %201 = vector.load %arg17[%c0_85, %c0_86] : memref<128x128xbf16, #tpu.memory_space<vmem>>, vector<128x32xbf16>
    tpu.vector_store %arg17[%c0_85, %c0_86], %200 {strides = array<i32>} : memref<128x128xbf16, #tpu.memory_space<vmem>>, vector<128x32xbf16>,
    %202 = vector.extract_strided_slice %178 {offsets = [0, 32], sizes = [128, 32], strides = [1, 1]} : vector<128x128xbf16> to vector<128x32xbf16>
    %203 = vector.extract_strided_slice %181 {offsets = [32, 0], sizes = [32, 128], strides = [1, 1]} : vector<128x128xbf16> to vector<32x128xbf16>
    %cst_87 = arith.constant dense<0.000000e+00> : vector<128x128xf32>
    %204 = tpu.matmul %202, %203, %cst_87 {dimension_numbers = #tpu.dot_dimension_numbers<[1], [0], [0], [1], [0, 0, 1, 1], [], []>} : vector<128x32xbf16>, vector<32x128xbf16>, vector<128x128xf32> -> vector<128x128xf32>
    %cst_88 = arith.constant dense<0xFF800000> : vector<128xf32>
    %205 = vector.multi_reduction <maximumf>, %204, %cst_88 [1] : vector<128x128xf32> to vector<128xf32>
    %206 = vector.shape_cast %205 : vector<128xf32> to vector<128x1xf32>
    %207 = vector.broadcast %206 : vector<128x1xf32> to vector<128x128xf32>
    %208 = arith.subf %204, %207 : vector<128x128xf32>
    %209 = math.exp %208 : vector<128x128xf32>
    %cst_89 = arith.constant dense<0.000000e+00> : vector<128xf32>
    %210 = vector.multi_reduction <add>, %209, %cst_89 [1] : vector<128x128xf32> to vector<128xf32>
    %211 = vector.shape_cast %210 : vector<128xf32> to vector<128x1xf32>
    %212 = arith.truncf %209 : vector<128x128xf32> to vector<128x128xbf16>
    %213 = vector.extract_strided_slice %183 {offsets = [0, 32], sizes = [128, 32], strides = [1, 1]} : vector<128x128xbf16> to vector<128x32xbf16>
    %cst_90 = arith.constant dense<0.000000e+00> : vector<128x32xf32>
    %214 = tpu.matmul %212, %213, %cst_90 {dimension_numbers = #tpu.dot_dimension_numbers<[1], [0], [0], [1], [0, 0, 1, 1], [], []>} : vector<128x128xbf16>, vector<128x32xbf16>, vector<128x32xf32> -> vector<128x32xf32>
    %215 = tpu.reciprocal %211 {approx = true} : vector<128x1xf32> -> vector<128x1xf32>
    %216 = vector.broadcast %215 : vector<128x1xf32> to vector<128x32xf32>
    %217 = arith.mulf %214, %216 : vector<128x32xf32>
    %218 = arith.truncf %217 : vector<128x32xf32> to vector<128x32xbf16>
    %c0_91 = arith.constant 0 : index
    %c32_92 = arith.constant 32 : index
    %219 = vector.load %arg17[%c0_91, %c32_92] : memref<128x128xbf16, #tpu.memory_space<vmem>>, vector<128x32xbf16>
    tpu.vector_store %arg17[%c0_91, %c32_92], %218 {strides = array<i32>} : memref<128x128xbf16, #tpu.memory_space<vmem>>, vector<128x32xbf16>,
    %220 = vector.extract_strided_slice %178 {offsets = [0, 64], sizes = [128, 32], strides = [1, 1]} : vector<128x128xbf16> to vector<128x32xbf16>
    %221 = vector.extract_strided_slice %181 {offsets = [64, 0], sizes = [32, 128], strides = [1, 1]} : vector<128x128xbf16> to vector<32x128xbf16>
    %cst_93 = arith.constant dense<0.000000e+00> : vector<128x128xf32>
    %222 = tpu.matmul %220, %221, %cst_93 {dimension_numbers = #tpu.dot_dimension_numbers<[1], [0], [0], [1], [0, 0, 1, 1], [], []>} : vector<128x32xbf16>, vector<32x128xbf16>, vector<128x128xf32> -> vector<128x128xf32>
    %cst_94 = arith.constant dense<0xFF800000> : vector<128xf32>
    %223 = vector.multi_reduction <maximumf>, %222, %cst_94 [1] : vector<128x128xf32> to vector<128xf32>
    %224 = vector.shape_cast %223 : vector<128xf32> to vector<128x1xf32>
    %225 = vector.broadcast %224 : vector<128x1xf32> to vector<128x128xf32>
    %226 = arith.subf %222, %225 : vector<128x128xf32>
    %227 = math.exp %226 : vector<128x128xf32>
    %cst_95 = arith.constant dense<0.000000e+00> : vector<128xf32>
    %228 = vector.multi_reduction <add>, %227, %cst_95 [1] : vector<128x128xf32> to vector<128xf32>
    %229 = vector.shape_cast %228 : vector<128xf32> to vector<128x1xf32>
    %230 = arith.truncf %227 : vector<128x128xf32> to vector<128x128xbf16>
    %231 = vector.extract_strided_slice %183 {offsets = [0, 64], sizes = [128, 32], strides = [1, 1]} : vector<128x128xbf16> to vector<128x32xbf16>
    %cst_96 = arith.constant dense<0.000000e+00> : vector<128x32xf32>
    %232 = tpu.matmul %230, %231, %cst_96 {dimension_numbers = #tpu.dot_dimension_numbers<[1], [0], [0], [1], [0, 0, 1, 1], [], []>} : vector<128x128xbf16>, vector<128x32xbf16>, vector<128x32xf32> -> vector<128x32xf32>
    %233 = tpu.reciprocal %229 {approx = true} : vector<128x1xf32> -> vector<128x1xf32>
    %234 = vector.broadcast %233 : vector<128x1xf32> to vector<128x32xf32>
    %235 = arith.mulf %232, %234 : vector<128x32xf32>
    %236 = arith.truncf %235 : vector<128x32xf32> to vector<128x32xbf16>
    %c0_97 = arith.constant 0 : index
    %c64_98 = arith.constant 64 : index
    %237 = vector.load %arg17[%c0_97, %c64_98] : memref<128x128xbf16, #tpu.memory_space<vmem>>, vector<128x32xbf16>
    tpu.vector_store %arg17[%c0_97, %c64_98], %236 {strides = array<i32>} : memref<128x128xbf16, #tpu.memory_space<vmem>>, vector<128x32xbf16>,
    %238 = vector.extract_strided_slice %178 {offsets = [0, 96], sizes = [128, 32], strides = [1, 1]} : vector<128x128xbf16> to vector<128x32xbf16>
    %239 = vector.extract_strided_slice %181 {offsets = [96, 0], sizes = [32, 128], strides = [1, 1]} : vector<128x128xbf16> to vector<32x128xbf16>
    %cst_99 = arith.constant dense<0.000000e+00> : vector<128x128xf32>
    %240 = tpu.matmul %238, %239, %cst_99 {dimension_numbers = #tpu.dot_dimension_numbers<[1], [0], [0], [1], [0, 0, 1, 1], [], []>} : vector<128x32xbf16>, vector<32x128xbf16>, vector<128x128xf32> -> vector<128x128xf32>
    %cst_100 = arith.constant dense<0xFF800000> : vector<128xf32>
    %241 = vector.multi_reduction <maximumf>, %240, %cst_100 [1] : vector<128x128xf32> to vector<128xf32>
    %242 = vector.shape_cast %241 : vector<128xf32> to vector<128x1xf32>
    %243 = vector.broadcast %242 : vector<128x1xf32> to vector<128x128xf32>
    %244 = arith.subf %240, %243 : vector<128x128xf32>
    %245 = math.exp %244 : vector<128x128xf32>
    %cst_101 = arith.constant dense<0.000000e+00> : vector<128xf32>
    %246 = vector.multi_reduction <add>, %245, %cst_101 [1] : vector<128x128xf32> to vector<128xf32>
    %247 = vector.shape_cast %246 : vector<128xf32> to vector<128x1xf32>
    %248 = arith.truncf %245 : vector<128x128xf32> to vector<128x128xbf16>
    %249 = vector.extract_strided_slice %183 {offsets = [0, 96], sizes = [128, 32], strides = [1, 1]} : vector<128x128xbf16> to vector<128x32xbf16>
    %cst_102 = arith.constant dense<0.000000e+00> : vector<128x32xf32>
    %250 = tpu.matmul %248, %249, %cst_102 {dimension_numbers = #tpu.dot_dimension_numbers<[1], [0], [0], [1], [0, 0, 1, 1], [], []>} : vector<128x128xbf16>, vector<128x32xbf16>, vector<128x32xf32> -> vector<128x32xf32>
    %251 = tpu.reciprocal %247 {approx = true} : vector<128x1xf32> -> vector<128x1xf32>
    %252 = vector.broadcast %251 : vector<128x1xf32> to vector<128x32xf32>
    %253 = arith.mulf %250, %252 : vector<128x32xf32>
    %254 = arith.truncf %253 : vector<128x32xf32> to vector<128x32xbf16>
    %c0_103 = arith.constant 0 : index
    %c96_104 = arith.constant 96 : index
    %255 = vector.load %arg17[%c0_103, %c96_104] : memref<128x128xbf16, #tpu.memory_space<vmem>>, vector<128x32xbf16>
    tpu.vector_store %arg17[%c0_103, %c96_104], %254 {strides = array<i32>} : memref<128x128xbf16, #tpu.memory_space<vmem>>, vector<128x32xbf16>,
    %c0_105 = arith.constant 0 : index
    %c0_106 = arith.constant 0 : index
    %256 = vector.load %arg17[%c0_105, %c0_106] : memref<128x128xbf16, #tpu.memory_space<vmem>>, vector<128x128xbf16>
    %c1_107 = arith.constant 1 : index
    %c0_108 = arith.constant 0 : index
    %c0_109 = arith.constant 0 : index
    %257 = vector.load %arg4[%c1_107, %c0_108, %c0_109] : memref<2x128x128xbf16, #tpu.memory_space<vmem>>, vector<1x128x128xbf16>
    %258 = vector.shape_cast %257 : vector<1x128x128xbf16> to vector<128x128xbf16>
    %cst_110 = arith.constant dense<0.000000e+00> : vector<128x128xf32>
    %259 = tpu.matmul %256, %258, %cst_110 {dimension_numbers = #tpu.dot_dimension_numbers<[1], [0], [0], [1], [0, 0, 1, 1], [], []>} : vector<128x128xbf16>, vector<128x128xbf16>, vector<128x128xf32> -> vector<128x128xf32>
    %c1_111 = arith.constant 1 : index
    %c0_112 = arith.constant 0 : index
    %c0_113 = arith.constant 0 : index
    %260 = vector.load %arg5[%c1_111, %c0_112, %c0_113] : memref<2x1x128xf32, #tpu.memory_space<vmem>>, vector<1x1x128xf32>
    %261 = vector.shape_cast %260 : vector<1x1x128xf32> to vector<1x128xf32>
    %262 = vector.broadcast %261 : vector<1x128xf32> to vector<128x128xf32>
    %263 = arith.addf %259, %262 : vector<128x128xf32>
    %264 = arith.addf %168, %263 : vector<128x128xf32>
    %c1_114 = arith.constant 1 : index
    %c0_115 = arith.constant 0 : index
    %c0_116 = arith.constant 0 : index
    %265 = vector.load %arg10[%c1_114, %c0_115, %c0_116] : memref<2x1x128xf32, #tpu.memory_space<vmem>>, vector<1x1x128xf32>
    %266 = vector.shape_cast %265 : vector<1x1x128xf32> to vector<1x128xf32>
    %c1_117 = arith.constant 1 : index
    %c0_118 = arith.constant 0 : index
    %c0_119 = arith.constant 0 : index
    %267 = vector.load %arg11[%c1_117, %c0_118, %c0_119] : memref<2x1x128xf32, #tpu.memory_space<vmem>>, vector<1x1x128xf32>
    %268 = vector.shape_cast %267 : vector<1x1x128xf32> to vector<1x128xf32>
    %cst_120 = arith.constant dense<0.000000e+00> : vector<128xf32>
    %269 = vector.multi_reduction <add>, %264, %cst_120 [1] : vector<128x128xf32> to vector<128xf32>
    %270 = vector.shape_cast %269 : vector<128xf32> to vector<128x1xf32>
    %cst_121 = arith.constant 1.280000e+02 : f32
    %271 = vector.broadcast %cst_121 : f32 to vector<128x1xf32>
    %272 = arith.divf %270, %271 : vector<128x1xf32>
    %273 = vector.broadcast %272 : vector<128x1xf32> to vector<128x128xf32>
    %274 = arith.subf %264, %273 : vector<128x128xf32>
    %275 = arith.mulf %274, %274 : vector<128x128xf32>
    %cst_122 = arith.constant dense<0.000000e+00> : vector<128xf32>
    %276 = vector.multi_reduction <add>, %275, %cst_122 [1] : vector<128x128xf32> to vector<128xf32>
    %277 = vector.shape_cast %276 : vector<128xf32> to vector<128x1xf32>
    %cst_123 = arith.constant 1.280000e+02 : f32
    %278 = vector.broadcast %cst_123 : f32 to vector<128x1xf32>
    %279 = arith.divf %277, %278 : vector<128x1xf32>
    %280 = vector.broadcast %272 : vector<128x1xf32> to vector<128x128xf32>
    %281 = arith.subf %264, %280 : vector<128x128xf32>
    %cst_124 = arith.constant 9.99999974E-6 : f32
    %282 = vector.broadcast %cst_124 : f32 to vector<128x1xf32>
    %283 = arith.addf %279, %282 : vector<128x1xf32>
    %284 = math.rsqrt %283 : vector<128x1xf32>
    %285 = vector.broadcast %284 : vector<128x1xf32> to vector<128x128xf32>
    %286 = arith.mulf %281, %285 : vector<128x128xf32>
    %287 = vector.broadcast %266 : vector<1x128xf32> to vector<128x128xf32>
    %288 = arith.mulf %286, %287 : vector<128x128xf32>
    %289 = vector.broadcast %268 : vector<1x128xf32> to vector<128x128xf32>
    %290 = arith.addf %288, %289 : vector<128x128xf32>
    %291 = arith.truncf %290 : vector<128x128xf32> to vector<128x128xbf16>
    %c1_125 = arith.constant 1 : index
    %c0_126 = arith.constant 0 : index
    %c0_127 = arith.constant 0 : index
    %292 = vector.load %arg6[%c1_125, %c0_126, %c0_127] : memref<2x128x256xbf16, #tpu.memory_space<vmem>>, vector<1x128x256xbf16>
    %293 = vector.shape_cast %292 : vector<1x128x256xbf16> to vector<128x256xbf16>
    %cst_128 = arith.constant dense<0.000000e+00> : vector<128x256xf32>
    %294 = tpu.matmul %291, %293, %cst_128 {dimension_numbers = #tpu.dot_dimension_numbers<[1], [0], [0], [1], [0, 0, 1, 1], [], []>} : vector<128x128xbf16>, vector<128x256xbf16>, vector<128x256xf32> -> vector<128x256xf32>
    %c1_129 = arith.constant 1 : index
    %c0_130 = arith.constant 0 : index
    %c0_131 = arith.constant 0 : index
    %295 = vector.load %arg7[%c1_129, %c0_130, %c0_131] : memref<2x1x256xf32, #tpu.memory_space<vmem>>, vector<1x1x256xf32>
    %296 = vector.shape_cast %295 : vector<1x1x256xf32> to vector<1x256xf32>
    %297 = vector.broadcast %296 : vector<1x256xf32> to vector<128x256xf32>
    %298 = arith.addf %294, %297 : vector<128x256xf32>
    %cst_132 = arith.constant 0.000000e+00 : f32
    %299 = vector.broadcast %cst_132 : f32 to vector<128x256xf32>
    %300 = arith.maximumf %298, %299 : vector<128x256xf32>
    %301 = arith.truncf %300 : vector<128x256xf32> to vector<128x256xbf16>
    %c1_133 = arith.constant 1 : index
    %c0_134 = arith.constant 0 : index
    %c0_135 = arith.constant 0 : index
    %302 = vector.load %arg8[%c1_133, %c0_134, %c0_135] : memref<2x256x128xbf16, #tpu.memory_space<vmem>>, vector<1x256x128xbf16>
    %303 = vector.shape_cast %302 : vector<1x256x128xbf16> to vector<256x128xbf16>
    %cst_136 = arith.constant dense<0.000000e+00> : vector<128x128xf32>
    %304 = tpu.matmul %301, %303, %cst_136 {dimension_numbers = #tpu.dot_dimension_numbers<[1], [0], [0], [1], [0, 0, 1, 1], [], []>} : vector<128x256xbf16>, vector<256x128xbf16>, vector<128x128xf32> -> vector<128x128xf32>
    %c1_137 = arith.constant 1 : index
    %c0_138 = arith.constant 0 : index
    %c0_139 = arith.constant 0 : index
    %305 = vector.load %arg9[%c1_137, %c0_138, %c0_139] : memref<2x1x128xf32, #tpu.memory_space<vmem>>, vector<1x1x128xf32>
    %306 = vector.shape_cast %305 : vector<1x1x128xf32> to vector<1x128xf32>
    %307 = vector.broadcast %306 : vector<1x128xf32> to vector<128x128xf32>
    %308 = arith.addf %304, %307 : vector<128x128xf32>
    %309 = arith.addf %290, %308 : vector<128x128xf32>
    %c1_140 = arith.constant 1 : index
    %c0_141 = arith.constant 0 : index
    %c0_142 = arith.constant 0 : index
    %310 = vector.load %arg12[%c1_140, %c0_141, %c0_142] : memref<2x1x128xf32, #tpu.memory_space<vmem>>, vector<1x1x128xf32>
    %311 = vector.shape_cast %310 : vector<1x1x128xf32> to vector<1x128xf32>
    %c1_143 = arith.constant 1 : index
    %c0_144 = arith.constant 0 : index
    %c0_145 = arith.constant 0 : index
    %312 = vector.load %arg13[%c1_143, %c0_144, %c0_145] : memref<2x1x128xf32, #tpu.memory_space<vmem>>, vector<1x1x128xf32>
    %313 = vector.shape_cast %312 : vector<1x1x128xf32> to vector<1x128xf32>
    %cst_146 = arith.constant dense<0.000000e+00> : vector<128xf32>
    %314 = vector.multi_reduction <add>, %309, %cst_146 [1] : vector<128x128xf32> to vector<128xf32>
    %315 = vector.shape_cast %314 : vector<128xf32> to vector<128x1xf32>
    %cst_147 = arith.constant 1.280000e+02 : f32
    %316 = vector.broadcast %cst_147 : f32 to vector<128x1xf32>
    %317 = arith.divf %315, %316 : vector<128x1xf32>
    %318 = vector.broadcast %317 : vector<128x1xf32> to vector<128x128xf32>
    %319 = arith.subf %309, %318 : vector<128x128xf32>
    %320 = arith.mulf %319, %319 : vector<128x128xf32>
    %cst_148 = arith.constant dense<0.000000e+00> : vector<128xf32>
    %321 = vector.multi_reduction <add>, %320, %cst_148 [1] : vector<128x128xf32> to vector<128xf32>
    %322 = vector.shape_cast %321 : vector<128xf32> to vector<128x1xf32>
    %cst_149 = arith.constant 1.280000e+02 : f32
    %323 = vector.broadcast %cst_149 : f32 to vector<128x1xf32>
    %324 = arith.divf %322, %323 : vector<128x1xf32>
    %325 = vector.broadcast %317 : vector<128x1xf32> to vector<128x128xf32>
    %326 = arith.subf %309, %325 : vector<128x128xf32>
    %cst_150 = arith.constant 9.99999974E-6 : f32
    %327 = vector.broadcast %cst_150 : f32 to vector<128x1xf32>
    %328 = arith.addf %324, %327 : vector<128x1xf32>
    %329 = math.rsqrt %328 : vector<128x1xf32>
    %330 = vector.broadcast %329 : vector<128x1xf32> to vector<128x128xf32>
    %331 = arith.mulf %326, %330 : vector<128x128xf32>
    %332 = vector.broadcast %311 : vector<1x128xf32> to vector<128x128xf32>
    %333 = arith.mulf %331, %332 : vector<128x128xf32>
    %334 = vector.broadcast %313 : vector<1x128xf32> to vector<128x128xf32>
    %335 = arith.addf %333, %334 : vector<128x128xf32>
    %c0_151 = arith.constant 0 : index
    %c0_152 = arith.constant 0 : index
    %336 = vector.load %arg14[%c0_151, %c0_152] : memref<1x128xf32, #tpu.memory_space<vmem>>, vector<1x128xf32>
    %c0_153 = arith.constant 0 : index
    %c0_154 = arith.constant 0 : index
    %337 = vector.load %arg15[%c0_153, %c0_154] : memref<1x128xf32, #tpu.memory_space<vmem>>, vector<1x128xf32>
    %cst_155 = arith.constant dense<0.000000e+00> : vector<128xf32>
    %338 = vector.multi_reduction <add>, %335, %cst_155 [1] : vector<128x128xf32> to vector<128xf32>
    %339 = vector.shape_cast %338 : vector<128xf32> to vector<128x1xf32>
    %cst_156 = arith.constant 1.280000e+02 : f32
    %340 = vector.broadcast %cst_156 : f32 to vector<128x1xf32>
    %341 = arith.divf %339, %340 : vector<128x1xf32>
    %342 = vector.broadcast %341 : vector<128x1xf32> to vector<128x128xf32>
    %343 = arith.subf %335, %342 : vector<128x128xf32>
    %344 = arith.mulf %343, %343 : vector<128x128xf32>
    %cst_157 = arith.constant dense<0.000000e+00> : vector<128xf32>
    %345 = vector.multi_reduction <add>, %344, %cst_157 [1] : vector<128x128xf32> to vector<128xf32>
    %346 = vector.shape_cast %345 : vector<128xf32> to vector<128x1xf32>
    %cst_158 = arith.constant 1.280000e+02 : f32
    %347 = vector.broadcast %cst_158 : f32 to vector<128x1xf32>
    %348 = arith.divf %346, %347 : vector<128x1xf32>
    %349 = vector.broadcast %341 : vector<128x1xf32> to vector<128x128xf32>
    %350 = arith.subf %335, %349 : vector<128x128xf32>
    %cst_159 = arith.constant 9.99999974E-6 : f32
    %351 = vector.broadcast %cst_159 : f32 to vector<128x1xf32>
    %352 = arith.addf %348, %351 : vector<128x1xf32>
    %353 = math.rsqrt %352 : vector<128x1xf32>
    %354 = vector.broadcast %353 : vector<128x1xf32> to vector<128x128xf32>
    %355 = arith.mulf %350, %354 : vector<128x128xf32>
    %356 = vector.broadcast %336 : vector<1x128xf32> to vector<128x128xf32>
    %357 = arith.mulf %355, %356 : vector<128x128xf32>
    %358 = vector.broadcast %337 : vector<1x128xf32> to vector<128x128xf32>
    %359 = arith.addf %357, %358 : vector<128x128xf32>
    %c0_160 = arith.constant 0 : index
    %c0_161 = arith.constant 0 : index
    %c0_162 = arith.constant 0 : index
    %360 = vector.load %arg16[%c0_160, %c0_161, %c0_162] : memref<1x128x128xf32, #tpu.memory_space<vmem>>, vector<1x128x128xf32>
    %361 = vector.shape_cast %360 : vector<1x128x128xf32> to vector<128x128xf32>
    %362 = vector.shape_cast %359 : vector<128x128xf32> to vector<1x128x128xf32>
    tpu.vector_store %arg16[%c0_160, %c0_161, %c0_162], %362 {strides = array<i32>} : memref<1x128x128xf32, #tpu.memory_space<vmem>>, vector<1x128x128xf32>,
    return
  }
  func.func @transform_0(%arg0: i32) -> (i32, i32, i32) {
    %c0_i32 = arith.constant 0 : i32
    %c0_i32_0 = arith.constant 0 : i32
    %c0_i32_1 = arith.constant 0 : i32
    return %arg0, %c0_i32, %c0_i32_0 : i32, i32, i32
  }
  func.func @transform_1(%arg0: i32) -> (i32, i32, i32) {
    %c0_i32 = arith.constant 0 : i32
    %c0_i32_0 = arith.constant 0 : i32
    %c0_i32_1 = arith.constant 0 : i32
    %c0_i32_2 = arith.constant 0 : i32
    return %c0_i32, %c0_i32_0, %c0_i32_1 : i32, i32, i32
  }
  func.func @transform_2(%arg0: i32) -> (i32, i32, i32) {
    %c0_i32 = arith.constant 0 : i32
    %c0_i32_0 = arith.constant 0 : i32
    %c0_i32_1 = arith.constant 0 : i32
    %c0_i32_2 = arith.constant 0 : i32
    return %c0_i32, %c0_i32_0, %c0_i32_1 : i32, i32, i32
  }
  func.func @transform_3(%arg0: i32) -> (i32, i32, i32) {
    %c0_i32 = arith.constant 0 : i32
    %c0_i32_0 = arith.constant 0 : i32
    %c0_i32_1 = arith.constant 0 : i32
    %c0_i32_2 = arith.constant 0 : i32
    return %c0_i32, %c0_i32_0, %c0_i32_1 : i32, i32, i32
  }
  func.func @transform_4(%arg0: i32) -> (i32, i32, i32) {
    %c0_i32 = arith.constant 0 : i32
    %c0_i32_0 = arith.constant 0 : i32
    %c0_i32_1 = arith.constant 0 : i32
    %c0_i32_2 = arith.constant 0 : i32
    return %c0_i32, %c0_i32_0, %c0_i32_1 : i32, i32, i32
  }
  func.func @transform_5(%arg0: i32) -> (i32, i32, i32) {
    %c0_i32 = arith.constant 0 : i32
    %c0_i32_0 = arith.constant 0 : i32
    %c0_i32_1 = arith.constant 0 : i32
    %c0_i32_2 = arith.constant 0 : i32
    return %c0_i32, %c0_i32_0, %c0_i32_1 : i32, i32, i32
  }
  func.func @transform_6(%arg0: i32) -> (i32, i32, i32) {
    %c0_i32 = arith.constant 0 : i32
    %c0_i32_0 = arith.constant 0 : i32
    %c0_i32_1 = arith.constant 0 : i32
    %c0_i32_2 = arith.constant 0 : i32
    return %c0_i32, %c0_i32_0, %c0_i32_1 : i32, i32, i32
  }
  func.func @transform_7(%arg0: i32) -> (i32, i32, i32) {
    %c0_i32 = arith.constant 0 : i32
    %c0_i32_0 = arith.constant 0 : i32
    %c0_i32_1 = arith.constant 0 : i32
    %c0_i32_2 = arith.constant 0 : i32
    return %c0_i32, %c0_i32_0, %c0_i32_1 : i32, i32, i32
  }
  func.func @transform_8(%arg0: i32) -> (i32, i32, i32) {
    %c0_i32 = arith.constant 0 : i32
    %c0_i32_0 = arith.constant 0 : i32
    %c0_i32_1 = arith.constant 0 : i32
    %c0_i32_2 = arith.constant 0 : i32
    return %c0_i32, %c0_i32_0, %c0_i32_1 : i32, i32, i32
  }
  func.func @transform_9(%arg0: i32) -> (i32, i32, i32) {
    %c0_i32 = arith.constant 0 : i32
    %c0_i32_0 = arith.constant 0 : i32
    %c0_i32_1 = arith.constant 0 : i32
    %c0_i32_2 = arith.constant 0 : i32
    return %c0_i32, %c0_i32_0, %c0_i32_1 : i32, i32, i32
  }
  func.func @transform_10(%arg0: i32) -> (i32, i32, i32) {
    %c0_i32 = arith.constant 0 : i32
    %c0_i32_0 = arith.constant 0 : i32
    %c0_i32_1 = arith.constant 0 : i32
    %c0_i32_2 = arith.constant 0 : i32
    return %c0_i32, %c0_i32_0, %c0_i32_1 : i32, i32, i32
  }
  func.func @transform_11(%arg0: i32) -> (i32, i32, i32) {
    %c0_i32 = arith.constant 0 : i32
    %c0_i32_0 = arith.constant 0 : i32
    %c0_i32_1 = arith.constant 0 : i32
    %c0_i32_2 = arith.constant 0 : i32
    return %c0_i32, %c0_i32_0, %c0_i32_1 : i32, i32, i32
  }
  func.func @transform_12(%arg0: i32) -> (i32, i32, i32) {
    %c0_i32 = arith.constant 0 : i32
    %c0_i32_0 = arith.constant 0 : i32
    %c0_i32_1 = arith.constant 0 : i32
    %c0_i32_2 = arith.constant 0 : i32
    return %c0_i32, %c0_i32_0, %c0_i32_1 : i32, i32, i32
  }
  func.func @transform_13(%arg0: i32) -> (i32, i32) {
    %c0_i32 = arith.constant 0 : i32
    %c0_i32_0 = arith.constant 0 : i32
    %c0_i32_1 = arith.constant 0 : i32
    return %c0_i32, %c0_i32_0 : i32, i32
  }
  func.func @transform_14(%arg0: i32) -> (i32, i32) {
    %c0_i32 = arith.constant 0 : i32
    %c0_i32_0 = arith.constant 0 : i32
    %c0_i32_1 = arith.constant 0 : i32
    return %c0_i32, %c0_i32_0 : i32, i32
  }
  func.func @transform_15(%arg0: i32) -> (i32, i32, i32) {
    %c0_i32 = arith.constant 0 : i32
    %c0_i32_0 = arith.constant 0 : i32
    %c0_i32_1 = arith.constant 0 : i32
    return %arg0, %c0_i32, %c0_i32_0 : i32, i32, i32
  }
}

</mosaic_0001>

<bundles_post_ra>
// kernel: tpu_custom_call.1
= control target key start
LH: loop header
LB: loop body
LE: loop exit
PB: predicated region body
PF: predicated region fallthrough
CT: control target
= control target key end

     0   :  { %s14707_s0 = inlined_call_operand.hbm [shape: f32[2,128,128], index: 0, kind: input, shape index: {}]   ;;  %s14708_s1 = inlined_call_operand.hbm [shape: bf16[2,128,384], index: 1, kind: input, shape index: {}]   ;;  %s14709_s2 = inlined_call_operand.hbm [shape: f32[2,1,384], index: 2, kind: input, shape index: {}]   ;;  %s14710_s3 = inlined_call_operand.hbm [shape: bf16[2,128,128], index: 3, kind: input, shape index: {}]   ;;  %s14711_s4 = inlined_call_operand.vmem [shape: f32[2,1,128], index: 4, kind: input, shape index: {}]   ;;  %s14712_s5 = inlined_call_operand.hbm [shape: bf16[2,128,256], index: 5, kind: input, shape index: {}]   ;;  %s14713_s6 = inlined_call_operand.vmem [shape: f32[2,1,256], index: 6, kind: input, shape index: {}]   ;;  %s14714_s7 = inlined_call_operand.hbm [shape: bf16[2,256,128], index: 7, kind: input, shape index: {}]   ;;  %s14715_s8 = inlined_call_operand.vmem [shape: f32[2,1,128], index: 8, kind: input, shape index: {}]   ;;  %s14716_s9 = inlined_call_operand.vmem [shape: f32[2,1,128], index: 9, kind: input, shape index: {}]   ;;  %s14717_s10 = inlined_call_operand.vmem [shape: f32[2,1,128], index: 10, kind: input, shape index: {}]   ;;  %s14718_s11 = inlined_call_operand.vmem [shape: f32[2,1,128], index: 11, kind: input, shape index: {}]   ;;  %s14719_s12 = inlined_call_operand.vmem [shape: f32[2,1,128], index: 12, kind: input, shape index: {}]   ;;  %s14720_s13 = inlined_call_operand.vmem [shape: f32[1,128], index: 13, kind: input, shape index: {}]   ;;  %s14721_s14 = inlined_call_operand.vmem [shape: f32[1,128], index: 14, kind: input, shape index: {}]   ;;  %s14722_s15 = inlined_call_operand.hbm [shape: f32[2,128,128], index: 15, kind: output, shape index: {}]  }
   0x1   :  { %14812 = sst [smem:[#allocation67_spill]] %s14708_s1 }
   0x2   :  { %14813 = sst [smem:[#allocation68_spill]] %s14709_s2 }
   0x3   :  { %14814 = sst [smem:[#allocation69_spill]] %s14710_s3 }
   0x4   :  { %14815 = sst [smem:[#allocation70_spill]] %s14712_s5 }
   0x5   :  { %14816 = sst [smem:[#allocation71_spill]] %s14714_s7 }
   0x6   :  { %14817 = sst [smem:[#allocation72_spill]] %s14720_s13 }
   0x7   :  { %14818 = sst [smem:[#allocation73_spill]] %s14721_s14 }
   0x8   :  { %14819 = sst [smem:[#allocation74_spill]] %s14722_s15 }
   0x9   :  { %20 = vsyncpa [#allocation4], 0 }
   0xa   :  { %22 = vsyncpa [#allocation4 + $0x1], 0 }
   0xb   :  { %23 = vsyncpa [#allocation7], 0 }
   0xc   :  { %24 = vsyncpa [#allocation10], 0 }
   0xd   :  { %25 = vsyncpa [#allocation13], 0 }
   0xe   :  { %26 = vsyncpa [#allocation5], 0 }
   0xf   :  { %28 = vsyncpa [#allocation5 + $0x1], 0  ;;  %s11161_s18 = smov 0   ;;  %s11163_s19 = smov 0  }
  0x10   :  { %s11165_s20 = smov 0   ;;  %s11167_s21 = smov 0  }
  0x11 LB: > { %s11060_s22 = smov [#allocation6]   ;;  %s11182_s24 = sadd.s32 4294967295, %s11058_s21   ;;  %s11058_s21 = sphi %s11167_s21, %s15042_s21   ;;  %s11054_s20 = sphi %s11165_s20, %s15041_s20   ;;  %s11050_s19 = sphi %s11163_s19, %s15040_s19   ;;  %s11046_s18 = sphi %s11161_s18, %s15039_s18  }
  0x12   : > { %s397_s23 = sshll.u32 %s11060_s22, 4  ;;  %p8395_p0 = scmp.ge.s32.totalorder %s11058_s21, 1  ;;  %s398_s23 = int_to_ptr.vmem [resolvable:$true] %s397_s23 }
  0x13   : > { %p14727_p1 = scmp.eq.s32.totalorder %s11182_s24, 0  ;;  %p385_p2 = scmp.lt.s32.totalorder %s11058_s21, 3 }
  0x14   : > { %s11061_s26 = smov [#allocation9]   ;;  %s11062_s29 = smov [#allocation8]  }
  0x15   : > { %p11187_p3 = pnand %p8395_p0, %p385_p2  ;;  %s423_s27 = sshll.u32 %s11061_s26, 4  ;;  %s11200_s27 = int_to_ptr.vmem [resolvable:$true] %s423_s27 }
  0x16   : > { %s11202_s30 = sshll.u32 %s11062_s29, 4  ;;  %s10835_s17 = scalar_lea.vmem %s398_s23, 6144  ;;  %s411_s30 = int_to_ptr.vmem [resolvable:$true] %s11202_s30 }
  0x17   : > { %s14820_s25 = scalar_select %p11187_p3, 1, 0 }
  0x18   : > { %p9873_p5 = pneg %p11187_p3  ;;  %p10836_p8 = scmp.ne.s32.totalorder %s398_s23, %s10835_s17 }
  0x19   : > { %p10843_p11 = scmp.lt.s32.totalorder %s398_s23, %s398_s23  ;;  %p10844_p12 = scmp.lt.s32.totalorder %s10835_s17, %s10835_s17 }
  0x1a   : > { %p11196_p6 = pnand %p9873_p5, %p14727_p1 }
  0x1b   : > { %p10845_p13 = por %p10844_p12, %p10843_p11 }
  0x1c   : > { %p11206_p7 = pneg %p11196_p6 }
  0x1e   : > { %p10838_p9 = pnand %p10836_p8, %p11206_p7 }
  0x20   : > { %p10839_p10 = pneg %p10838_p9 }
  0x22   : > { %p10846_p0 = pnand %p10845_p13, %p10839_p10 }
  0x24   : > { %10849 = shalt.err (!%p10846_p0)
}
  0x25   : > { %s11063_s22 = smov 192   ;;  %s11064_s26 = smov 12  }
  0x26   : > { %s14823_s1 = sld [smem:[#allocation67_spill]]  ;;  %s10861_s14 = scalar_lea.vmem %s11200_s27, 2048 }
  0x27   : > { %p10862_p2 = scmp.ne.s32.totalorder %s11200_s27, %s10861_s14  ;;  %p10869_p9 = scmp.lt.s32.totalorder %s11200_s27, %s11200_s27 }
  0x28   : > { %p10870_p10 = scmp.lt.s32.totalorder %s10861_s14, %s10861_s14 }
  0x29   : > { %p10864_p5 = pnand %p10862_p2, %p11206_p7 }
  0x2a   : > { %p10871_p11 = por %p10870_p10, %p10869_p9 }
  0x2b   : > { %p10865_p8 = pneg %p10864_p5 }
  0x2c   : > { %9876 = dma.hbm_to_vmem [thread:$0]  (!%p11196_p6), %s14823_s1, 6144, %s398_s23, [#allocation7], %s11063_s22, %s11063_s22, %s11064_s26  }
  0x2d   : > { %p10872_p12 = pnand %p10871_p11, %p10865_p8 }
  0x2f   : > { %10875 = shalt.err (!%p10872_p12)
}
  0x30   : > { %s14724_s17 = smov 64   ;;  %s11066_s13 = smov 4  }
  0x31   : > { %s14824_s3 = sld [smem:[#allocation69_spill]]  ;;  %s10887_s22 = scalar_lea.vmem %s411_s30, 96 }
  0x32   : > { %p10888_p13 = scmp.ne.s32.totalorder %s411_s30, %s10887_s22  ;;  %p10895_p5 = scmp.lt.s32.totalorder %s411_s30, %s411_s30 }
  0x33   : > { %p10896_p8 = scmp.lt.s32.totalorder %s10887_s22, %s10887_s22 }
  0x34   : > { %p10890_p0 = pnand %p10888_p13, %p11206_p7 }
  0x35   : > { %p10897_p9 = por %p10896_p8, %p10895_p5 }
  0x36   : > { %p10891_p2 = pneg %p10890_p0 }
  0x37   : > { %9882 = dma.hbm_to_vmem [thread:$0]  (!%p11196_p6), %s14824_s3, 2048, %s11200_s27, [#allocation10], %s14724_s17, %s14724_s17, %s11066_s13  }
  0x38   : > { %p10898_p10 = pnand %p10897_p9, %p10891_p2 }
  0x3a   : > { %10901 = shalt.err (!%p10898_p10)
}
  0x3b   : > { %s11067_s14 = smov 48   ;;  %s11068_s26 = smov 3  }
  0x3c   : > { %s14825_s2 = sld [smem:[#allocation68_spill]]  ;;  %s11069_s27 = smov [#allocation11]  }
  0x3d   : > { %s439_s15 = sshll.u32 %s11069_s27, 4  ;;  %s440_s15 = int_to_ptr.vmem [resolvable:$true] %s439_s15 }
  0x3e   : > { %s10913_s23 = scalar_lea.vmem %s440_s15, 4096  ;;  %p10921_p0 = scmp.lt.s32.totalorder %s440_s15, %s440_s15 }
  0x3f   : > { %p10914_p11 = scmp.ne.s32.totalorder %s440_s15, %s10913_s23  ;;  %p10922_p2 = scmp.lt.s32.totalorder %s10913_s23, %s10913_s23 }
  0x41   : > { %p10916_p12 = pnand %p10914_p11, %p11206_p7  ;;  %p10923_p5 = por %p10922_p2, %p10921_p0 }
  0x42   : > { %9879 = dma.hbm_to_vmem [thread:$0]  (!%p11196_p6), %s14825_s2, 96, %s411_s30, [#allocation7], %s11067_s14, %s11067_s14, %s11068_s26  }
  0x43   : > { %p10917_p13 = pneg %p10916_p12 }
  0x45   : > { %p10924_p8 = pnand %p10923_p5, %p10917_p13 }
  0x47   : > { %10927 = shalt.err (!%p10924_p8)
}
  0x48   : > { %s14725_s22 = smov 128   ;;  %s14726_s17 = smov 8  }
  0x49   : > { %s14826_s5 = sld [smem:[#allocation70_spill]]  ;;  %s11072_s14 = smov [#allocation12]  }
  0x4a   : > { %s455_s26 = sshll.u32 %s11072_s14, 4  ;;  %s456_s26 = int_to_ptr.vmem [resolvable:$true] %s455_s26 }
  0x4b   : > { %s10939_s29 = scalar_lea.vmem %s456_s26, 4096  ;;  %p10947_p12 = scmp.lt.s32.totalorder %s456_s26, %s456_s26 }
  0x4c   : > { %p10940_p9 = scmp.ne.s32.totalorder %s456_s26, %s10939_s29  ;;  %p10948_p13 = scmp.lt.s32.totalorder %s10939_s29, %s10939_s29 }
  0x4e   : > { %p10942_p10 = pnand %p10940_p9, %p11206_p7  ;;  %p10949_p0 = por %p10948_p13, %p10947_p12 }
  0x4f   : > { %9885 = dma.hbm_to_vmem [thread:$0]  (!%p11196_p6), %s14826_s5, 4096, %s440_s15, [#allocation10], %s14725_s22, %s14725_s22, %s14726_s17  }
  0x50   : > { %p10943_p11 = pneg %p10942_p10 }
  0x52   : > { %p10950_p2 = pnand %p10949_p0, %p10943_p11 }
  0x54   : > { %10953 = shalt.err (!%p10950_p2)
}
  0x55   : > { %s14827_s27 = smov 64   ;;  %s14828_s7 = sld [smem:[#allocation71_spill]] }
  0x56   : > { %s8394_s28 = sadd.s32 4294967294, %s11058_s21   ;;  %s11262_s16 = sadd.s32 1, %s11058_s21  }
  0x57   : > { %s41_s1 = sadd.s32 1, %s11054_s20  ;;  %s38_s30 = ssub.s32 %s11058_s21, %s11262_s16 }
  0x58   : > { %p48_p7 = scmp.ne.s32.totalorder %s11054_s20, %s11050_s19  ;;  %p39_p5 = scmp.eq.s32.totalorder %s38_s30, 0 }
  0x59   : > { %p49_p8 = scmp.eq.s32.totalorder %s11058_s21, 0  ;;  %p54_p9 = scmp.ne.s32.totalorder %s11050_s19, %s11046_s18 }
  0x5a   : > { %p372_p10 = scmp.eq.s32.totalorder %s11182_s24, 1  ;;  %p378_p13 = scmp.eq.s32.totalorder %s8394_s28, 1 }
  0x5b   : > { %9888 = dma.hbm_to_vmem [thread:$0]  (!%p11196_p6), %s14828_s7, 4096, %s456_s26, [#allocation13], %s14827_s27, %s14827_s27, %s11066_s13  }
  0x5c   : > { %s11274_s14 = scalar_select %p39_p5, %s11054_s20, %s41_s1  }
  0x5d   : > { %p50_p11 = por %p49_p8, %p48_p7  ;;  %p11278_p12 = por %p14727_p1, %p54_p9 }
  0x5e   : > { %14829 = sst [smem:[#allocation20_spill]] %s11274_s14  ;;  %p11282_p6 = por %p372_p10, %p48_p7 }
  0x5f   : > { %s14830_s29 = scalar_select %p11278_p12, 1, 0 }
  0x60   : > { %s14831_s13 = scalar_select %p11282_p6, 1, 0 }
  0x61   : > { %p9902_p0 = scmp.lt.s32.totalorder %s11058_s21, 2  ;;  %s490_s26 = sand.u32 1, %s11054_s20  }
  0x62   : > { %p11288_p2 = por %p378_p13, %p54_p9  ;;  %s8402_s23 = sshll.u32 %s490_s26, 7 }
  0x63   : > { %s8775_s15 = sshll.u32 %s11058_s21, 11  ;;  %s494_s17 = scalar_lea.vmem [#allocation3], %s8402_s23 }
  0x64   : > { %s14832_s27 = scalar_select %p11288_p2, 1, 0 }
  0x65   : > { %s11296_s22 = scalar_lea.hbm %s14707_s0, %s8775_s15  ;;  %s501_s2 = sshll.u32 %s494_s17, 4  ;;  %s11302_s2 = int_to_ptr.vmem [resolvable:$true] %s501_s2 }
  0x66   : > { %p11298_p7 = pnand %p9902_p0, %p50_p11  ;;  %s11304_s3 = scalar_lea.sflag [#allocation4], %s490_s26 }
  0x67   : > { %s10954_s5 = scalar_lea.hbm %s11296_s22, 2048  ;;  %s10959_s23 = scalar_lea.hbm %s14707_s0, 4096 }
  0x68   : > { %p10955_p5 = scmp.ne.s32.totalorder %s11296_s22, %s10954_s5  ;;  %p10956_p8 = pneg %p11298_p7 }
  0x69   : > { %p10960_p11 = scmp.lt.s32.totalorder %s11296_s22, %s14707_s0  ;;  %p10961_p13 = scmp.lt.s32.totalorder %s10959_s23, %s10954_s5 }
  0x6a   : > { %p10957_p9 = pnand %p10956_p8, %p10955_p5 }
  0x6b   : > { %p10962_p0 = por %p10961_p13, %p10960_p11 }
  0x6c   : > { %p10958_p10 = pneg %p10957_p9 }
  0x6e   : > { %p10963_p4 = pnand %p10962_p0, %p10958_p10 }
  0x70   : > { %10966 = shalt.err (!%p10963_p4)
}
  0x71   : > { %s10967_s26 = scalar_lea.vmem %s11302_s2, 2048  ;;  %s11073_s7 = smov [#allocation3]  }
  0x72   : > { %p10968_p1 = scmp.ne.s32.totalorder %s11302_s2, %s10967_s26  ;;  %s10972_s14 = sshll.u32 %s11073_s7, 4  ;;  %s10973_s14 = int_to_ptr.vmem [resolvable:$false] %s10972_s14 }
  0x73   : > { %s10974_s15 = scalar_lea.vmem %s10973_s14, 4096  ;;  %p10975_p9 = scmp.lt.s32.totalorder %s11302_s2, %s10973_s14 }
  0x74   : > { %p10970_p2 = pnand %p10968_p1, %p10956_p8  ;;  %p10976_p6 = scmp.lt.s32.totalorder %s10974_s15, %s10967_s26 }
  0x76   : > { %p10971_p5 = pneg %p10970_p2  ;;  %p10977_p12 = por %p10976_p6, %p10975_p9 }
  0x78   : > { %p10978_p3 = pnand %p10977_p12, %p10971_p5 }
  0x7a   : > { %10981 = shalt.err (!%p10978_p3)
}
  0x7b   : > { %s14834_s5 = smov 8   ;;  %s14835_s1 = smov 128  }
  0x7c   : > { %9892 = dma.hbm_to_vmem [thread:$0]  (!%p11298_p7), %s11296_s22, 2048, %s11302_s2, %s11304_s3, %s14835_s1, %s14835_s1, %s14834_s5  }
  0x7d   : > { %p14836_p1 = scmp.ne.s32.totalorder %s14820_s25, 0 }
  0x7f   : > { %513 = sbr.rel (%p14836_p1) target bundleno = 5421 (0x152d), region = 80 }
  0x84   : > { %s11331_s7 = sand.u32 1, %s11050_s19   ;;  %p14837_p3 = scmp.ne.s32.totalorder %s14830_s29, 0 }
  0x85   : > { %s8406_s14 = sshll.u32 %s11331_s7, 7  ;;  %s516_s23 = scalar_lea.sflag [#allocation4], %s11331_s7 }
  0x86   : > { %s11337_s28 = scalar_lea.vmem [#allocation3], %s8406_s14 }
  0x87   : > { %11025 = dma.done.wait (%p14837_p3), %s516_s23, 2048  }
  0x88   : > { %11027 = vsyncadd (%p14837_p3), %s516_s23, 4294965248  ;;  %p14838_p4 = scmp.eq.s32.totalorder %s11182_s24, 0 }
  0x8a   : > { %11029 = dma.done.wait (%p14838_p4), [#allocation7], 6240   ;;  %p14839_p12 = pmov %p14838_p4 }
  0x8b   : > { %p14840_p6 = pmov %p14838_p4 }
  0x8c   : > { %11031 = vsyncadd (%p14839_p12), [#allocation7], 4294961056 }
  0x8d   : > { %11033 = dma.done.wait (%p14840_p6), [#allocation10], 6144   ;;  %p14841_p2 = pmov %p14838_p4 }
  0x8f   : > { %11035 = vsyncadd (%p14841_p2), [#allocation10], 4294961152  ;;  %p14842_p7 = pmov %p14841_p2 }
  0x90   : > { %p14843_p8 = pmov %p14841_p2 }
  0x91   : > { %11037 = dma.done.wait (%p14842_p7), [#allocation13], 4096  }
  0x92   : > { %11039 = vsyncadd (%p14843_p8), [#allocation13], 4294963200  ;;  %v14732_v0 = vmov 0   ;;  %v9960_v1 = vld [vmem:[#allocation6 + $0xac] ss:$12 sps:$4 sm:$0xff]   ;;  %v587_v8 = vld [vmem:[%s11337_s28] sm:$0xff]  ;;  %v645_v49 = vlaneseq }
  0x93   : > { %820 = vmatprep.mubr.bf16.mxu0 %v14732_v0  ;;  %v9962_v2 = vld [vmem:[#allocation6 + $0xa8] ss:$12 sps:$4 sm:$0xff]   ;;  %788 = vmatprep.subr.bf16.mxu0 %v9960_v1  ;;  %v9965_v4 = vld [vmem:[#allocation6 + $0x90] ss:$12 sps:$4 sm:$0xff]   ;;  %v9968_v6 = vld [vmem:[#allocation6 + $0x78] ss:$12 sps:$4 sm:$0xff]  }
  0x94   : > { %v9963_v3 = vld [vmem:[#allocation6 + $0x94] ss:$12 sps:$4 sm:$0xff]   ;;  %789 = vmatpush1.bf16.msra.mxu0 %v9962_v2  ;;  %v9966_v5 = vld [vmem:[#allocation6 + $0x7c] ss:$12 sps:$4 sm:$0xff]   ;;  %v9969_v7 = vld [vmem:[#allocation6 + $0x64] ss:$12 sps:$4 sm:$0xff]  }
  0x95   : > { %790 = vmatprep.subr.bf16.mxu0 %v9963_v3  ;;  %v9971_v9 = vld [vmem:[#allocation6 + $0x60] ss:$12 sps:$4 sm:$0xff]   ;;  %v9974_v13 = vld [vmem:[#allocation6 + $0x48] ss:$12 sps:$4 sm:$0xff]   ;;  %v9984_v15 = vld [vmem:[#allocation6 + $0xb0] ss:$12 sps:$4 sm:$0xff]  }
  0x96   : > { %v588_v10 = vld [vmem:[%s11337_s28 + $0x8] sm:$0xff]  ;;  %v9975_v14 = vld [vmem:[#allocation6 + $0x34] ss:$12 sps:$4 sm:$0xff]   ;;  %v9985_v16 = vld [vmem:[#allocation6 + $0x98] ss:$12 sps:$4 sm:$0xff]   ;;  %9305 = vmatprep.subr.bf16.mxu1 %v9984_v15  ;;  %v11379_v50 = vshrl.u32 %v645_v49, 7 }
  0x97   : > { %v9972_v11 = vld [vmem:[#allocation6 + $0x4c] ss:$12 sps:$4 sm:$0xff]   ;;  %v603_v12 = vpack.c.bf16 %v588_v10, %v587_v8  ;;  %v9977_v17 = vld [vmem:[#allocation6 + $0x30] ss:$12 sps:$4 sm:$0xff]   ;;  %9306 = vmatpush3.bf16.msra.mxu1 %v9984_v15  ;;  %v9987_v22 = vld [vmem:[#allocation6 + $0x68] ss:$12 sps:$4 sm:$0xff]  }
  0x98   : > { %791 = vmatpush1.bf16.msra.mxu0 %v9965_v4  ;;  %v9978_v18 = vld [vmem:[#allocation6 + $0x1c] ss:$12 sps:$4 sm:$0xff]   ;;  %9307 = vmatprep.subr.bf16.mxu1 %v9985_v16  ;;  %v9986_v19 = vld [vmem:[#allocation6 + $0x80] ss:$12 sps:$4 sm:$0xff]   ;;  %v9980_v20 = vld [vmem:[#allocation6 + $0x18] ss:$12 sps:$4 sm:$0xff]  }
  0x99   : > { %792 = vmatprep.subr.bf16.mxu0 %v9966_v5  ;;  %9321 = vmatprep.mubr.bf16.mxu1 %v603_v12  ;;  %v9981_v21 = vld [vmem:[#allocation6 + $0x4] ss:$12 sps:$4 sm:$0xff]   ;;  %v9983_v23 = vld [vmem:[#allocation6] ss:$12 sps:$4 sm:$0xff]   ;;  %v590_v27 = vld [vmem:[%s11337_s28 + $0x18] sm:$0xff]  ;;  %14844 = vst [vmem:[#allocation21_spill] sm:$0xff] %v11379_v50 }
  0x9a   : > { %v9988_v24 = vld [vmem:[#allocation6 + $0x50] ss:$12 sps:$4 sm:$0xff]   ;;  %v9989_v25 = vld [vmem:[#allocation6 + $0x38] ss:$12 sps:$4 sm:$0xff]   ;;  %v9990_v28 = vld [vmem:[#allocation6 + $0x20] ss:$12 sps:$4 sm:$0xff]  }
  0x9b   : > { %9308 = vmatpush3.bf16.msra.mxu1 %v9985_v16  ;;  %v589_v26 = vld [vmem:[%s11337_s28 + $0x10] sm:$0xff]  ;;  %v591_v31 = vld [vmem:[%s11337_s28 + $0x20] sm:$0xff]  ;;  %v592_v32 = vld [vmem:[%s11337_s28 + $0x28] sm:$0xff]  ;;  %v11382_v51 = vsub.s32 1, %v11379_v50  ;;  %v11385_v52 = vsub.s32 0, %v11379_v50  ;;  %vm1054_vm0 = vcmask 261120  }
  0x9c   : > { %793 = vmatpush1.bf16.msra.mxu0 %v9968_v6  ;;  %9309 = vmatprep.subr.bf16.mxu1 %v9986_v19  ;;  %v604_v29 = vpack.c.bf16 %v590_v27, %v589_v26  ;;  %v9991_v30 = vld [vmem:[#allocation6 + $0x8] ss:$12 sps:$4 sm:$0xff]   ;;  %v605_v33 = vpack.c.bf16 %v592_v32, %v591_v31  ;;  %v594_v35 = vld [vmem:[%s11337_s28 + $0x38] sm:$0xff]  ;;  %v595_v36 = vld [vmem:[%s11337_s28 + $0x40] sm:$0xff]  ;;  %s11075_s2 = smov 96   ;;  %s11076_s3 = smov 64  }
  0x9d   : > { %794 = vmatprep.subr.bf16.mxu0 %v9969_v7  ;;  %v593_v34 = vld [vmem:[%s11337_s28 + $0x30] sm:$0xff]  ;;  %v596_v37 = vld [vmem:[%s11337_s28 + $0x48] sm:$0xff]  ;;  %v598_v41 = vld [vmem:[%s11337_s28 + $0x58] sm:$0xff]  ;;  %14845 = vst [vmem:[#allocation22_spill] sm:$0xff] %v11382_v51  ;;  %s11077_s25 = smov 32   ;;  %vm1489_vm1 = vcmask 257024  }
  0x9e   : > { %v606_v38 = vpack.c.bf16 %v594_v35, %v593_v34  ;;  %v607_v39 = vpack.c.bf16 %v596_v37, %v595_v36  ;;  %v597_v40 = vld [vmem:[%s11337_s28 + $0x50] sm:$0xff]  ;;  %v599_v42 = vld [vmem:[%s11337_s28 + $0x60] sm:$0xff]  ;;  %v600_v43 = vld [vmem:[%s11337_s28 + $0x68] sm:$0xff]  ;;  %14846 = vst [vmem:[#allocation23_spill] sm:$0xff] %v11385_v52  ;;  %vm2028_vm2 = vcmask 519424   ;;  %vm2551_vm3 = vcmask 781824  }
  0x9f   : > { %9310 = vmatpush3.bf16.msra.mxu1 %v9986_v19  ;;  %v608_v44 = vpack.c.bf16 %v598_v41, %v597_v40  ;;  %v609_v45 = vpack.c.bf16 %v600_v43, %v599_v42  ;;  %v601_v46 = vld [vmem:[%s11337_s28 + $0x70] sm:$0xff]  ;;  %v602_v47 = vld [vmem:[%s11337_s28 + $0x78] sm:$0xff]  ;;  %v11387_v53 = vld [vmem:[#allocation8] sm:$0x7]  ;;  %vm3074_vm4 = vcmask 1044224   ;;  %s15032_s26 = sld [smem:[#allocation72_spill]] }
  0xa0   : > { %795 = vmatpush1.bf16.msra.mxu0 %v9971_v9  ;;  %9311 = vmatprep.subr.bf16.mxu1 %v9987_v22  ;;  %v610_v48 = vpack.c.bf16 %v602_v47, %v601_v46  ;;  %v11391_v54 = vrot.slane %v11387_v53, %v11382_v51  ;;  %v11395_v56 = vrot.slane %v11387_v53, %v11385_v52  ;;  %v14731_v46 = vsub.s32 2, %v11379_v50  ;;  %s15033_s1 = sld [smem:[#allocation73_spill]]  ;;  %s14595_s23 = scalar_lea.vmem [#allocation14], %s8406_s14 }
  0xa1   : > { %796 = vmatprep.subr.bf16.mxu0 %v9972_v11  ;;  %s8904_s14 = sshll.u32 %s11182_s24, 11  ;;  %s15034_s17 = sld [smem:[#allocation74_spill]] }
  0xa2   : > { %p15035_p11 = scmp.ne.s32.totalorder %s14831_s13, 0  ;;  %s11078_s24 = smov [#allocation14]  }
  0xa3   : > { %9312 = vmatpush3.bf16.msra.mxu1 %v9987_v22 }
  0xa4   : > { %797 = vmatpush1.bf16.msra.mxu0 %v9974_v13  ;;  %9313 = vmatprep.subr.bf16.mxu1 %v9988_v24 }
  0xa5   : > { %798 = vmatprep.subr.bf16.mxu0 %v9975_v14 }
  0xa7   : > { %9314 = vmatpush3.bf16.msra.mxu1 %v9988_v24  ;;  %s14660_s30 = scalar_lea.hbm %s15034_s17, %s8904_s14 }
  0xa8   : > { %799 = vmatpush1.bf16.msra.mxu0 %v9977_v17  ;;  %9315 = vmatprep.subr.bf16.mxu1 %v9989_v25 }
  0xa9   : > { %800 = vmatprep.subr.bf16.mxu0 %v9978_v18 }
  0xab   : > { %9316 = vmatpush3.bf16.msra.mxu1 %v9989_v25 }
  0xac   : > { %801 = vmatpush1.bf16.msra.mxu0 %v9980_v20  ;;  %9317 = vmatprep.subr.bf16.mxu1 %v9990_v28 }
  0xad   : > { %802 = vmatprep.subr.bf16.mxu0 %v9981_v21 }
  0xaf   : > { %9318 = vmatpush3.bf16.msra.mxu1 %v9990_v28 }
  0xb0   : > { %803 = vmatpush1.bf16.msra.mxu0 %v9983_v23  ;;  %9319 = vmatprep.subr.bf16.mxu1 %v9991_v30 }
  0xb3   : > { %821 = vmatmul.mubr.bf16.vlgmr.msra.gmra.mxu0 %v603_v12  ;;  %9320 = vmatpush3.bf16.msra.mxu1 %v9991_v30 }
  0xb4   : > { %830 = vmatprep.mubr.bf16.mxu0 %v14732_v0 }
  0xb6   : > { %9322 = vmatmul.mubr.bf16.vlgmr.msra.gmra.mxu1 %v604_v29 }
  0xb7   : > { %9325 = vmatprep.mubr.bf16.mxu1 %v605_v33 }
  0xbb   : > { %831 = vmatmul.mubr.bf16.gmra.mxu0 %v604_v29 }
  0xbc   : > { %840 = vmatprep.mubr.bf16.mxu0 %v14732_v0 }
  0xbe   : > { %9326 = vmatmul.mubr.bf16.gmra.mxu1 %v606_v38 }
  0xbf   : > { %9329 = vmatprep.mubr.bf16.mxu1 %v607_v39 }
  0xc3   : > { %841 = vmatmul.mubr.bf16.gmra.mxu0 %v605_v33 }
  0xc4   : > { %850 = vmatprep.mubr.bf16.mxu0 %v14732_v0 }
  0xc6   : > { %9330 = vmatmul.mubr.bf16.gmra.mxu1 %v608_v44 }
  0xc7   : > { %9333 = vmatprep.mubr.bf16.mxu1 %v609_v45 }
  0xcb   : > { %851 = vmatmul.mubr.bf16.gmra.mxu0 %v606_v38 }
  0xcc   : > { %860 = vmatprep.mubr.bf16.mxu0 %v14732_v0 }
  0xce   : > { %9334 = vmatmul.mubr.bf16.gmra.mxu1 %v610_v48 }
  0xd3   : > { %861 = vmatmul.mubr.bf16.gmra.mxu0 %v607_v39 }
  0xd4   : > { %870 = vmatprep.mubr.bf16.mxu0 %v14732_v0 }
  0xdb   : > { %871 = vmatmul.mubr.bf16.gmra.mxu0 %v608_v44 }
  0xdc   : > { %880 = vmatprep.mubr.bf16.mxu0 %v14732_v0 }
  0xe3   : > { %881 = vmatmul.mubr.bf16.gmra.mxu0 %v609_v45 }
  0xe4   : > { %890 = vmatprep.mubr.bf16.mxu0 %v14732_v0 }
  0xeb   : > { %891 = vmatmul.mubr.bf16.gmra.mxu0 %v610_v48 }
 0x173   : > { %v822_v55 = vpop.f32.mrf.mxu0 }
 0x174   : > { %v823_v60 = vadd.f32 %v822_v55, %v11395_v56 }
 0x175   : > { %v824_v57 = vpop.f32.mrf.mxu0 }
 0x176   : > { %v825_v58 = vadd.f32 %v824_v57, %v11391_v54  ;;  %v11413_v12 = vpop.f32.mrf.mxu1 }
 0x177   : > { %v826_v59 = vpop.f32.mrf.mxu0 }
 0x178   : > { %v827_v61 = vadd.f32 %v826_v59, %v11395_v56  ;;  %1006 = vxpose.xlu0.b32.start [1/16] %v825_v58, 128  ;;  %v11417_v14 = vpop.f32.mrf.mxu1  ;;  %v11459_v59 = vrot.slane %v11387_v53, %v14731_v46 }
 0x179   : > { %v828_v62 = vpop.f32.mrf.mxu0 }
 0x17a   : > { %v11400_v63 = vpack.c.bf16 %v827_v61, %v823_v60  ;;  %v829_v1 = vadd.f32 %v828_v62, %v11391_v54  ;;  %v11420_v17 = vpop.f32.mrf.mxu1 }
 0x17b   : > { %v832_v2 = vpop.f32.mrf.mxu0 }
 0x17c   : > { %1007 = vxpose.xlu0.b32.cont [2/16] %v829_v1, 128  ;;  %1514 = vrot.lane.b32.xlu1 %v11400_v63, %s11075_s2  ;;  %v833_v6 = vadd.f32 %v832_v2, %v11395_v56  ;;  %v11424_v21 = vpop.f32.mrf.mxu1 }
 0x17d   : > { %9341 = vmatprep.mubr.msk.bf16.mxu1 %vm1054_vm0, %v11400_v63  ;;  %v834_v3 = vpop.f32.mrf.mxu0 }
 0x17e   : > { %v835_v4 = vadd.f32 %v834_v3, %v11391_v54  ;;  %v11429_v25 = vpop.f32.mrf.mxu1 }
 0x17f   : > { %v836_v5 = vpop.f32.mrf.mxu0 }
 0x180   : > { %v837_v7 = vadd.f32 %v836_v5, %v11395_v56  ;;  %1008 = vxpose.xlu0.b32.cont [3/16] %v835_v4, 128  ;;  %v11433_v27 = vpop.f32.mrf.mxu1 }
 0x181   : > { %v838_v8 = vpop.f32.mrf.mxu0 }
 0x182   : > { %v11410_v9 = vpack.c.bf16 %v837_v7, %v833_v6  ;;  %v839_v10 = vadd.f32 %v838_v8, %v11391_v54  ;;  %v11436_v30 = vpop.f32.mrf.mxu1 }
 0x183   : > { %v842_v11 = vpop.f32.mrf.mxu0 }
 0x184   : > { %1009 = vxpose.xlu0.b32.cont [4/16] %v839_v10, 128  ;;  %1516 = vrot.lane.b32.xlu1 %v11410_v9, %s11075_s2  ;;  %v843_v18 = vadd.f32 %v842_v11, %v11395_v56  ;;  %v11440_v34 = vpop.f32.mrf.mxu1 }
 0x185   : > { %v844_v13 = vpop.f32.mrf.mxu0 }
 0x186   : > { %v845_v15 = vadd.f32 %v844_v13, %v11391_v54  ;;  %v9331_v38 = vpop.f32.mrf.mxu1 }
 0x187   : > { %v846_v16 = vpop.f32.mrf.mxu0 }
 0x188   : > { %v847_v19 = vadd.f32 %v846_v16, %v11395_v56  ;;  %1010 = vxpose.xlu0.b32.cont [5/16] %v845_v15, 128  ;;  %v967_v40 = vpop.f32.mrf.mxu1 }
 0x189   : > { %v848_v20 = vpop.f32.mrf.mxu0 }
 0x18a   : > { %v11426_v22 = vpack.c.bf16 %v847_v19, %v843_v18  ;;  %v849_v23 = vadd.f32 %v848_v20, %v11391_v54  ;;  %v9332_v43 = vpop.f32.mrf.mxu1  ;;  %v976_v19 = vadd.f32 %v9331_v38, %v11459_v59 }
 0x18b   : > { %v852_v24 = vpop.f32.mrf.mxu0  ;;  %v979_v20 = vadd.f32 %v9332_v43, %v11459_v59 }
 0x18c   : > { %1011 = vxpose.xlu0.b32.cont [6/16] %v849_v23, 128  ;;  %1518 = vrot.lane.b32.xlu1 %v11426_v22, %s11075_s2  ;;  %v853_v31 = vadd.f32 %v852_v24, %v11395_v56  ;;  %v970_v48 = vpop.f32.mrf.mxu1 }
 0x18d   : > { %v854_v26 = vpop.f32.mrf.mxu0 }
 0x18e   : > { %v855_v28 = vadd.f32 %v854_v26, %v11391_v54  ;;  %v9335_v58 = vpop.f32.mrf.mxu1 }
 0x18f   : > { %v856_v29 = vpop.f32.mrf.mxu0  ;;  %v992_v1 = vadd.f32 %v9335_v58, %v11459_v59 }
 0x190   : > { %v857_v32 = vadd.f32 %v856_v29, %v11395_v56  ;;  %1012 = vxpose.xlu0.b32.cont [7/16] %v855_v28, 128  ;;  %v983_v61 = vpop.f32.mrf.mxu1 }
 0x191   : > { %v858_v33 = vpop.f32.mrf.mxu0  ;;  %v984_v8 = vadd.f32 %v983_v61, %v11459_v59 }
 0x192   : > { %v11442_v35 = vpack.c.bf16 %v857_v32, %v853_v31  ;;  %v859_v36 = vadd.f32 %v858_v33, %v11391_v54  ;;  %v9336_v3 = vpop.f32.mrf.mxu1  ;;  %v968_v32 = vadd.f32 %v967_v40, %v11459_v59  ;;  %v11486_v33 = vpack.c.bf16 %v979_v20, %v976_v19 }
 0x193   : > { %v862_v37 = vpop.f32.mrf.mxu0  ;;  %v995_v6 = vadd.f32 %v9336_v3, %v11459_v59  ;;  %v960_v40 = vadd.f32 %v11429_v25, %v11459_v59  ;;  %v952_v25 = vadd.f32 %v11433_v27, %v11459_v59  ;;  %v944_v27 = vadd.f32 %v11413_v12, %v11459_v59 }
 0x194   : > { %1013 = vxpose.xlu0.b32.cont [8/16] %v859_v36, 128  ;;  %1520 = vrot.lane.b32.xlu1 %v11442_v35, %s11075_s2  ;;  %v863_v44 = vadd.f32 %v862_v37, %v11395_v56  ;;  %v986_v53 = vpop.f32.mrf.mxu1  ;;  %v971_v36 = vadd.f32 %v970_v48, %v11459_v59  ;;  %v939_v12 = vadd.f32 %v11424_v21, %v11459_v59 }
 0x195   : > { %v864_v39 = vpop.f32.mrf.mxu0  ;;  %v11470_v13 = vpack.c.bf16 %v995_v6, %v992_v1  ;;  %v987_v15 = vadd.f32 %v986_v53, %v11459_v59 }
 0x196   : > { %v865_v41 = vadd.f32 %v864_v39, %v11391_v54  ;;  %v11500_v43 = vpack.c.bf16 %v971_v36, %v968_v32 }
 0x197   : > { %v866_v42 = vpop.f32.mrf.mxu0  ;;  %v11477_v23 = vpack.c.bf16 %v987_v15, %v984_v8  ;;  %9357 = vmatprep.subr.bf16.mxu0 %v11470_v13 }
 0x198   : > { %v867_v45 = vadd.f32 %v866_v42, %v11395_v56  ;;  %1014 = vxpose.xlu0.b32.cont [9/16] %v865_v41, 128  ;;  %9358 = vmatpush3.bf16.msra.mxu0 %v11470_v13  ;;  %v963_v42 = vadd.f32 %v11436_v30, %v11459_v59  ;;  %v955_v30 = vadd.f32 %v11440_v34, %v11459_v59 }
 0x199   : > { %v868_v47 = vpop.f32.mrf.mxu0  ;;  %9359 = vmatprep.subr.bf16.mxu0 %v11477_v23  ;;  %v947_v34 = vadd.f32 %v11420_v17, %v11459_v59 }
 0x19a   : > { %v11451_v49 = vpack.c.bf16 %v867_v45, %v863_v44  ;;  %v869_v55 = vadd.f32 %v868_v47, %v11391_v54  ;;  %v11509_v48 = vpack.c.bf16 %v963_v42, %v960_v40 }
 0x19b   : > { %v872_v57 = vpop.f32.mrf.mxu0 }
 0x19c   : > { %1015 = vxpose.xlu0.b32.cont [10/16] %v869_v55, 128  ;;  %1522 = vrot.lane.b32.xlu1 %v11451_v49, %s11075_s2  ;;  %v873_v4 = vadd.f32 %v872_v57, %v11395_v56 }
 0x19d   : > { %v874_v60 = vpop.f32.mrf.mxu0  ;;  %9360 = vmatpush3.bf16.msra.mxu0 %v11477_v23 }
 0x19e   : > { %v875_v62 = vadd.f32 %v874_v60, %v11391_v54  ;;  %9361 = vmatprep.subr.bf16.mxu0 %v11486_v33  ;;  %v11524_v60 = vpack.c.bf16 %v955_v30, %v952_v25 }
 0x19f   : > { %v876_v2 = vpop.f32.mrf.mxu0 }
 0x1a0   : > { %v877_v5 = vadd.f32 %v876_v2, %v11395_v56  ;;  %1016 = vxpose.xlu0.b32.cont [11/16] %v875_v62, 128 }
 0x1a1   : > { %v878_v7 = vpop.f32.mrf.mxu0  ;;  %9362 = vmatpush3.bf16.msra.mxu0 %v11486_v33 }
 0x1a2   : > { %v11467_v10 = vpack.c.bf16 %v877_v5, %v873_v4  ;;  %v879_v11 = vadd.f32 %v878_v7, %v11391_v54  ;;  %9363 = vmatprep.subr.bf16.mxu0 %v11500_v43 }
 0x1a3   : > { %v882_v16 = vpop.f32.mrf.mxu0 }
 0x1a4   : > { %1017 = vxpose.xlu0.b32.cont [12/16] %v879_v11, 128  ;;  %1524 = vrot.lane.b32.xlu1 %v11467_v10, %s11075_s2  ;;  %v883_v28 = vadd.f32 %v882_v16, %v11395_v56 }
 0x1a5   : > { %v884_v18 = vpop.f32.mrf.mxu0  ;;  %9364 = vmatpush3.bf16.msra.mxu0 %v11500_v43 }
 0x1a6   : > { %v885_v24 = vadd.f32 %v884_v18, %v11391_v54  ;;  %9365 = vmatprep.subr.bf16.mxu0 %v11509_v48 }
 0x1a7   : > { %v886_v26 = vpop.f32.mrf.mxu0 }
 0x1a8   : > { %v887_v29 = vadd.f32 %v886_v26, %v11395_v56  ;;  %1018 = vxpose.xlu0.b32.cont [13/16] %v885_v24, 128 }
 0x1a9   : > { %v888_v31 = vpop.f32.mrf.mxu0  ;;  %9366 = vmatpush3.bf16.msra.mxu0 %v11509_v48 }
 0x1aa   : > { %v11489_v37 = vpack.c.bf16 %v887_v29, %v883_v28  ;;  %v889_v38 = vadd.f32 %v888_v31, %v11391_v54  ;;  %9367 = vmatprep.subr.bf16.mxu0 %v11524_v60 }
 0x1ab   : > { %v892_v39 = vpop.f32.mrf.mxu0 }
 0x1ac   : > { %1019 = vxpose.xlu0.b32.cont [14/16] %v889_v38, 128  ;;  %1526 = vrot.lane.b32.xlu1 %v11489_v37, %s11075_s2  ;;  %v893_v58 = vadd.f32 %v892_v39, %v11395_v56 }
 0x1ad   : > { %v894_v41 = vpop.f32.mrf.mxu0  ;;  %9368 = vmatpush3.bf16.msra.mxu0 %v11524_v60 }
 0x1ae   : > { %v895_v44 = vadd.f32 %v894_v41, %v11391_v54 }
 0x1af   : > { %v896_v45 = vpop.f32.mrf.mxu0 }
 0x1b0   : > { %1020 = vxpose.xlu0.b32.cont [15/16] %v895_v44, 128  ;;  %2045 = vrot.lane.b32.xlu1 %v11400_v63, %s11076_s3  ;;  %v897_v55 = vadd.f32 %v896_v45, %v11395_v56  ;;  %v11534_v56 = vpack.c.bf16 %v947_v34, %v944_v27 }
 0x1b1   : > { %v898_v47 = vpop.f32.mrf.mxu0 }
 0x1b2   : > { %v899_v57 = vadd.f32 %v898_v47, %v11391_v54  ;;  %v11526_v61 = vpack.c.bf16 %v897_v55, %v893_v58  ;;  %v936_v54 = vadd.f32 %v11417_v14, %v11459_v59  ;;  %9369 = vmatprep.subr.bf16.mxu0 %v11534_v56 }
 0x1b3   : > { %9370 = vmatpush3.bf16.msra.mxu0 %v11534_v56 }
 0x1b4   : > { %1021 = vxpose.xlu0.b32.end [16/16] %v899_v57, 128  ;;  %2047 = vrot.lane.b32.xlu1 %v11410_v9, %s11076_s3  ;;  %v11542_v17 = vpack.c.bf16 %v939_v12, %v936_v54 }
 0x1b6   : > { %9371 = vmatprep.subr.bf16.mxu0 %v11542_v17 }
 0x1b7   : > { %9372 = vmatpush3.bf16.msra.mxu0 %v11542_v17 }
 0x1b8   : > { %1528 = vrot.lane.b32.xlu1 %v11526_v61, %s11075_s2 }
 0x1bc   : > { %2049 = vrot.lane.b32.xlu1 %v11426_v22, %s11076_s3 }
 0x1c0   : > { %2051 = vrot.lane.b32.xlu1 %v11442_v35, %s11076_s3 }
 0x1c4   : > { %2053 = vrot.lane.b32.xlu1 %v11451_v49, %s11076_s3 }
 0x1c8   : > { %2055 = vrot.lane.b32.xlu1 %v11467_v10, %s11076_s3 }
 0x1cc   : > { %2057 = vrot.lane.b32.xlu1 %v11489_v37, %s11076_s3 }
 0x1d0   : > { %2570 = vrot.lane.b32.xlu1 %v11410_v9, %s11077_s25 }
 0x1d4   : > { %2572 = vrot.lane.b32.xlu1 %v11426_v22, %s11077_s25 }
 0x1d8   : > { %2059 = vrot.lane.b32.xlu1 %v11526_v61, %s11076_s3 }
 0x1dc   : > { %2574 = vrot.lane.b32.xlu1 %v11442_v35, %s11077_s25 }
 0x1dd   : > { %2568 = vrot.lane.b32.xlu0 %v11400_v63, %s11077_s25 }
 0x1e0   : > { %2576 = vrot.lane.b32.xlu1 %v11451_v49, %s11077_s25 }
 0x1e1   : > { %1793 = vrot.lane.b32.xlu0 %v11470_v13, %s11075_s2 }
 0x1e4   : > { %2578 = vrot.lane.b32.xlu1 %v11467_v10, %s11077_s25 }
 0x1e5   : > { %1789 = vrot.lane.b32.xlu0 %v11486_v33, %s11075_s2 }
 0x1e8   : > { %2580 = vrot.lane.b32.xlu1 %v11489_v37, %s11077_s25 }
 0x1e9   : > { %1785 = vrot.lane.b32.xlu0 %v11509_v48, %s11075_s2 }
 0x1ec   : > { %1791 = vrot.lane.b32.xlu1 %v11477_v23, %s11075_s2 }
 0x1ed   : > { %1781 = vrot.lane.b32.xlu0 %v11534_v56, %s11075_s2 }
 0x1ee   : > { %v1515_v3 = vpop.permute.xlu1 %1514 }
 0x1f0   : > { %1787 = vrot.lane.b32.xlu1 %v11500_v43, %s11075_s2 }
 0x1f1   : > { %2316 = vrot.lane.b32.xlu0 %v11470_v13, %s11076_s3 }
 0x1f4   : > { %v1022_v63 = vpop.trf.xlu0  ;;  %1783 = vrot.lane.b32.xlu1 %v11524_v60, %s11075_s2 }
 0x1f5   : > { %2312 = vrot.lane.b32.xlu0 %v11486_v33, %s11076_s3 }
 0x1f6   : > { %v1517_v5 = vpop.permute.xlu1 %1516 }
 0x1f8   : > { %v1023_v14 = vpop.trf.xlu0  ;;  %1779 = vrot.lane.b32.xlu1 %v11542_v17, %s11075_s2 }
 0x1f9   : > { %2308 = vrot.lane.b32.xlu0 %v11509_v48, %s11076_s3  ;;  %v1038_v1 = vpack.c.bf16 %v1023_v14, %v1022_v63 }
 0x1fc   : > { %v1024_v21 = vpop.trf.xlu0  ;;  %2314 = vrot.lane.b32.xlu1 %v11477_v23, %s11076_s3 }
 0x1fd   : > { %2304 = vrot.lane.b32.xlu0 %v11534_v56, %s11076_s3 }
 0x1fe   : > { %v1519_v7 = vpop.permute.xlu1 %1518 }
 0x200   : > { %v1025_v59 = vpop.trf.xlu0  ;;  %2310 = vrot.lane.b32.xlu1 %v11500_v43, %s11076_s3 }
 0x201   : > { %v1039_v62 = vpack.c.bf16 %v1025_v59, %v1024_v21  ;;  %2839 = vrot.lane.b32.xlu0 %v11470_v13, %s11077_s25 }
 0x203   : > { %9337 = vmatprep.subr.bf16.mxu1 %v1039_v62 }
 0x204   : > { %9338 = vmatpush3.bf16.msra.mxu1 %v1039_v62  ;;  %v1026_v2 = vpop.trf.xlu0  ;;  %2306 = vrot.lane.b32.xlu1 %v11524_v60, %s11076_s3 }
 0x205   : > { %9339 = vmatprep.subr.bf16.mxu1 %v1038_v1 }
 0x206   : > { %v1521_v13 = vpop.permute.xlu1 %1520 }
 0x208   : > { %9340 = vmatpush3.bf16.msra.mxu1 %v1038_v1  ;;  %v1027_v4 = vpop.trf.xlu0  ;;  %2302 = vrot.lane.b32.xlu1 %v11542_v17, %s11076_s3 }
 0x209   : > { %v1040_v53 = vpack.c.bf16 %v1027_v4, %v1026_v2 }
 0x20b   : > { %9342 = vmatmul.mubr.msk.bf16.vlgmr.msra.gmra.mxu1 %vm1054_vm0, %v11410_v9 }
 0x20c   : > { %v1028_v6 = vpop.trf.xlu0  ;;  %2837 = vrot.lane.b32.xlu1 %v11477_v23, %s11077_s25  ;;  %9345 = vmatprep.mubr.msk.bf16.mxu1 %vm1054_vm0, %v11426_v22 }
 0x20e   : > { %v1523_v22 = vpop.permute.xlu1 %1522 }
 0x210   : > { %v1029_v8 = vpop.trf.xlu0  ;;  %2582 = vrot.lane.b32.xlu1 %v11526_v61, %s11077_s25 }
 0x211   : > { %v1041_v11 = vpack.c.bf16 %v1029_v8, %v1028_v6 }
 0x213   : > { %9346 = vmatmul.mubr.msk.bf16.gmra.mxu1 %vm1054_vm0, %v11442_v35  ;;  %9389 = vmatprep.subr.bf16.mxu1 %v1041_v11 }
 0x214   : > { %9349 = vmatprep.mubr.msk.bf16.mxu1 %vm1054_vm0, %v11451_v49  ;;  %9390 = vmatpush3.bf16.msra.mxu1 %v1041_v11  ;;  %v1030_v9 = vpop.trf.xlu0 }
 0x215   : > { %9391 = vmatprep.subr.bf16.mxu1 %v1040_v53  ;;  %2835 = vrot.lane.b32.xlu1 %v11486_v33, %s11077_s25 }
 0x216   : > { %v1525_v16 = vpop.permute.xlu1 %1524 }
 0x218   : > { %9392 = vmatpush3.bf16.msra.mxu1 %v1040_v53  ;;  %v1031_v15 = vpop.trf.xlu0 }
 0x219   : > { %2833 = vrot.lane.b32.xlu1 %v11500_v43, %s11077_s25  ;;  %v1042_v28 = vpack.c.bf16 %v1031_v15, %v1030_v9 }
 0x21b   : > { %9350 = vmatmul.mubr.msk.bf16.gmra.mxu1 %vm1054_vm0, %v11467_v10 }
 0x21c   : > { %9353 = vmatprep.mubr.msk.bf16.mxu1 %vm1054_vm0, %v11489_v37  ;;  %v1032_v35 = vpop.trf.xlu0 }
 0x21e   : > { %v1527_v49 = vpop.permute.xlu1 %1526 }
 0x220   : > { %v1033_v18 = vpop.trf.xlu0 }
 0x221   : > { %v1043_v19 = vpack.c.bf16 %v1033_v18, %v1032_v35 }
 0x222   : > { %v2046_v20 = vpop.permute.xlu1 %2045 }
 0x223   : > { %9354 = vmatmul.mubr.msk.bf16.gmra.mxu1 %vm1054_vm0, %v11526_v61  ;;  %9441 = vmatprep.subr.bf16.mxu1 %v1043_v19 }
 0x224   : > { %9393 = vmatprep.mubr.msk.bf16.mxu1 %vm1054_vm0, %v1515_v3  ;;  %v1034_v23 = vpop.trf.xlu0 }
 0x226   : > { %v2048_v24 = vpop.permute.xlu1 %2047 }
 0x228   : > { %v1035_v26 = vpop.trf.xlu0 }
 0x229   : > { %v1044_v42 = vpack.c.bf16 %v1035_v26, %v1034_v23 }
 0x22a   : > { %v1529_v29 = vpop.permute.xlu1 %1528 }
 0x22b   : > { %9394 = vmatmul.mubr.msk.bf16.vlgmr.msra.gmra.mxu1 %vm1054_vm0, %v1517_v5 }
 0x22c   : > { %9397 = vmatprep.mubr.msk.bf16.mxu1 %vm1054_vm0, %v1519_v7  ;;  %9442 = vmatpush3.bf16.msra.mxu1 %v1043_v19  ;;  %v1036_v10 = vpop.trf.xlu0 }
 0x22d   : > { %9443 = vmatprep.subr.bf16.mxu1 %v1042_v28 }
 0x22e   : > { %v2050_v31 = vpop.permute.xlu1 %2049 }
 0x230   : > { %9444 = vmatpush3.bf16.msra.mxu1 %v1042_v28  ;;  %v1037_v32 = vpop.trf.xlu0 }
 0x231   : > { %v1045_v33 = vpack.c.bf16 %v1037_v32, %v1036_v10 }
 0x232   : > { %v2052_v36 = vpop.permute.xlu1 %2051 }
 0x233   : > { %9398 = vmatmul.mubr.msk.bf16.gmra.mxu1 %vm1054_vm0, %v1521_v13  ;;  %9493 = vmatprep.subr.bf16.mxu1 %v1045_v33 }
 0x234   : > { %9401 = vmatprep.mubr.msk.bf16.mxu1 %vm1054_vm0, %v1523_v22 }
 0x236   : > { %v2054_v37 = vpop.permute.xlu1 %2053 }
 0x23a   : > { %v2056_v38 = vpop.permute.xlu1 %2055 }
 0x23b   : > { %9402 = vmatmul.mubr.msk.bf16.gmra.mxu1 %vm1054_vm0, %v1525_v16 }
 0x23c   : > { %9405 = vmatprep.mubr.msk.bf16.mxu1 %vm1054_vm0, %v1527_v49 }
 0x23e   : > { %v2058_v39 = vpop.permute.xlu1 %2057 }
 0x242   : > { %v2571_v41 = vpop.permute.xlu1 %2570 }
 0x243   : > { %9406 = vmatmul.mubr.msk.bf16.gmra.mxu1 %vm1054_vm0, %v1529_v29 }
 0x244   : > { %9445 = vmatprep.mubr.msk.bf16.mxu1 %vm1054_vm0, %v2046_v20 }
 0x246   : > { %v2573_v40 = vpop.permute.xlu1 %2572 }
 0x24a   : > { %v2060_v43 = vpop.permute.xlu1 %2059 }
 0x24b   : > { %9446 = vmatmul.mubr.msk.bf16.vlgmr.msra.gmra.mxu1 %vm1054_vm0, %v2048_v24 }
 0x24c   : > { %9449 = vmatprep.mubr.msk.bf16.mxu1 %vm1054_vm0, %v2050_v31  ;;  %9494 = vmatpush3.bf16.msra.mxu1 %v1045_v33 }
 0x24d   : > { %9495 = vmatprep.subr.bf16.mxu1 %v1044_v42 }
 0x24e   : > { %v2575_v44 = vpop.permute.xlu1 %2574 }
 0x24f   : > { %v2569_v45 = vpop.permute.xlu0 %2568 }
 0x250   : > { %9496 = vmatpush3.bf16.msra.mxu1 %v1044_v42 }
 0x252   : > { %v2577_v47 = vpop.permute.xlu1 %2576 }
 0x253   : > { %9450 = vmatmul.mubr.msk.bf16.gmra.mxu1 %vm1054_vm0, %v2052_v36  ;;  %v11639_v25 = vpop.permute.xlu0 %1793 }
 0x254   : > { %9453 = vmatprep.mubr.msk.bf16.mxu1 %vm1054_vm0, %v2054_v37  ;;  %9409 = vmatprep.subr.bf16.mxu0 %v11639_v25 }
 0x256   : > { %v2579_v30 = vpop.permute.xlu1 %2578 }
 0x25a   : > { %v2581_v55 = vpop.permute.xlu1 %2580 }
 0x25b   : > { %9454 = vmatmul.mubr.msk.bf16.gmra.mxu1 %vm1054_vm0, %v2056_v38 }
 0x25c   : > { %9457 = vmatprep.mubr.msk.bf16.mxu1 %vm1054_vm0, %v2058_v39 }
 0x25e   : > { %v11645_v57 = vpop.permute.xlu1 %1791 }
 0x262   : > { %v11647_v58 = vpop.permute.xlu1 %1787 }
 0x263   : > { %9458 = vmatmul.mubr.msk.bf16.gmra.mxu1 %vm1054_vm0, %v2060_v43 }
 0x264   : > { %9497 = vmatprep.mubr.msk.bf16.mxu1 %vm1054_vm0, %v2569_v45 }
 0x266   : > { %v11651_v27 = vpop.permute.xlu1 %1783 }
 0x26a   : > { %v11653_v34 = vpop.permute.xlu1 %1779 }
 0x26b   : > { %9498 = vmatmul.mubr.msk.bf16.vlgmr.msra.gmra.mxu1 %vm1054_vm0, %v2571_v41 }
 0x26c   : > { %9501 = vmatprep.mubr.msk.bf16.mxu1 %vm1054_vm0, %v2573_v40 }
 0x26e   : > { %v11657_v61 = vpop.permute.xlu1 %2314 }
 0x272   : > { %v11659_v54 = vpop.permute.xlu1 %2310 }
 0x273   : > { %9502 = vmatmul.mubr.msk.bf16.gmra.mxu1 %vm1054_vm0, %v2575_v44 }
 0x274   : > { %9505 = vmatprep.mubr.msk.bf16.mxu1 %vm1054_vm0, %v2577_v47 }
 0x276   : > { %v11663_v12 = vpop.permute.xlu1 %2306 }
 0x277   : > { %14847 = vst [vmem:[#allocation24_spill] sm:$0xff] %v11663_v12 }
 0x27a   : > { %v11665_v63 = vpop.permute.xlu1 %2302 }
 0x27b   : > { %14848 = vst [vmem:[#allocation25_spill] sm:$0xff] %v11665_v63  ;;  %9506 = vmatmul.mubr.msk.bf16.gmra.mxu1 %vm1054_vm0, %v2579_v30 }
 0x27c   : > { %9509 = vmatprep.mubr.msk.bf16.mxu1 %vm1054_vm0, %v2581_v55 }
 0x27e   : > { %v11669_v14 = vpop.permute.xlu1 %2837 }
 0x27f   : > { %14849 = vst [vmem:[#allocation26_spill] sm:$0xff] %v11669_v14  ;;  %v11821_v14 = vpop.permute.xlu0 %1789 }
 0x282   : > { %v2583_v21 = vpop.permute.xlu1 %2582 }
 0x283   : > { %9510 = vmatmul.mubr.msk.bf16.gmra.mxu1 %vm1054_vm0, %v2583_v21 }
 0x2cb   : > { %v11672_v59 = vpop.f32.mrf.mxu1 }
 0x2cc   : > { %1180 = vmax.xlane.f32.xlu1 %v11672_v59 }
 0x2cd   : > { %v11675_v62 = vpop.f32.mrf.mxu1 }
 0x2cf   : > { %v11677_v1 = vpop.f32.mrf.mxu1 }
 0x2d0   : > { %1176 = vmax.xlane.f32.xlu1 %v11675_v62 }
 0x2d1   : > { %v11680_v2 = vpop.f32.mrf.mxu1 }
 0x2d2   : > { %1178 = vmax.xlane.f32.xlu0 %v11680_v2 }
 0x2d3   : > { %v11683_v3 = vpop.f32.mrf.mxu1 }
 0x2d4   : > { %1182 = vmax.xlane.f32.xlu1 %v11677_v1 }
 0x2d5   : > { %v11686_v4 = vpop.f32.mrf.mxu1 }
 0x2d6   : > { %1188 = vmax.xlane.f32.xlu0 %v11683_v3 }
 0x2d7   : > { %v11689_v5 = vpop.f32.mrf.mxu1 }
 0x2d8   : > { %1190 = vmax.xlane.f32.xlu1 %v11689_v5 }
 0x2d9   : > { %v11692_v6 = vpop.f32.mrf.mxu1 }
 0x2da   : > { %1184 = vmax.xlane.f32.xlu0 %v11686_v4 }
 0x2db   : > { %v11695_v7 = vpop.f32.mrf.mxu1 }
 0x2dc   : > { %1186 = vmax.xlane.f32.xlu1 %v11692_v6 }
 0x2dd   : > { %v11698_v8 = vpop.f32.mrf.mxu1 }
 0x2de   : > { %1196 = vmax.xlane.f32.xlu0 %v11695_v7 }
 0x2df   : > { %v11701_v53 = vpop.f32.mrf.mxu1 }
 0x2e0   : > { %1198 = vmax.xlane.f32.xlu1 %v11701_v53 }
 0x2e1   : > { %v11704_v11 = vpop.f32.mrf.mxu1 }
 0x2e2   : > { %1192 = vmax.xlane.f32.xlu0 %v11698_v8 }
 0x2e3   : > { %v11707_v13 = vpop.f32.mrf.mxu1 }
 0x2e4   : > { %1194 = vmax.xlane.f32.xlu1 %v11704_v11 }
 0x2e5   : > { %v11710_v9 = vpop.f32.mrf.mxu1 }
 0x2e6   : > { %1204 = vmax.xlane.f32.xlu0 %v11707_v13 }
 0x2e7   : > { %v11713_v22 = vpop.f32.mrf.mxu1 }
 0x2e8   : > { %1206 = vmax.xlane.f32.xlu1 %v11713_v22 }
 0x2e9   : > { %v11716_v15 = vpop.f32.mrf.mxu1 }
 0x2ea   : > { %1200 = vmax.xlane.f32.xlu0 %v11710_v9 }
 0x2eb   : > { %v11719_v16 = vpop.f32.mrf.mxu1 }
 0x2ec   : > { %1202 = vmax.xlane.f32.xlu1 %v11716_v15 }
 0x2ed   : > { %v11722_v35 = vpop.f32.mrf.mxu1 }
 0x2ee   : > { %1655 = vmax.xlane.f32.xlu0 %v11719_v16 }
 0x2ef   : > { %v11725_v49 = vpop.f32.mrf.mxu1 }
 0x2f0   : > { %1657 = vmax.xlane.f32.xlu1 %v11725_v49 }
 0x2f1   : > { %v11728_v18 = vpop.f32.mrf.mxu1 }
 0x2f2   : > { %1651 = vmax.xlane.f32.xlu0 %v11722_v35 }
 0x2f3   : > { %v11731_v19 = vpop.f32.mrf.mxu1 }
 0x2f4   : > { %1653 = vmax.xlane.f32.xlu1 %v11728_v18 }
 0x2f5   : > { %v11734_v20 = vpop.f32.mrf.mxu1 }
 0x2f6   : > { %1663 = vmax.xlane.f32.xlu0 %v11731_v19 }
 0x2f7   : > { %v11737_v23 = vpop.f32.mrf.mxu1 }
 0x2f8   : > { %1659 = vmax.xlane.f32.xlu1 %v11734_v20 }
 0x2f9   : > { %v11740_v24 = vpop.f32.mrf.mxu1 }
 0x2fa   : > { %1661 = vmax.xlane.f32.xlu0 %v11740_v24 }
 0x2fb   : > { %v11743_v26 = vpop.f32.mrf.mxu1 }
 0x2fc   : > { %1665 = vmax.xlane.f32.xlu1 %v11737_v23 }
 0x2fd   : > { %v11746_v28 = vpop.f32.mrf.mxu1 }
 0x2fe   : > { %1671 = vmax.xlane.f32.xlu0 %v11743_v26 }
 0x2ff   : > { %v11749_v29 = vpop.f32.mrf.mxu1 }
 0x300   : > { %1667 = vmax.xlane.f32.xlu1 %v11746_v28 }
 0x301   : > { %v11752_v10 = vpop.f32.mrf.mxu1 }
 0x302   : > { %1669 = vmax.xlane.f32.xlu0 %v11752_v10 }
 0x303   : > { %v11755_v31 = vpop.f32.mrf.mxu1 }
 0x304   : > { %1673 = vmax.xlane.f32.xlu1 %v11749_v29 }
 0x305   : > { %v11758_v32 = vpop.f32.mrf.mxu1 }
 0x306   : > { %1679 = vmax.xlane.f32.xlu0 %v11755_v31 }
 0x307   : > { %v11761_v33 = vpop.f32.mrf.mxu1 }
 0x308   : > { %1675 = vmax.xlane.f32.xlu1 %v11758_v32 }
 0x309   : > { %v11764_v36 = vpop.f32.mrf.mxu1 }
 0x30a   : > { %1677 = vmax.xlane.f32.xlu0 %v11764_v36 }
 0x30b   : > { %v11767_v37 = vpop.f32.mrf.mxu1 }
 0x30c   : > { %1681 = vmax.xlane.f32.xlu1 %v11761_v33 }
 0x30d   : > { %v11770_v38 = vpop.f32.mrf.mxu1 }
 0x30e   : > { %2186 = vmax.xlane.f32.xlu0 %v11767_v37 }
 0x30f   : > { %v11773_v39 = vpop.f32.mrf.mxu1 }
 0x310   : > { %2182 = vmax.xlane.f32.xlu1 %v11770_v38 }
 0x311   : > { %v11776_v41 = vpop.f32.mrf.mxu1 }
 0x312   : > { %2184 = vmax.xlane.f32.xlu0 %v11776_v41 }
 0x313   : > { %v11779_v40 = vpop.f32.mrf.mxu1 }
 0x314   : > { %2188 = vmax.xlane.f32.xlu1 %v11773_v39 }
 0x315   : > { %v11782_v42 = vpop.f32.mrf.mxu1 }
 0x316   : > { %14850 = vst [vmem:[#allocation27_spill] sm:$0xff] %v11782_v42  ;;  %2194 = vmax.xlane.f32.xlu0 %v11779_v40 }
 0x317   : > { %v11785_v43 = vpop.f32.mrf.mxu1 }
 0x318   : > { %14851 = vst [vmem:[#allocation28_spill] sm:$0xff] %v11785_v43  ;;  %2190 = vmax.xlane.f32.xlu1 %v11782_v42 }
 0x319   : > { %v11788_v44 = vpop.f32.mrf.mxu1 }
 0x31a   : > { %14852 = vst [vmem:[#allocation29_spill] sm:$0xff] %v11788_v44  ;;  %2192 = vmax.xlane.f32.xlu0 %v11788_v44 }
 0x31b   : > { %v11791_v45 = vpop.f32.mrf.mxu1 }
 0x31c   : > { %14853 = vst [vmem:[#allocation30_spill] sm:$0xff] %v11791_v45  ;;  %2196 = vmax.xlane.f32.xlu1 %v11785_v43 }
 0x31d   : > { %v11794_v47 = vpop.f32.mrf.mxu1 }
 0x31e   : > { %14854 = vst [vmem:[#allocation31_spill] sm:$0xff] %v11794_v47  ;;  %2202 = vmax.xlane.f32.xlu0 %v11791_v45 }
 0x31f   : > { %v11797_v30 = vpop.f32.mrf.mxu1 }
 0x320   : > { %14855 = vst [vmem:[#allocation32_spill] sm:$0xff] %v11797_v30  ;;  %2198 = vmax.xlane.f32.xlu1 %v11794_v47 }
 0x321   : > { %v11800_v55 = vpop.f32.mrf.mxu1 }
 0x322   : > { %14856 = vst [vmem:[#allocation33_spill] sm:$0xff] %v11800_v55  ;;  %2200 = vmax.xlane.f32.xlu0 %v11800_v55  ;;  %v11850_v55 = vpop.permute.xlu1 %2835 }
 0x323   : > { %v11803_v21 = vpop.f32.mrf.mxu1  ;;  %14869 = vst [vmem:[#allocation46_spill] sm:$0xff] %v11850_v55 }
 0x324   : > { %14857 = vst [vmem:[#allocation34_spill] sm:$0xff] %v11803_v21  ;;  %2204 = vmax.xlane.f32.xlu1 %v11797_v30 }
 0x325   : > { %v11806_v46 = vpop.f32.mrf.mxu1 }
 0x326   : > { %14858 = vst [vmem:[#allocation35_spill] sm:$0xff] %v11806_v46  ;;  %2210 = vmax.xlane.f32.xlu0 %v11803_v21 }
 0x327   : > { %v11809_v0 = vpop.f32.mrf.mxu1 }
 0x328   : > { %14859 = vst [vmem:[#allocation36_spill] sm:$0xff] %v11809_v0  ;;  %2206 = vmax.xlane.f32.xlu1 %v11806_v46 }
 0x329   : > { %v11812_v50 = vpop.f32.mrf.mxu1 }
 0x32a   : > { %14860 = vst [vmem:[#allocation37_spill] sm:$0xff] %v11812_v50  ;;  %2208 = vmax.xlane.f32.xlu0 %v11812_v50  ;;  %v11832_v50 = vpop.permute.xlu0 %1785 }
 0x32b   : > { %v11815_v52 = vpop.f32.mrf.mxu1 }
 0x32c   : > { %14861 = vst [vmem:[#allocation38_spill] sm:$0xff] %v11815_v52  ;;  %2212 = vmax.xlane.f32.xlu1 %v11809_v0 }
 0x32d   : > { %v11818_v51 = vpop.f32.mrf.mxu1 }
 0x32e   : > { %14862 = vst [vmem:[#allocation39_spill] sm:$0xff] %v11818_v51  ;;  %2709 = vmax.xlane.f32.xlu0 %v11815_v52 }
 0x32f   : > { %v11823_v30 = vpop.f32.mrf.mxu1 }
 0x330   : > { %14863 = vst [vmem:[#allocation40_spill] sm:$0xff] %v11823_v30  ;;  %2705 = vmax.xlane.f32.xlu1 %v11818_v51  ;;  %v11843_v51 = vpop.permute.xlu0 %1781 }
 0x331   : > { %v11826_v21 = vpop.f32.mrf.mxu1 }
 0x332   : > { %14864 = vst [vmem:[#allocation41_spill] sm:$0xff] %v11826_v21  ;;  %2707 = vmax.xlane.f32.xlu0 %v11826_v21 }
 0x333   : > { %v11829_v46 = vpop.f32.mrf.mxu1 }
 0x334   : > { %14865 = vst [vmem:[#allocation42_spill] sm:$0xff] %v11829_v46  ;;  %2711 = vmax.xlane.f32.xlu1 %v11823_v30  ;;  %v11846_v21 = vpop.permute.xlu0 %2316 }
 0x335   : > { %v11834_v0 = vpop.f32.mrf.mxu1 }
 0x336   : > { %14866 = vst [vmem:[#allocation43_spill] sm:$0xff] %v11834_v0  ;;  %2717 = vmax.xlane.f32.xlu0 %v11829_v46 }
 0x337   : > { %v11837_v52 = vpop.f32.mrf.mxu1 }
 0x338   : > { %14867 = vst [vmem:[#allocation44_spill] sm:$0xff] %v11837_v52  ;;  %v11848_v30 = vpop.permute.xlu0 %2312 }
 0x339   : > { %v11839_v63 = vpop.f32.mrf.mxu1 }
 0x33a   : > { %14868 = vst [vmem:[#allocation45_spill] sm:$0xff] %v11839_v63  ;;  %2713 = vmax.xlane.f32.xlu0 %v11834_v0  ;;  %2715 = vmax.xlane.f32.xlu1 %v11839_v63  ;;  %v11858_v0 = vpop.permute.xlu1 %2833 }
 0x33b   : > { %14870 = vst [vmem:[#allocation47_spill] sm:$0xff] %v11858_v0 }
 0x33c   : > { %v11854_v46 = vpop.permute.xlu0 %2308 }
 0x33e   : > { %2719 = vmax.xlane.f32.xlu0 %v11837_v52 }
 0x340   : > { %v11860_v63 = vpop.permute.xlu0 %2304 }
 0x341   : > { %14871 = vst [vmem:[#allocation48_spill] sm:$0xff] %v11860_v63 }
 0x344   : > { %v11866_v55 = vpop.permute.xlu0 %2839 }
 0x345   : > { %14872 = vst [vmem:[#allocation49_spill] sm:$0xff] %v11866_v55 }
 0x34b   : > { %2829 = vrot.lane.b32.xlu1 %v11524_v60, %s11077_s25 }
 0x34f   : > { %2827 = vrot.lane.b32.xlu1 %v11534_v56, %s11077_s25 }
 0x353   : > { %2825 = vrot.lane.b32.xlu1 %v11542_v17, %s11077_s25 }
 0x354   : > { %2831 = vrot.lane.b32.xlu0 %v11509_v48, %s11077_s25  ;;  %v11872_v48 = vpop.f32.mrf.mxu1 }
 0x355   : > { %v1181_v52 = vpop.xlane.xlu1 %1180 }
 0x356   : > { %v1210_v60 = vsub.f32 %v11672_v59, %v1181_v52 }
 0x358   : > { %v1228_v12 = vmul.f32 1.442695, %v1210_v60 }
 0x359   : > { %v1177_v47 = vpop.xlane.xlu1 %1176 }
 0x35a   : > { %v1208_v45 = vsub.f32 %v11675_v62, %v1177_v47 }
 0x35b   : > { %v1179_v43 = vpop.xlane.xlu0 %1178 }
 0x35c   : > { %v1224_v56 = vmul.f32 1.442695, %v1208_v45  ;;  %v1209_v0 = vsub.f32 %v11680_v2, %v1179_v43  ;;  %v11875_v45 = vpop.f32.mrf.mxu1 }
 0x35d   : > { %v1183_v63 = vpop.xlane.xlu1 %1182 }
 0x35e   : > { %v1226_v44 = vmul.f32 1.442695, %v1209_v0  ;;  %v1211_v17 = vsub.f32 %v11677_v1, %v1183_v63  ;;  %10136 = vpow2.f32 %v1224_v56 }
 0x35f   : > { %v1189_v42 = vpop.xlane.xlu0 %1188 }
 0x360   : > { %10138 = vpow2.f32 %v1226_v44  ;;  %v1230_v55 = vmul.f32 1.442695, %v1211_v17  ;;  %v1214_v2 = vsub.f32 %v11683_v3, %v1189_v42  ;;  %v11880_v44 = vpop.f32.mrf.mxu1 }
 0x361   : > { %10140 = vpow2.f32 %v1228_v12  ;;  %v1191_v52 = vpop.xlane.xlu1 %1190 }
 0x362   : > { %10142 = vpow2.f32 %v1230_v55  ;;  %v1215_v59 = vsub.f32 %v11689_v5, %v1191_v52  ;;  %v1236_v12 = vmul.f32 1.442695, %v1214_v2  ;;  %v11885_v42 = vpop.f32.mrf.mxu1 }
 0x363   : > { %v1185_v62 = vpop.xlane.xlu0 %1184 }
 0x364   : > { %v1238_v43 = vmul.f32 1.442695, %v1215_v59  ;;  %v1212_v0 = vsub.f32 %v11686_v4, %v1185_v62 }
 0x365   : > { %v1187_v63 = vpop.xlane.xlu1 %1186 }
 0x366   : > { %v1232_v1 = vmul.f32 1.442695, %v1212_v0  ;;  %v1213_v47 = vsub.f32 %v11692_v6, %v1187_v63  ;;  %10144 = vpow2.f32 %v1238_v43 }
 0x367   : > { %v1197_v60 = vpop.xlane.xlu0 %1196 }
 0x368   : > { %v1234_v55 = vmul.f32 1.442695, %v1213_v47  ;;  %10146 = vpow2.f32 %v1232_v1  ;;  %v1218_v4 = vsub.f32 %v11695_v7, %v1197_v60  ;;  %v11898_v47 = vpop.f32.mrf.mxu1 }
 0x369   : > { %v1199_v5 = vpop.xlane.xlu1 %1198 }
 0x36a   : > { %10148 = vpow2.f32 %v1234_v55  ;;  %v1219_v56 = vsub.f32 %v11701_v53, %v1199_v5  ;;  %v1244_v7 = vmul.f32 1.442695, %v1218_v4 }
 0x36b   : > { %v1193_v17 = vpop.xlane.xlu0 %1192  ;;  %v11883_v3 = vpop.eup %10136  ;;  %10150 = vpow2.f32 %v1236_v12 }
 0x36c   : > { %v1246_v6 = vmul.f32 1.442695, %v1219_v56  ;;  %v1216_v52 = vsub.f32 %v11698_v8, %v1193_v17  ;;  %v11906_v56 = vpop.f32.mrf.mxu1 }
 0x36d   : > { %v11889_v59 = vpop.eup %10138  ;;  %v1195_v62 = vpop.xlane.xlu1 %1194 }
 0x36e   : > { %v11891_v2 = vpop.eup %10140  ;;  %v1240_v43 = vmul.f32 1.442695, %v1216_v52  ;;  %v1217_v0 = vsub.f32 %v11704_v11, %v1195_v62  ;;  %v1288_v53 = vpack.c.bf16 %v11889_v59, %v11883_v3  ;;  %10152 = vpow2.f32 %v1246_v6 }
 0x36f   : > { %v11896_v63 = vpop.eup %10142  ;;  %v1205_v1 = vpop.xlane.xlu0 %1204 }
 0x370   : > { %v1242_v60 = vmul.f32 1.442695, %v1217_v0  ;;  %9373 = vmatprep.mubr.bf16.mxu0 %v1288_v53  ;;  %v1289_v8 = vpack.c.bf16 %v11896_v63, %v11891_v2  ;;  %10154 = vpow2.f32 %v1240_v43  ;;  %v1222_v55 = vsub.f32 %v11707_v13, %v1205_v1  ;;  %v11919_v53 = vpop.f32.mrf.mxu1 }
 0x371   : > { %v1207_v12 = vpop.xlane.xlu1 %1206 }
 0x372   : > { %10156 = vpow2.f32 %v1242_v60  ;;  %v1223_v11 = vsub.f32 %v11713_v22, %v1207_v12  ;;  %9374 = vmatmul.mubr.bf16.vlgmr.msra.gmra.mxu0 %v1289_v8  ;;  %v1252_v43 = vmul.f32 1.442695, %v1222_v55 }
 0x373   : > { %9410 = vmatpush3.bf16.msra.mxu0 %v11639_v25  ;;  %v1201_v5 = vpop.xlane.xlu0 %1200  ;;  %2721 = vmax.xlane.f32.xlu0 %v11875_v45  ;;  %10158 = vpow2.f32 %v1244_v7  ;;  %v11910_v6 = vpop.eup %10144 }
 0x374   : > { %v1254_v17 = vmul.f32 1.442695, %v1223_v11  ;;  %9411 = vmatprep.subr.bf16.mxu0 %v11645_v57  ;;  %v1220_v4 = vsub.f32 %v11710_v9, %v1201_v5 }
 0x375   : > { %v1203_v52 = vpop.xlane.xlu1 %1202  ;;  %v11912_v22 = vpop.eup %10146 }
 0x376   : > { %v1248_v62 = vmul.f32 1.442695, %v1220_v4  ;;  %v1221_v13 = vsub.f32 %v11716_v15, %v1203_v52  ;;  %10160 = vpow2.f32 %v1254_v17 }
 0x377   : > { %v11915_v25 = vpop.eup %10148  ;;  %9412 = vmatpush3.bf16.msra.mxu0 %v11645_v57  ;;  %v1656_v0 = vpop.xlane.xlu0 %1655  ;;  %2725 = vmax.xlane.f32.xlu0 %v11872_v48 }
 0x378   : > { %v1250_v9 = vmul.f32 1.442695, %v1221_v13  ;;  %9413 = vmatprep.subr.bf16.mxu0 %v11821_v14  ;;  %v1685_v1 = vsub.f32 %v11719_v16, %v1656_v0  ;;  %2723 = vmax.xlane.f32.xlu1 %v11885_v42  ;;  %v1290_v15 = vpack.c.bf16 %v11915_v25, %v11912_v22  ;;  %v11926_v7 = vpop.eup %10150  ;;  %10162 = vpow2.f32 %v1248_v62  ;;  %v11933_v16 = vpop.f32.mrf.mxu1 }
 0x379   : > { %v1658_v57 = vpop.xlane.xlu1 %1657  ;;  %v1291_v8 = vpack.c.bf16 %v11910_v6, %v11926_v7 }
 0x37a   : > { %10164 = vpow2.f32 %v1250_v9  ;;  %v1686_v60 = vsub.f32 %v11725_v49, %v1658_v57  ;;  %9377 = vmatprep.mubr.bf16.mxu0 %v1290_v15  ;;  %v1703_v11 = vmul.f32 1.442695, %v1685_v1 }
 0x37b   : > { %9414 = vmatpush3.bf16.msra.mxu0 %v11821_v14  ;;  %v1652_v12 = vpop.xlane.xlu0 %1651  ;;  %2727 = vmax.xlane.f32.xlu0 %v11880_v44  ;;  %10166 = vpow2.f32 %v1252_v43  ;;  %v11937_v49 = vpop.eup %10152 }
 0x37c   : > { %v1705_v55 = vmul.f32 1.442695, %v1686_v60  ;;  %9378 = vmatmul.mubr.bf16.gmra.mxu0 %v1291_v8  ;;  %9415 = vmatprep.subr.bf16.mxu0 %v11647_v58  ;;  %v1683_v5 = vsub.f32 %v11722_v35, %v1652_v12 }
 0x37d   : > { %2731 = vmax.xlane.f32.xlu1 %v11933_v16  ;;  %v1654_v17 = vpop.xlane.xlu1 %1653  ;;  %v11940_v4 = vpop.eup %10154 }
 0x37e   : > { %10168 = vpow2.f32 %v1705_v55  ;;  %v1699_v14 = vmul.f32 1.442695, %v1683_v5  ;;  %v1684_v52 = vsub.f32 %v11728_v18, %v1654_v17 }
 0x37f   : > { %v11943_v62 = vpop.eup %10156  ;;  %9416 = vmatpush3.bf16.msra.mxu0 %v11647_v58  ;;  %v1664_v13 = vpop.xlane.xlu0 %1663  ;;  %2729 = vmax.xlane.f32.xlu0 %v11906_v56  ;;  %10170 = vpow2.f32 %v1703_v11 }
 0x380   : > { %v1701_v35 = vmul.f32 1.442695, %v1684_v52  ;;  %9417 = vmatprep.subr.bf16.mxu0 %v11832_v50  ;;  %v1292_v43 = vpack.c.bf16 %v11943_v62, %v11940_v4  ;;  %v11950_v0 = vpop.eup %10158  ;;  %10172 = vpow2.f32 %v1699_v14  ;;  %v1689_v9 = vsub.f32 %v11731_v19, %v1664_v13 }
 0x381   : > { %2735 = vmax.xlane.f32.xlu1 %v11919_v53  ;;  %v1660_v18 = vpop.xlane.xlu1 %1659  ;;  %v1293_v1 = vpack.c.bf16 %v11937_v49, %v11950_v0 }
 0x382   : > { %10174 = vpow2.f32 %v1701_v35  ;;  %v1687_v58 = vsub.f32 %v11734_v20, %v1660_v18  ;;  %9381 = vmatprep.mubr.bf16.mxu0 %v1292_v43  ;;  %v1711_v8 = vmul.f32 1.442695, %v1689_v9 }
 0x383   : > { %9418 = vmatpush3.bf16.msra.mxu0 %v11832_v50  ;;  %v1662_v15 = vpop.xlane.xlu0 %1661  ;;  %2733 = vmax.xlane.f32.xlu0 %v11898_v47  ;;  %v11961_v60 = vpop.eup %10160 }
 0x384   : > { %v1707_v57 = vmul.f32 1.442695, %v1687_v58  ;;  %9382 = vmatmul.mubr.bf16.gmra.mxu0 %v1293_v1  ;;  %9419 = vmatprep.subr.bf16.mxu0 %v11651_v27  ;;  %v1688_v19 = vsub.f32 %v11740_v24, %v1662_v15 }
 0x385   : > { %1258 = vadd.xlane.f32.xlu1 %v11889_v59  ;;  %v1666_v20 = vpop.xlane.xlu1 %1665  ;;  %v11964_v12 = vpop.eup %10162 }
 0x386   : > { %v1709_v11 = vmul.f32 1.442695, %v1688_v19  ;;  %v1690_v50 = vsub.f32 %v11737_v23, %v1666_v20  ;;  %10176 = vpow2.f32 %v1707_v57 }
 0x387   : > { %v11967_v55 = vpop.eup %10164  ;;  %9420 = vmatpush3.bf16.msra.mxu0 %v11651_v27  ;;  %v1672_v5 = vpop.xlane.xlu0 %1671  ;;  %1256 = vadd.xlane.f32.xlu0 %v11883_v3 }
 0x388   : > { %10178 = vpow2.f32 %v1709_v11  ;;  %v1713_v24 = vmul.f32 1.442695, %v1690_v50  ;;  %9421 = vmatprep.subr.bf16.mxu0 %v11843_v51  ;;  %v1294_v59 = vpack.c.bf16 %v11967_v55, %v11964_v12  ;;  %v11974_v17 = vpop.eup %10166  ;;  %v1693_v23 = vsub.f32 %v11743_v26, %v1672_v5 }
 0x389   : > { %10180 = vpow2.f32 %v1711_v8  ;;  %1262 = vadd.xlane.f32.xlu1 %v11896_v63  ;;  %v1668_v14 = vpop.xlane.xlu1 %1667  ;;  %v1295_v3 = vpack.c.bf16 %v11961_v60, %v11974_v17 }
 0x38a   : > { %10182 = vpow2.f32 %v1713_v24  ;;  %v1691_v27 = vsub.f32 %v11746_v28, %v1668_v14  ;;  %9385 = vmatprep.mubr.bf16.mxu0 %v1294_v59  ;;  %v1719_v43 = vmul.f32 1.442695, %v1693_v23 }
 0x38b   : > { %v10169_v52 = vpop.eup %10168  ;;  %9422 = vmatpush3.bf16.msra.mxu0 %v11843_v51  ;;  %v1670_v13 = vpop.xlane.xlu0 %1669  ;;  %1260 = vadd.xlane.f32.xlu0 %v11891_v2 }
 0x38c   : > { %v1715_v35 = vmul.f32 1.442695, %v1691_v27  ;;  %9386 = vmatmul.mubr.bf16.gmra.mxu0 %v1295_v3  ;;  %9423 = vmatprep.subr.bf16.mxu0 %v11653_v34  ;;  %v1692_v26 = vsub.f32 %v11752_v10, %v1670_v13  ;;  %v10171_v63 = vpop.eup %10170 }
 0x38d   : > { %1737 = vadd.xlane.f32.xlu1 %v10169_v52  ;;  %v1674_v28 = vpop.xlane.xlu1 %1673  ;;  %v10173_v9 = vpop.eup %10172 }
 0x38e   : > { %v1717_v18 = vmul.f32 1.442695, %v1692_v26  ;;  %v1694_v58 = vsub.f32 %v11749_v29, %v1674_v28  ;;  %10184 = vpow2.f32 %v1715_v35  ;;  %v1764_v29 = vpack.c.bf16 %v10169_v52, %v10171_v63 }
 0x38f   : > { %v10175_v1 = vpop.eup %10174  ;;  %9424 = vmatpush3.bf16.msra.mxu0 %v11653_v34  ;;  %v1680_v51 = vpop.xlane.xlu0 %1679  ;;  %1735 = vadd.xlane.f32.xlu0 %v10171_v63 }
 0x390   : > { %10186 = vpow2.f32 %v1717_v18  ;;  %v1721_v2 = vmul.f32 1.442695, %v1694_v58  ;;  %9461 = vmatprep.subr.bf16.mxu0 %v11846_v21  ;;  %v1763_v15 = vpack.c.bf16 %v10175_v1, %v10173_v9  ;;  %v1697_v10 = vsub.f32 %v11755_v31, %v1680_v51 }
 0x391   : > { %10188 = vpow2.f32 %v1719_v43  ;;  %1733 = vadd.xlane.f32.xlu1 %v10175_v1  ;;  %v1676_v57 = vpop.xlane.xlu1 %1675 }
 0x392   : > { %10190 = vpow2.f32 %v1721_v2  ;;  %v1695_v19 = vsub.f32 %v11758_v32, %v1676_v57  ;;  %9425 = vmatprep.mubr.bf16.mxu0 %v1763_v15  ;;  %v1727_v5 = vmul.f32 1.442695, %v1697_v10 }
 0x393   : > { %v1678_v8 = vpop.xlane.xlu0 %1677  ;;  %1731 = vadd.xlane.f32.xlu0 %v10173_v9  ;;  %v10177_v34 = vpop.eup %10176 }
 0x394   : > { %v1723_v20 = vmul.f32 1.442695, %v1695_v19  ;;  %9426 = vmatmul.mubr.bf16.vlgmr.msra.gmra.mxu0 %v1764_v29  ;;  %v1696_v11 = vsub.f32 %v11764_v36, %v1678_v8  ;;  %v14874_v29 = vld [vmem:[#allocation29_spill] sm:$0xff] }
 0x395   : > { %v10179_v50 = vpop.eup %10178  ;;  %9462 = vmatpush3.bf16.msra.mxu0 %v11846_v21  ;;  %v1682_v24 = vpop.xlane.xlu1 %1681 }
 0x396   : > { %v10181_v31 = vpop.eup %10180  ;;  %v1725_v59 = vmul.f32 1.442695, %v1696_v11  ;;  %9463 = vmatprep.subr.bf16.mxu0 %v11657_v61  ;;  %v1698_v32 = vsub.f32 %v11761_v33, %v1682_v24  ;;  %v1765_v23 = vpack.c.bf16 %v10179_v50, %v10177_v34  ;;  %10192 = vpow2.f32 %v1723_v20 }
 0x397   : > { %v10183_v14 = vpop.eup %10182  ;;  %v2187_v27 = vpop.xlane.xlu0 %2186  ;;  %1743 = vadd.xlane.f32.xlu0 %v10181_v31 }
 0x398   : > { %10194 = vpow2.f32 %v1725_v59  ;;  %v1729_v3 = vmul.f32 1.442695, %v1698_v32  ;;  %9429 = vmatprep.mubr.bf16.mxu0 %v1765_v23  ;;  %1745 = vadd.xlane.f32.xlu1 %v10183_v14  ;;  %v1766_v36 = vpack.c.bf16 %v10183_v14, %v10181_v31  ;;  %v2216_v21 = vsub.f32 %v11767_v37, %v2187_v27 }
 0x399   : > { %10196 = vpow2.f32 %v1727_v5  ;;  %9464 = vmatpush3.bf16.msra.mxu0 %v11657_v61  ;;  %v2183_v52 = vpop.xlane.xlu1 %2182  ;;  %v14876_v5 = vld [vmem:[#allocation28_spill] sm:$0xff] }
 0x39a   : > { %10198 = vpow2.f32 %v1729_v3  ;;  %9465 = vmatprep.subr.bf16.mxu0 %v11848_v30  ;;  %v2214_v33 = vsub.f32 %v11770_v38, %v2183_v52  ;;  %v2234_v28 = vmul.f32 1.442695, %v2216_v21  ;;  %v14879_v21 = vld [vmem:[#allocation31_spill] sm:$0xff] }
 0x39b   : > { %v2185_v13 = vpop.xlane.xlu0 %2184  ;;  %1739 = vadd.xlane.f32.xlu0 %v10177_v34  ;;  %v10185_v35 = vpop.eup %10184 }
 0x39c   : > { %v2230_v26 = vmul.f32 1.442695, %v2214_v33  ;;  %9430 = vmatmul.mubr.bf16.gmra.mxu0 %v1766_v36  ;;  %v2215_v63 = vsub.f32 %v11776_v41, %v2185_v13  ;;  %1741 = vadd.xlane.f32.xlu1 %v10179_v50  ;;  %v14875_v50 = vld [vmem:[#allocation24_spill] sm:$0xff] }
 0x39d   : > { %v10187_v43 = vpop.eup %10186  ;;  %9466 = vmatpush3.bf16.msra.mxu0 %v11848_v30  ;;  %v2189_v61 = vpop.xlane.xlu1 %2188  ;;  %v14878_v36 = vld [vmem:[#allocation48_spill] sm:$0xff] }
 0x39e   : > { %v10189_v37 = vpop.eup %10188  ;;  %v2232_v9 = vmul.f32 1.442695, %v2215_v63  ;;  %9467 = vmatprep.subr.bf16.mxu0 %v11659_v54  ;;  %v2217_v18 = vsub.f32 %v11773_v39, %v2189_v61  ;;  %v1767_v38 = vpack.c.bf16 %v10187_v43, %v10185_v35  ;;  %10200 = vpow2.f32 %v2230_v26  ;;  %v14873_v39 = vld [vmem:[#allocation27_spill] sm:$0xff]  ;;  %v14880_v26 = vld [vmem:[#allocation33_spill] sm:$0xff] }
 0x39f   : > { %v10191_v58 = vpop.eup %10190  ;;  %v2195_v1 = vpop.xlane.xlu0 %2194  ;;  %1751 = vadd.xlane.f32.xlu0 %v10189_v37 }
 0x3a0   : > { %10202 = vpow2.f32 %v2232_v9  ;;  %v2236_v51 = vmul.f32 1.442695, %v2217_v18  ;;  %9433 = vmatprep.mubr.bf16.mxu0 %v1767_v38  ;;  %1753 = vadd.xlane.f32.xlu1 %v10191_v58  ;;  %v1768_v41 = vpack.c.bf16 %v10191_v58, %v10189_v37  ;;  %v2220_v30 = vsub.f32 %v11779_v40, %v2195_v1  ;;  %v14881_v18 = vld [vmem:[#allocation25_spill] sm:$0xff]  ;;  %v14882_v38 = vld [vmem:[#allocation32_spill] sm:$0xff] }
 0x3a1   : > { %10204 = vpow2.f32 %v2234_v28  ;;  %9468 = vmatpush3.bf16.msra.mxu0 %v11659_v54  ;;  %v2191_v2 = vpop.xlane.xlu1 %2190 }
 0x3a2   : > { %10206 = vpow2.f32 %v2236_v51  ;;  %9469 = vmatprep.subr.bf16.mxu0 %v11854_v46  ;;  %v2218_v15 = vsub.f32 %v14873_v39, %v2191_v2  ;;  %v2242_v20 = vmul.f32 1.442695, %v2220_v30  ;;  %v14883_v39 = vld [vmem:[#allocation34_spill] sm:$0xff] }
 0x3a3   : > { %v2193_v10 = vpop.xlane.xlu0 %2192  ;;  %1747 = vadd.xlane.f32.xlu0 %v10185_v35  ;;  %v10193_v57 = vpop.eup %10192 }
 0x3a4   : > { %v2238_v19 = vmul.f32 1.442695, %v2218_v15  ;;  %9434 = vmatmul.mubr.bf16.gmra.mxu0 %v1768_v41  ;;  %v2219_v8 = vsub.f32 %v14874_v29, %v2193_v10  ;;  %1749 = vadd.xlane.f32.xlu1 %v10187_v43 }
 0x3a5   : > { %v10195_v34 = vpop.eup %10194  ;;  %9470 = vmatpush3.bf16.msra.mxu0 %v11854_v46  ;;  %v2197_v54 = vpop.xlane.xlu1 %2196  ;;  %v14877_v46 = vld [vmem:[#allocation30_spill] sm:$0xff] }
 0x3a6   : > { %v10197_v40 = vpop.eup %10196  ;;  %v2240_v11 = vmul.f32 1.442695, %v2219_v8  ;;  %9471 = vmatprep.subr.bf16.mxu0 %v14875_v50  ;;  %v2221_v24 = vsub.f32 %v14876_v5, %v2197_v54  ;;  %v1769_v31 = vpack.c.bf16 %v10195_v34, %v10193_v57  ;;  %10208 = vpow2.f32 %v2238_v19  ;;  %v14885_v19 = vld [vmem:[#allocation35_spill] sm:$0xff]  ;;  %v14886_v54 = vld [vmem:[#allocation37_spill] sm:$0xff] }
 0x3a7   : > { %v10199_v59 = vpop.eup %10198  ;;  %v2203_v32 = vpop.xlane.xlu0 %2202  ;;  %1759 = vadd.xlane.f32.xlu0 %v10197_v40 }
 0x3a8   : > { %10210 = vpow2.f32 %v2240_v11  ;;  %v2244_v23 = vmul.f32 1.442695, %v2221_v24  ;;  %9437 = vmatprep.mubr.bf16.mxu0 %v1769_v31  ;;  %1761 = vadd.xlane.f32.xlu1 %v10199_v59  ;;  %v1770_v14 = vpack.c.bf16 %v10199_v59, %v10197_v40  ;;  %v2224_v27 = vsub.f32 %v14877_v46, %v2203_v32  ;;  %v14887_v59 = vld [vmem:[#allocation26_spill] sm:$0xff]  ;;  %v14888_v32 = vld [vmem:[#allocation36_spill] sm:$0xff] }
 0x3a9   : > { %10212 = vpow2.f32 %v2242_v20  ;;  %9472 = vmatpush3.bf16.msra.mxu0 %v14875_v50  ;;  %v2199_v3 = vpop.xlane.xlu1 %2198 }
 0x3aa   : > { %10214 = vpow2.f32 %v2244_v23  ;;  %9473 = vmatprep.subr.bf16.mxu0 %v14878_v36  ;;  %v2222_v52 = vsub.f32 %v14879_v21, %v2199_v3  ;;  %v2250_v28 = vmul.f32 1.442695, %v2224_v27  ;;  %v14889_v21 = vld [vmem:[#allocation38_spill] sm:$0xff] }
 0x3ab   : > { %v2201_v33 = vpop.xlane.xlu0 %2200  ;;  %1755 = vadd.xlane.f32.xlu0 %v10193_v57  ;;  %v10201_v13 = vpop.eup %10200  ;;  %v14884_v57 = vld [vmem:[#allocation49_spill] sm:$0xff] }
 0x3ac   : > { %v2246_v35 = vmul.f32 1.442695, %v2222_v52  ;;  %9438 = vmatmul.mubr.bf16.gmra.mxu0 %v1770_v14  ;;  %v2223_v63 = vsub.f32 %v14880_v26, %v2201_v33  ;;  %1757 = vadd.xlane.f32.xlu1 %v10195_v34 }
 0x3ad   : > { %v10203_v43 = vpop.eup %10202  ;;  %9474 = vmatpush3.bf16.msra.mxu0 %v14878_v36  ;;  %v2205_v61 = vpop.xlane.xlu1 %2204 }
 0x3ae   : > { %v10205_v37 = vpop.eup %10204  ;;  %v2248_v9 = vmul.f32 1.442695, %v2223_v63  ;;  %9475 = vmatprep.subr.bf16.mxu0 %v14881_v18  ;;  %v2225_v58 = vsub.f32 %v14882_v38, %v2205_v61  ;;  %v2294_v1 = vpack.c.bf16 %v10203_v43, %v10201_v13  ;;  %10216 = vpow2.f32 %v2246_v35  ;;  %v14891_v35 = vld [vmem:[#allocation39_spill] sm:$0xff]  ;;  %v14892_v61 = vld [vmem:[#allocation41_spill] sm:$0xff] }
 0x3af   : > { %v10207_v51 = vpop.eup %10206  ;;  %v2211_v41 = vpop.xlane.xlu0 %2210  ;;  %2266 = vadd.xlane.f32.xlu0 %v10205_v37 }
 0x3b0   : > { %10218 = vpow2.f32 %v2248_v9  ;;  %v2252_v30 = vmul.f32 1.442695, %v2225_v58  ;;  %9477 = vmatprep.mubr.bf16.mxu0 %v2294_v1  ;;  %2268 = vadd.xlane.f32.xlu1 %v10207_v51  ;;  %v2295_v2 = vpack.c.bf16 %v10207_v51, %v10205_v37  ;;  %v2228_v15 = vsub.f32 %v14883_v39, %v2211_v41  ;;  %v14893_v51 = vld [vmem:[#allocation47_spill] sm:$0xff]  ;;  %v14894_v41 = vld [vmem:[#allocation40_spill] sm:$0xff] }
 0x3b1   : > { %10220 = vpow2.f32 %v2250_v28  ;;  %9476 = vmatpush3.bf16.msra.mxu0 %v14881_v18  ;;  %v2207_v10 = vpop.xlane.xlu1 %2206 }
 0x3b2   : > { %10222 = vpow2.f32 %v2252_v30  ;;  %9513 = vmatprep.subr.bf16.mxu0 %v14884_v57  ;;  %v2226_v29 = vsub.f32 %v14885_v19, %v2207_v10  ;;  %v2258_v50 = vmul.f32 1.442695, %v2228_v15  ;;  %v14895_v19 = vld [vmem:[#allocation42_spill] sm:$0xff] }
 0x3b3   : > { %v2209_v8 = vpop.xlane.xlu0 %2208  ;;  %2262 = vadd.xlane.f32.xlu0 %v10201_v13  ;;  %v10209_v34 = vpop.eup %10208  ;;  %v14890_v13 = vld [vmem:[#allocation46_spill] sm:$0xff] }
 0x3b4   : > { %v2254_v20 = vmul.f32 1.442695, %v2226_v29  ;;  %9478 = vmatmul.mubr.bf16.vlgmr.msra.gmra.mxu0 %v2295_v2  ;;  %v2227_v40 = vsub.f32 %v14886_v54, %v2209_v8  ;;  %2264 = vadd.xlane.f32.xlu1 %v10203_v43  ;;  %v14896_v54 = vld [vmem:[#allocation43_spill] sm:$0xff] }
 0x3b5   : > { %v10211_v11 = vpop.eup %10210  ;;  %9514 = vmatpush3.bf16.msra.mxu0 %v14884_v57  ;;  %v2213_v5 = vpop.xlane.xlu1 %2212 }
 0x3b6   : > { %v10213_v24 = vpop.eup %10212  ;;  %v2256_v31 = vmul.f32 1.442695, %v2227_v40  ;;  %9515 = vmatprep.subr.bf16.mxu0 %v14887_v59  ;;  %v2229_v23 = vsub.f32 %v14888_v32, %v2213_v5  ;;  %v2296_v14 = vpack.c.bf16 %v10211_v11, %v10209_v34  ;;  %10224 = vpow2.f32 %v2254_v20 }
 0x3b7   : > { %v10215_v46 = vpop.eup %10214  ;;  %v2710_v27 = vpop.xlane.xlu0 %2709  ;;  %2274 = vadd.xlane.f32.xlu0 %v10213_v24 }
 0x3b8   : > { %10226 = vpow2.f32 %v2256_v31  ;;  %v2260_v3 = vmul.f32 1.442695, %v2229_v23  ;;  %9481 = vmatprep.mubr.bf16.mxu0 %v2296_v14  ;;  %2276 = vadd.xlane.f32.xlu1 %v10215_v46  ;;  %v2297_v36 = vpack.c.bf16 %v10215_v46, %v10213_v24  ;;  %v2739_v52 = vsub.f32 %v14889_v21, %v2710_v27  ;;  %v14898_v27 = vld [vmem:[#allocation44_spill] sm:$0xff] }
 0x3b9   : > { %10228 = vpow2.f32 %v2258_v50  ;;  %9516 = vmatpush3.bf16.msra.mxu0 %v14887_v59  ;;  %v2706_v33 = vpop.xlane.xlu1 %2705 }
 0x3ba   : > { %10230 = vpow2.f32 %v2260_v3  ;;  %9517 = vmatprep.subr.bf16.mxu0 %v14890_v13  ;;  %v2737_v26 = vsub.f32 %v14891_v35, %v2706_v33  ;;  %v2757_v18 = vmul.f32 1.442695, %v2739_v52 }
 0x3bb   : > { %v2708_v63 = vpop.xlane.xlu0 %2707  ;;  %2270 = vadd.xlane.f32.xlu0 %v10209_v34  ;;  %v10217_v43 = vpop.eup %10216 }
 0x3bc   : > { %v2753_v28 = vmul.f32 1.442695, %v2737_v26  ;;  %9482 = vmatmul.mubr.bf16.gmra.mxu0 %v2297_v36  ;;  %v2738_v37 = vsub.f32 %v14892_v61, %v2708_v63  ;;  %2272 = vadd.xlane.f32.xlu1 %v10211_v11  ;;  %v14897_v11 = vld [vmem:[#allocation45_spill] sm:$0xff] }
 0x3bd   : > { %v10219_v9 = vpop.eup %10218  ;;  %9518 = vmatpush3.bf16.msra.mxu0 %v14890_v13  ;;  %v2712_v38 = vpop.xlane.xlu1 %2711 }
 0x3be   : > { %v10221_v58 = vpop.eup %10220  ;;  %v2755_v1 = vmul.f32 1.442695, %v2738_v37  ;;  %9519 = vmatprep.subr.bf16.mxu0 %v14893_v51  ;;  %v2740_v30 = vsub.f32 %v14894_v41, %v2712_v38  ;;  %v2298_v2 = vpack.c.bf16 %v10219_v9, %v10217_v43  ;;  %10232 = vpow2.f32 %v2753_v28 }
 0x3bf   : > { %v10223_v39 = vpop.eup %10222  ;;  %v2718_v15 = vpop.xlane.xlu0 %2717  ;;  %2282 = vadd.xlane.f32.xlu0 %v10221_v58 }
 0x3c0   : > { %10234 = vpow2.f32 %v2755_v1  ;;  %v2759_v10 = vmul.f32 1.442695, %v2740_v30  ;;  %9485 = vmatprep.mubr.bf16.mxu0 %v2298_v2  ;;  %2284 = vadd.xlane.f32.xlu1 %v10223_v39  ;;  %v2299_v57 = vpack.c.bf16 %v10223_v39, %v10221_v58  ;;  %v2743_v29 = vsub.f32 %v14895_v19, %v2718_v15 }
 0x3c1   : > { %10236 = vpow2.f32 %v2757_v18  ;;  %9520 = vmatpush3.bf16.msra.mxu0 %v14893_v51 }
 0x3c2   : > { %10238 = vpow2.f32 %v2759_v10  ;;  %v2765_v24 = vmul.f32 1.442695, %v2743_v29 }
 0x3c3   : > { %v2714_v8 = vpop.xlane.xlu0 %2713  ;;  %v2716_v34 = vpop.xlane.xlu1 %2715  ;;  %2278 = vadd.xlane.f32.xlu0 %v10217_v43 }
 0x3c4   : > { %v10225_v20 = vpop.eup %10224  ;;  %9486 = vmatmul.mubr.bf16.gmra.mxu0 %v2299_v57  ;;  %v2741_v40 = vsub.f32 %v14896_v54, %v2714_v8  ;;  %v2742_v50 = vsub.f32 %v14897_v11, %v2716_v34  ;;  %2280 = vadd.xlane.f32.xlu1 %v10219_v9  ;;  %10240 = vpow2.f32 %v2765_v24 }
 0x3c5   : > { %v10227_v5 = vpop.eup %10226 }
 0x3c6   : > { %v10229_v31 = vpop.eup %10228  ;;  %v2761_v59 = vmul.f32 1.442695, %v2741_v40  ;;  %v2300_v32 = vpack.c.bf16 %v10227_v5, %v10225_v20  ;;  %v2763_v14 = vmul.f32 1.442695, %v2742_v50 }
 0x3c7   : > { %v10231_v23 = vpop.eup %10230  ;;  %v2720_v46 = vpop.xlane.xlu0 %2719  ;;  %2290 = vadd.xlane.f32.xlu0 %v10229_v31 }
 0x3c8   : > { %v2744_v3 = vsub.f32 %v14898_v27, %v2720_v46  ;;  %9489 = vmatprep.mubr.bf16.mxu0 %v2300_v32  ;;  %2292 = vadd.xlane.f32.xlu1 %v10231_v23  ;;  %v2301_v36 = vpack.c.bf16 %v10231_v23, %v10229_v31  ;;  %v2830_v21 = vpop.permute.xlu1 %2829  ;;  %10242 = vpow2.f32 %v2761_v59 }
 0x3c9   : > { %10244 = vpow2.f32 %v2763_v14 }
 0x3ca   : > { %v2767_v52 = vmul.f32 1.442695, %v2744_v3 }
 0x3cb   : > { %v2832_v33 = vpop.permute.xlu0 %2831  ;;  %2286 = vadd.xlane.f32.xlu0 %v10225_v20  ;;  %v10233_v13 = vpop.eup %10232 }
 0x3cc   : > { %10246 = vpow2.f32 %v2767_v52  ;;  %9490 = vmatmul.mubr.bf16.gmra.mxu0 %v2301_v36  ;;  %9521 = vmatprep.subr.bf16.mxu0 %v2832_v33  ;;  %v2828_v28 = vpop.permute.xlu1 %2827 }
 0x3cd   : > { %v10235_v35 = vpop.eup %10234  ;;  %2288 = vadd.xlane.f32.xlu1 %v10227_v5  ;;  %9522 = vmatpush3.bf16.msra.mxu0 %v2832_v33 }
 0x3ce   : > { %v10237_v26 = vpop.eup %10236  ;;  %9523 = vmatprep.subr.bf16.mxu0 %v2830_v21  ;;  %v2817_v63 = vpack.c.bf16 %v10235_v35, %v10233_v13 }
 0x3cf   : > { %v10239_v43 = vpop.eup %10238  ;;  %2789 = vadd.xlane.f32.xlu0 %v10237_v26 }
 0x3d0   : > { %9529 = vmatprep.mubr.bf16.mxu0 %v2817_v63  ;;  %v2826_v61 = vpop.permute.xlu1 %2825  ;;  %v2818_v58 = vpack.c.bf16 %v10239_v43, %v10237_v26 }
 0x3d1   : > { %2791 = vadd.xlane.f32.xlu1 %v10239_v43  ;;  %9524 = vmatpush3.bf16.msra.mxu0 %v2830_v21  ;;  %v10241_v37 = vpop.eup %10240 }
 0x3d2   : > { %9525 = vmatprep.subr.bf16.mxu0 %v2828_v28 }
 0x3d3   : > { %2785 = vadd.xlane.f32.xlu0 %v10233_v13 }
 0x3d5   : > { %2787 = vadd.xlane.f32.xlu1 %v10235_v35  ;;  %9526 = vmatpush3.bf16.msra.mxu0 %v2828_v28  ;;  %v10243_v9 = vpop.eup %10242  ;;  %v14899_v35 = vmov 0  }
 0x3d6   : > { %9527 = vmatprep.subr.bf16.mxu0 %v2826_v61  ;;  %v10245_v18 = vpop.eup %10244 }
 0x3d7   : > { %2797 = vadd.xlane.f32.xlu0 %v10241_v37  ;;  %v2819_v1 = vpack.c.bf16 %v10245_v18, %v10243_v9 }
 0x3d9   : > { %v10247_v38 = vpop.eup %10246  ;;  %9528 = vmatpush3.bf16.msra.mxu0 %v2826_v61 }
 0x3da   : > { %2799 = vadd.xlane.f32.xlu1 %v10247_v38  ;;  %v2820_v51 = vpack.c.bf16 %v10247_v38, %v10241_v37 }
 0x3db   : > { %2793 = vadd.xlane.f32.xlu0 %v10243_v9 }
 0x3dc   : > { %9530 = vmatmul.mubr.bf16.vlgmr.msra.gmra.mxu0 %v2818_v58 }
 0x3dd   : > { %9533 = vmatprep.mubr.bf16.mxu0 %v2819_v1 }
 0x3de   : > { %2795 = vadd.xlane.f32.xlu1 %v10245_v18 }
 0x3e4   : > { %9534 = vmatmul.mubr.bf16.gmra.mxu0 %v2820_v51 }
 0x3fc   : > { %v2722_v41 = vpop.xlane.xlu0 %2721 }
 0x3fd   : > { %v2745_v30 = vsub.f32 %v11875_v45, %v2722_v41 }
 0x3ff   : > { %v2769_v2 = vmul.f32 1.442695, %v2745_v30 }
 0x400   : > { %v2726_v39 = vpop.xlane.xlu0 %2725 }
 0x401   : > { %v2747_v15 = vsub.f32 %v11872_v48, %v2726_v39  ;;  %v2724_v10 = vpop.xlane.xlu1 %2723  ;;  %10248 = vpow2.f32 %v2769_v2 }
 0x402   : > { %v2746_v57 = vsub.f32 %v11885_v42, %v2724_v10 }
 0x403   : > { %v2773_v19 = vmul.f32 1.442695, %v2747_v15 }
 0x404   : > { %v2771_v29 = vmul.f32 1.442695, %v2746_v57  ;;  %v2728_v8 = vpop.xlane.xlu0 %2727 }
 0x405   : > { %10250 = vpow2.f32 %v2773_v19  ;;  %v2748_v34 = vsub.f32 %v11880_v44, %v2728_v8 }
 0x406   : > { %10252 = vpow2.f32 %v2771_v29  ;;  %v2732_v20 = vpop.xlane.xlu1 %2731 }
 0x407   : > { %v2775_v54 = vmul.f32 1.442695, %v2748_v34  ;;  %v2750_v40 = vsub.f32 %v11933_v16, %v2732_v20 }
 0x408   : > { %v2730_v45 = vpop.xlane.xlu0 %2729 }
 0x409   : > { %10254 = vpow2.f32 %v2775_v54  ;;  %v2779_v11 = vmul.f32 1.442695, %v2750_v40  ;;  %v2749_v48 = vsub.f32 %v11906_v56, %v2730_v45 }
 0x40a   : > { %v2736_v50 = vpop.xlane.xlu1 %2735 }
 0x40b   : > { %v2777_v5 = vmul.f32 1.442695, %v2749_v48  ;;  %v2752_v42 = vsub.f32 %v11919_v53, %v2736_v50  ;;  %10256 = vpow2.f32 %v2779_v11 }
 0x40c   : > { %v2734_v24 = vpop.xlane.xlu0 %2733 }
 0x40d   : > { %10258 = vpow2.f32 %v2777_v5  ;;  %v2783_v31 = vmul.f32 1.442695, %v2752_v42  ;;  %v2751_v44 = vsub.f32 %v11898_v47, %v2734_v24 }
 0x40e   : > { %v10249_v32 = vpop.eup %10248  ;;  %v1259_v33 = vpop.xlane.xlu1 %1258 }
 0x40f   : > { %v2781_v59 = vmul.f32 1.442695, %v2751_v44  ;;  %10260 = vpow2.f32 %v2783_v31 }
 0x410   : > { %v1257_v36 = vpop.xlane.xlu0 %1256 }
 0x411   : > { %10262 = vpow2.f32 %v2781_v59 }
 0x412   : > { %v10251_v16 = vpop.eup %10250  ;;  %v1263_v26 = vpop.xlane.xlu1 %1262 }
 0x413   : > { %v10253_v23 = vpop.eup %10252  ;;  %2805 = vadd.xlane.f32.xlu0 %v10251_v16 }
 0x414   : > { %v2821_v14 = vpack.c.bf16 %v10253_v23, %v10249_v32  ;;  %v1261_v13 = vpop.xlane.xlu0 %1260 }
 0x415   : > { %10264 = vrcp.f32 %v1261_v13 }
 0x416   : > { %v10255_v46 = vpop.eup %10254  ;;  %9537 = vmatprep.mubr.bf16.mxu0 %v2821_v14  ;;  %10266 = vrcp.f32 %v1257_v36  ;;  %v1738_v43 = vpop.xlane.xlu1 %1737 }
 0x417   : > { %2801 = vadd.xlane.f32.xlu0 %v10249_v32  ;;  %2807 = vadd.xlane.f32.xlu1 %v10255_v46  ;;  %v2822_v56 = vpack.c.bf16 %v10255_v46, %v10251_v16  ;;  %10268 = vrcp.f32 %v1263_v26 }
 0x418   : > { %v10257_v53 = vpop.eup %10256  ;;  %v1736_v63 = vpop.xlane.xlu0 %1735  ;;  %10270 = vrcp.f32 %v1259_v33 }
 0x419   : > { %9538 = vmatmul.mubr.bf16.gmra.mxu0 %v2822_v56  ;;  %10272 = vrcp.f32 %v1736_v63 }
 0x41a   : > { %v10259_v27 = vpop.eup %10258  ;;  %v1734_v18 = vpop.xlane.xlu1 %1733 }
 0x41b   : > { %2803 = vadd.xlane.f32.xlu1 %v10253_v23  ;;  %v2823_v3 = vpack.c.bf16 %v10257_v53, %v10259_v27 }
 0x41c   : > { %v10261_v47 = vpop.eup %10260 }
 0x41d   : > { %9541 = vmatprep.mubr.bf16.mxu0 %v2823_v3 }
 0x41e   : > { %v10263_v21 = vpop.eup %10262 }
 0x41f   : > { %2813 = vadd.xlane.f32.xlu0 %v10263_v21  ;;  %1266 = vadd.xlane.f32.xlu1 %v11915_v25  ;;  %v2824_v52 = vpack.c.bf16 %v10261_v47, %v10263_v21  ;;  %v1732_v25 = vpop.xlane.xlu0 %1731 }
 0x420   : > { %10274 = vrcp.f32 %v1732_v25 }
 0x421   : > { %9542 = vmatmul.mubr.bf16.gmra.mxu0 %v2824_v52  ;;  %v12059_v30 = vpop.xlane.xlu1 %1745  ;;  %10276 = vrcp.f32 %v1738_v43 }
 0x422   : > { %3710 = vmatprep.mubr.bf16.mxu0 %v14899_v35  ;;  %v10265_v28 = vpop.eup %10264  ;;  %10278 = vrcp.f32 %v1734_v18 }
 0x423   : > { %2809 = vadd.xlane.f32.xlu0 %v10259_v27  ;;  %2815 = vadd.xlane.f32.xlu1 %v10261_v47  ;;  %v12056_v9 = vpop.xlane.xlu0 %1743 }
 0x425   : > { %v1742_v57 = vpop.xlane.xlu1 %1741 }
 0x427   : > { %1264 = vadd.xlane.f32.xlu0 %v11912_v22  ;;  %2811 = vadd.xlane.f32.xlu1 %v10257_v53  ;;  %v10267_v22 = vpop.eup %10266  ;;  %v1740_v2 = vpop.xlane.xlu0 %1739 }
 0x428   : > { %v10269_v58 = vpop.eup %10268  ;;  %10280 = vrcp.f32 %v1740_v2 }
 0x429   : > { %v10271_v51 = vpop.eup %10270  ;;  %v12076_v20 = vpop.xlane.xlu1 %1753  ;;  %10282 = vrcp.f32 %v1742_v57 }
 0x42a   : > { %v10273_v32 = vpop.eup %10272 }
 0x42b   : > { %1268 = vadd.xlane.f32.xlu0 %v11926_v7  ;;  %1270 = vadd.xlane.f32.xlu1 %v11910_v6  ;;  %v12068_v19 = vpop.xlane.xlu0 %1751 }
 0x42d   : > { %v12086_v48 = vpop.xlane.xlu1 %1749  ;;  %v10275_v14 = vpop.eup %10274 }
 0x42e   : > { %v10277_v3 = vpop.eup %10276 }
 0x42f   : > { %1274 = vadd.xlane.f32.xlu0 %v11943_v62  ;;  %1272 = vadd.xlane.f32.xlu1 %v11940_v4  ;;  %v12078_v54 = vpop.xlane.xlu0 %1747  ;;  %v10279_v52 = vpop.eup %10278 }
 0x431   : > { %v12096_v31 = vpop.xlane.xlu1 %1761 }
 0x432   : > { %v9375_v61 = vpop.f32.mrf.mxu0  ;;  %14903 = vst [vmem:[#allocation28_spill] sm:$0xff] %v12096_v31 }
 0x433   : > { %v1411_v37 = vmul.f32 %v10265_v28, %v9375_v61  ;;  %1276 = vadd.xlane.f32.xlu0 %v11950_v0  ;;  %1278 = vadd.xlane.f32.xlu1 %v11937_v49  ;;  %v12088_v50 = vpop.xlane.xlu0 %1759 }
 0x434   : > { %v1330_v7 = vpop.f32.mrf.mxu0 }
 0x435   : > { %v8778_v6 = vpack.c.bf16 %v1411_v37, %v1411_v37  ;;  %v1409_v38 = vmul.f32 %v10267_v22, %v1330_v7  ;;  %v12102_v56 = vpop.xlane.xlu1 %1757  ;;  %v10281_v28 = vpop.eup %10280 }
 0x436   : > { %v9376_v1 = vpop.f32.mrf.mxu0 }
 0x437   : > { %1492 = vst.msk [vmem:[#allocation2 + $0x8] sm:$0xf] %vm1489_vm1, %v8778_v6  ;;  %v8776_v4 = vpack.c.bf16 %v1409_v38, %v1409_v38  ;;  %v1412_v62 = vmul.f32 %v10269_v58, %v9376_v1  ;;  %v12098_v44 = vpop.xlane.xlu0 %1755  ;;  %v10283_v38 = vpop.eup %10282 }
 0x438   : > { %v1333_v41 = vpop.f32.mrf.mxu0 }
 0x439   : > { %1490 = vst.msk [vmem:[#allocation2] sm:$0xf] %vm1489_vm1, %v8776_v4  ;;  %v8779_v49 = vpack.c.bf16 %v1412_v62, %v1412_v62  ;;  %v1410_v0 = vmul.f32 %v10271_v51, %v1333_v41  ;;  %v2269_v43 = vpop.xlane.xlu1 %2268 }
 0x43b   : > { %1493 = vst.msk [vmem:[#allocation2 + $0xc] sm:$0xf] %vm1489_vm1, %v8779_v49  ;;  %v8777_v39 = vpack.c.bf16 %v1410_v0, %v1410_v0  ;;  %v2267_v36 = vpop.xlane.xlu0 %2266 }
 0x43c   : > { %v12063_v15 = vpop.f32.mrf.mxu0  ;;  %10284 = vrcp.f32 %v2267_v36 }
 0x43d   : > { %1491 = vst.msk [vmem:[#allocation2 + $0x4] sm:$0xf] %vm1489_vm1, %v8777_v39  ;;  %v2265_v1 = vpop.xlane.xlu1 %2264 }
 0x43e   : > { %v12066_v10 = vpop.f32.mrf.mxu0 }
 0x43f   : > { %v2263_v61 = vpop.xlane.xlu0 %2262 }
 0x440   : > { %v12070_v29 = vpop.f32.mrf.mxu0  ;;  %10286 = vrcp.f32 %v2263_v61 }
 0x441   : > { %v12122_v2 = vpop.xlane.xlu1 %2276  ;;  %10288 = vrcp.f32 %v2269_v43 }
 0x442   : > { %v12072_v8 = vpop.f32.mrf.mxu0  ;;  %10290 = vrcp.f32 %v2265_v1 }
 0x443   : > { %v12113_v62 = vpop.xlane.xlu0 %2274 }
 0x444   : > { %v12074_v34 = vpop.f32.mrf.mxu0 }
 0x446   : > { %v12080_v40 = vpop.f32.mrf.mxu0 }
 0x447   : > { %v12124_v39 = vpop.xlane.xlu0 %2270 }
 0x448   : > { %v12082_v45 = vpop.f32.mrf.mxu0 }
 0x44a   : > { %v12084_v11 = vpop.f32.mrf.mxu0 }
 0x44c   : > { %v12090_v5 = vpop.f32.mrf.mxu0 }
 0x44d   : > { %14900 = vst [vmem:[#allocation27_spill] sm:$0xff] %v12090_v5 }
 0x44e   : > { %v12092_v42 = vpop.f32.mrf.mxu0 }
 0x44f   : > { %14901 = vst [vmem:[#allocation29_spill] sm:$0xff] %v12092_v42 }
 0x450   : > { %v12094_v24 = vpop.f32.mrf.mxu0 }
 0x451   : > { %14902 = vst [vmem:[#allocation24_spill] sm:$0xff] %v12094_v24 }
 0x452   : > { %v12100_v59 = vpop.f32.mrf.mxu0 }
 0x453   : > { %14904 = vst [vmem:[#allocation30_spill] sm:$0xff] %v12100_v59 }
 0x454   : > { %v9427_v16 = vpop.f32.mrf.mxu0 }
 0x455   : > { %v1918_v23 = vmul.f32 %v10273_v32, %v9427_v16 }
 0x456   : > { %v1837_v46 = vpop.f32.mrf.mxu0 }
 0x457   : > { %v8794_v53 = vpack.c.bf16 %v1918_v23, %v1918_v23  ;;  %v1916_v27 = vmul.f32 %v10275_v14, %v1837_v46  ;;  %v12132_v23 = vpop.xlane.xlu1 %2272  ;;  %v12134_v14 = vpop.xlane.xlu0 %2282 }
 0x458   : > { %v9428_v47 = vpop.f32.mrf.mxu0 }
 0x459   : > { %v1919_v21 = vmul.f32 %v10277_v3, %v9428_v47  ;;  %1984 = vrot.lane.b32.xlu0 %v8794_v53, %s11077_s25  ;;  %v8792_v13 = vpack.c.bf16 %v1916_v27, %v1916_v27  ;;  %v10285_v27 = vpop.eup %10284 }
 0x45a   : > { %v1840_v33 = vpop.f32.mrf.mxu0 }
 0x45b   : > { %v8795_v26 = vpack.c.bf16 %v1919_v21, %v1919_v21  ;;  %v1917_v63 = vmul.f32 %v10279_v52, %v1840_v33  ;;  %v12140_v36 = vpop.xlane.xlu1 %2284  ;;  %v10287_v21 = vpop.eup %10286 }
 0x45c   : > { %v12105_v25 = vpop.f32.mrf.mxu0  ;;  %v12142_v52 = vpop.xlane.xlu0 %2278 }
 0x45d   : > { %1980 = vrot.lane.b32.xlu0 %v8792_v13, %s11077_s25  ;;  %1986 = vrot.lane.b32.xlu1 %v8795_v26, %s11077_s25  ;;  %v8793_v22 = vpack.c.bf16 %v1917_v63, %v1917_v63  ;;  %v10289_v63 = vpop.eup %10288 }
 0x45e   : > { %v1853_v37 = vpop.f32.mrf.mxu0 }
 0x45f   : > { %v1920_v7 = vmul.f32 %v10281_v28, %v1853_v37 }
 0x460   : > { %v12109_v18 = vpop.f32.mrf.mxu0 }
 0x461   : > { %v8796_v6 = vpack.c.bf16 %v1920_v7, %v1920_v7  ;;  %1982 = vrot.lane.b32.xlu1 %v8793_v22, %s11077_s25  ;;  %v12145_v22 = vpop.xlane.xlu1 %2280  ;;  %v10291_v7 = vpop.eup %10290 }
 0x462   : > { %v1856_v58 = vpop.f32.mrf.mxu0 }
 0x463   : > { %v1921_v4 = vmul.f32 %v10283_v38, %v1856_v58  ;;  %1988 = vrot.lane.b32.xlu0 %v8796_v6, %s11077_s25  ;;  %v12148_v6 = vpop.xlane.xlu0 %2290 }
 0x464   : > { %v12115_v51 = vpop.f32.mrf.mxu0 }
 0x465   : > { %v8797_v41 = vpack.c.bf16 %v1921_v4, %v1921_v4 }
 0x466   : > { %v12117_v49 = vpop.f32.mrf.mxu0 }
 0x467   : > { %1990 = vrot.lane.b32.xlu1 %v8797_v41, %s11077_s25 }
 0x468   : > { %v12120_v0 = vpop.f32.mrf.mxu0 }
 0x46a   : > { %v12126_v57 = vpop.f32.mrf.mxu0 }
 0x46c   : > { %v12128_v32 = vpop.f32.mrf.mxu0 }
 0x46d   : > { %14905 = vst [vmem:[#allocation48_spill] sm:$0xff] %v12128_v32 }
 0x46e   : > { %v12130_v16 = vpop.f32.mrf.mxu0 }
 0x46f   : > { %14906 = vst [vmem:[#allocation31_spill] sm:$0xff] %v12130_v16 }
 0x470   : > { %v12136_v46 = vpop.f32.mrf.mxu0 }
 0x471   : > { %14907 = vst [vmem:[#allocation33_spill] sm:$0xff] %v12136_v46 }
 0x472   : > { %v12138_v53 = vpop.f32.mrf.mxu0 }
 0x473   : > { %14908 = vst [vmem:[#allocation25_spill] sm:$0xff] %v12138_v53 }
 0x474   : > { %v9479_v3 = vpop.f32.mrf.mxu0 }
 0x475   : > { %v2441_v47 = vmul.f32 %v10285_v27, %v9479_v3  ;;  %v12157_v27 = vpop.xlane.xlu1 %2292 }
 0x476   : > { %v2360_v33 = vpop.f32.mrf.mxu0  ;;  %14909 = vst [vmem:[#allocation32_spill] sm:$0xff] %v12157_v27 }
 0x477   : > { %v8810_v13 = vpack.c.bf16 %v2441_v47, %v2441_v47  ;;  %v2439_v26 = vmul.f32 %v10287_v21, %v2360_v33  ;;  %v12159_v47 = vpop.xlane.xlu0 %2286 }
 0x478   : > { %v9480_v43 = vpop.f32.mrf.mxu0 }
 0x479   : > { %v8808_v28 = vpack.c.bf16 %v2439_v26, %v2439_v26  ;;  %v2442_v61 = vmul.f32 %v10289_v63, %v9480_v43  ;;  %2507 = vrot.lane.b32.xlu0 %v8810_v13, %s11076_s3  ;;  %v12164_v33 = vpop.xlane.xlu1 %2288 }
 0x47a   : > { %v2363_v37 = vpop.f32.mrf.mxu0  ;;  %14910 = vst [vmem:[#allocation34_spill] sm:$0xff] %v12164_v33 }
 0x47b   : > { %2503 = vrot.lane.b32.xlu1 %v8808_v28, %s11076_s3  ;;  %v8811_v58 = vpack.c.bf16 %v2442_v61, %v2442_v61  ;;  %v2440_v1 = vmul.f32 %v10291_v7, %v2363_v37  ;;  %v2790_v26 = vpop.xlane.xlu0 %2789 }
 0x47c   : > { %v12150_v38 = vpop.f32.mrf.mxu0  ;;  %10292 = vrcp.f32 %v2790_v26 }
 0x47d   : > { %v8809_v3 = vpack.c.bf16 %v2440_v1, %v2440_v1  ;;  %v2792_v43 = vpop.xlane.xlu1 %2791 }
 0x47e   : > { %v12152_v4 = vpop.f32.mrf.mxu0 }
 0x47f   : > { %2509 = vrot.lane.b32.xlu1 %v8811_v58, %s11076_s3  ;;  %v2786_v28 = vpop.xlane.xlu0 %2785 }
 0x480   : > { %v12155_v41 = vpop.f32.mrf.mxu0  ;;  %10294 = vrcp.f32 %v2786_v28 }
 0x481   : > { %v2788_v37 = vpop.xlane.xlu1 %2787  ;;  %10296 = vrcp.f32 %v12056_v9 }
 0x482   : > { %v12161_v21 = vpop.f32.mrf.mxu0  ;;  %10298 = vrcp.f32 %v2792_v43  ;;  %v9994_v43 = vld [vmem:[#allocation9 + $0x28] sm:$0xff]  }
 0x483   : > { %2505 = vrot.lane.b32.xlu1 %v8809_v3, %s11076_s3  ;;  %v12174_v58 = vpop.xlane.xlu0 %2797  ;;  %10300 = vrcp.f32 %v12124_v39 }
 0x484   : > { %v12166_v13 = vpop.f32.mrf.mxu0  ;;  %10302 = vrcp.f32 %v2788_v37  ;;  %v9995_v37 = vld [vmem:[#allocation9 + $0x20] sm:$0xff]  }
 0x485   : > { %v12176_v1 = vpop.xlane.xlu1 %2799 }
 0x486   : > { %v12168_v63 = vpop.f32.mrf.mxu0 }
 0x487   : > { %v12181_v3 = vpop.xlane.xlu0 %2793 }
 0x488   : > { %v12170_v61 = vpop.f32.mrf.mxu0 }
 0x489   : > { %v12185_v5 = vpop.xlane.xlu1 %2795  ;;  %v10293_v28 = vpop.eup %10292 }
 0x48a   : > { %v12172_v7 = vpop.f32.mrf.mxu0 }
 0x48c   : > { %v12178_v35 = vpop.f32.mrf.mxu0 }
 0x48d   : > { %14911 = vst [vmem:[#allocation49_spill] sm:$0xff] %v12178_v35  ;;  %v9992_v35 = vld [vmem:[#allocation9 + $0x38] sm:$0xff]   ;;  %v10295_v33 = vpop.eup %10294 }
 0x48e   : > { %v12183_v24 = vpop.f32.mrf.mxu0  ;;  %9545 = vmatprep.subr.bf16.mxu1 %v9992_v35 }
 0x48f   : > { %14912 = vst [vmem:[#allocation35_spill] sm:$0xff] %v12183_v24  ;;  %9546 = vmatpush3.bf16.msra.mxu1 %v9992_v35 }
 0x490   : > { %v12189_v42 = vpop.f32.mrf.mxu0 }
 0x491   : > { %14913 = vst [vmem:[#allocation37_spill] sm:$0xff] %v12189_v42  ;;  %v9993_v42 = vld [vmem:[#allocation9 + $0x30] sm:$0xff]  }
 0x492   : > { %v12194_v53 = vpop.f32.mrf.mxu0  ;;  %9547 = vmatprep.subr.bf16.mxu1 %v9993_v42 }
 0x493   : > { %14914 = vst [vmem:[#allocation26_spill] sm:$0xff] %v12194_v53  ;;  %9548 = vmatpush3.bf16.msra.mxu1 %v9993_v42 }
 0x494   : > { %9549 = vmatprep.subr.bf16.mxu1 %v9994_v43 }
 0x497   : > { %9550 = vmatpush3.bf16.msra.mxu1 %v9994_v43 }
 0x498   : > { %1280 = vadd.xlane.f32.xlu0 %v11964_v12  ;;  %9551 = vmatprep.subr.bf16.mxu1 %v9995_v37 }
 0x49b   : > { %9552 = vmatpush3.bf16.msra.mxu1 %v9995_v37 }
 0x49c   : > { %v12187_v59 = vpop.xlane.xlu0 %2805  ;;  %v9531_v26 = vpop.f32.mrf.mxu0 }
 0x49d   : > { %v2964_v24 = vmul.f32 %v10293_v28, %v9531_v26  ;;  %v10297_v26 = vpop.eup %10296 }
 0x49e   : > { %v2883_v53 = vpop.f32.mrf.mxu0  ;;  %v1922_v42 = vmul.f32 %v10297_v26, %v12105_v25  ;;  %v9997_v26 = vld [vmem:[#allocation9 + $0x10] sm:$0xff]  }
 0x49f   : > { %v8826_v16 = vpack.c.bf16 %v2964_v24, %v2964_v24  ;;  %v2962_v39 = vmul.f32 %v10295_v33, %v2883_v53 }
 0x4a0   : > { %v12191_v46 = vpop.xlane.xlu1 %2807  ;;  %v12196_v12 = vpop.xlane.xlu0 %2801 }
 0x4a1   : > { %v9532_v28 = vpop.f32.mrf.mxu0 }
 0x4a3   : > { %v2886_v43 = vpop.f32.mrf.mxu0 }
 0x4a4   : > { %v12198_v27 = vpop.xlane.xlu1 %2803 }
 0x4a7   : > { %1282 = vadd.xlane.f32.xlu1 %v11967_v55 }
 0x4a8   : > { %v12202_v9 = vpop.xlane.xlu0 %2813  ;;  %v1267_v32 = vpop.xlane.xlu1 %1266 }
 0x4a9   : > { %14915 = vst [vmem:[#allocation36_spill] sm:$0xff] %v12202_v9  ;;  %10304 = vrcp.f32 %v1267_v32  ;;  %v8824_v32 = vpack.c.bf16 %v2962_v39, %v2962_v39 }
 0x4aa   : > { %10306 = vrcp.f32 %v12059_v30  ;;  %v10299_v30 = vpop.eup %10298 }
 0x4ab   : > { %10308 = vrcp.f32 %v12132_v23  ;;  %v2965_v53 = vmul.f32 %v10299_v30, %v9532_v28  ;;  %v10301_v33 = vpop.eup %10300 }
 0x4ac   : > { %v12205_v35 = vpop.xlane.xlu0 %2809  ;;  %v12207_v55 = vpop.xlane.xlu1 %2815 }
 0x4ad   : > { %14916 = vst [vmem:[#allocation38_spill] sm:$0xff] %v12205_v35  ;;  %14917 = vst [vmem:[#allocation46_spill] sm:$0xff] %v12207_v55  ;;  %v8798_v55 = vpack.c.bf16 %v1922_v42, %v1922_v42  ;;  %v2443_v35 = vmul.f32 %v10301_v33, %v12152_v4  ;;  %v10303_v25 = vpop.eup %10302  ;;  %v8827_v31 = vpack.c.bf16 %v2965_v53, %v2965_v53  ;;  %v9998_v33 = vld [vmem:[#allocation9 + $0x8] sm:$0xff]  }
 0x4ae   : > { %3030 = vrot.lane.b32.xlu0 %v8826_v16, %s11075_s2  ;;  %v9996_v16 = vld [vmem:[#allocation9 + $0x18] sm:$0xff]  }
 0x4af   : > { %9553 = vmatprep.subr.bf16.mxu1 %v9996_v16  ;;  %v8812_v37 = vpack.c.bf16 %v2443_v35, %v2443_v35 }
 0x4b0   : > { %v1265_v9 = vpop.xlane.xlu0 %1264  ;;  %v12212_v24 = vpop.xlane.xlu1 %2811  ;;  %9554 = vmatpush3.bf16.msra.mxu1 %v9996_v16  ;;  %v9999_v16 = vld [vmem:[#allocation9] sm:$0xff]  }
 0x4b1   : > { %10310 = vrcp.f32 %v1265_v9  ;;  %v2963_v9 = vmul.f32 %v10303_v25, %v2886_v43  ;;  %9555 = vmatprep.subr.bf16.mxu1 %v9997_v26 }
 0x4b2   : > { %3026 = vrot.lane.b32.xlu0 %v8824_v32, %s11075_s2 }
 0x4b3   : > { %v8825_v53 = vpack.c.bf16 %v2963_v9, %v2963_v9 }
 0x4b4   : > { %v1269_v23 = vpop.xlane.xlu0 %1268  ;;  %v1271_v39 = vpop.xlane.xlu1 %1270  ;;  %9556 = vmatpush3.bf16.msra.mxu1 %v9997_v26 }
 0x4b5   : > { %10312 = vrcp.f32 %v1269_v23  ;;  %9557 = vmatprep.subr.bf16.mxu1 %v9998_v33 }
 0x4b6   : > { %10314 = vrcp.f32 %v1271_v39  ;;  %1992 = vrot.lane.b32.xlu0 %v8798_v55, %s11077_s25  ;;  %v10305_v28 = vpop.eup %10304 }
 0x4b7   : > { %v1414_v4 = vmul.f32 %v10305_v28, %v12072_v8  ;;  %v10307_v32 = vpop.eup %10306 }
 0x4b8   : > { %3032 = vrot.lane.b32.xlu1 %v8827_v31, %s11075_s2  ;;  %v1275_v42 = vpop.xlane.xlu0 %1274  ;;  %v1273_v30 = vpop.xlane.xlu1 %1272  ;;  %v1923_v23 = vmul.f32 %v10307_v32, %v12109_v18  ;;  %9558 = vmatpush3.bf16.msra.mxu1 %v9998_v33 }
 0x4b9   : > { %10316 = vrcp.f32 %v1275_v42  ;;  %v8781_v55 = vpack.c.bf16 %v1414_v4, %v1414_v4  ;;  %v10309_v31 = vpop.eup %10308  ;;  %9559 = vmatprep.subr.bf16.mxu1 %v9999_v16 }
 0x4ba   : > { %10318 = vrcp.f32 %v1273_v30  ;;  %2511 = vrot.lane.b32.xlu0 %v8812_v37, %s11076_s3  ;;  %v8799_v25 = vpack.c.bf16 %v1923_v23, %v1923_v23  ;;  %v2444_v18 = vmul.f32 %v10309_v31, %v12161_v21 }
 0x4bb   : > { %1495 = vst.msk [vmem:[#allocation2 + $0x14] sm:$0xf] %vm1489_vm1, %v8781_v55 }
 0x4bc   : > { %3028 = vrot.lane.b32.xlu1 %v8825_v53, %s11075_s2  ;;  %v1277_v35 = vpop.xlane.xlu0 %1276  ;;  %v1279_v8 = vpop.xlane.xlu1 %1278  ;;  %v8813_v28 = vpack.c.bf16 %v2444_v18, %v2444_v18  ;;  %9560 = vmatpush3.bf16.msra.mxu1 %v9999_v16 }
 0x4bd   : > { %10320 = vrcp.f32 %v1277_v35  ;;  %v9535_v18 = vpop.f32.mrf.mxu0 }
 0x4be   : > { %v10311_v43 = vpop.eup %10310  ;;  %10322 = vrcp.f32 %v1279_v8 }
 0x4bf   : > { %v1413_v39 = vmul.f32 %v10311_v43, %v12066_v10  ;;  %10324 = vrcp.f32 %v12113_v62 }
 0x4c0   : > { %1994 = vrot.lane.b32.xlu1 %v8799_v25, %s11077_s25  ;;  %10326 = vrcp.f32 %v12181_v3 }
 0x4c1   : > { %v8780_v26 = vpack.c.bf16 %v1413_v39, %v1413_v39  ;;  %10328 = vrcp.f32 %v12174_v58 }
 0x4c2   : > { %v10313_v9 = vpop.eup %10312  ;;  %10330 = vrcp.f32 %v12122_v2 }
 0x4c3   : > { %v10315_v37 = vpop.eup %10314  ;;  %1494 = vst.msk [vmem:[#allocation2 + $0x10] sm:$0xf] %vm1489_vm1, %v8780_v26  ;;  %v1415_v42 = vmul.f32 %v10313_v9, %v12063_v15  ;;  %10332 = vrcp.f32 %v12078_v54  ;;  %v2899_v26 = vpop.f32.mrf.mxu0 }
 0x4c4   : > { %2513 = vrot.lane.b32.xlu1 %v8813_v28, %s11076_s3  ;;  %v1416_v21 = vmul.f32 %v10315_v37, %v12070_v29  ;;  %10334 = vrcp.f32 %v12185_v5 }
 0x4c5   : > { %v8782_v4 = vpack.c.bf16 %v1415_v42, %v1415_v42  ;;  %10336 = vrcp.f32 %v12068_v19  ;;  %v9536_v5 = vpop.f32.mrf.mxu0 }
 0x4c6   : > { %v10317_v32 = vpop.eup %10316  ;;  %v8783_v30 = vpack.c.bf16 %v1416_v21, %v1416_v21  ;;  %10338 = vrcp.f32 %v12176_v1 }
 0x4c7   : > { %v10319_v10 = vpop.eup %10318  ;;  %1496 = vst.msk [vmem:[#allocation2 + $0x18] sm:$0xf] %vm1489_vm1, %v8782_v4  ;;  %v1418_v33 = vmul.f32 %v10317_v32, %v12084_v11  ;;  %10340 = vrcp.f32 %v12142_v52  ;;  %v2902_v52 = vpop.f32.mrf.mxu0 }
 0x4c8   : > { %1497 = vst.msk [vmem:[#allocation2 + $0x1c] sm:$0xf] %vm1489_vm1, %v8783_v30  ;;  %v1417_v23 = vmul.f32 %v10319_v10, %v12080_v40  ;;  %10342 = vrcp.f32 %v12086_v48 }
 0x4c9   : > { %v8785_v53 = vpack.c.bf16 %v1418_v33, %v1418_v33  ;;  %10344 = vrcp.f32 %v12134_v14 }
 0x4ca   : > { %v10321_v55 = vpop.eup %10320  ;;  %v8784_v15 = vpack.c.bf16 %v1417_v23, %v1417_v23  ;;  %10346 = vrcp.f32 %v12076_v20 }
 0x4cb   : > { %v10323_v35 = vpop.eup %10322  ;;  %v1985_v31 = vpop.permute.xlu0 %1984  ;;  %v1419_v29 = vmul.f32 %v10321_v55, %v12074_v34  ;;  %1499 = vst.msk [vmem:[#allocation2 + $0x24] sm:$0xf] %vm1489_vm1, %v8785_v53  ;;  %10348 = vrcp.f32 %v12196_v12 }
 0x4cc   : > { %2031 = vst.msk [vmem:[#allocation2 + $0x8] sm:$0xf] %vm2028_vm2, %v1985_v31  ;;  %v1420_v11 = vmul.f32 %v10323_v35, %v12082_v45  ;;  %v10325_v39 = vpop.eup %10324  ;;  %10350 = vrcp.f32 %v12145_v22 }
 0x4cd   : > { %1498 = vst.msk [vmem:[#allocation2 + $0x20] sm:$0xf] %vm1489_vm1, %v8784_v15  ;;  %v8786_v8 = vpack.c.bf16 %v1419_v29, %v1419_v29  ;;  %v10327_v3 = vpop.eup %10326  ;;  %10352 = vrcp.f32 %v12187_v59 }
 0x4ce   : > { %v8787_v16 = vpack.c.bf16 %v1420_v11, %v1420_v11  ;;  %v2966_v58 = vmul.f32 %v10327_v3, %v2899_v26  ;;  %10354 = vrcp.f32 %v12140_v36 }
 0x4cf   : > { %v1981_v43 = vpop.permute.xlu0 %1980  ;;  %v1987_v40 = vpop.permute.xlu1 %1986  ;;  %1500 = vst.msk [vmem:[#allocation2 + $0x28] sm:$0xf] %vm1489_vm1, %v8786_v8  ;;  %10356 = vrcp.f32 %v12098_v44 }
 0x4d0   : > { %2029 = vst.msk [vmem:[#allocation2] sm:$0xf] %vm2028_vm2, %v1981_v43  ;;  %2032 = vst.msk [vmem:[#allocation2 + $0xc] sm:$0xf] %vm2028_vm2, %v1987_v40  ;;  %10358 = vrcp.f32 %v12198_v27 }
 0x4d1   : > { %1501 = vst.msk [vmem:[#allocation2 + $0x2c] sm:$0xf] %vm1489_vm1, %v8787_v16 }
 0x4d3   : > { %v1983_v34 = vpop.permute.xlu1 %1982 }
 0x4d4   : > { %2030 = vst.msk [vmem:[#allocation2 + $0x4] sm:$0xf] %vm2028_vm2, %v1983_v34 }
 0x4d5   : > { %v1989_v25 = vpop.permute.xlu0 %1988 }
 0x4d6   : > { %2033 = vst.msk [vmem:[#allocation2 + $0x10] sm:$0xf] %vm2028_vm2, %v1989_v25 }
 0x4d9   : > { %1284 = vadd.xlane.f32.xlu0 %v11974_v17  ;;  %v1991_v45 = vpop.permute.xlu1 %1990  ;;  %v2445_v17 = vmul.f32 %v10325_v39, %v12150_v38  ;;  %v8828_v38 = vpack.c.bf16 %v2966_v58, %v2966_v58 }
 0x4da   : > { %2034 = vst.msk [vmem:[#allocation2 + $0x14] sm:$0xf] %vm2028_vm2, %v1991_v45  ;;  %v14918_v45 = vld [vmem:[#allocation28_spill] sm:$0xff] }
 0x4db   : > { %v8814_v2 = vpack.c.bf16 %v2445_v17, %v2445_v17 }
 0x4e8   : > { %1286 = vadd.xlane.f32.xlu1 %v11961_v60  ;;  %v10329_v60 = vpop.eup %10328  ;;  %10360 = vrcp.f32 %v12088_v50 }
 0x4e9   : > { %v2968_v19 = vmul.f32 %v10329_v60, %v9535_v18  ;;  %v10331_v28 = vpop.eup %10330  ;;  %10362 = vrcp.f32 %v12191_v46  ;;  %v14919_v18 = vld [vmem:[#allocation31_spill] sm:$0xff] }
 0x4ea   : > { %v2446_v1 = vmul.f32 %v10331_v28, %v12155_v41  ;;  %v10333_v37 = vpop.eup %10332  ;;  %10364 = vrcp.f32 %v12159_v47  ;;  %v14924_v28 = vld [vmem:[#allocation32_spill] sm:$0xff] }
 0x4eb   : > { %v2508_v62 = vpop.permute.xlu0 %2507  ;;  %v1924_v42 = vmul.f32 %v10333_v37, %v12117_v49  ;;  %v8830_v21 = vpack.c.bf16 %v2968_v19, %v2968_v19  ;;  %v10335_v4 = vpop.eup %10334  ;;  %10366 = vrcp.f32 %v12102_v56  ;;  %v14925_v37 = vld [vmem:[#allocation35_spill] sm:$0xff] }
 0x4ec   : > { %2554 = vst.msk [vmem:[#allocation2 + $0x8] sm:$0xf] %vm2551_vm3, %v2508_v62  ;;  %v8815_v32 = vpack.c.bf16 %v2446_v1, %v2446_v1  ;;  %v2967_v30 = vmul.f32 %v10335_v4, %v2902_v52  ;;  %v10337_v14 = vpop.eup %10336  ;;  %10368 = vrcp.f32 %v12148_v6  ;;  %v14920_v62 = vld [vmem:[#allocation38_spill] sm:$0xff] }
 0x4ed   : > { %v2504_v54 = vpop.permute.xlu1 %2503  ;;  %v1926_v41 = vmul.f32 %v10337_v14, %v12115_v51  ;;  %v8800_v10 = vpack.c.bf16 %v1924_v42, %v1924_v42  ;;  %v10339_v20 = vpop.eup %10338  ;;  %10370 = vrcp.f32 %v14918_v45  ;;  %v14927_v14 = vld [vmem:[#allocation49_spill] sm:$0xff] }
 0x4ee   : > { %2552 = vst.msk [vmem:[#allocation2] sm:$0xf] %vm2551_vm3, %v2504_v54  ;;  %v2969_v49 = vmul.f32 %v10339_v20, %v9536_v5  ;;  %v8829_v33 = vpack.c.bf16 %v2967_v30, %v2967_v30  ;;  %v10341_v23 = vpop.eup %10340  ;;  %v9539_v51 = vpop.f32.mrf.mxu0  ;;  %10372 = vrcp.f32 %v14920_v62  ;;  %v14923_v5 = vld [vmem:[#allocation36_spill] sm:$0xff] }
 0x4ef   : > { %2515 = vrot.lane.b32.xlu0 %v8814_v2, %s11076_s3  ;;  %v8802_v12 = vpack.c.bf16 %v1926_v41, %v1926_v41  ;;  %v2447_v53 = vmul.f32 %v10341_v23, %v12168_v63  ;;  %v10343_v22 = vpop.eup %10342  ;;  %v14922_v2 = vld [vmem:[#allocation48_spill] sm:$0xff] }
 0x4f0   : > { %v1925_v55 = vmul.f32 %v10343_v22, %v12126_v57  ;;  %v8831_v15 = vpack.c.bf16 %v2969_v49, %v2969_v49  ;;  %v10345_v59 = vpop.eup %10344  ;;  %v2915_v63 = vpop.f32.mrf.mxu0 }
 0x4f1   : > { %v2510_v9 = vpop.permute.xlu1 %2509  ;;  %v2449_v35 = vmul.f32 %v10345_v59, %v12166_v13  ;;  %v8816_v31 = vpack.c.bf16 %v2447_v53, %v2447_v53  ;;  %v10347_v36 = vpop.eup %10346 }
 0x4f2   : > { %2555 = vst.msk [vmem:[#allocation2 + $0xc] sm:$0xf] %vm2551_vm3, %v2510_v9  ;;  %v1927_v29 = vmul.f32 %v10347_v36, %v12120_v0  ;;  %v8801_v44 = vpack.c.bf16 %v1925_v55, %v1925_v55  ;;  %v10349_v57 = vpop.eup %10348  ;;  %v9540_v0 = vpop.f32.mrf.mxu0 }
 0x4f3   : > { %3034 = vrot.lane.b32.xlu0 %v8828_v38, %s11075_s2  ;;  %v8818_v11 = vpack.c.bf16 %v2449_v35, %v2449_v35  ;;  %v2970_v8 = vmul.f32 %v10349_v57, %v2915_v63  ;;  %v10351_v13 = vpop.eup %10350  ;;  %v14930_v35 = vld [vmem:[#allocation26_spill] sm:$0xff] }
 0x4f4   : > { %v8803_v27 = vpack.c.bf16 %v1927_v29, %v1927_v29  ;;  %v2448_v16 = vmul.f32 %v10351_v13, %v12172_v7  ;;  %v10353_v50 = vpop.eup %10352  ;;  %v2918_v7 = vpop.f32.mrf.mxu0 }
 0x4f5   : > { %v2506_v48 = vpop.permute.xlu1 %2505  ;;  %v2972_v43 = vmul.f32 %v10353_v50, %v9539_v51  ;;  %v8832_v40 = vpack.c.bf16 %v2970_v8, %v2970_v8  ;;  %v10355_v46 = vpop.eup %10354  ;;  %v14929_v51 = vld [vmem:[#allocation46_spill] sm:$0xff] }
 0x4f6   : > { %2553 = vst.msk [vmem:[#allocation2 + $0x4] sm:$0xf] %vm2551_vm3, %v2506_v48  ;;  %v2450_v34 = vmul.f32 %v10355_v46, %v12170_v61  ;;  %v8817_v25 = vpack.c.bf16 %v2448_v16, %v2448_v16  ;;  %v10357_v47 = vpop.eup %10356  ;;  %v14921_v61 = vld [vmem:[#allocation34_spill] sm:$0xff]  ;;  %v14926_v48 = vld [vmem:[#allocation25_spill] sm:$0xff] }
 0x4f7   : > { %3038 = vrot.lane.b32.xlu0 %v8830_v21, %s11075_s2  ;;  %v1928_v39 = vmul.f32 %v10357_v47, %v14919_v18  ;;  %v8834_v17 = vpack.c.bf16 %v2972_v43, %v2972_v43  ;;  %v10359_v56 = vpop.eup %10358  ;;  %10374 = vrcp.f32 %v14921_v61  ;;  %v9543_v21 = vpop.f32.mrf.mxu0 }
 0x4f8   : > { %v8819_v26 = vpack.c.bf16 %v2450_v34, %v2450_v34  ;;  %v2971_v3 = vmul.f32 %v10359_v56, %v2918_v7  ;;  %v10361_v6 = vpop.eup %10360  ;;  %10376 = vrcp.f32 %v14923_v5 }
 0x4f9   : > { %2517 = vrot.lane.b32.xlu1 %v8815_v32, %s11076_s3  ;;  %v1930_v58 = vmul.f32 %v10361_v6, %v14922_v2  ;;  %v8804_v54 = vpack.c.bf16 %v1928_v39, %v1928_v39  ;;  %v10363_v60 = vpop.eup %10362  ;;  %10378 = vrcp.f32 %v14924_v28  ;;  %v2931_v49 = vpop.f32.mrf.mxu0 }
 0x4fa   : > { %v2973_v19 = vmul.f32 %v10363_v60, %v9540_v0  ;;  %v8833_v38 = vpack.c.bf16 %v2971_v3, %v2971_v3  ;;  %v10365_v9 = vpop.eup %10364  ;;  %10380 = vrcp.f32 %v12212_v24 }
 0x4fb   : > { %1996 = vrot.lane.b32.xlu0 %v8800_v10, %s11077_s25  ;;  %v8806_v1 = vpack.c.bf16 %v1930_v58, %v1930_v58  ;;  %v2451_v52 = vmul.f32 %v10365_v9, %v14925_v37  ;;  %v10367_v42 = vpop.eup %10366  ;;  %10382 = vrcp.f32 %v14929_v51  ;;  %v9544_v36 = vpop.f32.mrf.mxu0  ;;  %v14933_v58 = vld [vmem:[#allocation30_spill] sm:$0xff] }
 0x4fc   : > { %v1929_v4 = vmul.f32 %v10367_v42, %v14926_v48  ;;  %v8835_v32 = vpack.c.bf16 %v2973_v19, %v2973_v19  ;;  %v10369_v30 = vpop.eup %10368 }
 0x4fd   : > { %3036 = vrot.lane.b32.xlu1 %v8829_v33, %s11075_s2  ;;  %v2453_v41 = vmul.f32 %v10369_v30, %v14927_v14  ;;  %v8820_v10 = vpack.c.bf16 %v2451_v52, %v2451_v52  ;;  %v10371_v20 = vpop.eup %10370  ;;  %v14928_v33 = vld [vmem:[#allocation33_spill] sm:$0xff] }
 0x4fe   : > { %v1931_v23 = vmul.f32 %v10371_v20, %v14928_v33  ;;  %v10373_v53 = vpop.eup %10372 }
 0x4ff   : > { %2000 = vrot.lane.b32.xlu0 %v8802_v12, %s11077_s25  ;;  %v8805_v12 = vpack.c.bf16 %v1929_v4, %v1929_v4  ;;  %v8822_v22 = vpack.c.bf16 %v2453_v41, %v2453_v41  ;;  %v2974_v55 = vmul.f32 %v10373_v53, %v2931_v49 }
 0x500   : > { %v8807_v59 = vpack.c.bf16 %v1931_v23, %v1931_v23  ;;  %v14935_v23 = vld [vmem:[#allocation24_spill] sm:$0xff] }
 0x501   : > { %3040 = vrot.lane.b32.xlu1 %v8831_v15, %s11075_s2  ;;  %v8836_v29 = vpack.c.bf16 %v2974_v55, %v2974_v55 }
 0x503   : > { %2519 = vrot.lane.b32.xlu0 %v8816_v31, %s11076_s3 }
 0x504   : > { %v10375_v15 = vpop.eup %10374 }
 0x505   : > { %1998 = vrot.lane.b32.xlu1 %v8801_v44, %s11077_s25  ;;  %v2452_v24 = vmul.f32 %v10375_v15, %v14930_v35  ;;  %v10377_v31 = vpop.eup %10376 }
 0x506   : > { %v2976_v63 = vmul.f32 %v10377_v31, %v9543_v21  ;;  %v10379_v57 = vpop.eup %10378  ;;  %v14934_v21 = vld [vmem:[#allocation27_spill] sm:$0xff] }
 0x507   : > { %2523 = vrot.lane.b32.xlu0 %v8818_v11, %s11076_s3  ;;  %v14931_v11 = vld [vmem:[#allocation37_spill] sm:$0xff]  ;;  %v8821_v13 = vpack.c.bf16 %v2452_v24, %v2452_v24  ;;  %v10381_v0 = vpop.eup %10380 }
 0x508   : > { %v2454_v8 = vmul.f32 %v10379_v57, %v14931_v11  ;;  %v8838_v16 = vpack.c.bf16 %v2976_v63, %v2976_v63  ;;  %v10383_v34 = vpop.eup %10382 }
 0x509   : > { %2002 = vrot.lane.b32.xlu1 %v8803_v27, %s11077_s25  ;;  %v2934_v27 = vpop.f32.mrf.mxu0 }
 0x50a   : > { %v8823_v43 = vpack.c.bf16 %v2454_v8, %v2454_v8 }
 0x50b   : > { %3042 = vrot.lane.b32.xlu0 %v8832_v40, %s11075_s2  ;;  %v2975_v40 = vmul.f32 %v10381_v0, %v2934_v27 }
 0x50d   : > { %2521 = vrot.lane.b32.xlu1 %v8817_v25, %s11076_s3  ;;  %v2977_v25 = vmul.f32 %v10383_v34, %v9544_v36  ;;  %v8837_v47 = vpack.c.bf16 %v2975_v40, %v2975_v40 }
 0x50f   : > { %3046 = vrot.lane.b32.xlu0 %v8834_v17, %s11075_s2  ;;  %v8839_v18 = vpack.c.bf16 %v2977_v25, %v2977_v25  ;;  %v14932_v17 = vld [vmem:[#allocation29_spill] sm:$0xff] }
 0x511   : > { %2525 = vrot.lane.b32.xlu1 %v8819_v26, %s11076_s3 }
 0x513   : > { %2004 = vrot.lane.b32.xlu0 %v8804_v54, %s11077_s25 }
 0x515   : > { %3044 = vrot.lane.b32.xlu1 %v8833_v38, %s11075_s2 }
 0x517   : > { %2008 = vrot.lane.b32.xlu0 %v8806_v1, %s11077_s25 }
 0x519   : > { %3048 = vrot.lane.b32.xlu1 %v8835_v32, %s11075_s2 }
 0x51b   : > { %2527 = vrot.lane.b32.xlu0 %v8820_v10, %s11076_s3 }
 0x51d   : > { %2006 = vrot.lane.b32.xlu1 %v8805_v12, %s11077_s25 }
 0x51f   : > { %2531 = vrot.lane.b32.xlu0 %v8822_v22, %s11076_s3 }
 0x521   : > { %v1281_v44 = vpop.xlane.xlu0 %1280  ;;  %2010 = vrot.lane.b32.xlu1 %v8807_v59, %s11077_s25 }
 0x522   : > { %10384 = vrcp.f32 %v1281_v44 }
 0x523   : > { %3050 = vrot.lane.b32.xlu0 %v8836_v29, %s11075_s2 }
 0x525   : > { %v3031_v50 = vpop.permute.xlu0 %3030  ;;  %2529 = vrot.lane.b32.xlu1 %v8821_v13, %s11076_s3 }
 0x526   : > { %3077 = vst.msk [vmem:[#allocation2 + $0x8] sm:$0xf] %vm3074_vm4, %v3031_v50 }
 0x527   : > { %3054 = vrot.lane.b32.xlu0 %v8838_v16, %s11075_s2 }
 0x529   : > { %v3027_v46 = vpop.permute.xlu0 %3026  ;;  %2533 = vrot.lane.b32.xlu1 %v8823_v43, %s11076_s3 }
 0x52a   : > { %3075 = vst.msk [vmem:[#allocation2] sm:$0xf] %vm3074_vm4, %v3027_v46 }
 0x52d   : > { %v1993_v7 = vpop.permute.xlu0 %1992  ;;  %3052 = vrot.lane.b32.xlu1 %v8837_v47, %s11075_s2 }
 0x52e   : > { %2035 = vst.msk [vmem:[#allocation2 + $0x18] sm:$0xf] %vm2028_vm2, %v1993_v7 }
 0x52f   : > { %v10385_v45 = vpop.eup %10384 }
 0x530   : > { %v1283_v39 = vpop.xlane.xlu1 %1282  ;;  %v1421_v56 = vmul.f32 %v10385_v45, %v14932_v17  ;;  %v12379_v45 = vld [vmem:[%s14711_s4] ss:$0 sm:$0xff] }
 0x531   : > { %10386 = vrcp.f32 %v1283_v39  ;;  %v2512_v26 = vpop.permute.xlu0 %2511  ;;  %3056 = vrot.lane.b32.xlu1 %v8839_v18, %s11075_s2 }
 0x532   : > { %2556 = vst.msk [vmem:[#allocation2 + $0x10] sm:$0xf] %vm2551_vm3, %v2512_v26  ;;  %v8788_v62 = vpack.c.bf16 %v1421_v56, %v1421_v56  ;;  %v10808_v26 = vld [vmem:[%s11337_s28] sm:$0xff] }
 0x534   : > { %v3033_v3 = vpop.permute.xlu1 %3032  ;;  %1502 = vst.msk [vmem:[#allocation2 + $0x30] sm:$0xf] %vm1489_vm1, %v8788_v62 }
 0x535   : > { %3078 = vst.msk [vmem:[#allocation2 + $0xc] sm:$0xf] %vm3074_vm4, %v3033_v3 }
 0x538   : > { %v3029_v6 = vpop.permute.xlu1 %3028 }
 0x539   : > { %3076 = vst.msk [vmem:[#allocation2 + $0x4] sm:$0xf] %vm3074_vm4, %v3029_v6 }
 0x53c   : > { %v1995_v61 = vpop.permute.xlu1 %1994  ;;  %v10001_v19 = vld [vmem:[#allocation2 + $0x8] sm:$0xff]  }
 0x53d   : > { %2036 = vst.msk [vmem:[#allocation2 + $0x1c] sm:$0xf] %vm2028_vm2, %v1995_v61  ;;  %v10809_v61 = vld [vmem:[%s11337_s28 + $0x10] sm:$0xff] }
 0x53e   : > { %v10387_v2 = vpop.eup %10386 }
 0x53f   : > { %v1422_v54 = vmul.f32 %v10387_v2, %v14933_v58 }
 0x540   : > { %v2514_v60 = vpop.permute.xlu1 %2513  ;;  %v10000_v5 = vld [vmem:[#allocation2] sm:$0xff]  }
 0x541   : > { %2557 = vst.msk [vmem:[#allocation2 + $0x14] sm:$0xf] %vm2551_vm3, %v2514_v60  ;;  %v8789_v38 = vpack.c.bf16 %v1422_v54, %v1422_v54  ;;  %9561 = vmatprep.mubr.bf16.mxu1 %v10000_v5  ;;  %v10810_v54 = vld [vmem:[%s11337_s28 + $0x8] sm:$0xff]  ;;  %v10811_v5 = vld [vmem:[%s11337_s28 + $0x18] sm:$0xff] }
 0x542   : > { %9562 = vmatmul.mubr.bf16.vlgmr.msra.gmra.mxu1 %v10001_v19 }
 0x543   : > { %1503 = vst.msk [vmem:[#allocation2 + $0x34] sm:$0xf] %vm1489_vm1, %v8789_v38 }
 0x562   : > { %v1285_v9 = vpop.xlane.xlu0 %1284 }
 0x563   : > { %10388 = vrcp.f32 %v1285_v9 }
 0x566   : > { %v2516_v28 = vpop.permute.xlu0 %2515 }
 0x567   : > { %2558 = vst.msk [vmem:[#allocation2 + $0x18] sm:$0xf] %vm2551_vm3, %v2516_v28 }
 0x56a   : > { %v3035_v1 = vpop.permute.xlu0 %3034 }
 0x56b   : > { %3079 = vst.msk [vmem:[#allocation2 + $0x10] sm:$0xf] %vm3074_vm4, %v3035_v1 }
 0x56e   : > { %v3039_v37 = vpop.permute.xlu0 %3038 }
 0x56f   : > { %3081 = vst.msk [vmem:[#allocation2 + $0x18] sm:$0xf] %vm3074_vm4, %v3039_v37 }
 0x570   : > { %v10389_v52 = vpop.eup %10388 }
 0x571   : > { %v1287_v42 = vpop.xlane.xlu1 %1286  ;;  %v1423_v48 = vmul.f32 %v10389_v52, %v14934_v21  ;;  %v10812_v52 = vld [vmem:[%s11337_s28 + $0x20] sm:$0xff] }
 0x572   : > { %10390 = vrcp.f32 %v1287_v42  ;;  %v1997_v4 = vpop.permute.xlu0 %1996 }
 0x573   : > { %2037 = vst.msk [vmem:[#allocation2 + $0x20] sm:$0xf] %vm2028_vm2, %v1997_v4  ;;  %v8790_v32 = vpack.c.bf16 %v1423_v48, %v1423_v48  ;;  %v10813_v4 = vld [vmem:[%s11337_s28 + $0x30] sm:$0xff] }
 0x575   : > { %v2518_v30 = vpop.permute.xlu1 %2517  ;;  %1504 = vst.msk [vmem:[#allocation2 + $0x38] sm:$0xf] %vm1489_vm1, %v8790_v32 }
 0x576   : > { %2559 = vst.msk [vmem:[#allocation2 + $0x1c] sm:$0xf] %vm2551_vm3, %v2518_v30  ;;  %v2001_v14 = vpop.permute.xlu0 %2000 }
 0x577   : > { %2039 = vst.msk [vmem:[#allocation2 + $0x28] sm:$0xf] %vm2028_vm2, %v2001_v14  ;;  %v10814_v14 = vld [vmem:[%s11337_s28 + $0x28] sm:$0xff] }
 0x579   : > { %v3037_v41 = vpop.permute.xlu1 %3036 }
 0x57a   : > { %3080 = vst.msk [vmem:[#allocation2 + $0x14] sm:$0xf] %vm3074_vm4, %v3037_v41  ;;  %v2520_v10 = vpop.permute.xlu0 %2519 }
 0x57b   : > { %2560 = vst.msk [vmem:[#allocation2 + $0x20] sm:$0xf] %vm2551_vm3, %v2520_v10  ;;  %v10815_v10 = vld [vmem:[%s11337_s28 + $0x38] sm:$0xff] }
 0x57d   : > { %v3041_v20 = vpop.permute.xlu1 %3040 }
 0x57e   : > { %3082 = vst.msk [vmem:[#allocation2 + $0x1c] sm:$0xf] %vm3074_vm4, %v3041_v20  ;;  %v2524_v49 = vpop.permute.xlu0 %2523 }
 0x57f   : > { %v10391_v33 = vpop.eup %10390  ;;  %2562 = vst.msk [vmem:[#allocation2 + $0x28] sm:$0xf] %vm2551_vm3, %v2524_v49 }
 0x580   : > { %v1424_v12 = vmul.f32 %v10391_v33, %v14935_v23 }
 0x581   : > { %v1999_v53 = vpop.permute.xlu1 %1998  ;;  %v10002_v22 = vld [vmem:[#allocation2 + $0x10] sm:$0xff]  }
 0x582   : > { %2038 = vst.msk [vmem:[#allocation2 + $0x24] sm:$0xf] %vm2028_vm2, %v1999_v53  ;;  %v3043_v51 = vpop.permute.xlu0 %3042  ;;  %v8791_v55 = vpack.c.bf16 %v1424_v12, %v1424_v12  ;;  %9565 = vmatprep.mubr.bf16.mxu1 %v10002_v22  ;;  %v10816_v22 = vld [vmem:[%s11337_s28 + $0x40] sm:$0xff] }
 0x583   : > { %3083 = vst.msk [vmem:[#allocation2 + $0x20] sm:$0xf] %vm3074_vm4, %v3043_v51 }
 0x584   : > { %1505 = vst.msk [vmem:[#allocation2 + $0x3c] sm:$0xf] %vm1489_vm1, %v8791_v55 }
 0x585   : > { %v2003_v15 = vpop.permute.xlu1 %2002  ;;  %v10003_v59 = vld [vmem:[#allocation2 + $0x18] sm:$0xff]  }
 0x586   : > { %2040 = vst.msk [vmem:[#allocation2 + $0x2c] sm:$0xf] %vm2028_vm2, %v2003_v15  ;;  %v3047_v35 = vpop.permute.xlu0 %3046  ;;  %9566 = vmatmul.mubr.bf16.gmra.mxu1 %v10003_v59  ;;  %v10817_v59 = vld [vmem:[%s11337_s28 + $0x50] sm:$0xff] }
 0x587   : > { %3085 = vst.msk [vmem:[#allocation2 + $0x28] sm:$0xf] %vm3074_vm4, %v3047_v35 }
 0x589   : > { %v2522_v24 = vpop.permute.xlu1 %2521 }
 0x58a   : > { %2561 = vst.msk [vmem:[#allocation2 + $0x24] sm:$0xf] %vm2551_vm3, %v2522_v24  ;;  %v2005_v31 = vpop.permute.xlu0 %2004 }
 0x58b   : > { %2041 = vst.msk [vmem:[#allocation2 + $0x30] sm:$0xf] %vm2028_vm2, %v2005_v31  ;;  %v10818_v31 = vld [vmem:[%s11337_s28 + $0x48] sm:$0xff] }
 0x58d   : > { %v2526_v36 = vpop.permute.xlu1 %2525 }
 0x58e   : > { %2563 = vst.msk [vmem:[#allocation2 + $0x2c] sm:$0xf] %vm2551_vm3, %v2526_v36  ;;  %v2009_v63 = vpop.permute.xlu0 %2008 }
 0x58f   : > { %2043 = vst.msk [vmem:[#allocation2 + $0x38] sm:$0xf] %vm2028_vm2, %v2009_v63  ;;  %v10819_v63 = vld [vmem:[%s11337_s28 + $0x58] sm:$0xff] }
 0x591   : > { %v3045_v29 = vpop.permute.xlu1 %3044 }
 0x592   : > { %3084 = vst.msk [vmem:[#allocation2 + $0x24] sm:$0xf] %vm3074_vm4, %v3045_v29  ;;  %v2528_v44 = vpop.permute.xlu0 %2527 }
 0x593   : > { %2564 = vst.msk [vmem:[#allocation2 + $0x30] sm:$0xf] %vm2551_vm3, %v2528_v44 }
 0x595   : > { %v3049_v57 = vpop.permute.xlu1 %3048 }
 0x596   : > { %3086 = vst.msk [vmem:[#allocation2 + $0x2c] sm:$0xf] %vm3074_vm4, %v3049_v57  ;;  %v2532_v11 = vpop.permute.xlu0 %2531 }
 0x597   : > { %2566 = vst.msk [vmem:[#allocation2 + $0x38] sm:$0xf] %vm2551_vm3, %v2532_v11 }
 0x599   : > { %v2007_v8 = vpop.permute.xlu1 %2006  ;;  %v10004_v13 = vld [vmem:[#allocation2 + $0x20] sm:$0xff]  }
 0x59a   : > { %2042 = vst.msk [vmem:[#allocation2 + $0x34] sm:$0xf] %vm2028_vm2, %v2007_v8  ;;  %v3051_v27 = vpop.permute.xlu0 %3050  ;;  %9569 = vmatprep.mubr.bf16.mxu1 %v10004_v13 }
 0x59b   : > { %3087 = vst.msk [vmem:[#allocation2 + $0x30] sm:$0xf] %vm3074_vm4, %v3051_v27  ;;  %v10820_v27 = vld [vmem:[%s11337_s28 + $0x60] sm:$0xff] }
 0x59d   : > { %v2011_v16 = vpop.permute.xlu1 %2010  ;;  %v10005_v50 = vld [vmem:[#allocation2 + $0x28] sm:$0xff]  }
 0x59e   : > { %2044 = vst.msk [vmem:[#allocation2 + $0x3c] sm:$0xf] %vm2028_vm2, %v2011_v16  ;;  %v3055_v0 = vpop.permute.xlu0 %3054  ;;  %9570 = vmatmul.mubr.bf16.gmra.mxu1 %v10005_v50 }
 0x59f   : > { %3089 = vst.msk [vmem:[#allocation2 + $0x38] sm:$0xf] %vm3074_vm4, %v3055_v0 }
 0x5a1   : > { %v2530_v43 = vpop.permute.xlu1 %2529 }
 0x5a2   : > { %2565 = vst.msk [vmem:[#allocation2 + $0x34] sm:$0xf] %vm2551_vm3, %v2530_v43  ;;  %v10821_v43 = vld [vmem:[%s11337_s28 + $0x70] sm:$0xff] }
 0x5a5   : > { %v2534_v40 = vpop.permute.xlu1 %2533 }
 0x5a6   : > { %2567 = vst.msk [vmem:[#allocation2 + $0x3c] sm:$0xf] %vm2551_vm3, %v2534_v40 }
 0x5a9   : > { %v3053_v46 = vpop.permute.xlu1 %3052 }
 0x5aa   : > { %3088 = vst.msk [vmem:[#allocation2 + $0x34] sm:$0xf] %vm3074_vm4, %v3053_v46 }
 0x5ad   : > { %v3057_v34 = vpop.permute.xlu1 %3056 }
 0x5ae   : > { %3090 = vst.msk [vmem:[#allocation2 + $0x3c] sm:$0xf] %vm3074_vm4, %v3057_v34  ;;  %v10822_v34 = vld [vmem:[%s11337_s28 + $0x68] sm:$0xff] }
 0x5b1   : > { %v10006_v25 = vld [vmem:[#allocation2 + $0x30] sm:$0xff]  }
 0x5b2   : > { %9573 = vmatprep.mubr.bf16.mxu1 %v10006_v25 }
 0x5b5   : > { %v10007_v47 = vld [vmem:[#allocation2 + $0x38] sm:$0xff]  }
 0x5b6   : > { %9574 = vmatmul.mubr.bf16.gmra.mxu1 %v10007_v47  ;;  %v10823_v47 = vld [vmem:[%s11337_s28 + $0x78] sm:$0xff]  ;;  %s8273_s28 = sshll.u32 %s14595_s23, 4  ;;  %s14662_s28 = int_to_ptr.vmem [resolvable:$true] %s8273_s28 }
 0x602   : > { %v9563_v7 = vpop.f32.mrf.mxu1 }
 0x603   : > { %v3269_v56 = vadd.f32 %v9563_v7, %v12379_v45 }
 0x604   : > { %v3260_v18 = vpop.f32.mrf.mxu1 }
 0x605   : > { %v3261_v39 = vadd.f32 %v12379_v45, %v3260_v18  ;;  %v12389_v2 = vadd.f32 %v10809_v61, %v3269_v56  ;;  %v10008_v56 = vld [vmem:[#allocation11 + $0x70] ss:$8 sps:$4 sm:$0xff]  }
 0x606   : > { %v9564_v17 = vpop.f32.mrf.mxu1 }
 0x607   : > { %v12384_v62 = vadd.f32 %v10808_v26, %v3261_v39  ;;  %v3272_v58 = vadd.f32 %v9564_v17, %v12379_v45  ;;  %v10010_v26 = vld [vmem:[#allocation11 + $0x74] ss:$8 sps:$4 sm:$0xff]  }
 0x608   : > { %v3263_v3 = vpop.f32.mrf.mxu1  ;;  %3678 = vmatprep.subr.bf16.mxu0 %v10010_v26 }
 0x609   : > { %v3264_v6 = vadd.f32 %v12379_v45, %v3263_v3  ;;  %3341 = vadd.xlane.f32.xlu0 %v12384_v62  ;;  %v12398_v19 = vadd.f32 %v10811_v5, %v3272_v58  ;;  %3679 = vmatpush1.bf16.msra.mxu0 %v10008_v56 }
 0x60b   : > { %v12393_v60 = vadd.f32 %v10810_v54, %v3264_v6 }
 0x60d   : > { %3343 = vadd.xlane.f32.xlu1 %v12393_v60  ;;  %3345 = vadd.xlane.f32.xlu0 %v12389_v2 }
 0x611   : > { %3347 = vadd.xlane.f32.xlu0 %v12398_v19 }
 0x646   : > { %v9567_v38 = vpop.f32.mrf.mxu1 }
 0x647   : > { %v3285_v37 = vadd.f32 %v9567_v38, %v12379_v45 }
 0x648   : > { %v3276_v9 = vpop.f32.mrf.mxu1 }
 0x649   : > { %v3277_v28 = vadd.f32 %v12379_v45, %v3276_v9  ;;  %v12409_v32 = vadd.f32 %v10813_v4, %v3285_v37  ;;  %v10011_v37 = vld [vmem:[#allocation11 + $0x60] ss:$8 sps:$4 sm:$0xff]  }
 0x64a   : > { %v9568_v1 = vpop.f32.mrf.mxu1  ;;  %v10017_v4 = vld [vmem:[#allocation11 + $0x40] ss:$8 sps:$4 sm:$0xff]  }
 0x64b   : > { %v12404_v42 = vadd.f32 %v10812_v52, %v3277_v28  ;;  %v3288_v30 = vadd.f32 %v9568_v1, %v12379_v45  ;;  %v10016_v52 = vld [vmem:[#allocation11 + $0x54] ss:$8 sps:$4 sm:$0xff]  }
 0x64c   : > { %v3279_v21 = vpop.f32.mrf.mxu1 }
 0x64d   : > { %v3280_v48 = vadd.f32 %v12379_v45, %v3279_v21  ;;  %3349 = vadd.xlane.f32.xlu0 %v12404_v42  ;;  %v12418_v20 = vadd.f32 %v10815_v10, %v3288_v30  ;;  %v10014_v21 = vld [vmem:[#allocation11 + $0x50] ss:$8 sps:$4 sm:$0xff]   ;;  %v10023_v10 = vld [vmem:[#allocation11 + $0x20] ss:$8 sps:$4 sm:$0xff]  }
 0x64e   : > { %v10020_v30 = vld [vmem:[#allocation11 + $0x30] ss:$8 sps:$4 sm:$0xff]  }
 0x64f   : > { %v12413_v41 = vadd.f32 %v10814_v14, %v3280_v48  ;;  %v10019_v48 = vld [vmem:[#allocation11 + $0x44] ss:$8 sps:$4 sm:$0xff]  }
 0x650   : > { %v10025_v14 = vld [vmem:[#allocation11 + $0x24] ss:$8 sps:$4 sm:$0xff]  }
 0x651   : > { %3351 = vadd.xlane.f32.xlu1 %v12413_v41  ;;  %3353 = vadd.xlane.f32.xlu0 %v12409_v32 }
 0x655   : > { %3355 = vadd.xlane.f32.xlu1 %v12418_v20 }
 0x65e   : > { %v9571_v49 = vpop.f32.mrf.mxu1 }
 0x65f   : > { %v3301_v53 = vadd.f32 %v9571_v49, %v12379_v45  ;;  %v10028_v49 = vld [vmem:[#allocation11 + $0x14] ss:$8 sps:$4 sm:$0xff]  }
 0x660   : > { %v3292_v33 = vpop.f32.mrf.mxu1 }
 0x661   : > { %v3293_v23 = vadd.f32 %v12379_v45, %v3292_v33  ;;  %v12429_v35 = vadd.f32 %v10817_v59, %v3301_v53  ;;  %v10026_v33 = vld [vmem:[#allocation11 + $0x10] ss:$8 sps:$4 sm:$0xff]  }
 0x662   : > { %v9572_v12 = vpop.f32.mrf.mxu1 }
 0x663   : > { %v12424_v51 = vadd.f32 %v10816_v22, %v3293_v23  ;;  %v3304_v24 = vadd.f32 %v9572_v12, %v12379_v45  ;;  %v10031_v23 = vld [vmem:[#allocation11 + $0x4] ss:$8 sps:$4 sm:$0xff]   ;;  %v10029_v12 = vld [vmem:[#allocation11] ss:$8 sps:$4 sm:$0xff]  }
 0x664   : > { %v3295_v55 = vpop.f32.mrf.mxu1 }
 0x665   : > { %v3296_v15 = vadd.f32 %v12379_v45, %v3295_v55  ;;  %3357 = vadd.xlane.f32.xlu0 %v12424_v51  ;;  %v12438_v29 = vadd.f32 %v10819_v63, %v3304_v24 }
 0x667   : > { %v12433_v36 = vadd.f32 %v10818_v31, %v3296_v15 }
 0x669   : > { %3359 = vadd.xlane.f32.xlu1 %v12433_v36  ;;  %3361 = vadd.xlane.f32.xlu0 %v12429_v35 }
 0x66d   : > { %3363 = vadd.xlane.f32.xlu1 %v12438_v29 }
 0x676   : > { %v9575_v44 = vpop.f32.mrf.mxu1 }
 0x677   : > { %v3317_v13 = vadd.f32 %v9575_v44, %v12379_v45 }
 0x678   : > { %v3308_v57 = vpop.f32.mrf.mxu1 }
 0x679   : > { %v3309_v11 = vadd.f32 %v12379_v45, %v3308_v57  ;;  %v12449_v40 = vadd.f32 %v10821_v43, %v3317_v13 }
 0x67a   : > { %v9576_v8 = vpop.f32.mrf.mxu1 }
 0x67b   : > { %v12444_v16 = vadd.f32 %v10820_v27, %v3309_v11  ;;  %v3320_v46 = vadd.f32 %v9576_v8, %v12379_v45 }
 0x67c   : > { %v3311_v50 = vpop.f32.mrf.mxu1 }
 0x67d   : > { %v3312_v0 = vadd.f32 %v12379_v45, %v3311_v50  ;;  %3365 = vadd.xlane.f32.xlu0 %v12444_v16  ;;  %v12458_v7 = vadd.f32 %v10823_v47, %v3320_v46 }
 0x67f   : > { %v12453_v25 = vadd.f32 %v10822_v34, %v3312_v0 }
 0x681   : > { %3367 = vadd.xlane.f32.xlu1 %v12453_v25  ;;  %3369 = vadd.xlane.f32.xlu0 %v12449_v40 }
 0x685   : > { %3371 = vadd.xlane.f32.xlu1 %v12458_v7 }
 0x692   : > { %v3342_v18 = vpop.xlane.xlu0 %3341 }
 0x693   : > { %v3374_v39 = vmul.f32 0.0078125, %v3342_v18 }
 0x695   : > { %v12462_v17 = vsub.f32 %v12384_v62, %v3374_v39 }
 0x696   : > { %v3346_v45 = vpop.xlane.xlu0 %3345  ;;  %v3344_v3 = vpop.xlane.xlu1 %3343 }
 0x697   : > { %v3376_v6 = vmul.f32 0.0078125, %v3346_v45  ;;  %v3375_v61 = vmul.f32 0.0078125, %v3344_v3  ;;  %v3406_v58 = vmul.f32 %v12462_v17, %v12462_v17 }
 0x699   : > { %v12467_v54 = vsub.f32 %v12389_v2, %v3376_v6  ;;  %v12470_v5 = vsub.f32 %v12393_v60, %v3375_v61  ;;  %3422 = vadd.xlane.f32.xlu0 %v3406_v58  ;;  %v10013_v60 = vld [vmem:[#allocation11 + $0x64] ss:$8 sps:$4 sm:$0xff]  }
 0x69a   : > { %v3348_v62 = vpop.xlane.xlu0 %3347  ;;  %3680 = vmatprep.subr.bf16.mxu0 %v10013_v60 }
 0x69b   : > { %v3377_v38 = vmul.f32 0.0078125, %v3348_v62  ;;  %v3408_v9 = vmul.f32 %v12467_v54, %v12467_v54  ;;  %v3407_v28 = vmul.f32 %v12470_v5, %v12470_v5  ;;  %3681 = vmatpush1.bf16.msra.mxu0 %v10011_v37 }
 0x69c   : > { %3682 = vmatprep.subr.bf16.mxu0 %v10016_v52 }
 0x69d   : > { %v12477_v1 = vsub.f32 %v12398_v19, %v3377_v38  ;;  %3426 = vadd.xlane.f32.xlu0 %v3408_v9  ;;  %3424 = vadd.xlane.f32.xlu1 %v3407_v28  ;;  %v10022_v19 = vld [vmem:[#allocation11 + $0x34] ss:$8 sps:$4 sm:$0xff]  }
 0x69f   : > { %v3409_v2 = vmul.f32 %v12477_v1, %v12477_v1  ;;  %3683 = vmatpush1.bf16.msra.mxu0 %v10014_v21 }
 0x6a0   : > { %3684 = vmatprep.subr.bf16.mxu0 %v10019_v48 }
 0x6a1   : > { %3428 = vadd.xlane.f32.xlu1 %v3409_v2 }
 0x6a3   : > { %3685 = vmatpush1.bf16.msra.mxu0 %v10017_v4 }
 0x6a4   : > { %3686 = vmatprep.subr.bf16.mxu0 %v10022_v19 }
 0x6a7   : > { %3687 = vmatpush1.bf16.msra.mxu0 %v10020_v30 }
 0x6a8   : > { %3688 = vmatprep.subr.bf16.mxu0 %v10025_v14 }
 0x6ab   : > { %3689 = vmatpush1.bf16.msra.mxu0 %v10023_v10 }
 0x6ac   : > { %3690 = vmatprep.subr.bf16.mxu0 %v10028_v49 }
 0x6af   : > { %3691 = vmatpush1.bf16.msra.mxu0 %v10026_v33 }
 0x6b0   : > { %3692 = vmatprep.subr.bf16.mxu0 %v10031_v23 }
 0x6b3   : > { %3693 = vmatpush1.bf16.msra.mxu0 %v10029_v12 }
 0x6d6   : > { %v3350_v53 = vpop.xlane.xlu0 %3349 }
 0x6d7   : > { %v3378_v22 = vmul.f32 0.0078125, %v3350_v53 }
 0x6d9   : > { %v12482_v55 = vsub.f32 %v12404_v42, %v3378_v22 }
 0x6da   : > { %v3354_v15 = vpop.xlane.xlu0 %3353  ;;  %v3352_v59 = vpop.xlane.xlu1 %3351 }
 0x6db   : > { %v3380_v24 = vmul.f32 0.0078125, %v3354_v15  ;;  %v3379_v31 = vmul.f32 0.0078125, %v3352_v59  ;;  %v3410_v63 = vmul.f32 %v12482_v55, %v12482_v55  ;;  %v12545_v15 = vld [vmem:[%s14716_s9] ss:$0 sm:$0xff] }
 0x6dd   : > { %v12487_v44 = vsub.f32 %v12409_v32, %v3380_v24  ;;  %v12490_v57 = vsub.f32 %v12413_v41, %v3379_v31  ;;  %3430 = vadd.xlane.f32.xlu0 %v3410_v63 }
 0x6de   : > { %v3356_v11 = vpop.xlane.xlu1 %3355 }
 0x6df   : > { %v3381_v8 = vmul.f32 0.0078125, %v3356_v11  ;;  %v3412_v42 = vmul.f32 %v12487_v44, %v12487_v44  ;;  %v3411_v13 = vmul.f32 %v12490_v57, %v12490_v57  ;;  %v12552_v11 = vld [vmem:[%s14717_s10] ss:$0 sm:$0xff] }
 0x6e1   : > { %v12497_v27 = vsub.f32 %v12418_v20, %v3381_v8  ;;  %3434 = vadd.xlane.f32.xlu0 %v3412_v42  ;;  %3432 = vadd.xlane.f32.xlu1 %v3411_v13 }
 0x6e3   : > { %v3413_v32 = vmul.f32 %v12497_v27, %v12497_v27 }
 0x6e5   : > { %3436 = vadd.xlane.f32.xlu1 %v3413_v32 }
 0x6ee   : > { %v3358_v41 = vpop.xlane.xlu0 %3357 }
 0x6ef   : > { %v3382_v50 = vmul.f32 0.0078125, %v3358_v41  ;;  %v10032_v41 = vld [vmem:[#allocation12 + $0x78] sm:$0xff]  }
 0x6f0   : > { %9041 = vmatprep.subr.bf16.mxu1 %v10032_v41 }
 0x6f1   : > { %v12502_v0 = vsub.f32 %v12424_v51, %v3382_v50  ;;  %v10033_v50 = vld [vmem:[#allocation12 + $0x38] sm:$0xff]  }
 0x6f2   : > { %v3362_v43 = vpop.xlane.xlu0 %3361  ;;  %v3360_v46 = vpop.xlane.xlu1 %3359  ;;  %9042 = vmatpush3.bf16.msra.mxu1 %v10033_v50 }
 0x6f3   : > { %v3384_v34 = vmul.f32 0.0078125, %v3362_v43  ;;  %v3383_v47 = vmul.f32 0.0078125, %v3360_v46  ;;  %v3414_v18 = vmul.f32 %v12502_v0, %v12502_v0  ;;  %v10034_v43 = vld [vmem:[#allocation12 + $0x70] sm:$0xff]  }
 0x6f4   : > { %9043 = vmatprep.subr.bf16.mxu1 %v10034_v43 }
 0x6f5   : > { %v12507_v20 = vsub.f32 %v12429_v35, %v3384_v34  ;;  %v12510_v39 = vsub.f32 %v12433_v36, %v3383_v47  ;;  %3438 = vadd.xlane.f32.xlu0 %v3414_v18  ;;  %v10035_v47 = vld [vmem:[#allocation12 + $0x30] sm:$0xff]   ;;  %v10036_v18 = vld [vmem:[#allocation12 + $0x68] sm:$0xff]  }
 0x6f6   : > { %v3364_v56 = vpop.xlane.xlu1 %3363  ;;  %9044 = vmatpush3.bf16.msra.mxu1 %v10035_v47 }
 0x6f7   : > { %v3385_v26 = vmul.f32 0.0078125, %v3364_v56  ;;  %v3416_v51 = vmul.f32 %v12507_v20, %v12507_v20  ;;  %v3415_v45 = vmul.f32 %v12510_v39, %v12510_v39  ;;  %v14936_v56 = vmov 0   ;;  %9045 = vmatprep.subr.bf16.mxu1 %v10036_v18  ;;  %v10045_v18 = vld [vmem:[#allocation12 + $0x8] sm:$0xff]  }
 0x6f9   : > { %v12517_v3 = vsub.f32 %v12438_v29, %v3385_v26  ;;  %3442 = vadd.xlane.f32.xlu0 %v3416_v51  ;;  %3440 = vadd.xlane.f32.xlu1 %v3415_v45  ;;  %v10037_v26 = vld [vmem:[#allocation12 + $0x28] sm:$0xff]   ;;  %v10038_v45 = vld [vmem:[#allocation12 + $0x60] sm:$0xff]  }
 0x6fa   : > { %9046 = vmatpush3.bf16.msra.mxu1 %v10037_v26 }
 0x6fb   : > { %v3417_v35 = vmul.f32 %v12517_v3, %v12517_v3  ;;  %9047 = vmatprep.subr.bf16.mxu1 %v10038_v45 }
 0x6fd   : > { %3444 = vadd.xlane.f32.xlu1 %v3417_v35 }
 0x706   : > { %v3366_v36 = vpop.xlane.xlu0 %3365 }
 0x707   : > { %v3386_v6 = vmul.f32 0.0078125, %v3366_v36  ;;  %v10039_v36 = vld [vmem:[#allocation12 + $0x20] sm:$0xff]  }
 0x708   : > { %9048 = vmatpush3.bf16.msra.mxu1 %v10039_v36 }
 0x709   : > { %v12522_v61 = vsub.f32 %v12444_v16, %v3386_v6  ;;  %v10040_v6 = vld [vmem:[#allocation12 + $0x58] sm:$0xff]  }
 0x70a   : > { %v3370_v58 = vpop.xlane.xlu0 %3369  ;;  %v3368_v62 = vpop.xlane.xlu1 %3367  ;;  %9049 = vmatprep.subr.bf16.mxu1 %v10040_v6  ;;  %v10047_v6 = vld [vmem:[#allocation12] sm:$0xff]  }
 0x70b   : > { %v3388_v38 = vmul.f32 0.0078125, %v3370_v58  ;;  %v3387_v9 = vmul.f32 0.0078125, %v3368_v62  ;;  %v3418_v28 = vmul.f32 %v12522_v61, %v12522_v61  ;;  %v10041_v58 = vld [vmem:[#allocation12 + $0x18] sm:$0xff]  }
 0x70c   : > { %9050 = vmatpush3.bf16.msra.mxu1 %v10041_v58 }
 0x70d   : > { %v12527_v29 = vsub.f32 %v12449_v40, %v3388_v38  ;;  %v12530_v2 = vsub.f32 %v12453_v25, %v3387_v9  ;;  %3446 = vadd.xlane.f32.xlu0 %v3418_v28 }
 0x70e   : > { %v3372_v60 = vpop.xlane.xlu1 %3371 }
 0x70f   : > { %v3389_v37 = vmul.f32 0.0078125, %v3372_v60  ;;  %v3420_v16 = vmul.f32 %v12527_v29, %v12527_v29  ;;  %v3419_v52 = vmul.f32 %v12530_v2, %v12530_v2 }
 0x711   : > { %v12537_v21 = vsub.f32 %v12458_v7, %v3389_v37  ;;  %3450 = vadd.xlane.f32.xlu0 %v3420_v16  ;;  %3448 = vadd.xlane.f32.xlu1 %v3419_v52 }
 0x713   : > { %v3421_v40 = vmul.f32 %v12537_v21, %v12537_v21 }
 0x715   : > { %3452 = vadd.xlane.f32.xlu1 %v3421_v40 }
 0x722   : > { %v3423_v25 = vpop.xlane.xlu0 %3422 }
 0x723   : > { %v3454_v48 = vmul.f32 0.0078125, %v3423_v25 }
 0x725   : > { %v3470_v4 = vadd.f32 1e-05, %v3454_v48 }
 0x726   : > { %v3427_v19 = vpop.xlane.xlu0 %3426  ;;  %v3425_v30 = vpop.xlane.xlu1 %3424 }
 0x727   : > { %10392 = vrsqrt.f32 %v3470_v4  ;;  %v3456_v14 = vmul.f32 0.0078125, %v3427_v19  ;;  %v3455_v10 = vmul.f32 0.0078125, %v3425_v30 }
 0x729   : > { %v3471_v49 = vadd.f32 1e-05, %v3455_v10  ;;  %v3472_v33 = vadd.f32 1e-05, %v3456_v14 }
 0x72a   : > { %v3429_v23 = vpop.xlane.xlu1 %3428 }
 0x72b   : > { %v3457_v12 = vmul.f32 0.0078125, %v3429_v23  ;;  %10394 = vrsqrt.f32 %v3471_v49 }
 0x72c   : > { %10396 = vrsqrt.f32 %v3472_v33 }
 0x72d   : > { %v3473_v7 = vadd.f32 1e-05, %v3457_v12 }
 0x72f   : > { %10398 = vrsqrt.f32 %v3473_v7 }
 0x734   : > { %v10393_v53 = vpop.eup %10392 }
 0x735   : > { %v3502_v22 = vmul.f32 %v10393_v53, %v12462_v17 }
 0x737   : > { %v3524_v31 = vmul.f32 %v12545_v15, %v3502_v22 }
 0x738   : > { %v10395_v59 = vpop.eup %10394 }
 0x739   : > { %v3503_v24 = vmul.f32 %v10395_v59, %v12470_v5  ;;  %v10397_v63 = vpop.eup %10396  ;;  %v12557_v13 = vadd.f32 %v12552_v11, %v3524_v31 }
 0x73a   : > { %v3504_v5 = vmul.f32 %v10397_v63, %v12467_v54 }
 0x73b   : > { %v3525_v42 = vmul.f32 %v12545_v15, %v3503_v24 }
 0x73c   : > { %v10399_v8 = vpop.eup %10398 }
 0x73d   : > { %v3505_v17 = vmul.f32 %v10399_v8, %v12477_v1  ;;  %v12560_v32 = vadd.f32 %v12552_v11, %v3525_v42  ;;  %v3526_v1 = vmul.f32 %v12545_v15, %v3504_v5 }
 0x73f   : > { %v3562_v46 = vpack.c.bf16 %v12560_v32, %v12557_v13  ;;  %v3527_v34 = vmul.f32 %v12545_v15, %v3505_v17  ;;  %v12572_v51 = vadd.f32 %v12552_v11, %v3526_v1  ;;  %v10042_v17 = vld [vmem:[#allocation12 + $0x50] sm:$0xff]  }
 0x740   : > { %9051 = vmatprep.subr.bf16.mxu1 %v10042_v17 }
 0x741   : > { %3711 = vmatmul.mubr.bf16.vlgmr.msra.gmra.mxu0 %v3562_v46  ;;  %v12569_v54 = vadd.f32 %v12552_v11, %v3527_v34 }
 0x742   : > { %3720 = vmatprep.mubr.bf16.mxu0 %v14936_v56 }
 0x743   : > { %v3563_v35 = vpack.c.bf16 %v12569_v54, %v12572_v51 }
 0x749   : > { %3721 = vmatmul.mubr.bf16.gmra.mxu0 %v3563_v35  ;;  %v10046_v35 = vld [vmem:[#allocation12 + $0x40] sm:$0xff]  }
 0x74a   : > { %3730 = vmatprep.mubr.bf16.mxu0 %v14936_v56 }
 0x766   : > { %v3431_v62 = vpop.xlane.xlu0 %3430 }
 0x767   : > { %v3458_v38 = vmul.f32 0.0078125, %v3431_v62 }
 0x769   : > { %v3474_v9 = vadd.f32 1e-05, %v3458_v38 }
 0x76a   : > { %v3435_v28 = vpop.xlane.xlu0 %3434  ;;  %v3433_v60 = vpop.xlane.xlu1 %3432 }
 0x76b   : > { %10400 = vrsqrt.f32 %v3474_v9  ;;  %v3460_v37 = vmul.f32 0.0078125, %v3435_v28  ;;  %v3459_v16 = vmul.f32 0.0078125, %v3433_v60 }
 0x76d   : > { %v3475_v52 = vadd.f32 1e-05, %v3459_v16  ;;  %v3476_v40 = vadd.f32 1e-05, %v3460_v37 }
 0x76e   : > { %v3437_v25 = vpop.xlane.xlu1 %3436 }
 0x76f   : > { %v3461_v48 = vmul.f32 0.0078125, %v3437_v25  ;;  %10402 = vrsqrt.f32 %v3475_v52 }
 0x770   : > { %10404 = vrsqrt.f32 %v3476_v40 }
 0x771   : > { %v3477_v4 = vadd.f32 1e-05, %v3461_v48 }
 0x773   : > { %10406 = vrsqrt.f32 %v3477_v4 }
 0x778   : > { %v10401_v19 = vpop.eup %10400 }
 0x779   : > { %v3506_v30 = vmul.f32 %v10401_v19, %v12482_v55 }
 0x77b   : > { %v3528_v33 = vmul.f32 %v12545_v15, %v3506_v30 }
 0x77c   : > { %v10403_v14 = vpop.eup %10402 }
 0x77d   : > { %v3507_v49 = vmul.f32 %v10403_v14, %v12490_v57  ;;  %v10405_v23 = vpop.eup %10404  ;;  %v12583_v63 = vadd.f32 %v12552_v11, %v3528_v33 }
 0x77e   : > { %v3439_v10 = vpop.xlane.xlu0 %3438  ;;  %v3508_v57 = vmul.f32 %v10405_v23, %v12487_v44  ;;  %v10044_v44 = vld [vmem:[#allocation12 + $0x48] sm:$0xff]  }
 0x77f   : > { %v3462_v12 = vmul.f32 0.0078125, %v3439_v10  ;;  %v3529_v53 = vmul.f32 %v12545_v15, %v3507_v49 }
 0x780   : > { %v10407_v7 = vpop.eup %10406  ;;  %v3530_v34 = vmul.f32 %v12545_v15, %v3508_v57 }
 0x781   : > { %v3478_v22 = vadd.f32 1e-05, %v3462_v12  ;;  %v3509_v59 = vmul.f32 %v10407_v7, %v12497_v27  ;;  %v12586_v55 = vadd.f32 %v12552_v11, %v3529_v53  ;;  %v10043_v27 = vld [vmem:[#allocation12 + $0x10] sm:$0xff]  }
 0x782   : > { %v3443_v24 = vpop.xlane.xlu0 %3442  ;;  %v3441_v31 = vpop.xlane.xlu1 %3440  ;;  %9052 = vmatpush3.bf16.msra.mxu1 %v10043_v27  ;;  %v12598_v45 = vadd.f32 %v12552_v11, %v3530_v34 }
 0x783   : > { %10408 = vrsqrt.f32 %v3478_v22  ;;  %v3464_v8 = vmul.f32 0.0078125, %v3443_v24  ;;  %v3463_v42 = vmul.f32 0.0078125, %v3441_v31  ;;  %v3564_v5 = vpack.c.bf16 %v12586_v55, %v12583_v63  ;;  %9053 = vmatprep.subr.bf16.mxu1 %v10044_v44 }
 0x784   : > { %v3531_v41 = vmul.f32 %v12545_v15, %v3509_v59 }
 0x785   : > { %v3479_v50 = vadd.f32 1e-05, %v3463_v42  ;;  %v3480_v43 = vadd.f32 1e-05, %v3464_v8  ;;  %3731 = vmatmul.mubr.bf16.gmra.mxu0 %v3564_v5 }
 0x786   : > { %v3445_v46 = vpop.xlane.xlu1 %3444  ;;  %3740 = vmatprep.mubr.bf16.mxu0 %v14936_v56  ;;  %v12595_v1 = vadd.f32 %v12552_v11, %v3531_v41  ;;  %9054 = vmatpush3.bf16.msra.mxu1 %v10045_v18 }
 0x787   : > { %v3465_v47 = vmul.f32 0.0078125, %v3445_v46  ;;  %10410 = vrsqrt.f32 %v3479_v50  ;;  %9055 = vmatprep.subr.bf16.mxu1 %v10046_v35 }
 0x788   : > { %10412 = vrsqrt.f32 %v3480_v43  ;;  %v3565_v36 = vpack.c.bf16 %v12595_v1, %v12598_v45 }
 0x789   : > { %v3481_v26 = vadd.f32 1e-05, %v3465_v47 }
 0x78a   : > { %9056 = vmatpush3.bf16.msra.mxu1 %v10047_v6 }
 0x78b   : > { %10414 = vrsqrt.f32 %v3481_v26 }
 0x78d   : > { %3741 = vmatmul.mubr.bf16.gmra.mxu0 %v3565_v36  ;;  %v14938_v36 = vld [vmem:[#allocation23_spill] sm:$0xff] }
 0x78e   : > { %3750 = vmatprep.mubr.bf16.mxu0 %v14936_v56 }
 0x790   : > { %v10409_v58 = vpop.eup %10408 }
 0x791   : > { %v3510_v62 = vmul.f32 %v10409_v58, %v12502_v0 }
 0x793   : > { %v3532_v60 = vmul.f32 %v12545_v15, %v3510_v62 }
 0x794   : > { %v10411_v38 = vpop.eup %10410 }
 0x795   : > { %v3511_v28 = vmul.f32 %v10411_v38, %v12510_v39  ;;  %v10413_v37 = vpop.eup %10412  ;;  %v12609_v30 = vadd.f32 %v12552_v11, %v3532_v60 }
 0x796   : > { %v3447_v9 = vpop.xlane.xlu0 %3446  ;;  %v3512_v39 = vmul.f32 %v10413_v37, %v12507_v20 }
 0x797   : > { %v3466_v16 = vmul.f32 0.0078125, %v3447_v9  ;;  %v3533_v40 = vmul.f32 %v12545_v15, %v3511_v28 }
 0x798   : > { %v10415_v52 = vpop.eup %10414  ;;  %v3534_v7 = vmul.f32 %v12545_v15, %v3512_v39 }
 0x799   : > { %v3482_v25 = vadd.f32 1e-05, %v3466_v16  ;;  %v3513_v48 = vmul.f32 %v10415_v52, %v12517_v3  ;;  %v12612_v0 = vadd.f32 %v12552_v11, %v3533_v40 }
 0x79a   : > { %v3451_v4 = vpop.xlane.xlu0 %3450  ;;  %v3449_v19 = vpop.xlane.xlu1 %3448  ;;  %v12624_v59 = vadd.f32 %v12552_v11, %v3534_v7 }
 0x79b   : > { %10416 = vrsqrt.f32 %v3482_v25  ;;  %v3468_v14 = vmul.f32 0.0078125, %v3451_v4  ;;  %v3467_v10 = vmul.f32 0.0078125, %v3449_v19  ;;  %v3566_v49 = vpack.c.bf16 %v12612_v0, %v12609_v30 }
 0x79c   : > { %v3535_v33 = vmul.f32 %v12545_v15, %v3513_v48 }
 0x79d   : > { %v3483_v23 = vadd.f32 1e-05, %v3467_v10  ;;  %v3484_v3 = vadd.f32 1e-05, %v3468_v14  ;;  %3751 = vmatmul.mubr.bf16.gmra.mxu0 %v3566_v49 }
 0x79e   : > { %v3453_v12 = vpop.xlane.xlu1 %3452  ;;  %3760 = vmatprep.mubr.bf16.mxu0 %v14936_v56  ;;  %v12621_v20 = vadd.f32 %v12552_v11, %v3535_v33 }
 0x79f   : > { %v3469_v53 = vmul.f32 0.0078125, %v3453_v12  ;;  %10418 = vrsqrt.f32 %v3483_v23 }
 0x7a0   : > { %10420 = vrsqrt.f32 %v3484_v3  ;;  %v3567_v24 = vpack.c.bf16 %v12621_v20, %v12624_v59 }
 0x7a1   : > { %v3485_v22 = vadd.f32 1e-05, %v3469_v53 }
 0x7a3   : > { %10422 = vrsqrt.f32 %v3485_v22 }
 0x7a5   : > { %3761 = vmatmul.mubr.bf16.gmra.mxu0 %v3567_v24 }
 0x7a6   : > { %3770 = vmatprep.mubr.bf16.mxu0 %v14936_v56 }
 0x7a8   : > { %v10417_v31 = vpop.eup %10416 }
 0x7a9   : > { %v3514_v57 = vmul.f32 %v10417_v31, %v12522_v61 }
 0x7ab   : > { %v3536_v17 = vmul.f32 %v12545_v15, %v3514_v57 }
 0x7ac   : > { %v10419_v8 = vpop.eup %10418 }
 0x7ad   : > { %v3515_v42 = vmul.f32 %v10419_v8, %v12530_v2  ;;  %v10421_v5 = vpop.eup %10420  ;;  %v12635_v43 = vadd.f32 %v12552_v11, %v3536_v17 }
 0x7ae   : > { %v3516_v34 = vmul.f32 %v10421_v5, %v12527_v29  ;;  %v3586_v29 = vld [vmem:[%s14713_s6] sm:$0x3] }
 0x7af   : > { %v3537_v27 = vmul.f32 %v12545_v15, %v3515_v42  ;;  %v12662_v6 = vrot.slane %v3586_v29, %v14938_v36 }
 0x7b0   : > { %v10423_v41 = vpop.eup %10422  ;;  %v3538_v47 = vmul.f32 %v12545_v15, %v3516_v34 }
 0x7b1   : > { %v3517_v50 = vmul.f32 %v10423_v41, %v12537_v21  ;;  %v12638_v46 = vadd.f32 %v12552_v11, %v3537_v27 }
 0x7b2   : > { %v12650_v44 = vadd.f32 %v12552_v11, %v3538_v47 }
 0x7b3   : > { %v3568_v61 = vpack.c.bf16 %v12638_v46, %v12635_v43  ;;  %v3539_v2 = vmul.f32 %v12545_v15, %v3517_v50  ;;  %v14937_v15 = vld [vmem:[#allocation22_spill] sm:$0xff] }
 0x7b4   : > { %v12659_v35 = vrot.slane %v3586_v29, %v14937_v15 }
 0x7b5   : > { %3771 = vmatmul.mubr.bf16.gmra.mxu0 %v3568_v61  ;;  %v12647_v21 = vadd.f32 %v12552_v11, %v3539_v2 }
 0x7b6   : > { %3780 = vmatprep.mubr.bf16.mxu0 %v14936_v56 }
 0x7b7   : > { %v3569_v18 = vpack.c.bf16 %v12647_v21, %v12650_v44 }
 0x7bd   : > { %3781 = vmatmul.mubr.bf16.gmra.mxu0 %v3569_v18 }
 0x7be   : > { %4528 = vmatprep.mubr.bf16.mxu0 %v14936_v56 }
 0x801   : > { %v3712_v26 = vpop.f32.mrf.mxu0 }
 0x802   : > { %v3713_v9 = vadd.f32 %v3712_v26, %v12662_v6 }
 0x803   : > { %v3714_v58 = vpop.f32.mrf.mxu0 }
 0x804   : > { %v3715_v62 = vadd.f32 %v3714_v58, %v12659_v35  ;;  %v3791_v25 = vmax.f32 %v3713_v9, 0.0 }
 0x805   : > { %v3716_v11 = vpop.f32.mrf.mxu0 }
 0x806   : > { %v3717_v38 = vadd.f32 %v3716_v11, %v12662_v6  ;;  %v3792_v52 = vmax.f32 %v3715_v62, 0.0 }
 0x807   : > { %v3718_v28 = vpop.f32.mrf.mxu0 }
 0x808   : > { %v3719_v60 = vadd.f32 %v3718_v28, %v12659_v35  ;;  %v3793_v37 = vmax.f32 %v3717_v38, 0.0 }
 0x809   : > { %v3722_v16 = vpop.f32.mrf.mxu0 }
 0x80a   : > { %v3794_v40 = vmax.f32 %v3719_v60, 0.0  ;;  %v3823_v19 = vpack.c.bf16 %v3793_v37, %v3791_v25  ;;  %v3723_v49 = vadd.f32 %v3722_v16, %v12662_v6 }
 0x80b   : > { %v3724_v48 = vpop.f32.mrf.mxu0 }
 0x80c   : > { %v3824_v4 = vpack.c.bf16 %v3794_v40, %v3792_v52  ;;  %v3725_v14 = vadd.f32 %v3724_v48, %v12659_v35  ;;  %v3795_v53 = vmax.f32 %v3723_v49, 0.0 }
 0x80d   : > { %v3726_v39 = vpop.f32.mrf.mxu0 }
 0x80e   : > { %v3727_v10 = vadd.f32 %v3726_v39, %v12662_v6  ;;  %4006 = vmatprep.mubr.bf16.mxu1 %v3824_v4  ;;  %v3796_v12 = vmax.f32 %v3725_v14, 0.0 }
 0x80f   : > { %v3728_v33 = vpop.f32.mrf.mxu0  ;;  %4007 = vmatmul.mubr.bf16.vlgmr.msra.gmra.mxu1 %v3823_v19 }
 0x810   : > { %v3729_v23 = vadd.f32 %v3728_v33, %v12659_v35  ;;  %v3797_v3 = vmax.f32 %v3727_v10, 0.0 }
 0x812   : > { %v3798_v7 = vmax.f32 %v3729_v23, 0.0  ;;  %v3825_v24 = vpack.c.bf16 %v3797_v3, %v3795_v53 }
 0x814   : > { %v3826_v22 = vpack.c.bf16 %v3798_v7, %v3796_v12 }
 0x816   : > { %4014 = vmatprep.mubr.bf16.mxu1 %v3826_v22 }
 0x817   : > { %4015 = vmatmul.mubr.bf16.gmra.mxu1 %v3825_v24 }
 0x845   : > { %v3732_v31 = vpop.f32.mrf.mxu0 }
 0x846   : > { %v3733_v5 = vadd.f32 %v3732_v31, %v12662_v6 }
 0x847   : > { %v3734_v57 = vpop.f32.mrf.mxu0 }
 0x848   : > { %v3735_v42 = vadd.f32 %v3734_v57, %v12659_v35  ;;  %v3799_v47 = vmax.f32 %v3733_v5, 0.0 }
 0x849   : > { %v3736_v8 = vpop.f32.mrf.mxu0 }
 0x84a   : > { %v3737_v17 = vadd.f32 %v3736_v8, %v12662_v6  ;;  %v3800_v61 = vmax.f32 %v3735_v42, 0.0 }
 0x84b   : > { %v3738_v41 = vpop.f32.mrf.mxu0 }
 0x84c   : > { %v3739_v27 = vadd.f32 %v3738_v41, %v12659_v35  ;;  %v3801_v50 = vmax.f32 %v3737_v17, 0.0 }
 0x84d   : > { %v3742_v34 = vpop.f32.mrf.mxu0 }
 0x84e   : > { %v3802_v2 = vmax.f32 %v3739_v27, 0.0  ;;  %v3827_v26 = vpack.c.bf16 %v3801_v50, %v3799_v47  ;;  %v3743_v38 = vadd.f32 %v3742_v34, %v12662_v6 }
 0x84f   : > { %v3744_v18 = vpop.f32.mrf.mxu0 }
 0x850   : > { %v3828_v29 = vpack.c.bf16 %v3802_v2, %v3800_v61  ;;  %v3745_v11 = vadd.f32 %v3744_v18, %v12659_v35  ;;  %v3803_v52 = vmax.f32 %v3743_v38, 0.0 }
 0x851   : > { %v3746_v58 = vpop.f32.mrf.mxu0 }
 0x852   : > { %v3747_v62 = vadd.f32 %v3746_v58, %v12662_v6  ;;  %4022 = vmatprep.mubr.bf16.mxu1 %v3828_v29  ;;  %v3804_v37 = vmax.f32 %v3745_v11, 0.0 }
 0x853   : > { %v3748_v9 = vpop.f32.mrf.mxu0  ;;  %4023 = vmatmul.mubr.bf16.gmra.mxu1 %v3827_v26 }
 0x854   : > { %v3749_v28 = vadd.f32 %v3748_v9, %v12659_v35  ;;  %v3805_v60 = vmax.f32 %v3747_v62, 0.0 }
 0x856   : > { %v3806_v16 = vmax.f32 %v3749_v28, 0.0  ;;  %v3829_v25 = vpack.c.bf16 %v3805_v60, %v3803_v52 }
 0x858   : > { %v3830_v40 = vpack.c.bf16 %v3806_v16, %v3804_v37 }
 0x85a   : > { %4030 = vmatprep.mubr.bf16.mxu1 %v3830_v40 }
 0x85b   : > { %4031 = vmatmul.mubr.bf16.gmra.mxu1 %v3829_v25 }
 0x85d   : > { %v3752_v48 = vpop.f32.mrf.mxu0 }
 0x85e   : > { %v3753_v10 = vadd.f32 %v3752_v48, %v12662_v6 }
 0x85f   : > { %v3754_v4 = vpop.f32.mrf.mxu0 }
 0x860   : > { %v3755_v39 = vadd.f32 %v3754_v4, %v12659_v35  ;;  %v3807_v53 = vmax.f32 %v3753_v10, 0.0 }
 0x861   : > { %v3756_v19 = vpop.f32.mrf.mxu0 }
 0x862   : > { %v3757_v14 = vadd.f32 %v3756_v19, %v12662_v6  ;;  %v3808_v12 = vmax.f32 %v3755_v39, 0.0 }
 0x863   : > { %v3758_v49 = vpop.f32.mrf.mxu0 }
 0x864   : > { %v3759_v33 = vadd.f32 %v3758_v49, %v12659_v35  ;;  %v3809_v23 = vmax.f32 %v3757_v14, 0.0 }
 0x865   : > { %v3762_v3 = vpop.f32.mrf.mxu0 }
 0x866   : > { %v3810_v7 = vmax.f32 %v3759_v33, 0.0  ;;  %v3831_v31 = vpack.c.bf16 %v3809_v23, %v3807_v53  ;;  %v3763_v17 = vadd.f32 %v3762_v3, %v12662_v6 }
 0x867   : > { %v3764_v22 = vpop.f32.mrf.mxu0 }
 0x868   : > { %v3832_v24 = vpack.c.bf16 %v3810_v7, %v3808_v12  ;;  %v3765_v8 = vadd.f32 %v3764_v22, %v12659_v35  ;;  %v3811_v61 = vmax.f32 %v3763_v17, 0.0 }
 0x869   : > { %v3766_v57 = vpop.f32.mrf.mxu0 }
 0x86a   : > { %v3767_v42 = vadd.f32 %v3766_v57, %v12662_v6  ;;  %4038 = vmatprep.mubr.bf16.mxu1 %v3832_v24  ;;  %v3812_v50 = vmax.f32 %v3765_v8, 0.0  ;;  %v12699_v24 = vld [vmem:[%s14715_s8] ss:$0 sm:$0xff] }
 0x86b   : > { %v3768_v5 = vpop.f32.mrf.mxu0  ;;  %4039 = vmatmul.mubr.bf16.gmra.mxu1 %v3831_v31 }
 0x86c   : > { %v3769_v41 = vadd.f32 %v3768_v5, %v12659_v35  ;;  %v3813_v27 = vmax.f32 %v3767_v42, 0.0 }
 0x86e   : > { %v3814_v34 = vmax.f32 %v3769_v41, 0.0  ;;  %v3833_v47 = vpack.c.bf16 %v3813_v27, %v3811_v61 }
 0x870   : > { %v3834_v2 = vpack.c.bf16 %v3814_v34, %v3812_v50 }
 0x872   : > { %4046 = vmatprep.mubr.bf16.mxu1 %v3834_v2 }
 0x873   : > { %4047 = vmatmul.mubr.bf16.gmra.mxu1 %v3833_v47 }
 0x875   : > { %v3772_v18 = vpop.f32.mrf.mxu0 }
 0x876   : > { %v3773_v62 = vadd.f32 %v3772_v18, %v12662_v6 }
 0x877   : > { %v3774_v29 = vpop.f32.mrf.mxu0 }
 0x878   : > { %v3775_v58 = vadd.f32 %v3774_v29, %v12659_v35  ;;  %v3815_v52 = vmax.f32 %v3773_v62, 0.0 }
 0x879   : > { %v3776_v26 = vpop.f32.mrf.mxu0 }
 0x87a   : > { %v3777_v11 = vadd.f32 %v3776_v26, %v12662_v6  ;;  %v3816_v37 = vmax.f32 %v3775_v58, 0.0 }
 0x87b   : > { %v3778_v38 = vpop.f32.mrf.mxu0 }
 0x87c   : > { %v3779_v9 = vadd.f32 %v3778_v38, %v12659_v35  ;;  %v3817_v28 = vmax.f32 %v3777_v11, 0.0 }
 0x87d   : > { %v3782_v60 = vpop.f32.mrf.mxu0 }
 0x87e   : > { %v3818_v16 = vmax.f32 %v3779_v9, 0.0  ;;  %v3835_v48 = vpack.c.bf16 %v3817_v28, %v3815_v52  ;;  %v3783_v14 = vadd.f32 %v3782_v60, %v12662_v6 }
 0x87f   : > { %v3784_v40 = vpop.f32.mrf.mxu0 }
 0x880   : > { %v3836_v25 = vpack.c.bf16 %v3818_v16, %v3816_v37  ;;  %v3785_v19 = vadd.f32 %v3784_v40, %v12659_v35  ;;  %v3819_v12 = vmax.f32 %v3783_v14, 0.0 }
 0x881   : > { %v3786_v4 = vpop.f32.mrf.mxu0 }
 0x882   : > { %v3787_v39 = vadd.f32 %v3786_v4, %v12662_v6  ;;  %4054 = vmatprep.mubr.bf16.mxu1 %v3836_v25  ;;  %v3820_v23 = vmax.f32 %v3785_v19, 0.0 }
 0x883   : > { %v3788_v10 = vpop.f32.mrf.mxu0  ;;  %4055 = vmatmul.mubr.bf16.gmra.mxu1 %v3835_v48 }
 0x884   : > { %v3789_v49 = vadd.f32 %v3788_v10, %v12659_v35  ;;  %v3821_v33 = vmax.f32 %v3787_v39, 0.0 }
 0x886   : > { %v3822_v3 = vmax.f32 %v3789_v49, 0.0  ;;  %v3837_v53 = vpack.c.bf16 %v3821_v33, %v3819_v12 }
 0x888   : > { %v3838_v7 = vpack.c.bf16 %v3822_v3, %v3820_v23 }
 0x88a   : > { %4062 = vmatprep.mubr.bf16.mxu1 %v3838_v7 }
 0x88b   : > { %4063 = vmatmul.mubr.bf16.gmra.mxu1 %v3837_v53 }
 0x8cf   : > { %v9057_v22 = vpop.f32.mrf.mxu1 }
 0x8d1   : > { %v9058_v31 = vpop.f32.mrf.mxu1 }
 0x8d2   : > { %v9059_v6 = vadd.f32 %v9058_v31, %v9057_v22 }
 0x8d3   : > { %v9060_v57 = vpop.f32.mrf.mxu1 }
 0x8d4   : > { %v4009_v8 = vadd.f32 %v9059_v6, %v12699_v24 }
 0x8d5   : > { %v9061_v35 = vpop.f32.mrf.mxu1 }
 0x8d6   : > { %v9062_v42 = vadd.f32 %v9061_v35, %v9060_v57  ;;  %v12703_v17 = vadd.f32 %v4009_v8, %v12557_v13 }
 0x8d7   : > { %v9063_v5 = vpop.f32.mrf.mxu1 }
 0x8d8   : > { %v4012_v41 = vadd.f32 %v9062_v42, %v12699_v24  ;;  %4089 = vadd.xlane.f32.xlu0 %v12703_v17 }
 0x8d9   : > { %v9064_v27 = vpop.f32.mrf.mxu1 }
 0x8da   : > { %v9065_v50 = vadd.f32 %v9064_v27, %v9063_v5  ;;  %v12708_v34 = vadd.f32 %v4012_v41, %v12560_v32 }
 0x8db   : > { %v9066_v61 = vpop.f32.mrf.mxu1 }
 0x8dc   : > { %v4017_v2 = vadd.f32 %v9065_v50, %v12699_v24  ;;  %4091 = vadd.xlane.f32.xlu1 %v12708_v34 }
 0x8dd   : > { %v9067_v47 = vpop.f32.mrf.mxu1 }
 0x8de   : > { %v9068_v18 = vadd.f32 %v9067_v47, %v9066_v61  ;;  %v12713_v13 = vadd.f32 %v4017_v2, %v12572_v51 }
 0x8e0   : > { %v4020_v29 = vadd.f32 %v9068_v18, %v12699_v24  ;;  %4093 = vadd.xlane.f32.xlu0 %v12713_v13 }
 0x8e2   : > { %v12718_v26 = vadd.f32 %v4020_v29, %v12569_v54 }
 0x8e4   : > { %4095 = vadd.xlane.f32.xlu1 %v12718_v26 }
 0x913   : > { %v9069_v32 = vpop.f32.mrf.mxu1 }
 0x915   : > { %v9070_v58 = vpop.f32.mrf.mxu1 }
 0x916   : > { %v9071_v11 = vadd.f32 %v9070_v58, %v9069_v32 }
 0x917   : > { %v9072_v62 = vpop.f32.mrf.mxu1 }
 0x918   : > { %v4025_v38 = vadd.f32 %v9071_v11, %v12699_v24 }
 0x919   : > { %v9073_v9 = vpop.f32.mrf.mxu1 }
 0x91a   : > { %v9074_v28 = vadd.f32 %v9073_v9, %v9072_v62  ;;  %v12723_v51 = vadd.f32 %v4025_v38, %v12583_v63 }
 0x91b   : > { %v9075_v60 = vpop.f32.mrf.mxu1 }
 0x91c   : > { %v4028_v37 = vadd.f32 %v9074_v28, %v12699_v24  ;;  %4097 = vadd.xlane.f32.xlu0 %v12723_v51 }
 0x91d   : > { %v9076_v54 = vpop.f32.mrf.mxu1 }
 0x91e   : > { %v9077_v16 = vadd.f32 %v9076_v54, %v9075_v60  ;;  %v12728_v52 = vadd.f32 %v4028_v37, %v12586_v55 }
 0x91f   : > { %v9078_v40 = vpop.f32.mrf.mxu1 }
 0x920   : > { %v4033_v25 = vadd.f32 %v9077_v16, %v12699_v24  ;;  %4099 = vadd.xlane.f32.xlu1 %v12728_v52 }
 0x921   : > { %v9079_v48 = vpop.f32.mrf.mxu1 }
 0x922   : > { %v9080_v4 = vadd.f32 %v9079_v48, %v9078_v40  ;;  %v12733_v63 = vadd.f32 %v4033_v25, %v12598_v45  ;;  %v10050_v25 = vld [vmem:[#allocation6 + $0x16c] ss:$12 sps:$4 sm:$0xff]  }
 0x923   : > { %4496 = vmatprep.subr.bf16.mxu0 %v10050_v25 }
 0x924   : > { %v4036_v19 = vadd.f32 %v9080_v4, %v12699_v24  ;;  %4101 = vadd.xlane.f32.xlu0 %v12733_v63 }
 0x926   : > { %v12738_v39 = vadd.f32 %v4036_v19, %v12595_v1 }
 0x928   : > { %4103 = vadd.xlane.f32.xlu1 %v12738_v39 }
 0x92b   : > { %v9081_v55 = vpop.f32.mrf.mxu1 }
 0x92d   : > { %v9082_v14 = vpop.f32.mrf.mxu1 }
 0x92e   : > { %v9083_v10 = vadd.f32 %v9082_v14, %v9081_v55 }
 0x92f   : > { %v9084_v49 = vpop.f32.mrf.mxu1 }
 0x930   : > { %v4041_v33 = vadd.f32 %v9083_v10, %v12699_v24 }
 0x931   : > { %v9085_v23 = vpop.f32.mrf.mxu1 }
 0x932   : > { %v9086_v3 = vadd.f32 %v9085_v23, %v9084_v49  ;;  %v12743_v45 = vadd.f32 %v4041_v33, %v12609_v30  ;;  %v10053_v49 = vld [vmem:[#allocation6 + $0x154] ss:$12 sps:$4 sm:$0xff]   ;;  %v10051_v33 = vld [vmem:[#allocation6 + $0x150] ss:$12 sps:$4 sm:$0xff]  }
 0x933   : > { %v9087_v12 = vpop.f32.mrf.mxu1  ;;  %v10057_v23 = vld [vmem:[#allocation6 + $0x170] ss:$12 sps:$4 sm:$0xff]  }
 0x934   : > { %v4044_v7 = vadd.f32 %v9086_v3, %v12699_v24  ;;  %4105 = vadd.xlane.f32.xlu0 %v12743_v45  ;;  %v10054_v3 = vld [vmem:[#allocation6 + $0x138] ss:$12 sps:$4 sm:$0xff]   ;;  %9577 = vmatprep.subr.bf16.mxu1 %v10057_v23 }
 0x935   : > { %v9088_v1 = vpop.f32.mrf.mxu1  ;;  %9578 = vmatpush3.bf16.msra.mxu1 %v10057_v23 }
 0x936   : > { %v9089_v53 = vadd.f32 %v9088_v1, %v9087_v12  ;;  %v12748_v22 = vadd.f32 %v4044_v7, %v12612_v0  ;;  %v10060_v12 = vld [vmem:[#allocation6 + $0x124] ss:$12 sps:$4 sm:$0xff]   ;;  %v10064_v1 = vld [vmem:[#allocation6 + $0x10c] ss:$12 sps:$4 sm:$0xff]  }
 0x937   : > { %v9090_v31 = vpop.f32.mrf.mxu1  ;;  %v10061_v7 = vld [vmem:[#allocation6 + $0x158] ss:$12 sps:$4 sm:$0xff]  }
 0x938   : > { %v4049_v6 = vadd.f32 %v9089_v53, %v12699_v24  ;;  %4107 = vadd.xlane.f32.xlu1 %v12748_v22  ;;  %9579 = vmatprep.subr.bf16.mxu1 %v10061_v7  ;;  %v10065_v53 = vld [vmem:[#allocation6 + $0x140] ss:$12 sps:$4 sm:$0xff]  }
 0x939   : > { %v9091_v57 = vpop.f32.mrf.mxu1  ;;  %9580 = vmatpush3.bf16.msra.mxu1 %v10061_v7 }
 0x93a   : > { %v9092_v8 = vadd.f32 %v9091_v57, %v9090_v31  ;;  %v12753_v30 = vadd.f32 %v4049_v6, %v12624_v59  ;;  %v10062_v31 = vld [vmem:[#allocation6 + $0x108] ss:$12 sps:$4 sm:$0xff]   ;;  %9581 = vmatprep.subr.bf16.mxu1 %v10065_v53 }
 0x93b   : > { %v10068_v6 = vld [vmem:[#allocation6 + $0xf4] ss:$12 sps:$4 sm:$0xff]  }
 0x93c   : > { %v4052_v35 = vadd.f32 %v9092_v8, %v12699_v24  ;;  %4109 = vadd.xlane.f32.xlu0 %v12753_v30  ;;  %v10069_v57 = vld [vmem:[#allocation6 + $0x128] ss:$12 sps:$4 sm:$0xff]   ;;  %v10066_v8 = vld [vmem:[#allocation6 + $0xf0] ss:$12 sps:$4 sm:$0xff]  }
 0x93d   : > { %9582 = vmatpush3.bf16.msra.mxu1 %v10065_v53 }
 0x93e   : > { %v12758_v42 = vadd.f32 %v4052_v35, %v12621_v20  ;;  %9583 = vmatprep.subr.bf16.mxu1 %v10069_v57  ;;  %v10072_v35 = vld [vmem:[#allocation6 + $0xdc] ss:$12 sps:$4 sm:$0xff]  }
 0x940   : > { %4111 = vadd.xlane.f32.xlu1 %v12758_v42 }
 0x941   : > { %9584 = vmatpush3.bf16.msra.mxu1 %v10069_v57 }
 0x943   : > { %v9093_v0 = vpop.f32.mrf.mxu1 }
 0x945   : > { %v9094_v5 = vpop.f32.mrf.mxu1 }
 0x946   : > { %v9095_v41 = vadd.f32 %v9094_v5, %v9093_v0  ;;  %v10073_v0 = vld [vmem:[#allocation6 + $0x110] ss:$12 sps:$4 sm:$0xff]   ;;  %v10070_v5 = vld [vmem:[#allocation6 + $0xd8] ss:$12 sps:$4 sm:$0xff]  }
 0x947   : > { %v9096_v27 = vpop.f32.mrf.mxu1  ;;  %9585 = vmatprep.subr.bf16.mxu1 %v10073_v0 }
 0x948   : > { %v4057_v50 = vadd.f32 %v9095_v41, %v12699_v24  ;;  %9586 = vmatpush3.bf16.msra.mxu1 %v10073_v0  ;;  %v10074_v41 = vld [vmem:[#allocation6 + $0xc0] ss:$12 sps:$4 sm:$0xff]  }
 0x949   : > { %v9097_v61 = vpop.f32.mrf.mxu1 }
 0x94a   : > { %v9098_v2 = vadd.f32 %v9097_v61, %v9096_v27  ;;  %v12763_v59 = vadd.f32 %v4057_v50, %v12635_v43  ;;  %v10076_v27 = vld [vmem:[#allocation6 + $0xc4] ss:$12 sps:$4 sm:$0xff]   ;;  %v10078_v61 = vld [vmem:[#allocation6 + $0xe0] ss:$12 sps:$4 sm:$0xff]  }
 0x94b   : > { %v9099_v47 = vpop.f32.mrf.mxu1  ;;  %v10077_v50 = vld [vmem:[#allocation6 + $0xf8] ss:$12 sps:$4 sm:$0xff]  }
 0x94c   : > { %v4060_v18 = vadd.f32 %v9098_v2, %v12699_v24  ;;  %4113 = vadd.xlane.f32.xlu0 %v12763_v59  ;;  %9587 = vmatprep.subr.bf16.mxu1 %v10077_v50  ;;  %v10079_v2 = vld [vmem:[#allocation6 + $0xc8] ss:$12 sps:$4 sm:$0xff]  }
 0x94d   : > { %v9100_v20 = vpop.f32.mrf.mxu1  ;;  %9588 = vmatpush3.bf16.msra.mxu1 %v10077_v50 }
 0x94e   : > { %v9101_v29 = vadd.f32 %v9100_v20, %v9099_v47  ;;  %v12768_v32 = vadd.f32 %v4060_v18, %v12638_v46  ;;  %9589 = vmatprep.subr.bf16.mxu1 %v10078_v61 }
 0x94f   : > { %v9102_v58 = vpop.f32.mrf.mxu1 }
 0x950   : > { %v4065_v11 = vadd.f32 %v9101_v29, %v12699_v24  ;;  %4115 = vadd.xlane.f32.xlu1 %v12768_v32 }
 0x951   : > { %v9103_v62 = vpop.f32.mrf.mxu1  ;;  %9590 = vmatpush3.bf16.msra.mxu1 %v10078_v61 }
 0x952   : > { %v9104_v38 = vadd.f32 %v9103_v62, %v9102_v58  ;;  %v12773_v43 = vadd.f32 %v4065_v11, %v12650_v44  ;;  %9591 = vmatprep.subr.bf16.mxu1 %v10079_v2 }
 0x954   : > { %v4068_v9 = vadd.f32 %v9104_v38, %v12699_v24  ;;  %4117 = vadd.xlane.f32.xlu0 %v12773_v43  ;;  %v10048_v24 = vld [vmem:[#allocation6 + $0x168] ss:$12 sps:$4 sm:$0xff]  }
 0x955   : > { %4497 = vmatpush1.bf16.msra.mxu0 %v10048_v24  ;;  %9592 = vmatpush3.bf16.msra.mxu1 %v10079_v2 }
 0x956   : > { %v12778_v28 = vadd.f32 %v4068_v9, %v12647_v21  ;;  %4498 = vmatprep.subr.bf16.mxu0 %v10053_v49 }
 0x958   : > { %4119 = vadd.xlane.f32.xlu1 %v12778_v28 }
 0x959   : > { %4499 = vmatpush1.bf16.msra.mxu0 %v10051_v33 }
 0x961   : > { %v4090_v46 = vpop.xlane.xlu0 %4089 }
 0x962   : > { %v4121_v60 = vmul.f32 0.0078125, %v4090_v46 }
 0x964   : > { %v12782_v37 = vsub.f32 %v12703_v17, %v4121_v60 }
 0x965   : > { %v4092_v54 = vpop.xlane.xlu1 %4091 }
 0x966   : > { %v4122_v16 = vmul.f32 0.0078125, %v4092_v54  ;;  %v4153_v44 = vmul.f32 %v12782_v37, %v12782_v37 }
 0x968   : > { %v12787_v40 = vsub.f32 %v12708_v34, %v4122_v16  ;;  %4169 = vadd.xlane.f32.xlu0 %v4153_v44 }
 0x969   : > { %v4094_v21 = vpop.xlane.xlu0 %4093 }
 0x96a   : > { %v4123_v48 = vmul.f32 0.0078125, %v4094_v21  ;;  %v4154_v4 = vmul.f32 %v12787_v40, %v12787_v40 }
 0x96c   : > { %v12792_v17 = vsub.f32 %v12713_v13, %v4123_v48  ;;  %4171 = vadd.xlane.f32.xlu1 %v4154_v4  ;;  %v10056_v13 = vld [vmem:[#allocation6 + $0x13c] ss:$12 sps:$4 sm:$0xff]  }
 0x96d   : > { %v4096_v19 = vpop.xlane.xlu1 %4095  ;;  %4500 = vmatprep.subr.bf16.mxu0 %v10056_v13 }
 0x96e   : > { %v4124_v55 = vmul.f32 0.0078125, %v4096_v19  ;;  %v4155_v34 = vmul.f32 %v12792_v17, %v12792_v17  ;;  %4501 = vmatpush1.bf16.msra.mxu0 %v10054_v3 }
 0x96f   : > { %4502 = vmatprep.subr.bf16.mxu0 %v10060_v12 }
 0x970   : > { %v12797_v14 = vsub.f32 %v12718_v26, %v4124_v55  ;;  %4173 = vadd.xlane.f32.xlu0 %v4155_v34  ;;  %v10058_v26 = vld [vmem:[#allocation6 + $0x120] ss:$12 sps:$4 sm:$0xff]  }
 0x972   : > { %v4156_v10 = vmul.f32 %v12797_v14, %v12797_v14  ;;  %4503 = vmatpush1.bf16.msra.mxu0 %v10058_v26 }
 0x973   : > { %4504 = vmatprep.subr.bf16.mxu0 %v10064_v1 }
 0x974   : > { %4175 = vadd.xlane.f32.xlu1 %v4156_v10 }
 0x976   : > { %4505 = vmatpush1.bf16.msra.mxu0 %v10062_v31 }
 0x977   : > { %4506 = vmatprep.subr.bf16.mxu0 %v10068_v6 }
 0x97a   : > { %4507 = vmatpush1.bf16.msra.mxu0 %v10066_v8 }
 0x97b   : > { %4508 = vmatprep.subr.bf16.mxu0 %v10072_v35 }
 0x97e   : > { %4509 = vmatpush1.bf16.msra.mxu0 %v10070_v5 }
 0x97f   : > { %4510 = vmatprep.subr.bf16.mxu0 %v10076_v27 }
 0x982   : > { %4511 = vmatpush1.bf16.msra.mxu0 %v10074_v41 }
 0x9a5   : > { %v4098_v47 = vpop.xlane.xlu0 %4097 }
 0x9a6   : > { %v4125_v18 = vmul.f32 0.0078125, %v4098_v47 }
 0x9a8   : > { %v12802_v20 = vsub.f32 %v12723_v51, %v4125_v18 }
 0x9a9   : > { %v4100_v29 = vpop.xlane.xlu1 %4099 }
 0x9aa   : > { %v4126_v58 = vmul.f32 0.0078125, %v4100_v29  ;;  %v4157_v11 = vmul.f32 %v12802_v20, %v12802_v20 }
 0x9ac   : > { %v12807_v62 = vsub.f32 %v12728_v52, %v4126_v58  ;;  %4177 = vadd.xlane.f32.xlu0 %v4157_v11 }
 0x9ad   : > { %v4102_v38 = vpop.xlane.xlu0 %4101 }
 0x9ae   : > { %v4127_v9 = vmul.f32 0.0078125, %v4102_v38  ;;  %v4158_v46 = vmul.f32 %v12807_v62, %v12807_v62  ;;  %v12865_v38 = vld [vmem:[%s14718_s11] ss:$0 sm:$0xff] }
 0x9b0   : > { %v12812_v60 = vsub.f32 %v12733_v63, %v4127_v9  ;;  %4179 = vadd.xlane.f32.xlu1 %v4158_v46 }
 0x9b1   : > { %v4104_v51 = vpop.xlane.xlu1 %4103 }
 0x9b2   : > { %v4128_v54 = vmul.f32 0.0078125, %v4104_v51  ;;  %v4159_v16 = vmul.f32 %v12812_v60, %v12812_v60 }
 0x9b4   : > { %v12817_v44 = vsub.f32 %v12738_v39, %v4128_v54  ;;  %4181 = vadd.xlane.f32.xlu0 %v4159_v16  ;;  %v12872_v54 = vld [vmem:[%s14719_s12] ss:$0 sm:$0xff] }
 0x9b6   : > { %v4160_v52 = vmul.f32 %v12817_v44, %v12817_v44 }
 0x9b8   : > { %4183 = vadd.xlane.f32.xlu1 %v4160_v52 }
 0x9bd   : > { %v4106_v24 = vpop.xlane.xlu0 %4105 }
 0x9be   : > { %v4129_v25 = vmul.f32 0.0078125, %v4106_v24 }
 0x9c0   : > { %v12822_v21 = vsub.f32 %v12743_v45, %v4129_v25 }
 0x9c1   : > { %v4108_v63 = vpop.xlane.xlu1 %4107 }
 0x9c2   : > { %v4130_v48 = vmul.f32 0.0078125, %v4108_v63  ;;  %v4161_v4 = vmul.f32 %v12822_v21, %v12822_v21 }
 0x9c4   : > { %v12827_v19 = vsub.f32 %v12748_v22, %v4130_v48  ;;  %4185 = vadd.xlane.f32.xlu0 %v4161_v4 }
 0x9c5   : > { %v4110_v39 = vpop.xlane.xlu0 %4109 }
 0x9c6   : > { %v4131_v55 = vmul.f32 0.0078125, %v4110_v39  ;;  %v4162_v34 = vmul.f32 %v12827_v19, %v12827_v19 }
 0x9c8   : > { %v12832_v10 = vsub.f32 %v12753_v30, %v4131_v55  ;;  %4187 = vadd.xlane.f32.xlu1 %v4162_v34 }
 0x9c9   : > { %v4112_v45 = vpop.xlane.xlu1 %4111 }
 0x9ca   : > { %v4132_v49 = vmul.f32 0.0078125, %v4112_v45  ;;  %v4163_v33 = vmul.f32 %v12832_v10, %v12832_v10 }
 0x9cc   : > { %v12837_v13 = vsub.f32 %v12758_v42, %v4132_v49  ;;  %4189 = vadd.xlane.f32.xlu0 %v4163_v33 }
 0x9ce   : > { %v4164_v22 = vmul.f32 %v12837_v13, %v12837_v13 }
 0x9d0   : > { %4191 = vadd.xlane.f32.xlu1 %v4164_v22 }
 0x9d5   : > { %v4114_v23 = vpop.xlane.xlu0 %4113 }
 0x9d6   : > { %v4133_v3 = vmul.f32 0.0078125, %v4114_v23 }
 0x9d8   : > { %v12842_v12 = vsub.f32 %v12763_v59, %v4133_v3 }
 0x9d9   : > { %v4116_v30 = vpop.xlane.xlu1 %4115 }
 0x9da   : > { %v4134_v7 = vmul.f32 0.0078125, %v4116_v30  ;;  %v4165_v26 = vmul.f32 %v12842_v12, %v12842_v12 }
 0x9dc   : > { %v12847_v1 = vsub.f32 %v12768_v32, %v4134_v7  ;;  %4193 = vadd.xlane.f32.xlu0 %v4165_v26 }
 0x9dd   : > { %v4118_v42 = vpop.xlane.xlu0 %4117 }
 0x9de   : > { %v4135_v53 = vmul.f32 0.0078125, %v4118_v42  ;;  %v4166_v31 = vmul.f32 %v12847_v1, %v12847_v1 }
 0x9e0   : > { %v12852_v6 = vsub.f32 %v12773_v43, %v4135_v53  ;;  %4195 = vadd.xlane.f32.xlu1 %v4166_v31 }
 0x9e1   : > { %v4120_v59 = vpop.xlane.xlu1 %4119 }
 0x9e2   : > { %v4136_v57 = vmul.f32 0.0078125, %v4120_v59  ;;  %v4167_v8 = vmul.f32 %v12852_v6, %v12852_v6 }
 0x9e4   : > { %v12857_v35 = vsub.f32 %v12778_v28, %v4136_v57  ;;  %4197 = vadd.xlane.f32.xlu0 %v4167_v8 }
 0x9e6   : > { %v4168_v32 = vmul.f32 %v12857_v35, %v12857_v35 }
 0x9e8   : > { %4199 = vadd.xlane.f32.xlu1 %v4168_v32 }
 0x9f1   : > { %v4170_v0 = vpop.xlane.xlu0 %4169 }
 0x9f2   : > { %v4201_v5 = vmul.f32 0.0078125, %v4170_v0 }
 0x9f4   : > { %v4217_v41 = vadd.f32 1e-05, %v4201_v5 }
 0x9f5   : > { %v4172_v27 = vpop.xlane.xlu1 %4171 }
 0x9f6   : > { %10424 = vrsqrt.f32 %v4217_v41  ;;  %v4202_v43 = vmul.f32 0.0078125, %v4172_v27 }
 0x9f8   : > { %v4218_v50 = vadd.f32 1e-05, %v4202_v43 }
 0x9f9   : > { %v4174_v61 = vpop.xlane.xlu0 %4173 }
 0x9fa   : > { %10426 = vrsqrt.f32 %v4218_v50  ;;  %v4203_v2 = vmul.f32 0.0078125, %v4174_v61 }
 0x9fc   : > { %v4219_v47 = vadd.f32 1e-05, %v4203_v2 }
 0x9fd   : > { %v4176_v18 = vpop.xlane.xlu1 %4175 }
 0x9fe   : > { %10428 = vrsqrt.f32 %v4219_v47  ;;  %v4204_v28 = vmul.f32 0.0078125, %v4176_v18 }
 0xa00   : > { %v4220_v29 = vadd.f32 1e-05, %v4204_v28 }
 0xa02   : > { %10430 = vrsqrt.f32 %v4220_v29 }
 0xa03   : > { %v10425_v58 = vpop.eup %10424 }
 0xa04   : > { %v4249_v11 = vmul.f32 %v10425_v58, %v12782_v37 }
 0xa06   : > { %v4271_v46 = vmul.f32 %v12865_v38, %v4249_v11 }
 0xa07   : > { %v10427_v9 = vpop.eup %10426 }
 0xa08   : > { %v4250_v51 = vmul.f32 %v10427_v9, %v12787_v40  ;;  %v12876_v37 = vadd.f32 %v12872_v54, %v4271_v46 }
 0xa0a   : > { %v4272_v16 = vmul.f32 %v12865_v38, %v4250_v51  ;;  %14939 = vst [vmem:[#allocation39_spill] sm:$0xff] %v12876_v37 }
 0xa0b   : > { %v10429_v52 = vpop.eup %10428 }
 0xa0c   : > { %v12879_v24 = vadd.f32 %v12872_v54, %v4272_v16  ;;  %v4251_v25 = vmul.f32 %v10429_v52, %v12792_v17 }
 0xa0e   : > { %14940 = vst [vmem:[#allocation41_spill] sm:$0xff] %v12879_v24  ;;  %v4309_v63 = vpack.c.bf16 %v12879_v24, %v12876_v37  ;;  %v4273_v4 = vmul.f32 %v12865_v38, %v4251_v25 }
 0xa0f   : > { %v10431_v40 = vpop.eup %10430 }
 0xa10   : > { %4529 = vmatmul.mubr.bf16.vlgmr.msra.gmra.mxu0 %v4309_v63  ;;  %9593 = vmatprep.mubr.bf16.mxu1 %v4309_v63  ;;  %v4252_v48 = vmul.f32 %v10431_v40, %v12797_v14  ;;  %v12889_v55 = vadd.f32 %v12872_v54, %v4273_v4 }
 0xa11   : > { %4538 = vmatprep.mubr.bf16.mxu0 %v14936_v56 }
 0xa12   : > { %v4274_v39 = vmul.f32 %v12865_v38, %v4252_v48  ;;  %14941 = vst [vmem:[#allocation47_spill] sm:$0xff] %v12889_v55 }
 0xa14   : > { %v12892_v34 = vadd.f32 %v12872_v54, %v4274_v39 }
 0xa16   : > { %14942 = vst [vmem:[#allocation40_spill] sm:$0xff] %v12892_v34  ;;  %v4310_v17 = vpack.c.bf16 %v12892_v34, %v12889_v55 }
 0xa18   : > { %4539 = vmatmul.mubr.bf16.gmra.mxu0 %v4310_v17  ;;  %9594 = vmatmul.mubr.bf16.vlgmr.msra.gmra.mxu1 %v4310_v17 }
 0xa19   : > { %4548 = vmatprep.mubr.bf16.mxu0 %v14936_v56 }
 0xa35   : > { %v4178_v14 = vpop.xlane.xlu0 %4177 }
 0xa36   : > { %v4205_v45 = vmul.f32 0.0078125, %v4178_v14 }
 0xa38   : > { %v4221_v49 = vadd.f32 1e-05, %v4205_v45 }
 0xa39   : > { %v4180_v33 = vpop.xlane.xlu1 %4179 }
 0xa3a   : > { %10432 = vrsqrt.f32 %v4221_v49  ;;  %v4206_v22 = vmul.f32 0.0078125, %v4180_v33 }
 0xa3c   : > { %v4222_v23 = vadd.f32 1e-05, %v4206_v22 }
 0xa3d   : > { %v4182_v3 = vpop.xlane.xlu0 %4181 }
 0xa3e   : > { %10434 = vrsqrt.f32 %v4222_v23  ;;  %v4207_v30 = vmul.f32 0.0078125, %v4182_v3 }
 0xa40   : > { %v4223_v7 = vadd.f32 1e-05, %v4207_v30 }
 0xa41   : > { %v4184_v26 = vpop.xlane.xlu1 %4183 }
 0xa42   : > { %10436 = vrsqrt.f32 %v4223_v7  ;;  %v4208_v42 = vmul.f32 0.0078125, %v4184_v26 }
 0xa44   : > { %v4224_v53 = vadd.f32 1e-05, %v4208_v42 }
 0xa46   : > { %10438 = vrsqrt.f32 %v4224_v53 }
 0xa47   : > { %v10433_v31 = vpop.eup %10432 }
 0xa48   : > { %v4253_v59 = vmul.f32 %v10433_v31, %v12802_v20 }
 0xa4a   : > { %v4275_v32 = vmul.f32 %v12865_v38, %v4253_v59 }
 0xa4b   : > { %v10435_v57 = vpop.eup %10434 }
 0xa4c   : > { %v4254_v8 = vmul.f32 %v10435_v57, %v12807_v62  ;;  %v12902_v50 = vadd.f32 %v12872_v54, %v4275_v32 }
 0xa4d   : > { %v4186_v0 = vpop.xlane.xlu0 %4185 }
 0xa4e   : > { %v4209_v5 = vmul.f32 0.0078125, %v4186_v0  ;;  %v4276_v41 = vmul.f32 %v12865_v38, %v4254_v8  ;;  %14943 = vst [vmem:[#allocation42_spill] sm:$0xff] %v12902_v50 }
 0xa4f   : > { %v10437_v27 = vpop.eup %10436 }
 0xa50   : > { %v4225_v43 = vadd.f32 1e-05, %v4209_v5  ;;  %v12905_v61 = vadd.f32 %v12872_v54, %v4276_v41  ;;  %v4255_v2 = vmul.f32 %v10437_v27, %v12812_v60 }
 0xa51   : > { %v4188_v20 = vpop.xlane.xlu1 %4187 }
 0xa52   : > { %14944 = vst [vmem:[#allocation43_spill] sm:$0xff] %v12905_v61  ;;  %10440 = vrsqrt.f32 %v4225_v43  ;;  %v4210_v47 = vmul.f32 0.0078125, %v4188_v20  ;;  %v4311_v62 = vpack.c.bf16 %v12905_v61, %v12902_v50  ;;  %v4277_v58 = vmul.f32 %v12865_v38, %v4255_v2 }
 0xa53   : > { %v10439_v18 = vpop.eup %10438 }
 0xa54   : > { %v4226_v28 = vadd.f32 1e-05, %v4210_v47  ;;  %4549 = vmatmul.mubr.bf16.gmra.mxu0 %v4311_v62  ;;  %9597 = vmatprep.mubr.bf16.mxu1 %v4311_v62  ;;  %v4256_v29 = vmul.f32 %v10439_v18, %v12817_v44  ;;  %v12915_v51 = vadd.f32 %v12872_v54, %v4277_v58 }
 0xa55   : > { %v4190_v11 = vpop.xlane.xlu0 %4189  ;;  %4558 = vmatprep.mubr.bf16.mxu0 %v14936_v56 }
 0xa56   : > { %10442 = vrsqrt.f32 %v4226_v28  ;;  %v4211_v9 = vmul.f32 0.0078125, %v4190_v11  ;;  %v4278_v60 = vmul.f32 %v12865_v38, %v4256_v29  ;;  %14945 = vst [vmem:[#allocation45_spill] sm:$0xff] %v12915_v51 }
 0xa58   : > { %v4227_v46 = vadd.f32 1e-05, %v4211_v9  ;;  %v12918_v16 = vadd.f32 %v12872_v54, %v4278_v60 }
 0xa59   : > { %v4192_v52 = vpop.xlane.xlu1 %4191 }
 0xa5a   : > { %14946 = vst [vmem:[#allocation44_spill] sm:$0xff] %v12918_v16  ;;  %10444 = vrsqrt.f32 %v4227_v46  ;;  %v4212_v25 = vmul.f32 0.0078125, %v4192_v52  ;;  %v4312_v44 = vpack.c.bf16 %v12918_v16, %v12915_v51 }
 0xa5c   : > { %v4228_v63 = vadd.f32 1e-05, %v4212_v25  ;;  %4559 = vmatmul.mubr.bf16.gmra.mxu0 %v4312_v44  ;;  %9598 = vmatmul.mubr.bf16.gmra.mxu1 %v4312_v44  ;;  %v12974_v44 = vld [vmem:[#allocation8 + $0x3] sm:$0x7] }
 0xa5d   : > { %4568 = vmatprep.mubr.bf16.mxu0 %v14936_v56 }
 0xa5e   : > { %10446 = vrsqrt.f32 %v4228_v63 }
 0xa5f   : > { %v10441_v40 = vpop.eup %10440 }
 0xa60   : > { %v4257_v48 = vmul.f32 %v10441_v40, %v12822_v21 }
 0xa62   : > { %v4279_v17 = vmul.f32 %v12865_v38, %v4257_v48 }
 0xa63   : > { %v10443_v4 = vpop.eup %10442 }
 0xa64   : > { %v4258_v39 = vmul.f32 %v10443_v4, %v12827_v19  ;;  %v12928_v23 = vadd.f32 %v12872_v54, %v4279_v17 }
 0xa65   : > { %v4194_v14 = vpop.xlane.xlu0 %4193 }
 0xa66   : > { %v4213_v45 = vmul.f32 0.0078125, %v4194_v14  ;;  %v4280_v49 = vmul.f32 %v12865_v38, %v4258_v39  ;;  %14947 = vst [vmem:[#allocation28_spill] sm:$0xff] %v12928_v23 }
 0xa67   : > { %v10445_v33 = vpop.eup %10444 }
 0xa68   : > { %v4229_v22 = vadd.f32 1e-05, %v4213_v45  ;;  %v12931_v3 = vadd.f32 %v12872_v54, %v4280_v49  ;;  %v4259_v30 = vmul.f32 %v10445_v33, %v12832_v10 }
 0xa69   : > { %v4196_v21 = vpop.xlane.xlu1 %4195 }
 0xa6a   : > { %14948 = vst [vmem:[#allocation31_spill] sm:$0xff] %v12931_v3  ;;  %10448 = vrsqrt.f32 %v4229_v22  ;;  %v4214_v7 = vmul.f32 0.0078125, %v4196_v21  ;;  %v4313_v19 = vpack.c.bf16 %v12931_v3, %v12928_v23  ;;  %v4281_v31 = vmul.f32 %v12865_v38, %v4259_v30 }
 0xa6b   : > { %v10447_v26 = vpop.eup %10446 }
 0xa6c   : > { %v4230_v42 = vadd.f32 1e-05, %v4214_v7  ;;  %4569 = vmatmul.mubr.bf16.gmra.mxu0 %v4313_v19  ;;  %9601 = vmatprep.mubr.bf16.mxu1 %v4313_v19  ;;  %v4260_v53 = vmul.f32 %v10447_v26, %v12837_v13  ;;  %v12941_v32 = vadd.f32 %v12872_v54, %v4281_v31 }
 0xa6d   : > { %v4198_v59 = vpop.xlane.xlu0 %4197  ;;  %4578 = vmatprep.mubr.bf16.mxu0 %v14936_v56 }
 0xa6e   : > { %10450 = vrsqrt.f32 %v4230_v42  ;;  %v4215_v57 = vmul.f32 0.0078125, %v4198_v59  ;;  %v4282_v10 = vmul.f32 %v12865_v38, %v4260_v53  ;;  %14949 = vst [vmem:[#allocation38_spill] sm:$0xff] %v12941_v32 }
 0xa70   : > { %v4231_v8 = vadd.f32 1e-05, %v4215_v57  ;;  %v12944_v0 = vadd.f32 %v12872_v54, %v4282_v10 }
 0xa71   : > { %v4200_v5 = vpop.xlane.xlu1 %4199 }
 0xa72   : > { %14950 = vst [vmem:[#allocation34_spill] sm:$0xff] %v12944_v0  ;;  %10452 = vrsqrt.f32 %v4231_v8  ;;  %v4216_v41 = vmul.f32 0.0078125, %v4200_v5  ;;  %v4314_v13 = vpack.c.bf16 %v12944_v0, %v12941_v32 }
 0xa74   : > { %v4232_v27 = vadd.f32 1e-05, %v4216_v41  ;;  %4579 = vmatmul.mubr.bf16.gmra.mxu0 %v4314_v13  ;;  %9602 = vmatmul.mubr.bf16.gmra.mxu1 %v4314_v13 }
 0xa75   : > { %4588 = vmatprep.mubr.bf16.mxu0 %v14936_v56 }
 0xa76   : > { %10454 = vrsqrt.f32 %v4232_v27 }
 0xa77   : > { %v10449_v43 = vpop.eup %10448 }
 0xa78   : > { %v4261_v2 = vmul.f32 %v10449_v43, %v12842_v12 }
 0xa7a   : > { %v4283_v62 = vmul.f32 %v12865_v38, %v4261_v2 }
 0xa7b   : > { %v10451_v20 = vpop.eup %10450 }
 0xa7c   : > { %v4262_v47 = vmul.f32 %v10451_v20, %v12847_v1  ;;  %v12954_v29 = vadd.f32 %v12872_v54, %v4283_v62 }
 0xa7e   : > { %v4284_v18 = vmul.f32 %v12865_v38, %v4262_v47  ;;  %14951 = vst [vmem:[#allocation48_spill] sm:$0xff] %v12954_v29 }
 0xa7f   : > { %v10453_v28 = vpop.eup %10452 }
 0xa80   : > { %v12957_v58 = vadd.f32 %v12872_v54, %v4284_v18  ;;  %v4263_v11 = vmul.f32 %v10453_v28, %v12852_v6 }
 0xa82   : > { %14952 = vst [vmem:[#allocation36_spill] sm:$0xff] %v12957_v58  ;;  %v4315_v9 = vpack.c.bf16 %v12957_v58, %v12954_v29  ;;  %v4285_v60 = vmul.f32 %v12865_v38, %v4263_v11 }
 0xa83   : > { %v10455_v12 = vpop.eup %10454 }
 0xa84   : > { %4589 = vmatmul.mubr.bf16.gmra.mxu0 %v4315_v9  ;;  %9605 = vmatprep.mubr.bf16.mxu1 %v4315_v9  ;;  %v4264_v1 = vmul.f32 %v10455_v12, %v12857_v35  ;;  %v12967_v52 = vadd.f32 %v12872_v54, %v4285_v60  ;;  %v12978_v35 = vrot.slane %v12974_v44, %v14937_v15 }
 0xa85   : > { %4598 = vmatprep.mubr.bf16.mxu0 %v14936_v56 }
 0xa86   : > { %v4286_v46 = vmul.f32 %v12865_v38, %v4264_v1  ;;  %14953 = vst [vmem:[#allocation32_spill] sm:$0xff] %v12967_v52  ;;  %v12982_v38 = vrot.slane %v12974_v44, %v14938_v36 }
 0xa88   : > { %v12970_v25 = vadd.f32 %v12872_v54, %v4286_v46 }
 0xa8a   : > { %14954 = vst [vmem:[#allocation35_spill] sm:$0xff] %v12970_v25  ;;  %v4316_v6 = vpack.c.bf16 %v12970_v25, %v12967_v52 }
 0xa8c   : > { %4599 = vmatmul.mubr.bf16.gmra.mxu0 %v4316_v6  ;;  %9606 = vmatmul.mubr.bf16.gmra.mxu1 %v4316_v6 }
 0xad0   : > { %v4530_v63 = vpop.f32.mrf.mxu0 }
 0xad1   : > { %v4531_v4 = vadd.f32 %v4530_v63, %v12982_v38 }
 0xad2   : > { %v4532_v40 = vpop.f32.mrf.mxu0 }
 0xad3   : > { %v4533_v54 = vadd.f32 %v4532_v40, %v12978_v35 }
 0xad4   : > { %v4534_v48 = vpop.f32.mrf.mxu0 }
 0xad5   : > { %v4535_v39 = vadd.f32 %v4534_v48, %v12982_v38  ;;  %4714 = vxpose.xlu0.b32.start [1/16] %v4533_v54, 128 }
 0xad6   : > { %v4536_v17 = vpop.f32.mrf.mxu0 }
 0xad7   : > { %v12987_v14 = vpack.c.bf16 %v4535_v39, %v4531_v4  ;;  %v4537_v45 = vadd.f32 %v4536_v17, %v12978_v35 }
 0xad8   : > { %v4540_v49 = vpop.f32.mrf.mxu0  ;;  %v13013_v18 = vpop.f32.mrf.mxu1 }
 0xad9   : > { %4715 = vxpose.xlu0.b32.cont [2/16] %v4537_v45, 128  ;;  %5220 = vrot.lane.b32.xlu1 %v12987_v14, %s11075_s2  ;;  %v4541_v21 = vadd.f32 %v4540_v49, %v12982_v38 }
 0xada   : > { %9613 = vmatprep.mubr.msk.bf16.mxu1 %vm1054_vm0, %v12987_v14  ;;  %v4542_v33 = vpop.f32.mrf.mxu0  ;;  %v13020_v12 = vpop.f32.mrf.mxu1 }
 0xadb   : > { %v4543_v22 = vadd.f32 %v4542_v33, %v12978_v35 }
 0xadc   : > { %v4544_v30 = vpop.f32.mrf.mxu0  ;;  %v13022_v1 = vpop.f32.mrf.mxu1 }
 0xadd   : > { %v4545_v7 = vadd.f32 %v4544_v30, %v12982_v38  ;;  %4716 = vxpose.xlu0.b32.cont [3/16] %v4543_v22, 128 }
 0xade   : > { %v4546_v19 = vpop.f32.mrf.mxu0  ;;  %v13024_v46 = vpop.f32.mrf.mxu1 }
 0xadf   : > { %v12997_v26 = vpack.c.bf16 %v4545_v7, %v4541_v21  ;;  %v4547_v42 = vadd.f32 %v4546_v19, %v12978_v35 }
 0xae1   : > { %4717 = vxpose.xlu0.b32.cont [4/16] %v4547_v42, 128  ;;  %5222 = vrot.lane.b32.xlu1 %v12997_v26, %s11075_s2 }
 0xb14   : > { %v4550_v53 = vpop.f32.mrf.mxu0 }
 0xb15   : > { %v4551_v10 = vadd.f32 %v4550_v53, %v12982_v38 }
 0xb16   : > { %v4552_v31 = vpop.f32.mrf.mxu0 }
 0xb17   : > { %v4553_v59 = vadd.f32 %v4552_v31, %v12978_v35 }
 0xb18   : > { %v4554_v57 = vpop.f32.mrf.mxu0 }
 0xb19   : > { %v4555_v8 = vadd.f32 %v4554_v57, %v12982_v38  ;;  %4718 = vxpose.xlu0.b32.cont [5/16] %v4553_v59, 128 }
 0xb1a   : > { %v4556_v5 = vpop.f32.mrf.mxu0 }
 0xb1b   : > { %v13005_v41 = vpack.c.bf16 %v4555_v8, %v4551_v10  ;;  %v4557_v13 = vadd.f32 %v4556_v5, %v12978_v35 }
 0xb1c   : > { %v4560_v27 = vpop.f32.mrf.mxu0  ;;  %v13027_v40 = vpop.f32.mrf.mxu1 }
 0xb1d   : > { %4719 = vxpose.xlu0.b32.cont [6/16] %v4557_v13, 128  ;;  %5224 = vrot.lane.b32.xlu1 %v13005_v41, %s11075_s2  ;;  %v4561_v47 = vadd.f32 %v4560_v27, %v12982_v38 }
 0xb1e   : > { %v4562_v43 = vpop.f32.mrf.mxu0  ;;  %v13034_v49 = vpop.f32.mrf.mxu1 }
 0xb1f   : > { %v4563_v2 = vadd.f32 %v4562_v43, %v12978_v35 }
 0xb20   : > { %v4564_v20 = vpop.f32.mrf.mxu0  ;;  %v9600_v21 = vpop.f32.mrf.mxu1 }
 0xb21   : > { %v4565_v62 = vadd.f32 %v4564_v20, %v12982_v38  ;;  %4720 = vxpose.xlu0.b32.cont [7/16] %v4563_v2, 128 }
 0xb22   : > { %v4566_v28 = vpop.f32.mrf.mxu0  ;;  %v4662_v57 = vpop.f32.mrf.mxu1 }
 0xb23   : > { %v13015_v11 = vpack.c.bf16 %v4565_v62, %v4561_v47  ;;  %v4567_v9 = vadd.f32 %v4566_v28, %v12978_v35 }
 0xb25   : > { %4721 = vxpose.xlu0.b32.cont [8/16] %v4567_v9, 128  ;;  %5226 = vrot.lane.b32.xlu1 %v13015_v11, %s11075_s2 }
 0xb2c   : > { %v4570_v60 = vpop.f32.mrf.mxu0 }
 0xb2d   : > { %v4571_v48 = vadd.f32 %v4570_v60, %v12982_v38 }
 0xb2e   : > { %v4572_v6 = vpop.f32.mrf.mxu0 }
 0xb2f   : > { %v4573_v63 = vadd.f32 %v4572_v6, %v12978_v35 }
 0xb30   : > { %v4574_v54 = vpop.f32.mrf.mxu0 }
 0xb31   : > { %v4575_v4 = vadd.f32 %v4574_v54, %v12982_v38  ;;  %4722 = vxpose.xlu0.b32.cont [9/16] %v4573_v63, 128 }
 0xb32   : > { %v4576_v39 = vpop.f32.mrf.mxu0 }
 0xb33   : > { %v13031_v17 = vpack.c.bf16 %v4575_v4, %v4571_v48  ;;  %v4577_v45 = vadd.f32 %v4576_v39, %v12978_v35  ;;  %v14955_v4 = vld [vmem:[#allocation21_spill] sm:$0xff] }
 0xb34   : > { %v4580_v33 = vpop.f32.mrf.mxu0  ;;  %v9603_v10 = vpop.f32.mrf.mxu1  ;;  %v14956_v39 = vsub.s32 2, %v14955_v4 }
 0xb35   : > { %4723 = vxpose.xlu0.b32.cont [10/16] %v4577_v45, 128  ;;  %5228 = vrot.lane.b32.xlu1 %v13031_v17, %s11075_s2  ;;  %v4581_v19 = vadd.f32 %v4580_v33, %v12982_v38 }
 0xb36   : > { %v4582_v22 = vpop.f32.mrf.mxu0  ;;  %v4675_v8 = vpop.f32.mrf.mxu1  ;;  %v4364_v45 = vrot.slane %v12974_v44, %v14956_v39 }
 0xb37   : > { %v4583_v30 = vadd.f32 %v4582_v22, %v12978_v35 }
 0xb38   : > { %v4584_v7 = vpop.f32.mrf.mxu0  ;;  %v9604_v13 = vpop.f32.mrf.mxu1  ;;  %v4647_v4 = vadd.f32 %v13024_v46, %v4364_v45 }
 0xb39   : > { %v4585_v42 = vadd.f32 %v4584_v7, %v12982_v38  ;;  %4724 = vxpose.xlu0.b32.cont [11/16] %v4583_v30, 128 }
 0xb3a   : > { %v4586_v53 = vpop.f32.mrf.mxu0  ;;  %v4678_v62 = vpop.f32.mrf.mxu1 }
 0xb3b   : > { %v13041_v31 = vpack.c.bf16 %v4585_v42, %v4581_v19  ;;  %v4587_v59 = vadd.f32 %v4586_v53, %v12978_v35 }
 0xb3d   : > { %4725 = vxpose.xlu0.b32.cont [12/16] %v4587_v59, 128  ;;  %5230 = vrot.lane.b32.xlu1 %v13041_v31, %s11075_s2 }
 0xb44   : > { %v4590_v5 = vpop.f32.mrf.mxu0 }
 0xb45   : > { %v4591_v20 = vadd.f32 %v4590_v5, %v12982_v38 }
 0xb46   : > { %v4592_v27 = vpop.f32.mrf.mxu0 }
 0xb47   : > { %v4593_v43 = vadd.f32 %v4592_v27, %v12978_v35 }
 0xb48   : > { %v4594_v2 = vpop.f32.mrf.mxu0 }
 0xb49   : > { %v4595_v47 = vadd.f32 %v4594_v2, %v12982_v38  ;;  %4726 = vxpose.xlu0.b32.cont [13/16] %v4593_v43, 128 }
 0xb4a   : > { %v4596_v28 = vpop.f32.mrf.mxu0 }
 0xb4b   : > { %v13049_v9 = vpack.c.bf16 %v4595_v47, %v4591_v20  ;;  %v4597_v60 = vadd.f32 %v4596_v28, %v12978_v35  ;;  %v4687_v47 = vadd.f32 %v9604_v13, %v4364_v45  ;;  %v4671_v13 = vadd.f32 %v9600_v21, %v4364_v45 }
 0xb4c   : > { %v4600_v6 = vpop.f32.mrf.mxu0  ;;  %v9607_v63 = vpop.f32.mrf.mxu1  ;;  %v4660_v21 = vadd.f32 %v13034_v49, %v4364_v45 }
 0xb4d   : > { %4727 = vxpose.xlu0.b32.cont [14/16] %v4597_v60, 128  ;;  %5232 = vrot.lane.b32.xlu1 %v13049_v9, %s11075_s2  ;;  %v4601_v7 = vadd.f32 %v4600_v6, %v12982_v38  ;;  %v4700_v19 = vadd.f32 %v9607_v63, %v4364_v45  ;;  %v4679_v6 = vadd.f32 %v4678_v62, %v4364_v45 }
 0xb4e   : > { %v4602_v54 = vpop.f32.mrf.mxu0  ;;  %v4691_v48 = vpop.f32.mrf.mxu1 }
 0xb4f   : > { %v4603_v33 = vadd.f32 %v4602_v54, %v12978_v35  ;;  %v4692_v59 = vadd.f32 %v4691_v48, %v4364_v45  ;;  %v4663_v54 = vadd.f32 %v4662_v57, %v4364_v45 }
 0xb50   : > { %v4604_v22 = vpop.f32.mrf.mxu0  ;;  %v9608_v30 = vpop.f32.mrf.mxu1 }
 0xb51   : > { %v4605_v42 = vadd.f32 %v4604_v22, %v12982_v38  ;;  %v4703_v53 = vadd.f32 %v9608_v30, %v4364_v45  ;;  %4728 = vxpose.xlu0.b32.cont [15/16] %v4603_v33, 128  ;;  %v4684_v38 = vadd.f32 %v9603_v10, %v4364_v45  ;;  %v4668_v10 = vadd.f32 %v13027_v40, %v4364_v45  ;;  %v5221_v30 = vpop.permute.xlu1 %5220 }
 0xb52   : > { %v4606_v5 = vpop.f32.mrf.mxu0  ;;  %v4694_v27 = vpop.f32.mrf.mxu1  ;;  %v13093_v48 = vpack.c.bf16 %v4663_v54, %v4660_v21  ;;  %v4652_v40 = vadd.f32 %v13013_v18, %v4364_v45 }
 0xb53   : > { %v13060_v43 = vpack.c.bf16 %v4605_v42, %v4601_v7  ;;  %v13062_v2 = vpack.c.bf16 %v4703_v53, %v4700_v19  ;;  %v4607_v44 = vadd.f32 %v4606_v5, %v12978_v35  ;;  %v4695_v20 = vadd.f32 %v4694_v27, %v4364_v45 }
 0xb54   : > { %v13072_v60 = vpack.c.bf16 %v4687_v47, %v4684_v38  ;;  %v4676_v35 = vadd.f32 %v4675_v8, %v4364_v45  ;;  %v13085_v62 = vpack.c.bf16 %v4671_v13, %v4668_v10  ;;  %v4655_v8 = vadd.f32 %v13022_v1, %v4364_v45 }
 0xb55   : > { %v13065_v28 = vpack.c.bf16 %v4695_v20, %v4692_v59  ;;  %9629 = vmatprep.subr.bf16.mxu0 %v13062_v2  ;;  %4729 = vxpose.xlu0.b32.end [16/16] %v4607_v44, 128  ;;  %v4644_v1 = vadd.f32 %v13020_v12, %v4364_v45  ;;  %v5223_v19 = vpop.permute.xlu1 %5222 }
 0xb56   : > { %5234 = vrot.lane.b32.xlu1 %v13060_v43, %s11075_s2  ;;  %9630 = vmatpush3.bf16.msra.mxu0 %v13062_v2  ;;  %v13078_v63 = vpack.c.bf16 %v4679_v6, %v4676_v35  ;;  %v13100_v57 = vpack.c.bf16 %v4655_v8, %v4652_v40 }
 0xb57   : > { %9631 = vmatprep.subr.bf16.mxu0 %v13065_v28  ;;  %v13108_v49 = vpack.c.bf16 %v4647_v4, %v4644_v1 }
 0xb5a   : > { %5750 = vrot.lane.b32.xlu1 %v12987_v14, %s11076_s3  ;;  %9632 = vmatpush3.bf16.msra.mxu0 %v13065_v28 }
 0xb5b   : > { %9633 = vmatprep.subr.bf16.mxu0 %v13072_v60 }
 0xb5e   : > { %5752 = vrot.lane.b32.xlu1 %v12997_v26, %s11076_s3  ;;  %9634 = vmatpush3.bf16.msra.mxu0 %v13072_v60 }
 0xb5f   : > { %9635 = vmatprep.subr.bf16.mxu0 %v13078_v63 }
 0xb62   : > { %5754 = vrot.lane.b32.xlu1 %v13005_v41, %s11076_s3  ;;  %9636 = vmatpush3.bf16.msra.mxu0 %v13078_v63 }
 0xb63   : > { %9637 = vmatprep.subr.bf16.mxu0 %v13085_v62 }
 0xb66   : > { %5756 = vrot.lane.b32.xlu1 %v13015_v11, %s11076_s3  ;;  %9638 = vmatpush3.bf16.msra.mxu0 %v13085_v62 }
 0xb67   : > { %9639 = vmatprep.subr.bf16.mxu0 %v13093_v48 }
 0xb6a   : > { %5758 = vrot.lane.b32.xlu1 %v13031_v17, %s11076_s3  ;;  %9640 = vmatpush3.bf16.msra.mxu0 %v13093_v48 }
 0xb6b   : > { %9641 = vmatprep.subr.bf16.mxu0 %v13100_v57 }
 0xb6e   : > { %5760 = vrot.lane.b32.xlu1 %v13041_v31, %s11076_s3  ;;  %9642 = vmatpush3.bf16.msra.mxu0 %v13100_v57 }
 0xb6f   : > { %9643 = vmatprep.subr.bf16.mxu0 %v13108_v49 }
 0xb72   : > { %5762 = vrot.lane.b32.xlu1 %v13049_v9, %s11076_s3  ;;  %9644 = vmatpush3.bf16.msra.mxu0 %v13108_v49 }
 0xb76   : > { %5764 = vrot.lane.b32.xlu1 %v13060_v43, %s11076_s3 }
 0xb7a   : > { %6272 = vrot.lane.b32.xlu1 %v12987_v14, %s11077_s25 }
 0xb7e   : > { %6274 = vrot.lane.b32.xlu1 %v12997_v26, %s11077_s25  ;;  %6286 = vrot.lane.b32.xlu0 %v13060_v43, %s11077_s25 }
 0xb82   : > { %6276 = vrot.lane.b32.xlu1 %v13005_v41, %s11077_s25  ;;  %5493 = vrot.lane.b32.xlu0 %v13078_v63, %s11075_s2 }
 0xb86   : > { %6278 = vrot.lane.b32.xlu1 %v13015_v11, %s11077_s25  ;;  %5489 = vrot.lane.b32.xlu0 %v13093_v48, %s11075_s2 }
 0xb8a   : > { %6280 = vrot.lane.b32.xlu1 %v13031_v17, %s11077_s25  ;;  %5485 = vrot.lane.b32.xlu0 %v13108_v49, %s11075_s2 }
 0xb8e   : > { %6282 = vrot.lane.b32.xlu1 %v13041_v31, %s11077_s25  ;;  %6015 = vrot.lane.b32.xlu0 %v13078_v63, %s11076_s3 }
 0xb8f   : > { %v5225_v5 = vpop.permute.xlu1 %5224 }
 0xb92   : > { %6284 = vrot.lane.b32.xlu1 %v13049_v9, %s11077_s25  ;;  %6011 = vrot.lane.b32.xlu0 %v13093_v48, %s11076_s3 }
 0xb95   : > { %v4730_v14 = vpop.trf.xlu0 }
 0xb96   : > { %5495 = vrot.lane.b32.xlu1 %v13072_v60, %s11075_s2  ;;  %6007 = vrot.lane.b32.xlu0 %v13108_v49, %s11076_s3 }
 0xb99   : > { %v4731_v18 = vpop.trf.xlu0 }
 0xb9a   : > { %5491 = vrot.lane.b32.xlu1 %v13085_v62, %s11075_s2  ;;  %5497 = vrot.lane.b32.xlu0 %v13065_v28, %s11075_s2  ;;  %v4746_v45 = vpack.c.bf16 %v4731_v18, %v4730_v14 }
 0xb9d   : > { %v4732_v12 = vpop.trf.xlu0 }
 0xb9e   : > { %5487 = vrot.lane.b32.xlu1 %v13100_v57, %s11075_s2  ;;  %6019 = vrot.lane.b32.xlu0 %v13065_v28, %s11076_s3 }
 0xba1   : > { %v4733_v46 = vpop.trf.xlu0 }
 0xba2   : > { %v4747_v39 = vpack.c.bf16 %v4733_v46, %v4732_v12  ;;  %6017 = vrot.lane.b32.xlu1 %v13072_v60, %s11076_s3  ;;  %6541 = vrot.lane.b32.xlu0 %v13065_v28, %s11077_s25 }
 0xba4   : > { %9609 = vmatprep.subr.bf16.mxu1 %v4747_v39 }
 0xba5   : > { %9610 = vmatpush3.bf16.msra.mxu1 %v4747_v39  ;;  %v4734_v33 = vpop.trf.xlu0 }
 0xba6   : > { %6013 = vrot.lane.b32.xlu1 %v13085_v62, %s11076_s3  ;;  %9611 = vmatprep.subr.bf16.mxu1 %v4746_v45 }
 0xba9   : > { %9612 = vmatpush3.bf16.msra.mxu1 %v4746_v45  ;;  %v4735_v22 = vpop.trf.xlu0 }
 0xbaa   : > { %6009 = vrot.lane.b32.xlu1 %v13100_v57, %s11076_s3  ;;  %v4748_v53 = vpack.c.bf16 %v4735_v22, %v4734_v33 }
 0xbac   : > { %9614 = vmatmul.mubr.msk.bf16.vlgmr.msra.gmra.mxu1 %vm1054_vm0, %v12997_v26 }
 0xbad   : > { %9617 = vmatprep.mubr.msk.bf16.mxu1 %vm1054_vm0, %v13005_v41  ;;  %v4736_v7 = vpop.trf.xlu0  ;;  %v5227_v41 = vpop.permute.xlu1 %5226 }
 0xbae   : > { %6539 = vrot.lane.b32.xlu1 %v13072_v60, %s11077_s25 }
 0xbb1   : > { %v4737_v42 = vpop.trf.xlu0  ;;  %v5229_v44 = vpop.permute.xlu1 %5228 }
 0xbb2   : > { %v4749_v59 = vpack.c.bf16 %v4737_v42, %v4736_v7  ;;  %6537 = vrot.lane.b32.xlu1 %v13078_v63, %s11077_s25 }
 0xbb4   : > { %9618 = vmatmul.mubr.msk.bf16.gmra.mxu1 %vm1054_vm0, %v13015_v11  ;;  %9661 = vmatprep.subr.bf16.mxu1 %v4749_v59 }
 0xbb5   : > { %9621 = vmatprep.mubr.msk.bf16.mxu1 %vm1054_vm0, %v13031_v17  ;;  %9662 = vmatpush3.bf16.msra.mxu1 %v4749_v59  ;;  %v4738_v26 = vpop.trf.xlu0  ;;  %v5231_v17 = vpop.permute.xlu1 %5230 }
 0xbb6   : > { %6535 = vrot.lane.b32.xlu1 %v13085_v62, %s11077_s25  ;;  %9663 = vmatprep.subr.bf16.mxu1 %v4748_v53 }
 0xbb9   : > { %9664 = vmatpush3.bf16.msra.mxu1 %v4748_v53  ;;  %v4739_v27 = vpop.trf.xlu0 }
 0xbba   : > { %5499 = vrot.lane.b32.xlu1 %v13062_v2, %s11075_s2  ;;  %v4750_v60 = vpack.c.bf16 %v4739_v27, %v4738_v26 }
 0xbbc   : > { %9622 = vmatmul.mubr.msk.bf16.gmra.mxu1 %vm1054_vm0, %v13041_v31 }
 0xbbd   : > { %9625 = vmatprep.mubr.msk.bf16.mxu1 %vm1054_vm0, %v13049_v9  ;;  %v4740_v11 = vpop.trf.xlu0 }
 0xbbe   : > { %6021 = vrot.lane.b32.xlu1 %v13062_v2, %s11076_s3 }
 0xbbf   : > { %v5233_v28 = vpop.permute.xlu1 %5232 }
 0xbc1   : > { %v4741_v20 = vpop.trf.xlu0 }
 0xbc2   : > { %6543 = vrot.lane.b32.xlu1 %v13062_v2, %s11077_s25  ;;  %v4751_v47 = vpack.c.bf16 %v4741_v20, %v4740_v11 }
 0xbc4   : > { %9626 = vmatmul.mubr.msk.bf16.gmra.mxu1 %vm1054_vm0, %v13060_v43  ;;  %9713 = vmatprep.subr.bf16.mxu1 %v4751_v47 }
 0xbc5   : > { %9665 = vmatprep.mubr.msk.bf16.mxu1 %vm1054_vm0, %v5221_v30  ;;  %v4742_v31 = vpop.trf.xlu0 }
 0xbc8   : > { %v5235_v38 = vpop.permute.xlu1 %5234 }
 0xbc9   : > { %v4743_v9 = vpop.trf.xlu0 }
 0xbca   : > { %v4752_v40 = vpack.c.bf16 %v4743_v9, %v4742_v31 }
 0xbcc   : > { %v5751_v6 = vpop.permute.xlu1 %5750  ;;  %9666 = vmatmul.mubr.msk.bf16.vlgmr.msra.gmra.mxu1 %vm1054_vm0, %v5223_v19 }
 0xbcd   : > { %9669 = vmatprep.mubr.msk.bf16.mxu1 %vm1054_vm0, %v5225_v5  ;;  %9714 = vmatpush3.bf16.msra.mxu1 %v4751_v47  ;;  %v4744_v35 = vpop.trf.xlu0 }
 0xbce   : > { %9715 = vmatprep.subr.bf16.mxu1 %v4750_v60 }
 0xbd0   : > { %v5753_v2 = vpop.permute.xlu1 %5752 }
 0xbd1   : > { %9716 = vmatpush3.bf16.msra.mxu1 %v4750_v60  ;;  %v4745_v13 = vpop.trf.xlu0 }
 0xbd2   : > { %v4753_v63 = vpack.c.bf16 %v4745_v13, %v4744_v35 }
 0xbd4   : > { %v5755_v43 = vpop.permute.xlu1 %5754  ;;  %9670 = vmatmul.mubr.msk.bf16.gmra.mxu1 %vm1054_vm0, %v5227_v41  ;;  %9765 = vmatprep.subr.bf16.mxu1 %v4753_v63 }
 0xbd5   : > { %9673 = vmatprep.mubr.msk.bf16.mxu1 %vm1054_vm0, %v5229_v44 }
 0xbd8   : > { %v5757_v10 = vpop.permute.xlu1 %5756 }
 0xbdc   : > { %v5759_v62 = vpop.permute.xlu1 %5758  ;;  %9674 = vmatmul.mubr.msk.bf16.gmra.mxu1 %vm1054_vm0, %v5231_v17 }
 0xbdd   : > { %9677 = vmatprep.mubr.msk.bf16.mxu1 %vm1054_vm0, %v5233_v28 }
 0xbe0   : > { %v5761_v54 = vpop.permute.xlu1 %5760 }
 0xbe4   : > { %v5763_v21 = vpop.permute.xlu1 %5762  ;;  %9678 = vmatmul.mubr.msk.bf16.gmra.mxu1 %vm1054_vm0, %v5235_v38 }
 0xbe5   : > { %9717 = vmatprep.mubr.msk.bf16.mxu1 %vm1054_vm0, %v5751_v6 }
 0xbe8   : > { %v5765_v8 = vpop.permute.xlu1 %5764 }
 0xbec   : > { %v6273_v4 = vpop.permute.xlu1 %6272  ;;  %9718 = vmatmul.mubr.msk.bf16.vlgmr.msra.gmra.mxu1 %vm1054_vm0, %v5753_v2 }
 0xbed   : > { %9721 = vmatprep.mubr.msk.bf16.mxu1 %vm1054_vm0, %v5755_v43  ;;  %9766 = vmatpush3.bf16.msra.mxu1 %v4753_v63 }
 0xbee   : > { %9767 = vmatprep.subr.bf16.mxu1 %v4752_v40 }
 0xbf0   : > { %v6275_v1 = vpop.permute.xlu1 %6274  ;;  %v6287_v53 = vpop.permute.xlu0 %6286 }
 0xbf1   : > { %9768 = vmatpush3.bf16.msra.mxu1 %v4752_v40 }
 0xbf4   : > { %v6277_v14 = vpop.permute.xlu1 %6276  ;;  %9722 = vmatmul.mubr.msk.bf16.gmra.mxu1 %vm1054_vm0, %v5757_v10  ;;  %v13367_v50 = vpop.permute.xlu0 %5493 }
 0xbf5   : > { %9725 = vmatprep.mubr.msk.bf16.mxu1 %vm1054_vm0, %v5759_v62 }
 0xbf8   : > { %v6279_v18 = vpop.permute.xlu1 %6278  ;;  %v13377_v37 = vpop.permute.xlu0 %5489 }
 0xbfc   : > { %v6281_v12 = vpop.permute.xlu1 %6280  ;;  %9726 = vmatmul.mubr.msk.bf16.gmra.mxu1 %vm1054_vm0, %v5761_v54 }
 0xbfd   : > { %9729 = vmatprep.mubr.msk.bf16.mxu1 %vm1054_vm0, %v5763_v21 }
 0xc00   : > { %v6283_v46 = vpop.permute.xlu1 %6282 }
 0xc04   : > { %v6285_v39 = vpop.permute.xlu1 %6284  ;;  %9730 = vmatmul.mubr.msk.bf16.gmra.mxu1 %vm1054_vm0, %v5765_v8 }
 0xc05   : > { %9769 = vmatprep.mubr.msk.bf16.mxu1 %vm1054_vm0, %v6273_v4 }
 0xc08   : > { %v13208_v45 = vpop.permute.xlu1 %5495 }
 0xc0c   : > { %v13210_v33 = vpop.permute.xlu1 %5491  ;;  %9770 = vmatmul.mubr.msk.bf16.vlgmr.msra.gmra.mxu1 %vm1054_vm0, %v6275_v1 }
 0xc0d   : > { %9773 = vmatprep.mubr.msk.bf16.mxu1 %vm1054_vm0, %v6277_v14 }
 0xc10   : > { %v13214_v22 = vpop.permute.xlu1 %5487 }
 0xc14   : > { %v13216_v30 = vpop.permute.xlu1 %6017  ;;  %9774 = vmatmul.mubr.msk.bf16.gmra.mxu1 %vm1054_vm0, %v6279_v18 }
 0xc15   : > { %9777 = vmatprep.mubr.msk.bf16.mxu1 %vm1054_vm0, %v6281_v12 }
 0xc18   : > { %v13220_v7 = vpop.permute.xlu1 %6013 }
 0xc19   : > { %14957 = vst [vmem:[#allocation25_spill] sm:$0xff] %v13220_v7 }
 0xc1c   : > { %v13222_v19 = vpop.permute.xlu1 %6009  ;;  %9778 = vmatmul.mubr.msk.bf16.gmra.mxu1 %vm1054_vm0, %v6283_v46 }
 0xc1d   : > { %14958 = vst [vmem:[#allocation49_spill] sm:$0xff] %v13222_v19  ;;  %9781 = vmatprep.mubr.msk.bf16.mxu1 %vm1054_vm0, %v6285_v39 }
 0xc20   : > { %v13226_v42 = vpop.permute.xlu1 %6539 }
 0xc21   : > { %14959 = vst [vmem:[#allocation33_spill] sm:$0xff] %v13226_v42  ;;  %v13389_v42 = vpop.permute.xlu0 %5485 }
 0xc24   : > { %v13228_v59 = vpop.permute.xlu1 %6537  ;;  %9782 = vmatmul.mubr.msk.bf16.gmra.mxu1 %vm1054_vm0, %v6287_v53 }
 0xc25   : > { %14960 = vst [vmem:[#allocation46_spill] sm:$0xff] %v13228_v59 }
 0xc28   : > { %v13231_v5 = vpop.permute.xlu1 %6535 }
 0xc29   : > { %14961 = vst [vmem:[#allocation26_spill] sm:$0xff] %v13231_v5 }
 0xc2c   : > { %v13233_v26 = vpop.permute.xlu1 %5499 }
 0xc2d   : > { %9681 = vmatprep.subr.bf16.mxu0 %v13233_v26 }
 0xc6c   : > { %v13236_v41 = vpop.f32.mrf.mxu1 }
 0xc6d   : > { %4887 = vmax.xlane.f32.xlu1 %v13236_v41 }
 0xc6e   : > { %v13239_v27 = vpop.f32.mrf.mxu1 }
 0xc70   : > { %v13241_v44 = vpop.f32.mrf.mxu1 }
 0xc71   : > { %4889 = vmax.xlane.f32.xlu0 %v13241_v44  ;;  %4883 = vmax.xlane.f32.xlu1 %v13239_v27 }
 0xc72   : > { %v13245_v11 = vpop.f32.mrf.mxu1 }
 0xc74   : > { %v13247_v17 = vpop.f32.mrf.mxu1 }
 0xc75   : > { %4885 = vmax.xlane.f32.xlu1 %v13245_v11 }
 0xc76   : > { %v13250_v20 = vpop.f32.mrf.mxu1 }
 0xc78   : > { %v13252_v47 = vpop.f32.mrf.mxu1 }
 0xc79   : > { %4895 = vmax.xlane.f32.xlu1 %v13247_v17 }
 0xc7a   : > { %v13255_v28 = vpop.f32.mrf.mxu1 }
 0xc7c   : > { %v13257_v31 = vpop.f32.mrf.mxu1 }
 0xc7d   : > { %4891 = vmax.xlane.f32.xlu1 %v13250_v20 }
 0xc7e   : > { %v13260_v38 = vpop.f32.mrf.mxu1 }
 0xc80   : > { %v13262_v9 = vpop.f32.mrf.mxu1 }
 0xc81   : > { %4905 = vmax.xlane.f32.xlu0 %v13262_v9  ;;  %4897 = vmax.xlane.f32.xlu1 %v13252_v47 }
 0xc82   : > { %v13266_v60 = vpop.f32.mrf.mxu1 }
 0xc84   : > { %v13268_v6 = vpop.f32.mrf.mxu1 }
 0xc85   : > { %4893 = vmax.xlane.f32.xlu1 %v13255_v28 }
 0xc86   : > { %v13271_v35 = vpop.f32.mrf.mxu1 }
 0xc88   : > { %v13273_v2 = vpop.f32.mrf.mxu1 }
 0xc89   : > { %4903 = vmax.xlane.f32.xlu1 %v13257_v31  ;;  %4913 = vmax.xlane.f32.xlu0 %v13273_v2 }
 0xc8a   : > { %v13277_v13 = vpop.f32.mrf.mxu1 }
 0xc8c   : > { %v13279_v63 = vpop.f32.mrf.mxu1 }
 0xc8d   : > { %4899 = vmax.xlane.f32.xlu1 %v13260_v38  ;;  %4909 = vmax.xlane.f32.xlu0 %v13277_v13 }
 0xc8e   : > { %v13283_v43 = vpop.f32.mrf.mxu1 }
 0xc90   : > { %v13285_v10 = vpop.f32.mrf.mxu1 }
 0xc91   : > { %4901 = vmax.xlane.f32.xlu1 %v13266_v60  ;;  %5363 = vmax.xlane.f32.xlu0 %v13285_v10 }
 0xc92   : > { %v13289_v62 = vpop.f32.mrf.mxu1 }
 0xc94   : > { %v13291_v54 = vpop.f32.mrf.mxu1 }
 0xc95   : > { %4911 = vmax.xlane.f32.xlu1 %v13268_v6  ;;  %5359 = vmax.xlane.f32.xlu0 %v13289_v62 }
 0xc96   : > { %v13295_v21 = vpop.f32.mrf.mxu1 }
 0xc98   : > { %v13297_v8 = vpop.f32.mrf.mxu1 }
 0xc99   : > { %4907 = vmax.xlane.f32.xlu1 %v13271_v35  ;;  %5371 = vmax.xlane.f32.xlu0 %v13297_v8 }
 0xc9a   : > { %v13301_v40 = vpop.f32.mrf.mxu1 }
 0xc9c   : > { %v13303_v4 = vpop.f32.mrf.mxu1 }
 0xc9d   : > { %5361 = vmax.xlane.f32.xlu1 %v13279_v63  ;;  %5367 = vmax.xlane.f32.xlu0 %v13301_v40 }
 0xc9e   : > { %v13307_v1 = vpop.f32.mrf.mxu1 }
 0xca0   : > { %v13309_v14 = vpop.f32.mrf.mxu1 }
 0xca1   : > { %5357 = vmax.xlane.f32.xlu1 %v13283_v43  ;;  %5379 = vmax.xlane.f32.xlu0 %v13309_v14 }
 0xca2   : > { %v13313_v18 = vpop.f32.mrf.mxu1 }
 0xca4   : > { %v13315_v12 = vpop.f32.mrf.mxu1 }
 0xca5   : > { %5369 = vmax.xlane.f32.xlu1 %v13291_v54  ;;  %5375 = vmax.xlane.f32.xlu0 %v13313_v18 }
 0xca6   : > { %v13319_v46 = vpop.f32.mrf.mxu1 }
 0xca8   : > { %v13321_v39 = vpop.f32.mrf.mxu1 }
 0xca9   : > { %5365 = vmax.xlane.f32.xlu1 %v13295_v21  ;;  %5387 = vmax.xlane.f32.xlu0 %v13321_v39 }
 0xcaa   : > { %v13325_v53 = vpop.f32.mrf.mxu1 }
 0xcac   : > { %v13327_v36 = vpop.f32.mrf.mxu1 }
 0xcad   : > { %5377 = vmax.xlane.f32.xlu1 %v13303_v4  ;;  %5383 = vmax.xlane.f32.xlu0 %v13325_v53 }
 0xcae   : > { %v13331_v15 = vpop.f32.mrf.mxu1 }
 0xcb0   : > { %v13333_v25 = vpop.f32.mrf.mxu1 }
 0xcb1   : > { %5373 = vmax.xlane.f32.xlu1 %v13307_v1  ;;  %5893 = vmax.xlane.f32.xlu0 %v13333_v25 }
 0xcb2   : > { %v13337_v58 = vpop.f32.mrf.mxu1 }
 0xcb4   : > { %v13339_v52 = vpop.f32.mrf.mxu1 }
 0xcb5   : > { %14962 = vst [vmem:[#allocation37_spill] sm:$0xff] %v13339_v52  ;;  %5385 = vmax.xlane.f32.xlu1 %v13315_v12  ;;  %5889 = vmax.xlane.f32.xlu0 %v13337_v58 }
 0xcb6   : > { %v13343_v29 = vpop.f32.mrf.mxu1 }
 0xcb7   : > { %14963 = vst [vmem:[#allocation29_spill] sm:$0xff] %v13343_v29 }
 0xcb8   : > { %v13345_v0 = vpop.f32.mrf.mxu1 }
 0xcb9   : > { %14964 = vst [vmem:[#allocation30_spill] sm:$0xff] %v13345_v0  ;;  %5381 = vmax.xlane.f32.xlu1 %v13319_v46  ;;  %5901 = vmax.xlane.f32.xlu0 %v13345_v0 }
 0xcba   : > { %v13349_v3 = vpop.f32.mrf.mxu1 }
 0xcbc   : > { %v13351_v32 = vpop.f32.mrf.mxu1 }
 0xcbd   : > { %14965 = vst [vmem:[#allocation27_spill] sm:$0xff] %v13351_v32  ;;  %5891 = vmax.xlane.f32.xlu1 %v13327_v36  ;;  %5897 = vmax.xlane.f32.xlu0 %v13349_v3 }
 0xcbe   : > { %v13355_v23 = vpop.f32.mrf.mxu1 }
 0xcbf   : > { %14966 = vst [vmem:[#allocation24_spill] sm:$0xff] %v13355_v23 }
 0xcc0   : > { %v13357_v16 = vpop.f32.mrf.mxu1 }
 0xcc1   : > { %14967 = vst [vmem:[#allocation21_spill] sm:$0xff] %v13357_v16  ;;  %5887 = vmax.xlane.f32.xlu1 %v13331_v15  ;;  %5909 = vmax.xlane.f32.xlu0 %v13357_v16 }
 0xcc2   : > { %v13361_v61 = vpop.f32.mrf.mxu1 }
 0xcc3   : > { %14968 = vst [vmem:[#allocation50_spill] sm:$0xff] %v13361_v61 }
 0xcc4   : > { %v13363_v51 = vpop.f32.mrf.mxu1 }
 0xcc5   : > { %14969 = vst [vmem:[#allocation51_spill] sm:$0xff] %v13363_v51  ;;  %5899 = vmax.xlane.f32.xlu1 %v13339_v52  ;;  %5905 = vmax.xlane.f32.xlu0 %v13361_v61 }
 0xcc6   : > { %v13369_v34 = vpop.f32.mrf.mxu1 }
 0xcc7   : > { %14970 = vst [vmem:[#allocation52_spill] sm:$0xff] %v13369_v34 }
 0xcc8   : > { %v13371_v55 = vpop.f32.mrf.mxu1 }
 0xcc9   : > { %14971 = vst [vmem:[#allocation53_spill] sm:$0xff] %v13371_v55  ;;  %5895 = vmax.xlane.f32.xlu1 %v13343_v29  ;;  %5917 = vmax.xlane.f32.xlu0 %v13371_v55 }
 0xcca   : > { %v13375_v24 = vpop.f32.mrf.mxu1 }
 0xccb   : > { %14972 = vst [vmem:[#allocation54_spill] sm:$0xff] %v13375_v24 }
 0xccc   : > { %v13379_v56 = vpop.f32.mrf.mxu1 }
 0xccd   : > { %14973 = vst [vmem:[#allocation55_spill] sm:$0xff] %v13379_v56  ;;  %5907 = vmax.xlane.f32.xlu1 %v13351_v32  ;;  %5913 = vmax.xlane.f32.xlu0 %v13375_v24  ;;  %v13397_v32 = vpop.permute.xlu0 %6015 }
 0xcce   : > { %v13383_v5 = vpop.f32.mrf.mxu1 }
 0xccf   : > { %14974 = vst [vmem:[#allocation56_spill] sm:$0xff] %v13383_v5 }
 0xcd0   : > { %v13385_v59 = vpop.f32.mrf.mxu1 }
 0xcd1   : > { %14975 = vst [vmem:[#allocation57_spill] sm:$0xff] %v13385_v59  ;;  %5903 = vmax.xlane.f32.xlu1 %v13355_v23  ;;  %6415 = vmax.xlane.f32.xlu0 %v13385_v59  ;;  %v13407_v59 = vpop.permute.xlu0 %6011 }
 0xcd2   : > { %v13391_v55 = vpop.f32.mrf.mxu1  ;;  %14980 = vst [vmem:[#allocation62_spill] sm:$0xff] %v13407_v59 }
 0xcd3   : > { %14976 = vst [vmem:[#allocation58_spill] sm:$0xff] %v13391_v55 }
 0xcd4   : > { %v13393_v16 = vpop.f32.mrf.mxu1 }
 0xcd5   : > { %14977 = vst [vmem:[#allocation59_spill] sm:$0xff] %v13393_v16  ;;  %5915 = vmax.xlane.f32.xlu1 %v13363_v51  ;;  %6411 = vmax.xlane.f32.xlu0 %v13391_v55  ;;  %v13413_v55 = vpop.permute.xlu0 %6007 }
 0xcd6   : > { %v13399_v24 = vpop.f32.mrf.mxu1  ;;  %14982 = vst [vmem:[#allocation64_spill] sm:$0xff] %v13413_v55 }
 0xcd7   : > { %14978 = vst [vmem:[#allocation60_spill] sm:$0xff] %v13399_v24 }
 0xcd8   : > { %v13403_v23 = vpop.f32.mrf.mxu1 }
 0xcd9   : > { %5911 = vmax.xlane.f32.xlu1 %v13369_v34  ;;  %6421 = vmax.xlane.f32.xlu0 %v13393_v16  ;;  %14979 = vst [vmem:[#allocation61_spill] sm:$0xff] %v13403_v23  ;;  %v13416_v34 = vpop.permute.xlu0 %5497  ;;  %v13418_v16 = vpop.permute.xlu1 %6021 }
 0xcda   : > { %v13409_v19 = vpop.f32.mrf.mxu1 }
 0xcdb   : > { %14981 = vst [vmem:[#allocation63_spill] sm:$0xff] %v13409_v19 }
 0xcdd   : > { %6413 = vmax.xlane.f32.xlu1 %v13379_v56  ;;  %6423 = vmax.xlane.f32.xlu0 %v13403_v23  ;;  %v13420_v51 = vpop.permute.xlu0 %6019  ;;  %v13422_v56 = vpop.permute.xlu1 %6543 }
 0xcde   : > { %14983 = vst [vmem:[#allocation65_spill] sm:$0xff] %v13422_v56 }
 0xce1   : > { %6409 = vmax.xlane.f32.xlu1 %v13383_v5  ;;  %6419 = vmax.xlane.f32.xlu0 %v13409_v19  ;;  %v13424_v23 = vpop.permute.xlu0 %6541 }
 0xce2   : > { %14984 = vst [vmem:[#allocation66_spill] sm:$0xff] %v13424_v23 }
 0xce5   : > { %6417 = vmax.xlane.f32.xlu1 %v13399_v24 }
 0xcf6   : > { %6531 = vrot.lane.b32.xlu1 %v13100_v57, %s11077_s25  ;;  %v4888_v5 = vpop.xlane.xlu1 %4887 }
 0xcf7   : > { %6533 = vrot.lane.b32.xlu0 %v13093_v48, %s11077_s25  ;;  %v4917_v56 = vsub.f32 %v13236_v41, %v4888_v5 }
 0xcf9   : > { %v4935_v0 = vmul.f32 1.442695, %v4917_v56 }
 0xcfa   : > { %v4890_v19 = vpop.xlane.xlu0 %4889  ;;  %6529 = vrot.lane.b32.xlu1 %v13108_v49, %s11077_s25  ;;  %v4884_v24 = vpop.xlane.xlu1 %4883 }
 0xcfb   : > { %v4918_v55 = vsub.f32 %v13241_v44, %v4890_v19  ;;  %v4915_v61 = vsub.f32 %v13239_v27, %v4884_v24  ;;  %v13436_v49 = vpop.f32.mrf.mxu1 }
 0xcfd   : > { %v4937_v29 = vmul.f32 1.442695, %v4918_v55  ;;  %v4931_v23 = vmul.f32 1.442695, %v4915_v61  ;;  %v13438_v19 = vpop.f32.mrf.mxu1 }
 0xcfe   : > { %v4886_v59 = vpop.xlane.xlu1 %4885 }
 0xcff   : > { %v4916_v57 = vsub.f32 %v13245_v11, %v4886_v59  ;;  %10456 = vpow2.f32 %v4937_v29  ;;  %v13443_v59 = vpop.f32.mrf.mxu1 }
 0xd00   : > { %10458 = vpow2.f32 %v4931_v23 }
 0xd01   : > { %v4933_v52 = vmul.f32 1.442695, %v4916_v57 }
 0xd02   : > { %v4896_v48 = vpop.xlane.xlu1 %4895 }
 0xd03   : > { %10460 = vpow2.f32 %v4933_v52  ;;  %v4921_v61 = vsub.f32 %v13247_v17, %v4896_v48 }
 0xd04   : > { %10462 = vpow2.f32 %v4935_v0 }
 0xd06   : > { %v4892_v7 = vpop.xlane.xlu1 %4891 }
 0xd07   : > { %v4919_v24 = vsub.f32 %v13250_v20, %v4892_v7  ;;  %v4943_v7 = vmul.f32 1.442695, %v4921_v61  ;;  %v13454_v20 = vpop.f32.mrf.mxu1 }
 0xd09   : > { %v4939_v56 = vmul.f32 1.442695, %v4919_v24 }
 0xd0a   : > { %v4898_v5 = vpop.xlane.xlu1 %4897  ;;  %v4906_v23 = vpop.xlane.xlu0 %4905 }
 0xd0b   : > { %v4922_v55 = vsub.f32 %v13252_v47, %v4898_v5  ;;  %10464 = vpow2.f32 %v4939_v56 }
 0xd0c   : > { %v13445_v29 = vpop.eup %10456 }
 0xd0d   : > { %v4945_v52 = vmul.f32 1.442695, %v4922_v55  ;;  %v13447_v41 = vpop.eup %10458 }
 0xd0e   : > { %v4894_v0 = vpop.xlane.xlu1 %4893 }
 0xd0f   : > { %v4920_v27 = vsub.f32 %v13255_v28, %v4894_v0  ;;  %10466 = vpow2.f32 %v4945_v52  ;;  %v13460_v28 = vpop.f32.mrf.mxu1  ;;  %v4926_v0 = vsub.f32 %v13262_v9, %v4906_v23 }
 0xd10   : > { %v13450_v44 = vpop.eup %10460 }
 0xd11   : > { %v13452_v11 = vpop.eup %10462  ;;  %v4941_v17 = vmul.f32 1.442695, %v4920_v27  ;;  %v4995_v47 = vpack.c.bf16 %v13450_v44, %v13447_v41  ;;  %v13467_v52 = vpop.f32.mrf.mxu1 }
 0xd12   : > { %v4996_v57 = vpack.c.bf16 %v13445_v29, %v13452_v11  ;;  %v4914_v48 = vpop.xlane.xlu0 %4913  ;;  %v4904_v24 = vpop.xlane.xlu1 %4903 }
 0xd13   : > { %10468 = vpow2.f32 %v4941_v17  ;;  %9645 = vmatprep.mubr.bf16.mxu0 %v4995_v47  ;;  %v4925_v5 = vsub.f32 %v13257_v31, %v4904_v24  ;;  %v13476_v47 = vpop.f32.mrf.mxu1 }
 0xd14   : > { %10470 = vpow2.f32 %v4943_v7  ;;  %9646 = vmatmul.mubr.bf16.vlgmr.msra.gmra.mxu0 %v4996_v57 }
 0xd15   : > { %9682 = vmatpush3.bf16.msra.mxu0 %v13233_v26  ;;  %v4951_v27 = vmul.f32 1.442695, %v4925_v5 }
 0xd16   : > { %9683 = vmatprep.subr.bf16.mxu0 %v13416_v34  ;;  %v4910_v55 = vpop.xlane.xlu0 %4909  ;;  %6429 = vmax.xlane.f32.xlu0 %v13436_v49  ;;  %v4900_v61 = vpop.xlane.xlu1 %4899 }
 0xd17   : > { %v4923_v56 = vsub.f32 %v13260_v38, %v4900_v61  ;;  %v4953_v38 = vmul.f32 1.442695, %v4926_v0  ;;  %10472 = vpow2.f32 %v4951_v27 }
 0xd18   : > { %v13479_v9 = vpop.eup %10464 }
 0xd19   : > { %9684 = vmatpush3.bf16.msra.mxu0 %v13416_v34  ;;  %v4947_v7 = vmul.f32 1.442695, %v4923_v56  ;;  %v4928_v34 = vsub.f32 %v13277_v13, %v4910_v55  ;;  %v13492_v56 = vpop.f32.mrf.mxu1  ;;  %v4930_v13 = vsub.f32 %v13273_v2, %v4914_v48 }
 0xd1a   : > { %9685 = vmatprep.subr.bf16.mxu0 %v13208_v45  ;;  %v13472_v26 = vpop.xlane.xlu0 %5363  ;;  %6427 = vmax.xlane.f32.xlu0 %v13454_v20  ;;  %v4902_v31 = vpop.xlane.xlu1 %4901 }
 0xd1b   : > { %v4924_v17 = vsub.f32 %v13266_v60, %v4902_v31  ;;  %10474 = vpow2.f32 %v4947_v7  ;;  %v4957_v0 = vmul.f32 1.442695, %v4928_v34  ;;  %v5392_v34 = vsub.f32 %v13285_v10, %v13472_v26 }
 0xd1c   : > { %v13484_v5 = vpop.eup %10466 }
 0xd1d   : > { %v4949_v57 = vmul.f32 1.442695, %v4924_v17  ;;  %9686 = vmatpush3.bf16.msra.mxu0 %v13208_v45  ;;  %v5411_v10 = vmul.f32 1.442695, %v5392_v34 }
 0xd1e   : > { %9687 = vmatprep.subr.bf16.mxu0 %v13367_v50  ;;  %v5360_v23 = vpop.xlane.xlu0 %5359  ;;  %6425 = vmax.xlane.f32.xlu1 %v13438_v19  ;;  %v4912_v24 = vpop.xlane.xlu1 %4911 }
 0xd1f   : > { %6431 = vmax.xlane.f32.xlu0 %v13443_v59  ;;  %v4929_v60 = vsub.f32 %v13268_v6, %v4912_v24  ;;  %10476 = vpow2.f32 %v4949_v57  ;;  %v5390_v17 = vsub.f32 %v13289_v62, %v5360_v23 }
 0xd20   : > { %v13488_v61 = vpop.eup %10468  ;;  %10478 = vpow2.f32 %v4953_v38 }
 0xd21   : > { %v13490_v45 = vpop.eup %10470  ;;  %9688 = vmatpush3.bf16.msra.mxu0 %v13367_v50  ;;  %v4997_v55 = vpack.c.bf16 %v13488_v61, %v13479_v9  ;;  %v4959_v7 = vmul.f32 1.442695, %v4929_v60  ;;  %v4961_v50 = vmul.f32 1.442695, %v4930_v13  ;;  %10480 = vpow2.f32 %v4957_v0 }
 0xd22   : > { %9689 = vmatprep.subr.bf16.mxu0 %v13210_v33  ;;  %v13499_v27 = vpop.xlane.xlu0 %5371  ;;  %6433 = vmax.xlane.f32.xlu1 %v13467_v52  ;;  %v4908_v6 = vpop.xlane.xlu1 %4907  ;;  %v4998_v31 = vpack.c.bf16 %v13484_v5, %v13490_v45 }
 0xd23   : > { %6435 = vmax.xlane.f32.xlu0 %v13492_v56  ;;  %v4927_v2 = vsub.f32 %v13271_v35, %v4908_v6  ;;  %9649 = vmatprep.mubr.bf16.mxu0 %v4997_v55  ;;  %10482 = vpow2.f32 %v4959_v7 }
 0xd24   : > { %9650 = vmatmul.mubr.bf16.gmra.mxu0 %v4998_v31  ;;  %v10473_v24 = vpop.eup %10472 }
 0xd25   : > { %v4955_v48 = vmul.f32 1.442695, %v4927_v2  ;;  %9690 = vmatpush3.bf16.msra.mxu0 %v13210_v33  ;;  %v5407_v33 = vmul.f32 1.442695, %v5390_v17 }
 0xd26   : > { %9691 = vmatprep.subr.bf16.mxu0 %v13377_v37  ;;  %v5368_v38 = vpop.xlane.xlu0 %5367  ;;  %6437 = vmax.xlane.f32.xlu1 %v13460_v28  ;;  %v5362_v57 = vpop.xlane.xlu1 %5361 }
 0xd27   : > { %6439 = vmax.xlane.f32.xlu0 %v13476_v47  ;;  %v5391_v35 = vsub.f32 %v13279_v63, %v5362_v57  ;;  %10484 = vpow2.f32 %v4955_v48  ;;  %v5394_v0 = vsub.f32 %v13301_v40, %v5368_v38 }
 0xd28   : > { %10486 = vpow2.f32 %v4961_v50  ;;  %v13521_v13 = vpop.eup %10474 }
 0xd29   : > { %9692 = vmatpush3.bf16.msra.mxu0 %v13377_v37  ;;  %v5409_v60 = vmul.f32 1.442695, %v5391_v35  ;;  %10488 = vpow2.f32 %v5407_v33  ;;  %v5415_v40 = vmul.f32 1.442695, %v5394_v0 }
 0xd2a   : > { %9693 = vmatprep.subr.bf16.mxu0 %v13214_v22  ;;  %v13516_v62 = vpop.xlane.xlu0 %5379  ;;  %4967 = vadd.xlane.f32.xlu1 %v13452_v11  ;;  %v5358_v23 = vpop.xlane.xlu1 %5357 }
 0xd2b   : > { %4969 = vadd.xlane.f32.xlu0 %v13445_v29  ;;  %v5389_v63 = vsub.f32 %v13283_v43, %v5358_v23  ;;  %10490 = vpow2.f32 %v5409_v60  ;;  %v5400_v35 = vsub.f32 %v13309_v14, %v13516_v62 }
 0xd2c   : > { %v13523_v55 = vpop.eup %10476 }
 0xd2d   : > { %v5405_v37 = vmul.f32 1.442695, %v5389_v63  ;;  %9694 = vmatpush3.bf16.msra.mxu0 %v13214_v22  ;;  %v10479_v26 = vpop.eup %10478  ;;  %v4999_v43 = vpack.c.bf16 %v13523_v55, %v13521_v13  ;;  %v5396_v22 = vsub.f32 %v13297_v8, %v13499_v27  ;;  %v5427_v63 = vmul.f32 1.442695, %v5400_v35 }
 0xd2e   : > { %9695 = vmatprep.subr.bf16.mxu0 %v13389_v42  ;;  %v5376_v11 = vpop.xlane.xlu0 %5375  ;;  %4963 = vadd.xlane.f32.xlu1 %v13447_v41  ;;  %v5370_v29 = vpop.xlane.xlu1 %5369  ;;  %v5000_v31 = vpack.c.bf16 %v10479_v26, %v10473_v24 }
 0xd2f   : > { %4965 = vadd.xlane.f32.xlu0 %v13450_v44  ;;  %v5395_v6 = vsub.f32 %v13291_v54, %v5370_v29  ;;  %10492 = vpow2.f32 %v5405_v37  ;;  %9653 = vmatprep.mubr.bf16.mxu0 %v4999_v43  ;;  %v13539_v2 = vpop.eup %10480  ;;  %v5419_v27 = vmul.f32 1.442695, %v5396_v22  ;;  %v5398_v17 = vsub.f32 %v13313_v18, %v5376_v11 }
 0xd30   : > { %10494 = vpow2.f32 %v5411_v10  ;;  %9654 = vmatmul.mubr.bf16.gmra.mxu0 %v5000_v31  ;;  %v10483_v50 = vpop.eup %10482 }
 0xd31   : > { %9696 = vmatpush3.bf16.msra.mxu0 %v13389_v42  ;;  %v5417_v44 = vmul.f32 1.442695, %v5395_v6  ;;  %10496 = vpow2.f32 %v5415_v40  ;;  %v5423_v18 = vmul.f32 1.442695, %v5398_v17 }
 0xd32   : > { %v13536_v41 = vpop.xlane.xlu0 %5387  ;;  %4975 = vadd.xlane.f32.xlu1 %v13490_v45  ;;  %v5366_v7 = vpop.xlane.xlu1 %5365  ;;  %9733 = vmatprep.subr.bf16.mxu0 %v13418_v16 }
 0xd33   : > { %4977 = vadd.xlane.f32.xlu0 %v13484_v5  ;;  %v5393_v54 = vsub.f32 %v13295_v21, %v5366_v7  ;;  %10498 = vpow2.f32 %v5417_v44 }
 0xd34   : > { %v13544_v8 = vpop.eup %10484 }
 0xd35   : > { %v5413_v48 = vmul.f32 1.442695, %v5393_v54  ;;  %v10487_v42 = vpop.eup %10486  ;;  %v5001_v57 = vpack.c.bf16 %v13539_v2, %v13544_v8 }
 0xd36   : > { %v5384_v45 = vpop.xlane.xlu0 %5383  ;;  %4971 = vadd.xlane.f32.xlu1 %v13479_v9  ;;  %v5378_v38 = vpop.xlane.xlu1 %5377  ;;  %v5002_v5 = vpack.c.bf16 %v10487_v42, %v10483_v50 }
 0xd37   : > { %4973 = vadd.xlane.f32.xlu0 %v13488_v61  ;;  %v5399_v21 = vsub.f32 %v13303_v4, %v5378_v38  ;;  %10500 = vpow2.f32 %v5413_v48  ;;  %9657 = vmatprep.mubr.bf16.mxu0 %v5001_v57  ;;  %v13556_v33 = vpop.eup %10488  ;;  %v5402_v14 = vsub.f32 %v13325_v53, %v5384_v45 }
 0xd38   : > { %10502 = vpow2.f32 %v5419_v27  ;;  %9658 = vmatmul.mubr.bf16.gmra.mxu0 %v5002_v5  ;;  %v10491_v4 = vpop.eup %10490  ;;  %v14986_v5 = vld [vmem:[#allocation37_spill] sm:$0xff] }
 0xd39   : > { %v5425_v23 = vmul.f32 1.442695, %v5399_v21  ;;  %10504 = vpow2.f32 %v5423_v18  ;;  %v5431_v53 = vmul.f32 1.442695, %v5402_v14 }
 0xd3a   : > { %v13554_v34 = vpop.xlane.xlu0 %5893  ;;  %4983 = vadd.xlane.f32.xlu1 %v10473_v24  ;;  %v5374_v9 = vpop.xlane.xlu1 %5373 }
 0xd3b   : > { %4985 = vadd.xlane.f32.xlu0 %v10479_v26  ;;  %v5397_v61 = vsub.f32 %v13307_v1, %v5374_v9  ;;  %10506 = vpow2.f32 %v5425_v23  ;;  %v5404_v26 = vsub.f32 %v13321_v39, %v13536_v41 }
 0xd3c   : > { %v13559_v60 = vpop.eup %10492 }
 0xd3d   : > { %v5421_v10 = vmul.f32 1.442695, %v5397_v61  ;;  %v10495_v37 = vpop.eup %10494  ;;  %v5469_v0 = vpack.c.bf16 %v13556_v33, %v13559_v60  ;;  %v5435_v39 = vmul.f32 1.442695, %v5404_v26 }
 0xd3e   : > { %v5890_v62 = vpop.xlane.xlu0 %5889  ;;  %4979 = vadd.xlane.f32.xlu1 %v13521_v13  ;;  %v5386_v24 = vpop.xlane.xlu1 %5385  ;;  %v5470_v11 = vpack.c.bf16 %v10495_v37, %v10491_v4 }
 0xd3f   : > { %4981 = vadd.xlane.f32.xlu0 %v13523_v55  ;;  %v5403_v1 = vsub.f32 %v13315_v12, %v5386_v24  ;;  %10508 = vpow2.f32 %v5421_v10  ;;  %9697 = vmatprep.mubr.bf16.mxu0 %v5469_v0  ;;  %v13572_v43 = vpop.eup %10496  ;;  %v14990_v0 = vld [vmem:[#allocation50_spill] sm:$0xff] }
 0xd40   : > { %10510 = vpow2.f32 %v5427_v63  ;;  %9698 = vmatmul.mubr.bf16.vlgmr.msra.gmra.mxu0 %v5470_v11  ;;  %v10499_v55 = vpop.eup %10498 }
 0xd41   : > { %9734 = vmatpush3.bf16.msra.mxu0 %v13418_v16  ;;  %v5433_v6 = vmul.f32 1.442695, %v5403_v1  ;;  %10512 = vpow2.f32 %v5431_v53  ;;  %v5920_v16 = vsub.f32 %v13337_v58, %v5890_v62 }
 0xd42   : > { %v13570_v13 = vpop.xlane.xlu0 %5901  ;;  %4991 = vadd.xlane.f32.xlu1 %v10483_v50  ;;  %v5382_v29 = vpop.xlane.xlu1 %5381  ;;  %9735 = vmatprep.subr.bf16.mxu0 %v13420_v51 }
 0xd43   : > { %4993 = vadd.xlane.f32.xlu0 %v10487_v42  ;;  %v5401_v12 = vsub.f32 %v13319_v46, %v5382_v29  ;;  %10514 = vpow2.f32 %v5433_v6  ;;  %v5937_v58 = vmul.f32 1.442695, %v5920_v16  ;;  %v14992_v29 = vld [vmem:[#allocation27_spill] sm:$0xff] }
 0xd44   : > { %v13576_v31 = vpop.eup %10500 }
 0xd45   : > { %v5429_v22 = vmul.f32 1.442695, %v5401_v12  ;;  %v10503_v40 = vpop.eup %10502  ;;  %9736 = vmatpush3.bf16.msra.mxu0 %v13420_v51  ;;  %v5471_v44 = vpack.c.bf16 %v13572_v43, %v13576_v31  ;;  %v5922_v51 = vsub.f32 %v13333_v25, %v13554_v34 }
 0xd46   : > { %v5898_v41 = vpop.xlane.xlu0 %5897  ;;  %4987 = vadd.xlane.f32.xlu1 %v13544_v8  ;;  %v5892_v7 = vpop.xlane.xlu1 %5891  ;;  %9737 = vmatprep.subr.bf16.mxu0 %v13216_v30  ;;  %v5472_v54 = vpack.c.bf16 %v10503_v40, %v10499_v55 }
 0xd47   : > { %4989 = vadd.xlane.f32.xlu0 %v13539_v2  ;;  %v5921_v46 = vsub.f32 %v13327_v36, %v5892_v7  ;;  %10516 = vpow2.f32 %v5429_v22  ;;  %9701 = vmatprep.mubr.bf16.mxu0 %v5471_v44  ;;  %v13591_v27 = vpop.eup %10504  ;;  %v5941_v25 = vmul.f32 1.442695, %v5922_v51  ;;  %v14995_v7 = vld [vmem:[#allocation24_spill] sm:$0xff] }
 0xd48   : > { %10518 = vpow2.f32 %v5435_v39  ;;  %9702 = vmatmul.mubr.bf16.gmra.mxu0 %v5472_v54  ;;  %v10507_v48 = vpop.eup %10506 }
 0xd49   : > { %9738 = vmatpush3.bf16.msra.mxu0 %v13216_v30  ;;  %v5939_v2 = vmul.f32 1.442695, %v5921_v46  ;;  %10520 = vpow2.f32 %v5937_v58  ;;  %v5924_v30 = vsub.f32 %v13349_v3, %v5898_v41  ;;  %v14987_v3 = vld [vmem:[#allocation30_spill] sm:$0xff]  ;;  %v14994_v41 = vld [vmem:[#allocation64_spill] sm:$0xff] }
 0xd4a   : > { %v13589_v50 = vpop.xlane.xlu0 %5909  ;;  %5441 = vadd.xlane.f32.xlu1 %v10491_v4  ;;  %v5888_v8 = vpop.xlane.xlu1 %5887  ;;  %9739 = vmatprep.subr.bf16.mxu0 %v13397_v32  ;;  %v14988_v4 = vld [vmem:[#allocation62_spill] sm:$0xff] }
 0xd4b   : > { %5443 = vadd.xlane.f32.xlu0 %v10495_v37  ;;  %v5919_v36 = vsub.f32 %v13331_v15, %v5888_v8  ;;  %10522 = vpow2.f32 %v5939_v2  ;;  %v14985_v15 = vld [vmem:[#allocation25_spill] sm:$0xff]  ;;  %v5945_v34 = vmul.f32 1.442695, %v5924_v30  ;;  %v14996_v8 = vld [vmem:[#allocation54_spill] sm:$0xff]  ;;  %v14998_v30 = vld [vmem:[#allocation51_spill] sm:$0xff] }
 0xd4c   : > { %v13595_v42 = vpop.eup %10508 }
 0xd4d   : > { %v5935_v17 = vmul.f32 1.442695, %v5919_v36  ;;  %v10511_v45 = vpop.eup %10510  ;;  %9740 = vmatpush3.bf16.msra.mxu0 %v13397_v32  ;;  %v5473_v21 = vpack.c.bf16 %v13591_v27, %v13595_v42  ;;  %v5926_v32 = vsub.f32 %v14987_v3, %v13570_v13  ;;  %v14991_v13 = vld [vmem:[#allocation49_spill] sm:$0xff]  ;;  %v15001_v3 = vld [vmem:[#allocation52_spill] sm:$0xff] }
 0xd4e   : > { %v5906_v38 = vpop.xlane.xlu0 %5905  ;;  %5437 = vadd.xlane.f32.xlu1 %v13559_v60  ;;  %v5900_v57 = vpop.xlane.xlu1 %5899  ;;  %9741 = vmatprep.subr.bf16.mxu0 %v14985_v15  ;;  %v5474_v18 = vpack.c.bf16 %v10511_v45, %v10507_v48  ;;  %v14989_v60 = vld [vmem:[#allocation29_spill] sm:$0xff] }
 0xd4f   : > { %5439 = vadd.xlane.f32.xlu0 %v13556_v33  ;;  %v5925_v35 = vsub.f32 %v14986_v5, %v5900_v57  ;;  %10524 = vpow2.f32 %v5935_v17  ;;  %9705 = vmatprep.mubr.bf16.mxu0 %v5473_v21  ;;  %v13610_v61 = vpop.eup %10512  ;;  %v5949_v14 = vmul.f32 1.442695, %v5926_v32  ;;  %v5928_v11 = vsub.f32 %v14990_v0, %v5906_v38  ;;  %v14999_v57 = vld [vmem:[#allocation53_spill] sm:$0xff]  ;;  %v15004_v0 = vld [vmem:[#allocation55_spill] sm:$0xff] }
 0xd50   : > { %10526 = vpow2.f32 %v5941_v25  ;;  %9706 = vmatmul.mubr.bf16.gmra.mxu0 %v5474_v18  ;;  %v10515_v10 = vpop.eup %10514 }
 0xd51   : > { %9742 = vmatpush3.bf16.msra.mxu0 %v14985_v15  ;;  %v5947_v33 = vmul.f32 1.442695, %v5925_v35  ;;  %10528 = vpow2.f32 %v5945_v34 }
 0xd52   : > { %v13608_v9 = vpop.xlane.xlu0 %5917  ;;  %5449 = vadd.xlane.f32.xlu1 %v10499_v55  ;;  %v5896_v23 = vpop.xlane.xlu1 %5895  ;;  %9743 = vmatprep.subr.bf16.mxu0 %v14988_v4  ;;  %v14993_v55 = vld [vmem:[#allocation21_spill] sm:$0xff] }
 0xd53   : > { %5451 = vadd.xlane.f32.xlu0 %v10503_v40  ;;  %v5923_v63 = vsub.f32 %v14989_v60, %v5896_v23  ;;  %10530 = vpow2.f32 %v5947_v33  ;;  %v5930_v39 = vsub.f32 %v14993_v55, %v13589_v50  ;;  %v5934_v21 = vsub.f32 %v14999_v57, %v13608_v9  ;;  %v15002_v60 = vld [vmem:[#allocation58_spill] sm:$0xff]  ;;  %v15007_v55 = vld [vmem:[#allocation63_spill] sm:$0xff] }
 0xd54   : > { %v13614_v37 = vpop.eup %10516 }
 0xd55   : > { %v5943_v62 = vmul.f32 1.442695, %v5923_v63  ;;  %v10519_v24 = vpop.eup %10518  ;;  %9744 = vmatpush3.bf16.msra.mxu0 %v14988_v4  ;;  %v5475_v53 = vpack.c.bf16 %v13610_v61, %v13614_v37  ;;  %v5957_v51 = vmul.f32 1.442695, %v5930_v39  ;;  %v5965_v9 = vmul.f32 1.442695, %v5934_v21 }
 0xd56   : > { %v5914_v1 = vpop.xlane.xlu0 %5913  ;;  %5445 = vadd.xlane.f32.xlu1 %v13576_v31  ;;  %v5908_v26 = vpop.xlane.xlu1 %5907  ;;  %9745 = vmatprep.subr.bf16.mxu0 %v14991_v13  ;;  %v5476_v12 = vpack.c.bf16 %v10519_v24, %v10515_v10  ;;  %v5953_v31 = vmul.f32 1.442695, %v5928_v11 }
 0xd57   : > { %5447 = vadd.xlane.f32.xlu0 %v13572_v43  ;;  %v5929_v6 = vsub.f32 %v14992_v29, %v5908_v26  ;;  %10532 = vpow2.f32 %v5943_v62  ;;  %9709 = vmatprep.mubr.bf16.mxu0 %v5475_v53  ;;  %v13629_v16 = vpop.eup %10520  ;;  %v5932_v2 = vsub.f32 %v14996_v8, %v5914_v1  ;;  %v15005_v26 = vld [vmem:[#allocation57_spill] sm:$0xff] }
 0xd58   : > { %10534 = vpow2.f32 %v5949_v14  ;;  %9710 = vmatmul.mubr.bf16.gmra.mxu0 %v5476_v12  ;;  %v10523_v46 = vpop.eup %10522  ;;  %v15009_v8 = vld [vmem:[#allocation61_spill] sm:$0xff] }
 0xd59   : > { %9746 = vmatpush3.bf16.msra.mxu0 %v14991_v13  ;;  %v5955_v43 = vmul.f32 1.442695, %v5929_v6  ;;  %10536 = vpow2.f32 %v5953_v31  ;;  %v15008_v31 = vld [vmem:[#allocation56_spill] sm:$0xff] }
 0xd5a   : > { %v13627_v22 = vpop.xlane.xlu0 %6415  ;;  %5457 = vadd.xlane.f32.xlu1 %v10507_v48  ;;  %v5904_v40 = vpop.xlane.xlu1 %5903  ;;  %9747 = vmatprep.subr.bf16.mxu0 %v14994_v41 }
 0xd5b   : > { %5459 = vadd.xlane.f32.xlu0 %v10511_v45  ;;  %v5927_v44 = vsub.f32 %v14995_v7, %v5904_v40  ;;  %10538 = vpow2.f32 %v5955_v43  ;;  %v14997_v45 = vld [vmem:[#allocation65_spill] sm:$0xff]  ;;  %v6444_v53 = vsub.f32 %v15005_v26, %v13627_v22 }
 0xd5c   : > { %v13633_v54 = vpop.eup %10524 }
 0xd5d   : > { %v5951_v58 = vmul.f32 1.442695, %v5927_v44  ;;  %v10527_v50 = vpop.eup %10526  ;;  %9748 = vmatpush3.bf16.msra.mxu0 %v14994_v41  ;;  %v5999_v25 = vpack.c.bf16 %v13629_v16, %v13633_v54  ;;  %v6463_v22 = vmul.f32 1.442695, %v6444_v53 }
 0xd5e   : > { %v6412_v36 = vpop.xlane.xlu0 %6411  ;;  %5453 = vadd.xlane.f32.xlu1 %v13595_v42  ;;  %v5916_v48 = vpop.xlane.xlu1 %5915  ;;  %v6000_v17 = vpack.c.bf16 %v10527_v50, %v10523_v46  ;;  %9785 = vmatprep.subr.bf16.mxu0 %v14997_v45  ;;  %v5961_v42 = vmul.f32 1.442695, %v5932_v2 }
 0xd5f   : > { %5455 = vadd.xlane.f32.xlu0 %v13591_v27  ;;  %v5933_v38 = vsub.f32 %v14998_v30, %v5916_v48  ;;  %10540 = vpow2.f32 %v5951_v58  ;;  %9749 = vmatprep.mubr.bf16.mxu0 %v5999_v25  ;;  %v13648_v35 = vpop.eup %10528  ;;  %v15000_v27 = vld [vmem:[#allocation66_spill] sm:$0xff]  ;;  %v6442_v63 = vsub.f32 %v15002_v60, %v6412_v36  ;;  %v15011_v36 = vld [vmem:[#allocation60_spill] sm:$0xff] }
 0xd60   : > { %10542 = vpow2.f32 %v5957_v51  ;;  %9750 = vmatmul.mubr.bf16.vlgmr.msra.gmra.mxu0 %v6000_v17  ;;  %v10531_v34 = vpop.eup %10530  ;;  %v15012_v17 = vld [vmem:[#allocation59_spill] sm:$0xff] }
 0xd61   : > { %9786 = vmatpush3.bf16.msra.mxu0 %v14997_v45  ;;  %v5963_v18 = vmul.f32 1.442695, %v5933_v38  ;;  %10544 = vpow2.f32 %v5961_v42 }
 0xd62   : > { %v13646_v15 = vpop.xlane.xlu0 %6421  ;;  %5465 = vadd.xlane.f32.xlu1 %v10515_v10  ;;  %v5912_v5 = vpop.xlane.xlu1 %5911  ;;  %9787 = vmatprep.subr.bf16.mxu0 %v15000_v27 }
 0xd63   : > { %5467 = vadd.xlane.f32.xlu0 %v10519_v24  ;;  %v5931_v32 = vsub.f32 %v15001_v3, %v5912_v5  ;;  %10546 = vpow2.f32 %v5963_v18  ;;  %v15003_v24 = vld [vmem:[#allocation33_spill] sm:$0xff]  ;;  %v6447_v45 = vsub.f32 %v15012_v17, %v13646_v15 }
 0xd64   : > { %v13652_v23 = vpop.eup %10532 }
 0xd65   : > { %v5959_v33 = vmul.f32 1.442695, %v5931_v32  ;;  %v10535_v4 = vpop.eup %10534  ;;  %9788 = vmatpush3.bf16.msra.mxu0 %v15000_v27  ;;  %v6001_v62 = vpack.c.bf16 %v13648_v35, %v13652_v23  ;;  %v6469_v5 = vmul.f32 1.442695, %v6447_v45 }
 0xd66   : > { %v6424_v10 = vpop.xlane.xlu0 %6423  ;;  %5461 = vadd.xlane.f32.xlu1 %v13614_v37  ;;  %v6414_v14 = vpop.xlane.xlu1 %6413  ;;  %9789 = vmatprep.subr.bf16.mxu0 %v15003_v24  ;;  %v6002_v1 = vpack.c.bf16 %v10535_v4, %v10531_v34  ;;  %v6459_v37 = vmul.f32 1.442695, %v6442_v63 }
 0xd67   : > { %5463 = vadd.xlane.f32.xlu0 %v13610_v61  ;;  %v6443_v11 = vsub.f32 %v15004_v0, %v6414_v14  ;;  %10548 = vpow2.f32 %v5959_v33  ;;  %9753 = vmatprep.mubr.bf16.mxu0 %v6001_v62  ;;  %v13665_v6 = vpop.eup %10536  ;;  %v15006_v61 = vld [vmem:[#allocation46_spill] sm:$0xff]  ;;  %v6448_v2 = vsub.f32 %v15009_v8, %v6424_v10 }
 0xd68   : > { %10550 = vpow2.f32 %v5965_v9  ;;  %9754 = vmatmul.mubr.bf16.gmra.mxu0 %v6002_v1  ;;  %v10539_v43 = vpop.eup %10538 }
 0xd69   : > { %9790 = vmatpush3.bf16.msra.mxu0 %v15003_v24  ;;  %v6461_v12 = vmul.f32 1.442695, %v6443_v11  ;;  %10552 = vpow2.f32 %v6459_v37  ;;  %v6471_v57 = vmul.f32 1.442695, %v6448_v2 }
 0xd6a   : > { %v6420_v13 = vpop.xlane.xlu0 %6419  ;;  %5971 = vadd.xlane.f32.xlu1 %v10523_v46  ;;  %v6410_v29 = vpop.xlane.xlu1 %6409  ;;  %9791 = vmatprep.subr.bf16.mxu0 %v15006_v61 }
 0xd6b   : > { %v6446_v39 = vsub.f32 %v15007_v55, %v6420_v13  ;;  %5973 = vadd.xlane.f32.xlu0 %v10527_v50  ;;  %v6441_v40 = vsub.f32 %v15008_v31, %v6410_v29  ;;  %10554 = vpow2.f32 %v6461_v12  ;;  %v15010_v50 = vld [vmem:[#allocation26_spill] sm:$0xff] }
 0xd6c   : > { %v10541_v41 = vpop.eup %10540 }
 0xd6d   : > { %v6457_v7 = vmul.f32 1.442695, %v6441_v40  ;;  %v10543_v44 = vpop.eup %10542  ;;  %v6467_v51 = vmul.f32 1.442695, %v6446_v39  ;;  %9792 = vmatpush3.bf16.msra.mxu0 %v15006_v61  ;;  %v6003_v58 = vpack.c.bf16 %v13665_v6, %v10541_v41 }
 0xd6e   : > { %5967 = vadd.xlane.f32.xlu1 %v13633_v54  ;;  %v6418_v46 = vpop.xlane.xlu1 %6417  ;;  %9793 = vmatprep.subr.bf16.mxu0 %v15010_v50  ;;  %v6004_v25 = vpack.c.bf16 %v10543_v44, %v10539_v43  ;;  %v6534_v30 = vpop.permute.xlu0 %6533 }
 0xd6f   : > { %5969 = vadd.xlane.f32.xlu0 %v13629_v16  ;;  %v6445_v48 = vsub.f32 %v15011_v36, %v6418_v46  ;;  %10556 = vpow2.f32 %v6457_v7  ;;  %9757 = vmatprep.mubr.bf16.mxu0 %v6003_v58  ;;  %v10545_v38 = vpop.eup %10544 }
 0xd70   : > { %10558 = vpow2.f32 %v6463_v22  ;;  %9758 = vmatmul.mubr.bf16.gmra.mxu0 %v6004_v25  ;;  %v10547_v16 = vpop.eup %10546 }
 0xd71   : > { %v6465_v54 = vmul.f32 1.442695, %v6445_v48  ;;  %10560 = vpow2.f32 %v6467_v51  ;;  %9794 = vmatpush3.bf16.msra.mxu0 %v15010_v50 }
 0xd72   : > { %5979 = vadd.xlane.f32.xlu1 %v10531_v34  ;;  %9795 = vmatprep.subr.bf16.mxu0 %v6534_v30  ;;  %v6532_v21 = vpop.permute.xlu1 %6531 }
 0xd73   : > { %10562 = vpow2.f32 %v6465_v54  ;;  %5981 = vadd.xlane.f32.xlu0 %v10535_v4 }
 0xd74   : > { %v10549_v42 = vpop.eup %10548  ;;  %10564 = vpow2.f32 %v6471_v57 }
 0xd75   : > { %v10551_v18 = vpop.eup %10550  ;;  %9796 = vmatpush3.bf16.msra.mxu0 %v6534_v30  ;;  %v6005_v15 = vpack.c.bf16 %v10545_v38, %v10549_v42  ;;  %10566 = vpow2.f32 %v6469_v5 }
 0xd76   : > { %5975 = vadd.xlane.f32.xlu1 %v13652_v23  ;;  %9797 = vmatprep.subr.bf16.mxu0 %v6532_v21  ;;  %v6006_v27 = vpack.c.bf16 %v10551_v18, %v10547_v16  ;;  %v6530_v3 = vpop.permute.xlu1 %6529  ;;  %v10553_v32 = vpop.eup %10552 }
 0xd77   : > { %5977 = vadd.xlane.f32.xlu0 %v13648_v35  ;;  %9761 = vmatprep.mubr.bf16.mxu0 %v6005_v15 }
 0xd78   : > { %9762 = vmatmul.mubr.bf16.gmra.mxu0 %v6006_v27  ;;  %v10555_v34 = vpop.eup %10554 }
 0xd79   : > { %9798 = vmatpush3.bf16.msra.mxu0 %v6532_v21 }
 0xd7a   : > { %5987 = vadd.xlane.f32.xlu1 %v10539_v43  ;;  %9799 = vmatprep.subr.bf16.mxu0 %v6530_v3 }
 0xd7b   : > { %5989 = vadd.xlane.f32.xlu0 %v10543_v44 }
 0xd7c   : > { %v10557_v9 = vpop.eup %10556 }
 0xd7d   : > { %v10559_v33 = vpop.eup %10558  ;;  %9800 = vmatpush3.bf16.msra.mxu0 %v6530_v3  ;;  %v6521_v23 = vpack.c.bf16 %v10553_v32, %v10557_v9 }
 0xd7e   : > { %5983 = vadd.xlane.f32.xlu1 %v10541_v41  ;;  %v10561_v4 = vpop.eup %10560  ;;  %v6522_v60 = vpack.c.bf16 %v10559_v33, %v10555_v34 }
 0xd7f   : > { %5985 = vadd.xlane.f32.xlu0 %v13665_v6  ;;  %9801 = vmatprep.mubr.bf16.mxu0 %v6521_v23 }
 0xd80   : > { %v10563_v35 = vpop.eup %10562  ;;  %9802 = vmatmul.mubr.bf16.vlgmr.msra.gmra.mxu0 %v6522_v60 }
 0xd81   : > { %v6523_v63 = vpack.c.bf16 %v10561_v4, %v10563_v35  ;;  %v10565_v10 = vpop.eup %10564 }
 0xd82   : > { %5995 = vadd.xlane.f32.xlu1 %v10547_v16  ;;  %v10567_v14 = vpop.eup %10566 }
 0xd83   : > { %5997 = vadd.xlane.f32.xlu0 %v10551_v18  ;;  %9805 = vmatprep.mubr.bf16.mxu0 %v6523_v63  ;;  %v6524_v62 = vpack.c.bf16 %v10565_v10, %v10567_v14 }
 0xd86   : > { %5991 = vadd.xlane.f32.xlu1 %v10549_v42  ;;  %v15013_v42 = vmov 0  }
 0xd87   : > { %5993 = vadd.xlane.f32.xlu0 %v10545_v38 }
 0xd88   : > { %9806 = vmatmul.mubr.bf16.gmra.mxu0 %v6524_v62 }
 0xd8a   : > { %6493 = vadd.xlane.f32.xlu1 %v10555_v34 }
 0xd8b   : > { %6495 = vadd.xlane.f32.xlu0 %v10559_v33 }
 0xd8e   : > { %6489 = vadd.xlane.f32.xlu1 %v10557_v9 }
 0xd8f   : > { %6491 = vadd.xlane.f32.xlu0 %v10553_v32 }
 0xd92   : > { %6501 = vadd.xlane.f32.xlu1 %v10567_v14 }
 0xd93   : > { %6503 = vadd.xlane.f32.xlu0 %v10565_v10 }
 0xd96   : > { %6497 = vadd.xlane.f32.xlu1 %v10563_v35 }
 0xd97   : > { %6499 = vadd.xlane.f32.xlu0 %v10561_v4 }
 0xd9f   : > { %v6430_v24 = vpop.xlane.xlu0 %6429 }
 0xda0   : > { %v6451_v0 = vsub.f32 %v13436_v49, %v6430_v24 }
 0xda2   : > { %v6477_v11 = vmul.f32 1.442695, %v6451_v0 }
 0xda3   : > { %v6428_v1 = vpop.xlane.xlu0 %6427 }
 0xda4   : > { %10568 = vpow2.f32 %v6477_v11  ;;  %v6450_v26 = vsub.f32 %v13454_v20, %v6428_v1 }
 0xda6   : > { %v6475_v53 = vmul.f32 1.442695, %v6450_v26 }
 0xda7   : > { %v6426_v37 = vpop.xlane.xlu1 %6425 }
 0xda8   : > { %v6432_v13 = vpop.xlane.xlu0 %6431  ;;  %v6449_v29 = vsub.f32 %v13438_v19, %v6426_v37  ;;  %10570 = vpow2.f32 %v6475_v53 }
 0xda9   : > { %v6452_v6 = vsub.f32 %v13443_v59, %v6432_v13 }
 0xdaa   : > { %v6473_v12 = vmul.f32 1.442695, %v6449_v29 }
 0xdab   : > { %v6479_v61 = vmul.f32 1.442695, %v6452_v6  ;;  %v6434_v55 = vpop.xlane.xlu1 %6433 }
 0xdac   : > { %10572 = vpow2.f32 %v6473_v12  ;;  %v6436_v39 = vpop.xlane.xlu0 %6435  ;;  %v6453_v49 = vsub.f32 %v13467_v52, %v6434_v55 }
 0xdad   : > { %10574 = vpow2.f32 %v6479_v61  ;;  %v6454_v31 = vsub.f32 %v13492_v56, %v6436_v39 }
 0xdae   : > { %v6481_v40 = vmul.f32 1.442695, %v6453_v49 }
 0xdaf   : > { %v6483_v20 = vmul.f32 1.442695, %v6454_v31  ;;  %v6438_v43 = vpop.xlane.xlu1 %6437 }
 0xdb0   : > { %10576 = vpow2.f32 %v6481_v40  ;;  %v6440_v41 = vpop.xlane.xlu0 %6439  ;;  %v6455_v19 = vsub.f32 %v13460_v28, %v6438_v43 }
 0xdb1   : > { %v10569_v22 = vpop.eup %10568  ;;  %10578 = vpow2.f32 %v6483_v20  ;;  %v6456_v59 = vsub.f32 %v13476_v47, %v6440_v41 }
 0xdb2   : > { %v6485_v7 = vmul.f32 1.442695, %v6455_v19  ;;  %6509 = vadd.xlane.f32.xlu1 %v10569_v22 }
 0xdb3   : > { %v6487_v44 = vmul.f32 1.442695, %v6456_v59  ;;  %v4968_v51 = vpop.xlane.xlu1 %4967 }
 0xdb4   : > { %10580 = vpow2.f32 %v6485_v7  ;;  %v4970_v52 = vpop.xlane.xlu0 %4969 }
 0xdb5   : > { %10582 = vpow2.f32 %v6487_v44  ;;  %v10571_v56 = vpop.eup %10570 }
 0xdb6   : > { %10584 = vrcp.f32 %v4968_v51 }
 0xdb7   : > { %v4964_v46 = vpop.xlane.xlu1 %4963 }
 0xdb8   : > { %v4966_v58 = vpop.xlane.xlu0 %4965  ;;  %10586 = vrcp.f32 %v4964_v46 }
 0xdb9   : > { %v10573_v8 = vpop.eup %10572  ;;  %10588 = vrcp.f32 %v4970_v52 }
 0xdba   : > { %v10575_v2 = vpop.eup %10574  ;;  %6505 = vadd.xlane.f32.xlu1 %v10573_v8  ;;  %v6525_v50 = vpack.c.bf16 %v10571_v56, %v10573_v8  ;;  %10590 = vrcp.f32 %v4966_v58 }
 0xdbb   : > { %6511 = vadd.xlane.f32.xlu0 %v10575_v2  ;;  %v4976_v28 = vpop.xlane.xlu1 %4975  ;;  %v6526_v36 = vpack.c.bf16 %v10575_v2, %v10569_v22 }
 0xdbc   : > { %v4978_v48 = vpop.xlane.xlu0 %4977  ;;  %9809 = vmatprep.mubr.bf16.mxu0 %v6525_v50  ;;  %10592 = vrcp.f32 %v4976_v28 }
 0xdbd   : > { %v10577_v47 = vpop.eup %10576  ;;  %9810 = vmatmul.mubr.bf16.gmra.mxu0 %v6526_v36 }
 0xdbe   : > { %v10579_v25 = vpop.eup %10578 }
 0xdbf   : > { %6507 = vadd.xlane.f32.xlu0 %v10571_v56  ;;  %v4972_v17 = vpop.xlane.xlu1 %4971  ;;  %v6527_v45 = vpack.c.bf16 %v10579_v25, %v10577_v47 }
 0xdc0   : > { %v4974_v54 = vpop.xlane.xlu0 %4973  ;;  %10594 = vrcp.f32 %v4972_v17 }
 0xdc1   : > { %v10581_v30 = vpop.eup %10580  ;;  %9813 = vmatprep.mubr.bf16.mxu0 %v6527_v45  ;;  %10596 = vrcp.f32 %v4978_v48 }
 0xdc2   : > { %v10583_v38 = vpop.eup %10582  ;;  %6517 = vadd.xlane.f32.xlu1 %v10581_v30  ;;  %10598 = vrcp.f32 %v4974_v54 }
 0xdc3   : > { %6519 = vadd.xlane.f32.xlu0 %v10583_v38  ;;  %v4984_v57 = vpop.xlane.xlu1 %4983  ;;  %v6528_v16 = vpack.c.bf16 %v10583_v38, %v10581_v30  ;;  %v10585_v9 = vpop.eup %10584 }
 0xdc4   : > { %v4986_v21 = vpop.xlane.xlu0 %4985  ;;  %10600 = vrcp.f32 %v4984_v57 }
 0xdc5   : > { %9814 = vmatmul.mubr.bf16.gmra.mxu0 %v6528_v16  ;;  %v10587_v60 = vpop.eup %10586 }
 0xdc6   : > { %6513 = vadd.xlane.f32.xlu1 %v10577_v47  ;;  %7418 = vmatprep.mubr.bf16.mxu0 %v15013_v42  ;;  %v10589_v62 = vpop.eup %10588 }
 0xdc7   : > { %6515 = vadd.xlane.f32.xlu0 %v10579_v25  ;;  %v4980_v5 = vpop.xlane.xlu1 %4979  ;;  %v10591_v26 = vpop.eup %10590 }
 0xdc8   : > { %v4982_v18 = vpop.xlane.xlu0 %4981  ;;  %10602 = vrcp.f32 %v4980_v5 }
 0xdc9   : > { %v10593_v39 = vpop.eup %10592  ;;  %10604 = vrcp.f32 %v4986_v21 }
 0xdca   : > { %10606 = vrcp.f32 %v4982_v18 }
 0xdcb   : > { %v4992_v15 = vpop.xlane.xlu1 %4991 }
 0xdcc   : > { %v13692_v27 = vpop.xlane.xlu0 %4993  ;;  %10608 = vrcp.f32 %v4992_v15 }
 0xdcd   : > { %v10595_v20 = vpop.eup %10594 }
 0xdce   : > { %v10597_v22 = vpop.eup %10596 }
 0xdcf   : > { %v4988_v3 = vpop.xlane.xlu1 %4987  ;;  %v10599_v52 = vpop.eup %10598 }
 0xdd0   : > { %v13694_v32 = vpop.xlane.xlu0 %4989  ;;  %10610 = vrcp.f32 %v4988_v3 }
 0xdd1   : > { %10612 = vrcp.f32 %v13692_v27  ;;  %v10601_v28 = vpop.eup %10600 }
 0xdd2   : > { %10614 = vrcp.f32 %v13694_v32 }
 0xdd3   : > { %v13696_v34 = vpop.xlane.xlu1 %5441 }
 0xdd4   : > { %v13698_v33 = vpop.xlane.xlu0 %5443  ;;  %v9647_v23 = vpop.f32.mrf.mxu0  ;;  %10616 = vrcp.f32 %v13696_v34 }
 0xdd5   : > { %v5118_v4 = vmul.f32 %v10585_v9, %v9647_v23  ;;  %v10603_v25 = vpop.eup %10602 }
 0xdd6   : > { %v5037_v35 = vpop.f32.mrf.mxu0  ;;  %v10605_v30 = vpop.eup %10604 }
 0xdd7   : > { %v8842_v63 = vpack.c.bf16 %v5118_v4, %v5118_v4  ;;  %v5116_v10 = vmul.f32 %v10587_v60, %v5037_v35  ;;  %v13700_v14 = vpop.xlane.xlu1 %5437  ;;  %v10607_v5 = vpop.eup %10606 }
 0xdd8   : > { %v13702_v24 = vpop.xlane.xlu0 %5439  ;;  %v9648_v0 = vpop.f32.mrf.mxu0  ;;  %10618 = vrcp.f32 %v13700_v14 }
 0xdd9   : > { %5198 = vst.msk [vmem:[#allocation2 + $0x8] sm:$0xf] %vm1489_vm1, %v8842_v63  ;;  %v8840_v11 = vpack.c.bf16 %v5116_v10, %v5116_v10  ;;  %v5119_v1 = vmul.f32 %v10589_v62, %v9648_v0  ;;  %10620 = vrcp.f32 %v13698_v33  ;;  %v10609_v32 = vpop.eup %10608 }
 0xdda   : > { %v5040_v53 = vpop.f32.mrf.mxu0  ;;  %10622 = vrcp.f32 %v13702_v24 }
 0xddb   : > { %5196 = vst.msk [vmem:[#allocation2] sm:$0xf] %vm1489_vm1, %v8840_v11  ;;  %v8843_v37 = vpack.c.bf16 %v5119_v1, %v5119_v1  ;;  %v5117_v13 = vmul.f32 %v10591_v26, %v5040_v53  ;;  %v13706_v29 = vpop.xlane.xlu1 %5449 }
 0xddc   : > { %v13709_v12 = vpop.xlane.xlu0 %5451  ;;  %10624 = vrcp.f32 %v13706_v29 }
 0xddd   : > { %5199 = vst.msk [vmem:[#allocation2 + $0xc] sm:$0xf] %vm1489_vm1, %v8843_v37  ;;  %v8841_v6 = vpack.c.bf16 %v5117_v13, %v5117_v13  ;;  %v10611_v4 = vpop.eup %10610 }
 0xdde   : > { %v10613_v10 = vpop.eup %10612 }
 0xddf   : > { %5197 = vst.msk [vmem:[#allocation2 + $0x4] sm:$0xf] %vm1489_vm1, %v8841_v6  ;;  %v13712_v61 = vpop.xlane.xlu1 %5445  ;;  %v10615_v11 = vpop.eup %10614 }
 0xde0   : > { %v13714_v55 = vpop.xlane.xlu0 %5447  ;;  %10626 = vrcp.f32 %v13712_v61 }
 0xde1   : > { %10628 = vrcp.f32 %v13709_v12  ;;  %v10617_v37 = vpop.eup %10616 }
 0xde2   : > { %10630 = vrcp.f32 %v13714_v55 }
 0xde3   : > { %v13716_v31 = vpop.xlane.xlu1 %5457 }
 0xde4   : > { %v9651_v49 = vpop.f32.mrf.mxu0  ;;  %v13718_v7 = vpop.xlane.xlu0 %5459 }
 0xde5   : > { %v5122_v40 = vmul.f32 %v10593_v39, %v9651_v49  ;;  %v10619_v39 = vpop.eup %10618 }
 0xde6   : > { %v5053_v43 = vpop.f32.mrf.mxu0 }
 0xde7   : > { %v8846_v41 = vpack.c.bf16 %v5122_v40, %v5122_v40  ;;  %v5120_v19 = vmul.f32 %v10595_v20, %v5053_v43  ;;  %v13722_v56 = vpop.xlane.xlu1 %5453  ;;  %v10621_v43 = vpop.eup %10620 }
 0xde8   : > { %v9652_v59 = vpop.f32.mrf.mxu0  ;;  %v13725_v50 = vpop.xlane.xlu0 %5455  ;;  %10632 = vrcp.f32 %v13722_v56 }
 0xde9   : > { %5202 = vst.msk [vmem:[#allocation2 + $0x18] sm:$0xf] %vm1489_vm1, %v8846_v41  ;;  %v8844_v44 = vpack.c.bf16 %v5120_v19, %v5120_v19  ;;  %v5123_v51 = vmul.f32 %v10597_v22, %v9652_v59  ;;  %v10623_v22 = vpop.eup %10622  ;;  %10634 = vrcp.f32 %v13725_v50 }
 0xdea   : > { %v5056_v46 = vpop.f32.mrf.mxu0 }
 0xdeb   : > { %5200 = vst.msk [vmem:[#allocation2 + $0x10] sm:$0xf] %vm1489_vm1, %v8844_v44  ;;  %v8847_v58 = vpack.c.bf16 %v5123_v51, %v5123_v51  ;;  %v5121_v8 = vmul.f32 %v10599_v52, %v5056_v46  ;;  %v13729_v36 = vpop.xlane.xlu1 %5465 }
 0xdec   : > { %v13733_v38 = vpop.xlane.xlu0 %5467 }
 0xded   : > { %5203 = vst.msk [vmem:[#allocation2 + $0x1c] sm:$0xf] %vm1489_vm1, %v8847_v58  ;;  %v8845_v2 = vpack.c.bf16 %v5121_v8, %v5121_v8  ;;  %v10625_v8 = vpop.eup %10624 }
 0xdef   : > { %5201 = vst.msk [vmem:[#allocation2 + $0x14] sm:$0xf] %vm1489_vm1, %v8845_v2  ;;  %v13737_v18 = vpop.xlane.xlu1 %5461  ;;  %v10627_v2 = vpop.eup %10626 }
 0xdf0   : > { %v9655_v48 = vpop.f32.mrf.mxu0  ;;  %v13743_v60 = vpop.xlane.xlu0 %5463 }
 0xdf1   : > { %v5126_v47 = vmul.f32 %v10601_v28, %v9655_v48 }
 0xdf2   : > { %v5069_v17 = vpop.f32.mrf.mxu0 }
 0xdf3   : > { %v8850_v45 = vpack.c.bf16 %v5126_v47, %v5126_v47  ;;  %v5124_v54 = vmul.f32 %v10603_v25, %v5069_v17  ;;  %v13747_v14 = vpop.xlane.xlu1 %5971  ;;  %v10629_v25 = vpop.eup %10628 }
 0xdf4   : > { %v9656_v57 = vpop.f32.mrf.mxu0  ;;  %v5974_v13 = vpop.xlane.xlu0 %5973  ;;  %10636 = vrcp.f32 %v13747_v14 }
 0xdf5   : > { %5206 = vst.msk [vmem:[#allocation2 + $0x28] sm:$0xf] %vm1489_vm1, %v8850_v45  ;;  %v8848_v16 = vpack.c.bf16 %v5124_v54, %v5124_v54  ;;  %v5127_v21 = vmul.f32 %v10605_v30, %v9656_v57  ;;  %v10631_v57 = vpop.eup %10630 }
 0xdf6   : > { %v5072_v15 = vpop.f32.mrf.mxu0 }
 0xdf7   : > { %5204 = vst.msk [vmem:[#allocation2 + $0x20] sm:$0xf] %vm1489_vm1, %v8848_v16  ;;  %v8851_v27 = vpack.c.bf16 %v5127_v21, %v5127_v21  ;;  %v5125_v3 = vmul.f32 %v10607_v5, %v5072_v15  ;;  %v5968_v49 = vpop.xlane.xlu1 %5967 }
 0xdf8   : > { %v9659_v34 = vpop.f32.mrf.mxu0  ;;  %v5970_v55 = vpop.xlane.xlu0 %5969  ;;  %10638 = vrcp.f32 %v5968_v49 }
 0xdf9   : > { %5207 = vst.msk [vmem:[#allocation2 + $0x2c] sm:$0xf] %vm1489_vm1, %v8851_v27  ;;  %v8849_v9 = vpack.c.bf16 %v5125_v3, %v5125_v3  ;;  %v5130_v23 = vmul.f32 %v10609_v32, %v9659_v34  ;;  %v10633_v3 = vpop.eup %10632  ;;  %10640 = vrcp.f32 %v5974_v13 }
 0xdfa   : > { %v5085_v35 = vpop.f32.mrf.mxu0  ;;  %10642 = vrcp.f32 %v5970_v55 }
 0xdfb   : > { %5205 = vst.msk [vmem:[#allocation2 + $0x24] sm:$0xf] %vm1489_vm1, %v8849_v9  ;;  %v8854_v63 = vpack.c.bf16 %v5130_v23, %v5130_v23  ;;  %v5128_v33 = vmul.f32 %v10611_v4, %v5085_v35  ;;  %v5980_v46 = vpop.xlane.xlu1 %5979 }
 0xdfc   : > { %v9660_v62 = vpop.f32.mrf.mxu0  ;;  %v5982_v17 = vpop.xlane.xlu0 %5981  ;;  %10644 = vrcp.f32 %v5980_v46 }
 0xdfd   : > { %5210 = vst.msk [vmem:[#allocation2 + $0x38] sm:$0xf] %vm1489_vm1, %v8854_v63  ;;  %v8852_v24 = vpack.c.bf16 %v5128_v33, %v5128_v33  ;;  %v5131_v0 = vmul.f32 %v10613_v10, %v9660_v62  ;;  %v10635_v33 = vpop.eup %10634 }
 0xdfe   : > { %v5088_v1 = vpop.f32.mrf.mxu0 }
 0xdff   : > { %5208 = vst.msk [vmem:[#allocation2 + $0x30] sm:$0xf] %vm1489_vm1, %v8852_v24  ;;  %v8855_v26 = vpack.c.bf16 %v5131_v0, %v5131_v0  ;;  %v5129_v53 = vmul.f32 %v10615_v11, %v5088_v1  ;;  %v5976_v16 = vpop.xlane.xlu1 %5975 }
 0xe00   : > { %v9699_v29 = vpop.f32.mrf.mxu0  ;;  %v5978_v32 = vpop.xlane.xlu0 %5977  ;;  %10646 = vrcp.f32 %v5976_v16 }
 0xe01   : > { %5211 = vst.msk [vmem:[#allocation2 + $0x3c] sm:$0xf] %vm1489_vm1, %v8855_v26  ;;  %v8853_v6 = vpack.c.bf16 %v5129_v53, %v5129_v53  ;;  %v5624_v61 = vmul.f32 %v10617_v37, %v9699_v29  ;;  %v10637_v13 = vpop.eup %10636  ;;  %10648 = vrcp.f32 %v5978_v32 }
 0xe02   : > { %v5543_v40 = vpop.f32.mrf.mxu0  ;;  %10650 = vrcp.f32 %v5982_v17 }
 0xe03   : > { %5209 = vst.msk [vmem:[#allocation2 + $0x34] sm:$0xf] %vm1489_vm1, %v8853_v6  ;;  %v8858_v20 = vpack.c.bf16 %v5624_v61, %v5624_v61  ;;  %v5622_v12 = vmul.f32 %v10619_v39, %v5543_v40  ;;  %v13768_v4 = vpop.xlane.xlu1 %5987 }
 0xe04   : > { %v9700_v41 = vpop.f32.mrf.mxu0  ;;  %v13774_v24 = vpop.xlane.xlu0 %5989 }
 0xe05   : > { %v5625_v19 = vmul.f32 %v10621_v43, %v9700_v41  ;;  %5690 = vrot.lane.b32.xlu1 %v8858_v20, %s11077_s25  ;;  %v8856_v44 = vpack.c.bf16 %v5622_v12, %v5622_v12  ;;  %v10639_v39 = vpop.eup %10638 }
 0xe06   : > { %v5546_v59 = vpop.f32.mrf.mxu0  ;;  %v10641_v12 = vpop.eup %10640 }
 0xe07   : > { %v8859_v51 = vpack.c.bf16 %v5625_v19, %v5625_v19  ;;  %v5623_v52 = vmul.f32 %v10623_v22, %v5546_v59  ;;  %v13778_v11 = vpop.xlane.xlu1 %5983 }
 0xe08   : > { %v9703_v58 = vpop.f32.mrf.mxu0  ;;  %v13785_v53 = vpop.xlane.xlu0 %5985 }
 0xe09   : > { %5692 = vrot.lane.b32.xlu0 %v8859_v51, %s11077_s25  ;;  %5686 = vrot.lane.b32.xlu1 %v8856_v44, %s11077_s25  ;;  %v8857_v28 = vpack.c.bf16 %v5623_v52, %v5623_v52  ;;  %v5628_v48 = vmul.f32 %v10625_v8, %v9703_v58  ;;  %v10643_v44 = vpop.eup %10642 }
 0xe0a   : > { %v5559_v56 = vpop.f32.mrf.mxu0  ;;  %v10645_v51 = vpop.eup %10644 }
 0xe0b   : > { %v5626_v47 = vmul.f32 %v10627_v2, %v5559_v56  ;;  %v8862_v50 = vpack.c.bf16 %v5628_v48, %v5628_v48  ;;  %v13789_v29 = vpop.xlane.xlu1 %5995  ;;  %v10081_v48 = vld [vmem:[#allocation9 + $0x70] sm:$0xff]  }
 0xe0c   : > { %v9704_v45 = vpop.f32.mrf.mxu0  ;;  %v13791_v43 = vpop.xlane.xlu0 %5997 }
 0xe0d   : > { %v8860_v54 = vpack.c.bf16 %v5626_v47, %v5626_v47  ;;  %v5629_v30 = vmul.f32 %v10629_v25, %v9704_v45  ;;  %5688 = vrot.lane.b32.xlu0 %v8857_v28, %s11077_s25  ;;  %v10080_v28 = vld [vmem:[#allocation9 + $0x78] sm:$0xff]   ;;  %v10647_v25 = vpop.eup %10646 }
 0xe0e   : > { %v5562_v21 = vpop.f32.mrf.mxu0  ;;  %9817 = vmatprep.subr.bf16.mxu1 %v10080_v28 }
 0xe0f   : > { %v5627_v5 = vmul.f32 %v10631_v57, %v5562_v21  ;;  %5694 = vrot.lane.b32.xlu1 %v8860_v54, %s11077_s25  ;;  %v8863_v27 = vpack.c.bf16 %v5629_v30, %v5629_v30  ;;  %v13794_v55 = vpop.xlane.xlu1 %5991  ;;  %9818 = vmatpush3.bf16.msra.mxu1 %v10080_v28  ;;  %v10649_v57 = vpop.eup %10648  ;;  %v10082_v21 = vld [vmem:[#allocation9 + $0x68] sm:$0xff]  }
 0xe10   : > { %v13763_v15 = vpop.f32.mrf.mxu0  ;;  %v13797_v2 = vpop.xlane.xlu0 %5993  ;;  %9819 = vmatprep.subr.bf16.mxu1 %v10081_v48 }
 0xe11   : > { %5698 = vrot.lane.b32.xlu0 %v8862_v50, %s11077_s25  ;;  %v8861_v9 = vpack.c.bf16 %v5627_v5, %v5627_v5  ;;  %v10651_v5 = vpop.eup %10650 }
 0xe12   : > { %v5575_v34 = vpop.f32.mrf.mxu0 }
 0xe13   : > { %v5630_v23 = vmul.f32 %v10633_v3, %v5575_v34  ;;  %5700 = vrot.lane.b32.xlu1 %v8863_v27, %s11077_s25  ;;  %v6494_v17 = vpop.xlane.xlu1 %6493  ;;  %9820 = vmatpush3.bf16.msra.mxu1 %v10081_v48 }
 0xe14   : > { %v13770_v35 = vpop.f32.mrf.mxu0  ;;  %v6496_v27 = vpop.xlane.xlu0 %6495  ;;  %9821 = vmatprep.subr.bf16.mxu1 %v10082_v21  ;;  %10652 = vrcp.f32 %v6494_v17 }
 0xe15   : > { %v8864_v63 = vpack.c.bf16 %v5630_v23, %v5630_v23  ;;  %5696 = vrot.lane.b32.xlu0 %v8861_v9, %s11077_s25 }
 0xe16   : > { %v5578_v10 = vpop.f32.mrf.mxu0 }
 0xe17   : > { %v5631_v62 = vmul.f32 %v10635_v33, %v5578_v10  ;;  %5702 = vrot.lane.b32.xlu1 %v8864_v63, %s11077_s25  ;;  %v6490_v23 = vpop.xlane.xlu1 %6489  ;;  %v10083_v33 = vld [vmem:[#allocation9 + $0x60] sm:$0xff]   ;;  %9822 = vmatpush3.bf16.msra.mxu1 %v10082_v21 }
 0xe18   : > { %v13776_v14 = vpop.f32.mrf.mxu0  ;;  %10654 = vrcp.f32 %v6490_v23  ;;  %9823 = vmatprep.subr.bf16.mxu1 %v10083_v33 }
 0xe19   : > { %v8865_v0 = vpack.c.bf16 %v5631_v62, %v5631_v62  ;;  %10656 = vrcp.f32 %v6496_v27 }
 0xe1a   : > { %v13780_v1 = vpop.f32.mrf.mxu0  ;;  %10658 = vrcp.f32 %v13716_v31 }
 0xe1b   : > { %5704 = vrot.lane.b32.xlu0 %v8865_v0, %s11077_s25  ;;  %v6492_v0 = vpop.xlane.xlu0 %6491  ;;  %9824 = vmatpush3.bf16.msra.mxu1 %v10083_v33 }
 0xe1c   : > { %v13783_v26 = vpop.f32.mrf.mxu0  ;;  %10660 = vrcp.f32 %v6492_v0 }
 0xe1d   : > { %10662 = vrcp.f32 %v13718_v7 }
 0xe1e   : > { %v13787_v37 = vpop.f32.mrf.mxu0  ;;  %10664 = vrcp.f32 %v13778_v11 }
 0xe1f   : > { %10666 = vrcp.f32 %v13785_v53 }
 0xe20   : > { %v9751_v6 = vpop.f32.mrf.mxu0 }
 0xe21   : > { %v6146_v61 = vmul.f32 %v10637_v13, %v9751_v6  ;;  %v10653_v31 = vpop.eup %10652 }
 0xe22   : > { %v6065_v49 = vpop.f32.mrf.mxu0 }
 0xe23   : > { %v8874_v40 = vpack.c.bf16 %v6146_v61, %v6146_v61  ;;  %v6144_v20 = vmul.f32 %v10639_v39, %v6065_v49  ;;  %v10084_v61 = vld [vmem:[#allocation9 + $0x58] sm:$0xff]   ;;  %v6502_v49 = vpop.xlane.xlu1 %6501 }
 0xe24   : > { %v9752_v41 = vpop.f32.mrf.mxu0  ;;  %9825 = vmatprep.subr.bf16.mxu1 %v10084_v61  ;;  %10668 = vrcp.f32 %v6502_v49 }
 0xe25   : > { %v8872_v19 = vpack.c.bf16 %v6144_v20, %v6144_v20  ;;  %v6147_v22 = vmul.f32 %v10641_v12, %v9752_v41  ;;  %6212 = vrot.lane.b32.xlu0 %v8874_v40, %s11076_s3  ;;  %v10085_v20 = vld [vmem:[#allocation9 + $0x50] sm:$0xff]   ;;  %9826 = vmatpush3.bf16.msra.mxu1 %v10084_v61  ;;  %v6504_v41 = vpop.xlane.xlu0 %6503  ;;  %v10655_v7 = vpop.eup %10654 }
 0xe26   : > { %v6068_v59 = vpop.f32.mrf.mxu0  ;;  %9827 = vmatprep.subr.bf16.mxu1 %v10085_v20  ;;  %v10657_v11 = vpop.eup %10656  ;;  %10670 = vrcp.f32 %v6504_v41 }
 0xe27   : > { %6208 = vrot.lane.b32.xlu1 %v8872_v19, %s11076_s3  ;;  %v8875_v46 = vpack.c.bf16 %v6147_v22, %v6147_v22  ;;  %v6145_v58 = vmul.f32 %v10643_v44, %v6068_v59  ;;  %v10086_v22 = vld [vmem:[#allocation9 + $0x48] sm:$0xff]   ;;  %v6498_v44 = vpop.xlane.xlu1 %6497 }
 0xe28   : > { %v9755_v52 = vpop.f32.mrf.mxu0  ;;  %10672 = vrcp.f32 %v6498_v44 }
 0xe29   : > { %v6150_v8 = vmul.f32 %v10645_v51, %v9755_v52  ;;  %v8873_v54 = vpack.c.bf16 %v6145_v58, %v6145_v58  ;;  %9828 = vmatpush3.bf16.msra.mxu1 %v10085_v20  ;;  %v6500_v48 = vpop.xlane.xlu0 %6499  ;;  %10674 = vrcp.f32 %v13768_v4 }
 0xe2a   : > { %v6081_v56 = vpop.f32.mrf.mxu0  ;;  %9829 = vmatprep.subr.bf16.mxu1 %v10086_v22  ;;  %10676 = vrcp.f32 %v6500_v48 }
 0xe2b   : > { %v8878_v47 = vpack.c.bf16 %v6150_v8, %v6150_v8  ;;  %6214 = vrot.lane.b32.xlu1 %v8875_v46, %s11076_s3  ;;  %v6148_v30 = vmul.f32 %v10647_v25, %v6081_v56  ;;  %v10087_v8 = vld [vmem:[#allocation9 + $0x40] sm:$0xff]   ;;  %v10659_v56 = vpop.eup %10658  ;;  %10678 = vrcp.f32 %v13737_v18 }
 0xe2c   : > { %v9756_v45 = vpop.f32.mrf.mxu0  ;;  %v10661_v53 = vpop.eup %10660  ;;  %v5632_v25 = vmul.f32 %v10659_v56, %v13763_v15  ;;  %10680 = vrcp.f32 %v13774_v24 }
 0xe2d   : > { %6220 = vrot.lane.b32.xlu0 %v8878_v47, %s11076_s3  ;;  %v8876_v32 = vpack.c.bf16 %v6148_v30, %v6148_v30  ;;  %v6151_v34 = vmul.f32 %v10651_v5, %v9756_v45  ;;  %9830 = vmatpush3.bf16.msra.mxu1 %v10086_v22  ;;  %10682 = vrcp.f32 %v13743_v60 }
 0xe2e   : > { %v6084_v16 = vpop.f32.mrf.mxu0  ;;  %9831 = vmatprep.subr.bf16.mxu1 %v10087_v8  ;;  %v8866_v21 = vpack.c.bf16 %v5632_v25, %v5632_v25 }
 0xe2f   : > { %v6149_v50 = vmul.f32 %v10649_v57, %v6084_v16  ;;  %6210 = vrot.lane.b32.xlu1 %v8873_v54, %s11076_s3  ;;  %v8879_v62 = vpack.c.bf16 %v6151_v34, %v6151_v34  ;;  %v10663_v57 = vpop.eup %10662 }
 0xe30   : > { %v13802_v3 = vpop.f32.mrf.mxu0  ;;  %v10665_v16 = vpop.eup %10664 }
 0xe31   : > { %v8877_v9 = vpack.c.bf16 %v6149_v50, %v6149_v50  ;;  %9832 = vmatpush3.bf16.msra.mxu1 %v10087_v8  ;;  %v5633_v50 = vmul.f32 %v10663_v57, %v13770_v35 }
 0xe32   : > { %v13804_v63 = vpop.f32.mrf.mxu0 }
 0xe33   : > { %6218 = vrot.lane.b32.xlu0 %v8877_v9, %s11076_s3  ;;  %6216 = vrot.lane.b32.xlu1 %v8876_v32, %s11076_s3  ;;  %v6152_v5 = vmul.f32 %v10665_v16, %v13804_v63  ;;  %v10667_v32 = vpop.eup %10666  ;;  %v8867_v34 = vpack.c.bf16 %v5633_v50, %v5633_v50 }
 0xe34   : > { %v13808_v10 = vpop.f32.mrf.mxu0  ;;  %v10669_v4 = vpop.eup %10668 }
 0xe35   : > { %v8880_v9 = vpack.c.bf16 %v6152_v5, %v6152_v5 }
 0xe36   : > { %v13810_v13 = vpop.f32.mrf.mxu0 }
 0xe37   : > { %6222 = vrot.lane.b32.xlu1 %v8879_v62, %s11076_s3  ;;  %v6153_v23 = vmul.f32 %v10667_v32, %v13810_v13  ;;  %v10671_v62 = vpop.eup %10670 }
 0xe38   : > { %v13814_v6 = vpop.f32.mrf.mxu0  ;;  %v10673_v18 = vpop.eup %10672 }
 0xe39   : > { %v8881_v24 = vpack.c.bf16 %v6153_v23, %v6153_v23  ;;  %v10675_v20 = vpop.eup %10674 }
 0xe3a   : > { %v13816_v39 = vpop.f32.mrf.mxu0  ;;  %v10677_v13 = vpop.eup %10676 }
 0xe3b   : > { %v10679_v22 = vpop.eup %10678  ;;  %v6510_v56 = vpop.xlane.xlu1 %6509 }
 0xe3c   : > { %v13819_v40 = vpop.f32.mrf.mxu0  ;;  %10684 = vrcp.f32 %v6510_v56 }
 0xe3e   : > { %v13822_v12 = vpop.f32.mrf.mxu0 }
 0xe40   : > { %v9803_v19 = vpop.f32.mrf.mxu0 }
 0xe41   : > { %v6668_v59 = vmul.f32 %v10653_v31, %v9803_v19  ;;  %v6154_v31 = vmul.f32 %v10675_v20, %v13802_v3 }
 0xe42   : > { %v6587_v51 = vpop.f32.mrf.mxu0 }
 0xe43   : > { %v8890_v52 = vpack.c.bf16 %v6668_v59, %v6668_v59  ;;  %v6666_v46 = vmul.f32 %v10655_v7, %v6587_v51  ;;  %v10681_v59 = vpop.eup %10680  ;;  %v5634_v7 = vmul.f32 %v10679_v22, %v13780_v1  ;;  %v8882_v44 = vpack.c.bf16 %v6154_v31, %v6154_v31 }
 0xe44   : > { %v9804_v58 = vpop.f32.mrf.mxu0  ;;  %v6155_v51 = vmul.f32 %v10681_v59, %v13808_v10  ;;  %v10683_v3 = vpop.eup %10682 }
 0xe45   : > { %v6669_v28 = vmul.f32 %v10657_v11, %v9804_v58  ;;  %6734 = vrot.lane.b32.xlu1 %v8890_v52, %s11075_s2  ;;  %v8888_v17 = vpack.c.bf16 %v6666_v46, %v6666_v46  ;;  %v8868_v46 = vpack.c.bf16 %v5634_v7, %v5634_v7  ;;  %v5635_v11 = vmul.f32 %v10683_v3, %v13787_v37  ;;  %v6512_v1 = vpop.xlane.xlu0 %6511  ;;  %v6506_v10 = vpop.xlane.xlu1 %6505 }
 0xe46   : > { %v6590_v47 = vpop.f32.mrf.mxu0  ;;  %v8883_v58 = vpack.c.bf16 %v6155_v51, %v6155_v51  ;;  %10686 = vrcp.f32 %v6506_v10 }
 0xe47   : > { %v8891_v45 = vpack.c.bf16 %v6669_v28, %v6669_v28  ;;  %v6667_v54 = vmul.f32 %v10661_v53, %v6590_v47  ;;  %v8869_v8 = vpack.c.bf16 %v5635_v11, %v5635_v11  ;;  %10688 = vrcp.f32 %v6512_v1 }
 0xe48   : > { %v9807_v30 = vpop.f32.mrf.mxu0  ;;  %10690 = vrcp.f32 %v13729_v36 }
 0xe49   : > { %6736 = vrot.lane.b32.xlu0 %v8891_v45, %s11075_s2  ;;  %6730 = vrot.lane.b32.xlu1 %v8888_v17, %s11075_s2  ;;  %v8889_v15 = vpack.c.bf16 %v6667_v54, %v6667_v54  ;;  %v6672_v33 = vmul.f32 %v10669_v4, %v9807_v30  ;;  %v6508_v28 = vpop.xlane.xlu0 %6507  ;;  %v10685_v54 = vpop.eup %10684 }
 0xe4a   : > { %v6603_v27 = vpop.f32.mrf.mxu0  ;;  %10692 = vrcp.f32 %v6508_v28 }
 0xe4b   : > { %v8894_v63 = vpack.c.bf16 %v6672_v33, %v6672_v33  ;;  %v6670_v0 = vmul.f32 %v10673_v18, %v6603_v27  ;;  %v6518_v53 = vpop.xlane.xlu1 %6517  ;;  %10694 = vrcp.f32 %v13733_v38 }
 0xe4c   : > { %v9808_v35 = vpop.f32.mrf.mxu0  ;;  %10696 = vrcp.f32 %v13794_v55 }
 0xe4d   : > { %6732 = vrot.lane.b32.xlu0 %v8889_v15, %s11075_s2  ;;  %5706 = vrot.lane.b32.xlu1 %v8866_v21, %s11077_s25  ;;  %v6673_v61 = vmul.f32 %v10671_v62, %v9808_v35  ;;  %v8892_v41 = vpack.c.bf16 %v6670_v0, %v6670_v0  ;;  %v6520_v48 = vpop.xlane.xlu0 %6519  ;;  %10698 = vrcp.f32 %v13789_v29 }
 0xe4e   : > { %v6606_v49 = vpop.f32.mrf.mxu0  ;;  %10700 = vrcp.f32 %v13797_v2 }
 0xe4f   : > { %v8895_v60 = vpack.c.bf16 %v6673_v61, %v6673_v61  ;;  %v6671_v19 = vmul.f32 %v10677_v13, %v6606_v49  ;;  %v6514_v47 = vpop.xlane.xlu1 %6513  ;;  %10702 = vrcp.f32 %v13791_v43 }
 0xe50   : > { %10704 = vrcp.f32 %v6514_v47 }
 0xe51   : > { %5708 = vrot.lane.b32.xlu0 %v8867_v34, %s11077_s25  ;;  %6224 = vrot.lane.b32.xlu1 %v8880_v9, %s11076_s3  ;;  %v8893_v52 = vpack.c.bf16 %v6671_v19, %v6671_v19  ;;  %v6516_v37 = vpop.xlane.xlu0 %6515  ;;  %10706 = vrcp.f32 %v6518_v53 }
 0xe52   : > { %10708 = vrcp.f32 %v6516_v37 }
 0xe53   : > { %v10687_v57 = vpop.eup %10686  ;;  %10710 = vrcp.f32 %v6520_v48 }
 0xe54   : > { %v10689_v5 = vpop.eup %10688 }
 0xe55   : > { %6226 = vrot.lane.b32.xlu0 %v8881_v24, %s11076_s3  ;;  %6742 = vrot.lane.b32.xlu1 %v8894_v63, %s11075_s2  ;;  %v10691_v29 = vpop.eup %10690 }
 0xe56   : > { %v5636_v4 = vmul.f32 %v10691_v29, %v13776_v14 }
 0xe57   : > { %v10693_v32 = vpop.eup %10692 }
 0xe58   : > { %v10695_v35 = vpop.eup %10694  ;;  %v8870_v24 = vpack.c.bf16 %v5636_v4, %v5636_v4 }
 0xe59   : > { %6744 = vrot.lane.b32.xlu0 %v8895_v60, %s11075_s2  ;;  %6738 = vrot.lane.b32.xlu1 %v8892_v41, %s11075_s2  ;;  %v10697_v18 = vpop.eup %10696  ;;  %v5637_v14 = vmul.f32 %v10695_v35, %v13783_v26 }
 0xe5a   : > { %v6156_v63 = vmul.f32 %v10697_v18, %v13816_v39  ;;  %v10699_v20 = vpop.eup %10698 }
 0xe5b   : > { %v10701_v31 = vpop.eup %10700  ;;  %v8871_v41 = vpack.c.bf16 %v5637_v14, %v5637_v14  ;;  %v6158_v26 = vmul.f32 %v10699_v20, %v13814_v6 }
 0xe5c   : > { %v8884_v60 = vpack.c.bf16 %v6156_v63, %v6156_v63  ;;  %v6157_v39 = vmul.f32 %v10701_v31, %v13822_v12  ;;  %v10703_v22 = vpop.eup %10702 }
 0xe5d   : > { %6740 = vrot.lane.b32.xlu0 %v8893_v52, %s11075_s2  ;;  %6228 = vrot.lane.b32.xlu1 %v8882_v44, %s11076_s3  ;;  %v10705_v7 = vpop.eup %10704  ;;  %v8886_v44 = vpack.c.bf16 %v6158_v26, %v6158_v26  ;;  %v6159_v51 = vmul.f32 %v10703_v22, %v13819_v40 }
 0xe5e   : > { %v8885_v52 = vpack.c.bf16 %v6157_v39, %v6157_v39  ;;  %v10707_v6 = vpop.eup %10706 }
 0xe5f   : > { %v10709_v12 = vpop.eup %10708  ;;  %v8887_v11 = vpack.c.bf16 %v6159_v51, %v6159_v51 }
 0xe60   : > { %v10711_v1 = vpop.eup %10710 }
 0xe61   : > { %6230 = vrot.lane.b32.xlu0 %v8883_v58, %s11076_s3  ;;  %5710 = vrot.lane.b32.xlu1 %v8868_v46, %s11077_s25 }
 0xe65   : > { %5712 = vrot.lane.b32.xlu0 %v8869_v8, %s11077_s25 }
 0xe77   : > { %v5691_v25 = vpop.permute.xlu1 %5690 }
 0xe78   : > { %5736 = vst.msk [vmem:[#allocation2 + $0x8] sm:$0xf] %vm2028_vm2, %v5691_v25 }
 0xe7b   : > { %v5693_v17 = vpop.permute.xlu0 %5692  ;;  %v5687_v45 = vpop.permute.xlu1 %5686 }
 0xe7c   : > { %5737 = vst.msk [vmem:[#allocation2 + $0xc] sm:$0xf] %vm2028_vm2, %v5693_v17  ;;  %5734 = vst.msk [vmem:[#allocation2] sm:$0xf] %vm2028_vm2, %v5687_v45 }
 0xe7d   : > { %v9811_v30 = vpop.f32.mrf.mxu0 }
 0xe7e   : > { %v6676_v36 = vmul.f32 %v10685_v54, %v9811_v30 }
 0xe7f   : > { %v6619_v16 = vpop.f32.mrf.mxu0  ;;  %v5689_v21 = vpop.permute.xlu0 %5688 }
 0xe80   : > { %v8898_v38 = vpack.c.bf16 %v6676_v36, %v6676_v36  ;;  %v6674_v50 = vmul.f32 %v10687_v57, %v6619_v16  ;;  %5735 = vst.msk [vmem:[#allocation2 + $0x4] sm:$0xf] %vm2028_vm2, %v5689_v21 }
 0xe81   : > { %v9812_v55 = vpop.f32.mrf.mxu0  ;;  %v5695_v27 = vpop.permute.xlu1 %5694 }
 0xe82   : > { %v6677_v15 = vmul.f32 %v10689_v5, %v9812_v55  ;;  %6750 = vrot.lane.b32.xlu1 %v8898_v38, %s11075_s2  ;;  %5738 = vst.msk [vmem:[#allocation2 + $0x10] sm:$0xf] %vm2028_vm2, %v5695_v27  ;;  %v8896_v34 = vpack.c.bf16 %v6674_v50, %v6674_v50 }
 0xe83   : > { %v6622_v2 = vpop.f32.mrf.mxu0  ;;  %v5699_v33 = vpop.permute.xlu0 %5698 }
 0xe84   : > { %v8899_v9 = vpack.c.bf16 %v6677_v15, %v6677_v15  ;;  %v6675_v23 = vmul.f32 %v10693_v32, %v6622_v2  ;;  %5740 = vst.msk [vmem:[#allocation2 + $0x18] sm:$0xf] %vm2028_vm2, %v5699_v33 }
 0xe85   : > { %v9815_v43 = vpop.f32.mrf.mxu0  ;;  %v5701_v62 = vpop.permute.xlu1 %5700 }
 0xe86   : > { %6752 = vrot.lane.b32.xlu0 %v8899_v9, %s11075_s2  ;;  %6746 = vrot.lane.b32.xlu1 %v8896_v34, %s11075_s2  ;;  %5741 = vst.msk [vmem:[#allocation2 + $0x1c] sm:$0xf] %vm2028_vm2, %v5701_v62  ;;  %v8897_v0 = vpack.c.bf16 %v6675_v23, %v6675_v23  ;;  %v6680_v58 = vmul.f32 %v10707_v6, %v9815_v43 }
 0xe87   : > { %v5697_v61 = vpop.permute.xlu0 %5696  ;;  %v6635_v49 = vpop.f32.mrf.mxu0 }
 0xe88   : > { %5739 = vst.msk [vmem:[#allocation2 + $0x14] sm:$0xf] %vm2028_vm2, %v5697_v61  ;;  %v6678_v3 = vmul.f32 %v10705_v7, %v6635_v49  ;;  %v8902_v10 = vpack.c.bf16 %v6680_v58, %v6680_v58 }
 0xe89   : > { %v5703_v13 = vpop.permute.xlu1 %5702  ;;  %v9816_v19 = vpop.f32.mrf.mxu0 }
 0xe8a   : > { %6748 = vrot.lane.b32.xlu0 %v8897_v0, %s11075_s2  ;;  %5714 = vrot.lane.b32.xlu1 %v8870_v24, %s11077_s25  ;;  %5742 = vst.msk [vmem:[#allocation2 + $0x20] sm:$0xf] %vm2028_vm2, %v5703_v13  ;;  %v8900_v8 = vpack.c.bf16 %v6678_v3, %v6678_v3  ;;  %v6681_v40 = vmul.f32 %v10711_v1, %v9816_v19  ;;  %v15016_v1 = vld [vmem:[#allocation47_spill] sm:$0xff] }
 0xe8b   : > { %v6638_v46 = vpop.f32.mrf.mxu0 }
 0xe8c   : > { %v6679_v56 = vmul.f32 %v10709_v12, %v6638_v46  ;;  %v8903_v47 = vpack.c.bf16 %v6681_v40, %v6681_v40  ;;  %v15014_v46 = vld [vmem:[#allocation39_spill] sm:$0xff] }
 0xe8d   : > { %v5705_v59 = vpop.permute.xlu0 %5704 }
 0xe8e   : > { %5716 = vrot.lane.b32.xlu0 %v8871_v41, %s11077_s25  ;;  %6232 = vrot.lane.b32.xlu1 %v8884_v60, %s11076_s3  ;;  %5743 = vst.msk [vmem:[#allocation2 + $0x24] sm:$0xf] %vm2028_vm2, %v5705_v59  ;;  %v8901_v28 = vpack.c.bf16 %v6679_v56, %v6679_v56  ;;  %s10986_s25 = sshll.u32 %s11078_s24, 4  ;;  %s10987_s25 = int_to_ptr.vmem [resolvable:$false] %s10986_s25 }
 0xe8f   : > { %p10989_p5 = scmp.lt.s32.totalorder %s14662_s28, %s10987_s25 }
 0xe92   : > { %6234 = vrot.lane.b32.xlu0 %v8885_v52, %s11076_s3  ;;  %6236 = vrot.lane.b32.xlu1 %v8886_v44, %s11076_s3  ;;  %v8708_v44 = vld [vmem:[%s14711_s4 + $0x1] ss:$0 sm:$0xff] }
 0xe96   : > { %6238 = vrot.lane.b32.xlu0 %v8887_v11, %s11076_s3  ;;  %6754 = vrot.lane.b32.xlu1 %v8900_v8, %s11075_s2  ;;  %v15015_v8 = vld [vmem:[#allocation41_spill] sm:$0xff]  ;;  %s10982_s3 = scalar_lea.vmem %s14662_s28, 2048 }
 0xe97   : > { %v6213_v53 = vpop.permute.xlu0 %6212  ;;  %p10983_p10 = scmp.ne.s32.totalorder %s14662_s28, %s10982_s3 }
 0xe98   : > { %6258 = vst.msk [vmem:[#allocation2 + $0x8] sm:$0xf] %vm2551_vm3, %v6213_v53  ;;  %v15017_v53 = vld [vmem:[#allocation40_spill] sm:$0xff] }
 0xe99   : > { %v6209_v48 = vpop.permute.xlu1 %6208  ;;  %p10984_p13 = pnand %p10983_p10, %p15035_p11 }
 0xe9a   : > { %6756 = vrot.lane.b32.xlu0 %v8901_v28, %s11075_s2  ;;  %6758 = vrot.lane.b32.xlu1 %v8902_v10, %s11075_s2  ;;  %6256 = vst.msk [vmem:[#allocation2] sm:$0xf] %vm2551_vm3, %v6209_v48 }
 0xe9b   : > { %p10985_p0 = pneg %p10984_p13 }
 0xe9d   : > { %v6215_v37 = vpop.permute.xlu1 %6214 }
 0xe9e   : > { %6760 = vrot.lane.b32.xlu0 %v8903_v47, %s11075_s2  ;;  %6259 = vst.msk [vmem:[#allocation2 + $0xc] sm:$0xf] %vm2551_vm3, %v6215_v37  ;;  %s8260_s2 = scalar_lea.sflag [#allocation5], %s11331_s7 }
 0xe9f   : > { %v6221_v25 = vpop.permute.xlu0 %6220 }
 0xea0   : > { %6262 = vst.msk [vmem:[#allocation2 + $0x18] sm:$0xf] %vm2551_vm3, %v6221_v25 }
 0xea1   : > { %v6211_v17 = vpop.permute.xlu1 %6210 }
 0xea2   : > { %6257 = vst.msk [vmem:[#allocation2 + $0x4] sm:$0xf] %vm2551_vm3, %v6211_v17 }
 0xea5   : > { %v6219_v45 = vpop.permute.xlu0 %6218  ;;  %v6217_v54 = vpop.permute.xlu1 %6216 }
 0xea6   : > { %6261 = vst.msk [vmem:[#allocation2 + $0x14] sm:$0xf] %vm2551_vm3, %v6219_v45  ;;  %6260 = vst.msk [vmem:[#allocation2 + $0x10] sm:$0xf] %vm2551_vm3, %v6217_v54  ;;  %v15018_v45 = vld [vmem:[#allocation42_spill] sm:$0xff] }
 0xea9   : > { %v6223_v30 = vpop.permute.xlu1 %6222 }
 0xeaa   : > { %6263 = vst.msk [vmem:[#allocation2 + $0x1c] sm:$0xf] %vm2551_vm3, %v6223_v30 }
 0xeb7   : > { %v6735_v36 = vpop.permute.xlu1 %6734 }
 0xeb8   : > { %6780 = vst.msk [vmem:[#allocation2 + $0x8] sm:$0xf] %vm3074_vm4, %v6735_v36 }
 0xebb   : > { %v6737_v57 = vpop.permute.xlu0 %6736  ;;  %v6731_v16 = vpop.permute.xlu1 %6730 }
 0xebc   : > { %6781 = vst.msk [vmem:[#allocation2 + $0xc] sm:$0xf] %vm3074_vm4, %v6737_v57  ;;  %6778 = vst.msk [vmem:[#allocation2] sm:$0xf] %vm3074_vm4, %v6731_v16  ;;  %v15019_v57 = vld [vmem:[#allocation45_spill] sm:$0xff] }
 0xebf   : > { %v6733_v38 = vpop.permute.xlu0 %6732  ;;  %v5707_v21 = vpop.permute.xlu1 %5706 }
 0xec0   : > { %6779 = vst.msk [vmem:[#allocation2 + $0x4] sm:$0xf] %vm3074_vm4, %v6733_v38 }
 0xec1   : > { %5744 = vst.msk [vmem:[#allocation2 + $0x28] sm:$0xf] %vm2028_vm2, %v5707_v21  ;;  %v15020_v21 = vld [vmem:[#allocation43_spill] sm:$0xff] }
 0xec3   : > { %v5709_v50 = vpop.permute.xlu0 %5708  ;;  %v6225_v5 = vpop.permute.xlu1 %6224  ;;  %v10089_v27 = vld [vmem:[#allocation2 + $0x8] sm:$0xff]  }
 0xec4   : > { %5745 = vst.msk [vmem:[#allocation2 + $0x2c] sm:$0xf] %vm2028_vm2, %v5709_v50 }
 0xec5   : > { %6264 = vst.msk [vmem:[#allocation2 + $0x20] sm:$0xf] %vm2551_vm3, %v6225_v5  ;;  %v15021_v5 = vld [vmem:[#allocation44_spill] sm:$0xff] }
 0xec7   : > { %v6227_v55 = vpop.permute.xlu0 %6226  ;;  %v6743_v29 = vpop.permute.xlu1 %6742  ;;  %v10088_v15 = vld [vmem:[#allocation2] sm:$0xff]  }
 0xec8   : > { %6265 = vst.msk [vmem:[#allocation2 + $0x24] sm:$0xf] %vm2551_vm3, %v6227_v55  ;;  %9833 = vmatprep.mubr.bf16.mxu1 %v10088_v15 }
 0xec9   : > { %6784 = vst.msk [vmem:[#allocation2 + $0x18] sm:$0xf] %vm3074_vm4, %v6743_v29  ;;  %9834 = vmatmul.mubr.bf16.vlgmr.msra.gmra.mxu1 %v10089_v27 }
 0xecb   : > { %v6745_v32 = vpop.permute.xlu0 %6744  ;;  %v6739_v2 = vpop.permute.xlu1 %6738 }
 0xecc   : > { %6785 = vst.msk [vmem:[#allocation2 + $0x1c] sm:$0xf] %vm3074_vm4, %v6745_v32  ;;  %6782 = vst.msk [vmem:[#allocation2 + $0x10] sm:$0xf] %vm3074_vm4, %v6739_v2 }
 0xecf   : > { %v6741_v4 = vpop.permute.xlu0 %6740  ;;  %v6229_v34 = vpop.permute.xlu1 %6228 }
 0xed0   : > { %6783 = vst.msk [vmem:[#allocation2 + $0x14] sm:$0xf] %vm3074_vm4, %v6741_v4  ;;  %v15022_v4 = vld [vmem:[#allocation28_spill] sm:$0xff] }
 0xed1   : > { %6266 = vst.msk [vmem:[#allocation2 + $0x28] sm:$0xf] %vm2551_vm3, %v6229_v34 }
 0xed3   : > { %v6231_v9 = vpop.permute.xlu0 %6230  ;;  %v5711_v23 = vpop.permute.xlu1 %5710  ;;  %v10091_v35 = vld [vmem:[#allocation2 + $0x18] sm:$0xff]  }
 0xed4   : > { %6267 = vst.msk [vmem:[#allocation2 + $0x2c] sm:$0xf] %vm2551_vm3, %v6231_v9 }
 0xed5   : > { %5746 = vst.msk [vmem:[#allocation2 + $0x30] sm:$0xf] %vm2028_vm2, %v5711_v23 }
 0xed7   : > { %v5713_v33 = vpop.permute.xlu0 %5712  ;;  %v10090_v43 = vld [vmem:[#allocation2 + $0x10] sm:$0xff]  }
 0xed8   : > { %5747 = vst.msk [vmem:[#allocation2 + $0x34] sm:$0xf] %vm2028_vm2, %v5713_v33  ;;  %9837 = vmatprep.mubr.bf16.mxu1 %v10090_v43  ;;  %v15023_v33 = vld [vmem:[#allocation38_spill] sm:$0xff] }
 0xed9   : > { %9838 = vmatmul.mubr.bf16.gmra.mxu1 %v10091_v35 }
 0xef4   : > { %v6751_v62 = vpop.permute.xlu1 %6750 }
 0xef5   : > { %6788 = vst.msk [vmem:[#allocation2 + $0x28] sm:$0xf] %vm3074_vm4, %v6751_v62  ;;  %v15024_v62 = vld [vmem:[#allocation31_spill] sm:$0xff] }
 0xef8   : > { %v6753_v18 = vpop.permute.xlu0 %6752  ;;  %v6747_v24 = vpop.permute.xlu1 %6746 }
 0xef9   : > { %6789 = vst.msk [vmem:[#allocation2 + $0x2c] sm:$0xf] %vm3074_vm4, %v6753_v18  ;;  %6786 = vst.msk [vmem:[#allocation2 + $0x20] sm:$0xf] %vm3074_vm4, %v6747_v24  ;;  %v15025_v24 = vld [vmem:[#allocation34_spill] sm:$0xff] }
 0xefc   : > { %v6749_v14 = vpop.permute.xlu0 %6748  ;;  %v5715_v63 = vpop.permute.xlu1 %5714 }
 0xefd   : > { %6787 = vst.msk [vmem:[#allocation2 + $0x24] sm:$0xf] %vm3074_vm4, %v6749_v14 }
 0xefe   : > { %5748 = vst.msk [vmem:[#allocation2 + $0x38] sm:$0xf] %vm2028_vm2, %v5715_v63 }
 0xf00   : > { %v5717_v0 = vpop.permute.xlu0 %5716  ;;  %v6233_v61 = vpop.permute.xlu1 %6232  ;;  %v10093_v31 = vld [vmem:[#allocation2 + $0x28] sm:$0xff]  }
 0xf01   : > { %5749 = vst.msk [vmem:[#allocation2 + $0x3c] sm:$0xf] %vm2028_vm2, %v5717_v0 }
 0xf02   : > { %6268 = vst.msk [vmem:[#allocation2 + $0x30] sm:$0xf] %vm2551_vm3, %v6233_v61 }
 0xf04   : > { %v6235_v49 = vpop.permute.xlu0 %6234  ;;  %v6237_v20 = vpop.permute.xlu1 %6236  ;;  %v10092_v13 = vld [vmem:[#allocation2 + $0x20] sm:$0xff]  }
 0xf05   : > { %6269 = vst.msk [vmem:[#allocation2 + $0x34] sm:$0xf] %vm2551_vm3, %v6235_v49  ;;  %6270 = vst.msk [vmem:[#allocation2 + $0x38] sm:$0xf] %vm2551_vm3, %v6237_v20  ;;  %9841 = vmatprep.mubr.bf16.mxu1 %v10092_v13  ;;  %v15026_v13 = vld [vmem:[#allocation48_spill] sm:$0xff] }
 0xf06   : > { %9842 = vmatmul.mubr.bf16.gmra.mxu1 %v10093_v31 }
 0xf08   : > { %v6239_v41 = vpop.permute.xlu0 %6238  ;;  %v6755_v26 = vpop.permute.xlu1 %6754 }
 0xf09   : > { %6271 = vst.msk [vmem:[#allocation2 + $0x3c] sm:$0xf] %vm2551_vm3, %v6239_v41 }
 0xf0a   : > { %6790 = vst.msk [vmem:[#allocation2 + $0x30] sm:$0xf] %vm3074_vm4, %v6755_v26 }
 0xf0c   : > { %v6757_v60 = vpop.permute.xlu0 %6756  ;;  %v6759_v39 = vpop.permute.xlu1 %6758 }
 0xf0d   : > { %6791 = vst.msk [vmem:[#allocation2 + $0x34] sm:$0xf] %vm3074_vm4, %v6757_v60  ;;  %6792 = vst.msk [vmem:[#allocation2 + $0x38] sm:$0xf] %vm3074_vm4, %v6759_v39  ;;  %v15027_v60 = vld [vmem:[#allocation32_spill] sm:$0xff] }
 0xf10   : > { %v6761_v19 = vpop.permute.xlu0 %6760 }
 0xf11   : > { %6793 = vst.msk [vmem:[#allocation2 + $0x3c] sm:$0xf] %vm3074_vm4, %v6761_v19 }
 0xf14   : > { %v10094_v22 = vld [vmem:[#allocation2 + $0x30] sm:$0xff]  }
 0xf15   : > { %9845 = vmatprep.mubr.bf16.mxu1 %v10094_v22  ;;  %v15028_v22 = vld [vmem:[#allocation36_spill] sm:$0xff] }
 0xf18   : > { %v10095_v59 = vld [vmem:[#allocation2 + $0x38] sm:$0xff]  }
 0xf19   : > { %9846 = vmatmul.mubr.bf16.gmra.mxu1 %v10095_v59 }
 0xf89   : > { %v9835_v7 = vpop.f32.mrf.mxu1 }
 0xf8a   : > { %v6974_v58 = vadd.f32 %v9835_v7, %v8708_v44  ;;  %v15029_v7 = vld [vmem:[#allocation35_spill] sm:$0xff] }
 0xf8b   : > { %v6965_v51 = vpop.f32.mrf.mxu1 }
 0xf8c   : > { %v6966_v52 = vadd.f32 %v8708_v44, %v6965_v51  ;;  %v13939_v10 = vadd.f32 %v6974_v58, %v15016_v1 }
 0xf8d   : > { %v9836_v3 = vpop.f32.mrf.mxu1 }
 0xf8e   : > { %v13931_v6 = vadd.f32 %v6966_v52, %v15014_v46  ;;  %v6977_v40 = vadd.f32 %v9836_v3, %v8708_v44  ;;  %v10096_v52 = vld [vmem:[#allocation11 + $0xf0] ss:$8 sps:$4 sm:$0xff]   ;;  %v10098_v3 = vld [vmem:[#allocation11 + $0xf4] ss:$8 sps:$4 sm:$0xff]  }
 0xf8f   : > { %v6968_v12 = vpop.f32.mrf.mxu1  ;;  %7386 = vmatprep.subr.bf16.mxu0 %v10098_v3 }
 0xf90   : > { %v6969_v11 = vadd.f32 %v8708_v44, %v6968_v12  ;;  %7048 = vadd.xlane.f32.xlu1 %v13931_v6  ;;  %v13943_v48 = vadd.f32 %v6977_v40, %v15017_v53  ;;  %7387 = vmatpush1.bf16.msra.mxu0 %v10096_v52 }
 0xf92   : > { %v13935_v56 = vadd.f32 %v6969_v11, %v15015_v8 }
 0xf94   : > { %7050 = vadd.xlane.f32.xlu0 %v13935_v56 }
 0xf98   : > { %7052 = vadd.xlane.f32.xlu0 %v13939_v10 }
 0xf99   : > { %v9839_v28 = vpop.f32.mrf.mxu1 }
 0xf9a   : > { %v6990_v17 = vadd.f32 %v9839_v28, %v8708_v44 }
 0xf9b   : > { %v6981_v47 = vpop.f32.mrf.mxu1 }
 0xf9c   : > { %v6982_v37 = vadd.f32 %v8708_v44, %v6981_v47  ;;  %7054 = vadd.xlane.f32.xlu0 %v13943_v48  ;;  %v13951_v16 = vadd.f32 %v6990_v17, %v15019_v57 }
 0xf9d   : > { %v9840_v25 = vpop.f32.mrf.mxu1 }
 0xf9e   : > { %v13947_v54 = vadd.f32 %v6982_v37, %v15018_v45  ;;  %v6993_v38 = vadd.f32 %v9840_v25, %v8708_v44 }
 0xf9f   : > { %v6984_v30 = vpop.f32.mrf.mxu1 }
 0xfa0   : > { %v6985_v36 = vadd.f32 %v8708_v44, %v6984_v30  ;;  %7056 = vadd.xlane.f32.xlu1 %v13947_v54  ;;  %v13959_v55 = vadd.f32 %v6993_v38, %v15021_v5 }
 0xfa2   : > { %v13954_v50 = vadd.f32 %v6985_v36, %v15020_v21  ;;  %v10099_v21 = vld [vmem:[#allocation11 + $0xe0] ss:$8 sps:$4 sm:$0xff]  }
 0xfa4   : > { %7058 = vadd.xlane.f32.xlu0 %v13954_v50  ;;  %7060 = vadd.xlane.f32.xlu1 %v13951_v16 }
 0xfa8   : > { %7062 = vadd.xlane.f32.xlu0 %v13959_v55 }
 0xfc6   : > { %v9843_v29 = vpop.f32.mrf.mxu1 }
 0xfc7   : > { %v7006_v2 = vadd.f32 %v9843_v29, %v8708_v44 }
 0xfc8   : > { %v6997_v15 = vpop.f32.mrf.mxu1 }
 0xfc9   : > { %v6998_v27 = vadd.f32 %v8708_v44, %v6997_v15  ;;  %v13967_v43 = vadd.f32 %v7006_v2, %v15023_v33  ;;  %v10102_v2 = vld [vmem:[#allocation11 + $0xd0] ss:$8 sps:$4 sm:$0xff]  }
 0xfca   : > { %v9844_v32 = vpop.f32.mrf.mxu1 }
 0xfcb   : > { %v13963_v34 = vadd.f32 %v6998_v27, %v15022_v4  ;;  %v7009_v35 = vadd.f32 %v9844_v32, %v8708_v44 }
 0xfcc   : > { %v7000_v9 = vpop.f32.mrf.mxu1 }
 0xfcd   : > { %v7001_v23 = vadd.f32 %v8708_v44, %v7000_v9  ;;  %7064 = vadd.xlane.f32.xlu1 %v13963_v34  ;;  %v13975_v14 = vadd.f32 %v7009_v35, %v15025_v24  ;;  %v10108_v24 = vld [vmem:[#allocation11 + $0xb0] ss:$8 sps:$4 sm:$0xff]  }
 0xfcf   : > { %v13970_v18 = vadd.f32 %v7001_v23, %v15024_v62  ;;  %v10110_v62 = vld [vmem:[#allocation11 + $0xb4] ss:$8 sps:$4 sm:$0xff]  }
 0xfd1   : > { %7066 = vadd.xlane.f32.xlu0 %v13970_v18  ;;  %7068 = vadd.xlane.f32.xlu1 %v13967_v43 }
 0xfd5   : > { %7070 = vadd.xlane.f32.xlu0 %v13975_v14 }
 0xfd9   : > { %v9847_v63 = vpop.f32.mrf.mxu1 }
 0xfda   : > { %v7022_v20 = vadd.f32 %v9847_v63, %v8708_v44  ;;  %v10113_v63 = vld [vmem:[#allocation11 + $0xa4] ss:$8 sps:$4 sm:$0xff]  }
 0xfdb   : > { %v7013_v0 = vpop.f32.mrf.mxu1 }
 0xfdc   : > { %v7014_v61 = vadd.f32 %v8708_v44, %v7013_v0  ;;  %v13983_v39 = vadd.f32 %v7022_v20, %v15027_v60  ;;  %v10111_v0 = vld [vmem:[#allocation11 + $0xa0] ss:$8 sps:$4 sm:$0xff]  }
 0xfdd   : > { %v9848_v49 = vpop.f32.mrf.mxu1  ;;  %v10117_v20 = vld [vmem:[#allocation11 + $0x80] ss:$8 sps:$4 sm:$0xff]  }
 0xfde   : > { %v13979_v31 = vadd.f32 %v7014_v61, %v15026_v13  ;;  %v7025_v19 = vadd.f32 %v9848_v49, %v8708_v44  ;;  %v10114_v61 = vld [vmem:[#allocation11 + $0x90] ss:$8 sps:$4 sm:$0xff]   ;;  %v10119_v49 = vld [vmem:[#allocation11 + $0x84] ss:$8 sps:$4 sm:$0xff]  }
 0xfdf   : > { %v7016_v41 = vpop.f32.mrf.mxu1 }
 0xfe0   : > { %v7017_v26 = vadd.f32 %v8708_v44, %v7016_v41  ;;  %7072 = vadd.xlane.f32.xlu1 %v13979_v31  ;;  %v13991_v51 = vadd.f32 %v7025_v19, %v15029_v7 }
 0xfe2   : > { %v13986_v59 = vadd.f32 %v7017_v26, %v15028_v22 }
 0xfe4   : > { %7074 = vadd.xlane.f32.xlu0 %v13986_v59  ;;  %7076 = vadd.xlane.f32.xlu1 %v13983_v39 }
 0xfe8   : > { %7078 = vadd.xlane.f32.xlu0 %v13991_v51 }
0x1019   : > { %v7049_v46 = vpop.xlane.xlu1 %7048 }
0x101a   : > { %v7080_v12 = vmul.f32 0.0078125, %v7049_v46 }
0x101c   : > { %v13995_v44 = vsub.f32 %v13931_v6, %v7080_v12 }
0x101d   : > { %v7051_v11 = vpop.xlane.xlu0 %7050 }
0x101e   : > { %v7081_v58 = vmul.f32 0.0078125, %v7051_v11  ;;  %v7112_v8 = vmul.f32 %v13995_v44, %v13995_v44 }
0x1020   : > { %v14000_v1 = vsub.f32 %v13935_v56, %v7081_v58  ;;  %7128 = vadd.xlane.f32.xlu1 %v7112_v8 }
0x1021   : > { %v7053_v40 = vpop.xlane.xlu0 %7052 }
0x1022   : > { %v7082_v28 = vmul.f32 0.0078125, %v7053_v40  ;;  %v7113_v53 = vmul.f32 %v14000_v1, %v14000_v1 }
0x1024   : > { %v14005_v47 = vsub.f32 %v13939_v10, %v7082_v28  ;;  %7130 = vadd.xlane.f32.xlu0 %v7113_v53  ;;  %v10101_v10 = vld [vmem:[#allocation11 + $0xe4] ss:$8 sps:$4 sm:$0xff]  }
0x1025   : > { %v7055_v6 = vpop.xlane.xlu0 %7054  ;;  %7388 = vmatprep.subr.bf16.mxu0 %v10101_v10 }
0x1026   : > { %v7083_v37 = vmul.f32 0.0078125, %v7055_v6  ;;  %v7114_v25 = vmul.f32 %v14005_v47, %v14005_v47  ;;  %7389 = vmatpush1.bf16.msra.mxu0 %v10099_v21  ;;  %v10121_v21 = vld [vmem:[#allocation12 + $0xb8] sm:$0xff]  }
0x1028   : > { %v14010_v17 = vsub.f32 %v13943_v48, %v7083_v37  ;;  %7132 = vadd.xlane.f32.xlu1 %v7114_v25 }
0x1029   : > { %v7057_v56 = vpop.xlane.xlu1 %7056 }
0x102a   : > { %v7084_v45 = vmul.f32 0.0078125, %v7057_v56  ;;  %v7115_v30 = vmul.f32 %v14010_v17, %v14010_v17 }
0x102c   : > { %v14015_v36 = vsub.f32 %v13947_v54, %v7084_v45  ;;  %7134 = vadd.xlane.f32.xlu0 %v7115_v30  ;;  %v10104_v54 = vld [vmem:[#allocation11 + $0xd4] ss:$8 sps:$4 sm:$0xff]  }
0x102d   : > { %v7059_v57 = vpop.xlane.xlu0 %7058  ;;  %v7061_v38 = vpop.xlane.xlu1 %7060  ;;  %7390 = vmatprep.subr.bf16.mxu0 %v10104_v54  ;;  %v10125_v54 = vld [vmem:[#allocation12 + $0xa8] sm:$0xff]  }
0x102e   : > { %v7085_v5 = vmul.f32 0.0078125, %v7059_v57  ;;  %v7086_v29 = vmul.f32 0.0078125, %v7061_v38  ;;  %v7116_v48 = vmul.f32 %v14015_v36, %v14015_v36  ;;  %7391 = vmatpush1.bf16.msra.mxu0 %v10102_v2 }
0x1030   : > { %v14020_v15 = vsub.f32 %v13954_v50, %v7085_v5  ;;  %v14023_v27 = vsub.f32 %v13951_v16, %v7086_v29  ;;  %7136 = vadd.xlane.f32.xlu1 %v7116_v48  ;;  %v10107_v16 = vld [vmem:[#allocation11 + $0xc4] ss:$8 sps:$4 sm:$0xff]   ;;  %v10105_v50 = vld [vmem:[#allocation11 + $0xc0] ss:$8 sps:$4 sm:$0xff]   ;;  %v10122_v5 = vld [vmem:[#allocation12 + $0xf0] sm:$0xff]  }
0x1031   : > { %v7063_v32 = vpop.xlane.xlu0 %7062  ;;  %7392 = vmatprep.subr.bf16.mxu0 %v10107_v16  ;;  %v10123_v29 = vld [vmem:[#allocation12 + $0xb0] sm:$0xff]   ;;  %v10124_v48 = vld [vmem:[#allocation12 + $0xe8] sm:$0xff]  }
0x1032   : > { %v7087_v4 = vmul.f32 0.0078125, %v7063_v32  ;;  %v7117_v9 = vmul.f32 %v14020_v15, %v14020_v15  ;;  %v7118_v23 = vmul.f32 %v14023_v27, %v14023_v27  ;;  %7393 = vmatpush1.bf16.msra.mxu0 %v10105_v50  ;;  %v10126_v32 = vld [vmem:[#allocation12 + $0xe0] sm:$0xff]  }
0x1033   : > { %7394 = vmatprep.subr.bf16.mxu0 %v10110_v62 }
0x1034   : > { %v14030_v33 = vsub.f32 %v13959_v55, %v7087_v4  ;;  %7138 = vadd.xlane.f32.xlu0 %v7117_v9  ;;  %7140 = vadd.xlane.f32.xlu1 %v7118_v23  ;;  %v10116_v55 = vld [vmem:[#allocation11 + $0x94] ss:$8 sps:$4 sm:$0xff]   ;;  %v10127_v4 = vld [vmem:[#allocation12 + $0xa0] sm:$0xff]  }
0x1035   : > { %v10128_v9 = vld [vmem:[#allocation12 + $0xd8] sm:$0xff]  }
0x1036   : > { %v7119_v35 = vmul.f32 %v14030_v33, %v14030_v33  ;;  %7395 = vmatpush1.bf16.msra.mxu0 %v10108_v24 }
0x1037   : > { %7396 = vmatprep.subr.bf16.mxu0 %v10113_v63 }
0x1038   : > { %7142 = vadd.xlane.f32.xlu0 %v7119_v35  ;;  %v10129_v35 = vld [vmem:[#allocation12 + $0x98] sm:$0xff]  }
0x103a   : > { %7397 = vmatpush1.bf16.msra.mxu0 %v10111_v0 }
0x103b   : > { %7398 = vmatprep.subr.bf16.mxu0 %v10116_v55 }
0x103e   : > { %7399 = vmatpush1.bf16.msra.mxu0 %v10114_v61 }
0x103f   : > { %7400 = vmatprep.subr.bf16.mxu0 %v10119_v49 }
0x1042   : > { %7401 = vmatpush1.bf16.msra.mxu0 %v10117_v20 }
0x1056   : > { %v7065_v13 = vpop.xlane.xlu1 %7064 }
0x1057   : > { %v7088_v41 = vmul.f32 0.0078125, %v7065_v13 }
0x1059   : > { %v14035_v26 = vsub.f32 %v13963_v34, %v7088_v41 }
0x105a   : > { %v7067_v60 = vpop.xlane.xlu0 %7066  ;;  %v7069_v19 = vpop.xlane.xlu1 %7068 }
0x105b   : > { %v7089_v22 = vmul.f32 0.0078125, %v7067_v60  ;;  %v7090_v7 = vmul.f32 0.0078125, %v7069_v19  ;;  %v7120_v52 = vmul.f32 %v14035_v26, %v14035_v26  ;;  %v14077_v60 = vld [vmem:[%s14716_s9 + $0x1] ss:$0 sm:$0xff] }
0x105d   : > { %v14040_v3 = vsub.f32 %v13970_v18, %v7089_v22  ;;  %v14043_v46 = vsub.f32 %v13967_v43, %v7090_v7  ;;  %7144 = vadd.xlane.f32.xlu1 %v7120_v52 }
0x105e   : > { %v7071_v12 = vpop.xlane.xlu0 %7070 }
0x105f   : > { %v7091_v11 = vmul.f32 0.0078125, %v7071_v12  ;;  %v7121_v34 = vmul.f32 %v14040_v3, %v14040_v3  ;;  %v7122_v58 = vmul.f32 %v14043_v46, %v14043_v46 }
0x1061   : > { %v14050_v8 = vsub.f32 %v13975_v14, %v7091_v11  ;;  %7146 = vadd.xlane.f32.xlu0 %v7121_v34  ;;  %7148 = vadd.xlane.f32.xlu1 %v7122_v58 }
0x1063   : > { %v7123_v18 = vmul.f32 %v14050_v8, %v14050_v8 }
0x1065   : > { %7150 = vadd.xlane.f32.xlu0 %v7123_v18 }
0x1069   : > { %v7073_v43 = vpop.xlane.xlu1 %7072 }
0x106a   : > { %v7092_v40 = vmul.f32 0.0078125, %v7073_v43 }
0x106c   : > { %v14055_v28 = vsub.f32 %v13979_v31, %v7092_v40 }
0x106d   : > { %v7075_v53 = vpop.xlane.xlu0 %7074  ;;  %v7077_v6 = vpop.xlane.xlu1 %7076 }
0x106e   : > { %v7093_v37 = vmul.f32 0.0078125, %v7075_v53  ;;  %v7094_v25 = vmul.f32 0.0078125, %v7077_v6  ;;  %v7124_v56 = vmul.f32 %v14055_v28, %v14055_v28  ;;  %v14085_v53 = vld [vmem:[%s14717_s10 + $0x1] ss:$0 sm:$0xff] }
0x1070   : > { %v14060_v14 = vsub.f32 %v13986_v59, %v7093_v37  ;;  %v14063_v45 = vsub.f32 %v13983_v39, %v7094_v25  ;;  %7152 = vadd.xlane.f32.xlu1 %v7124_v56  ;;  %v10120_v39 = vld [vmem:[#allocation12 + $0xf8] sm:$0xff]  }
0x1071   : > { %v7079_v30 = vpop.xlane.xlu0 %7078  ;;  %9241 = vmatprep.subr.bf16.mxu1 %v10120_v39 }
0x1072   : > { %v7095_v10 = vmul.f32 0.0078125, %v7079_v30  ;;  %v7125_v31 = vmul.f32 %v14060_v14, %v14060_v14  ;;  %v7126_v57 = vmul.f32 %v14063_v45, %v14063_v45  ;;  %9242 = vmatpush3.bf16.msra.mxu1 %v10121_v21 }
0x1073   : > { %9243 = vmatprep.subr.bf16.mxu1 %v10122_v5 }
0x1074   : > { %v14070_v38 = vsub.f32 %v13991_v51, %v7095_v10  ;;  %7154 = vadd.xlane.f32.xlu0 %v7125_v31  ;;  %7156 = vadd.xlane.f32.xlu1 %v7126_v57 }
0x1076   : > { %v7127_v59 = vmul.f32 %v14070_v38, %v14070_v38  ;;  %9244 = vmatpush3.bf16.msra.mxu1 %v10123_v29 }
0x1077   : > { %9245 = vmatprep.subr.bf16.mxu1 %v10124_v48 }
0x1078   : > { %7158 = vadd.xlane.f32.xlu0 %v7127_v59 }
0x107a   : > { %9246 = vmatpush3.bf16.msra.mxu1 %v10125_v54 }
0x107b   : > { %9247 = vmatprep.subr.bf16.mxu1 %v10126_v32 }
0x107e   : > { %9248 = vmatpush3.bf16.msra.mxu1 %v10127_v4 }
0x107f   : > { %9249 = vmatprep.subr.bf16.mxu1 %v10128_v9 }
0x1082   : > { %9250 = vmatpush3.bf16.msra.mxu1 %v10129_v35 }
0x10a9   : > { %v7129_v51 = vpop.xlane.xlu1 %7128 }
0x10aa   : > { %v7160_v2 = vmul.f32 0.0078125, %v7129_v51 }
0x10ac   : > { %v7176_v23 = vadd.f32 1e-05, %v7160_v2 }
0x10ad   : > { %v7131_v16 = vpop.xlane.xlu0 %7130 }
0x10ae   : > { %10712 = vrsqrt.f32 %v7176_v23  ;;  %v7161_v50 = vmul.f32 0.0078125, %v7131_v16 }
0x10b0   : > { %v7177_v62 = vadd.f32 1e-05, %v7161_v50 }
0x10b1   : > { %v7133_v24 = vpop.xlane.xlu1 %7132 }
0x10b2   : > { %10714 = vrsqrt.f32 %v7177_v62  ;;  %v7162_v63 = vmul.f32 0.0078125, %v7133_v24 }
0x10b4   : > { %v7178_v0 = vadd.f32 1e-05, %v7162_v63 }
0x10b5   : > { %v7135_v55 = vpop.xlane.xlu0 %7134 }
0x10b6   : > { %10716 = vrsqrt.f32 %v7178_v0  ;;  %v7163_v61 = vmul.f32 0.0078125, %v7135_v55 }
0x10b8   : > { %v7179_v49 = vadd.f32 1e-05, %v7163_v61 }
0x10b9   : > { %v7137_v20 = vpop.xlane.xlu1 %7136 }
0x10ba   : > { %10718 = vrsqrt.f32 %v7179_v49  ;;  %v7164_v13 = vmul.f32 0.0078125, %v7137_v20 }
0x10bb   : > { %v10713_v41 = vpop.eup %10712 }
0x10bc   : > { %v7208_v19 = vmul.f32 %v10713_v41, %v13995_v44  ;;  %v7180_v22 = vadd.f32 1e-05, %v7164_v13 }
0x10bd   : > { %v7139_v7 = vpop.xlane.xlu0 %7138  ;;  %v7141_v52 = vpop.xlane.xlu1 %7140 }
0x10be   : > { %10720 = vrsqrt.f32 %v7180_v22  ;;  %v7165_v12 = vmul.f32 0.0078125, %v7139_v7  ;;  %v7166_v11 = vmul.f32 0.0078125, %v7141_v52  ;;  %v7230_v58 = vmul.f32 %v14077_v60, %v7208_v19 }
0x10bf   : > { %v10715_v34 = vpop.eup %10714 }
0x10c0   : > { %v7209_v18 = vmul.f32 %v10715_v34, %v14000_v1  ;;  %v7181_v43 = vadd.f32 1e-05, %v7165_v12  ;;  %v7182_v40 = vadd.f32 1e-05, %v7166_v11  ;;  %v14089_v56 = vadd.f32 %v14085_v53, %v7230_v58 }
0x10c1   : > { %v7143_v6 = vpop.xlane.xlu0 %7142 }
0x10c2   : > { %v7231_v44 = vmul.f32 %v14077_v60, %v7209_v18  ;;  %10722 = vrsqrt.f32 %v7181_v43  ;;  %v7167_v37 = vmul.f32 0.0078125, %v7143_v6 }
0x10c3   : > { %v10717_v25 = vpop.eup %10716  ;;  %10724 = vrsqrt.f32 %v7182_v40 }
0x10c4   : > { %v7183_v30 = vadd.f32 1e-05, %v7167_v37  ;;  %v14092_v1 = vadd.f32 %v14085_v53, %v7231_v44  ;;  %v7210_v10 = vmul.f32 %v10717_v25, %v14005_v47 }
0x10c6   : > { %10726 = vrsqrt.f32 %v7183_v30  ;;  %v7268_v31 = vpack.c.bf16 %v14092_v1, %v14089_v56  ;;  %v7232_v39 = vmul.f32 %v14077_v60, %v7210_v10 }
0x10c7   : > { %v10719_v57 = vpop.eup %10718 }
0x10c8   : > { %7419 = vmatmul.mubr.bf16.vlgmr.msra.gmra.mxu0 %v7268_v31  ;;  %v7211_v59 = vmul.f32 %v10719_v57, %v14010_v17  ;;  %v14102_v29 = vadd.f32 %v14085_v53, %v7232_v39 }
0x10c9   : > { %7428 = vmatprep.mubr.bf16.mxu0 %v15013_v42 }
0x10ca   : > { %v7233_v21 = vmul.f32 %v14077_v60, %v7211_v59 }
0x10cb   : > { %v10721_v5 = vpop.eup %10720 }
0x10cc   : > { %v14105_v47 = vadd.f32 %v14085_v53, %v7233_v21  ;;  %v7212_v48 = vmul.f32 %v10721_v5, %v14015_v36 }
0x10ce   : > { %v7269_v54 = vpack.c.bf16 %v14105_v47, %v14102_v29  ;;  %v7234_v51 = vmul.f32 %v14077_v60, %v7212_v48 }
0x10cf   : > { %v10723_v32 = vpop.eup %10722 }
0x10d0   : > { %7429 = vmatmul.mubr.bf16.gmra.mxu0 %v7269_v54  ;;  %v7213_v17 = vmul.f32 %v10723_v32, %v14020_v15  ;;  %v10725_v2 = vpop.eup %10724  ;;  %v14115_v23 = vadd.f32 %v14085_v53, %v7234_v51 }
0x10d1   : > { %7438 = vmatprep.mubr.bf16.mxu0 %v15013_v42  ;;  %v7214_v16 = vmul.f32 %v10725_v2, %v14023_v27 }
0x10d2   : > { %v7235_v4 = vmul.f32 %v14077_v60, %v7213_v17 }
0x10d3   : > { %v10727_v9 = vpop.eup %10726  ;;  %v7236_v62 = vmul.f32 %v14077_v60, %v7214_v16  ;;  %v10130_v16 = vld [vmem:[#allocation12 + $0xd0] sm:$0xff]  }
0x10d4   : > { %v14118_v36 = vadd.f32 %v14085_v53, %v7235_v4  ;;  %v7215_v50 = vmul.f32 %v10727_v9, %v14030_v33  ;;  %9251 = vmatprep.subr.bf16.mxu1 %v10130_v16 }
0x10d5   : > { %v14131_v63 = vadd.f32 %v14085_v53, %v7236_v62  ;;  %v10132_v62 = vld [vmem:[#allocation12 + $0xc8] sm:$0xff]  }
0x10d6   : > { %v7270_v15 = vpack.c.bf16 %v14118_v36, %v14115_v23  ;;  %v7237_v35 = vmul.f32 %v14077_v60, %v7215_v50 }
0x10d8   : > { %7439 = vmatmul.mubr.bf16.gmra.mxu0 %v7270_v15  ;;  %v14128_v24 = vadd.f32 %v14085_v53, %v7237_v35  ;;  %v10131_v15 = vld [vmem:[#allocation12 + $0x90] sm:$0xff]  }
0x10d9   : > { %7448 = vmatprep.mubr.bf16.mxu0 %v15013_v42  ;;  %9252 = vmatpush3.bf16.msra.mxu1 %v10131_v15 }
0x10da   : > { %v7271_v27 = vpack.c.bf16 %v14128_v24, %v14131_v63  ;;  %9253 = vmatprep.subr.bf16.mxu1 %v10132_v62 }
0x10e0   : > { %7449 = vmatmul.mubr.bf16.gmra.mxu0 %v7271_v27 }
0x10e1   : > { %7458 = vmatprep.mubr.bf16.mxu0 %v15013_v42 }
0x10e6   : > { %v7145_v33 = vpop.xlane.xlu1 %7144 }
0x10e7   : > { %v7168_v0 = vmul.f32 0.0078125, %v7145_v33 }
0x10e9   : > { %v7184_v55 = vadd.f32 1e-05, %v7168_v0  ;;  %v10133_v0 = vld [vmem:[#allocation12 + $0x88] sm:$0xff]  }
0x10ea   : > { %v7147_v61 = vpop.xlane.xlu0 %7146  ;;  %v7149_v49 = vpop.xlane.xlu1 %7148  ;;  %9254 = vmatpush3.bf16.msra.mxu1 %v10133_v0 }
0x10eb   : > { %10728 = vrsqrt.f32 %v7184_v55  ;;  %v7169_v20 = vmul.f32 0.0078125, %v7147_v61  ;;  %v7170_v13 = vmul.f32 0.0078125, %v7149_v49 }
0x10ed   : > { %v7185_v41 = vadd.f32 1e-05, %v7169_v20  ;;  %v7186_v19 = vadd.f32 1e-05, %v7170_v13 }
0x10ee   : > { %v7151_v22 = vpop.xlane.xlu0 %7150 }
0x10ef   : > { %10730 = vrsqrt.f32 %v7185_v41  ;;  %v7171_v7 = vmul.f32 0.0078125, %v7151_v22 }
0x10f0   : > { %10732 = vrsqrt.f32 %v7186_v19  ;;  %v10135_v19 = vld [vmem:[#allocation12 + $0x80] sm:$0xff]  }
0x10f1   : > { %v7187_v52 = vadd.f32 1e-05, %v7171_v7 }
0x10f3   : > { %10734 = vrsqrt.f32 %v7187_v52 }
0x10f8   : > { %v10729_v12 = vpop.eup %10728 }
0x10f9   : > { %v7153_v11 = vpop.xlane.xlu1 %7152  ;;  %v7216_v34 = vmul.f32 %v10729_v12, %v14035_v26 }
0x10fa   : > { %v7172_v58 = vmul.f32 0.0078125, %v7153_v11  ;;  %v8729_v11 = vld [vmem:[%s14713_s6 + $0x2] sm:$0x3] }
0x10fb   : > { %v7238_v37 = vmul.f32 %v14077_v60, %v7216_v34 }
0x10fc   : > { %v10731_v18 = vpop.eup %10730  ;;  %v7188_v43 = vadd.f32 1e-05, %v7172_v58  ;;  %v15030_v58 = vld [vmem:[#allocation22_spill] sm:$0xff] }
0x10fd   : > { %v7155_v40 = vpop.xlane.xlu0 %7154  ;;  %v7157_v6 = vpop.xlane.xlu1 %7156  ;;  %v7217_v44 = vmul.f32 %v10731_v18, %v14040_v3  ;;  %v14141_v26 = vadd.f32 %v14085_v53, %v7238_v37  ;;  %v14191_v18 = vrot.slane %v8729_v11, %v15030_v58 }
0x10fe   : > { %v10733_v25 = vpop.eup %10732  ;;  %10736 = vrsqrt.f32 %v7188_v43  ;;  %v7173_v30 = vmul.f32 0.0078125, %v7155_v40  ;;  %v7174_v10 = vmul.f32 0.0078125, %v7157_v6 }
0x10ff   : > { %v7239_v31 = vmul.f32 %v14077_v60, %v7217_v44  ;;  %v7218_v3 = vmul.f32 %v10733_v25, %v14043_v46 }
0x1100   : > { %v10735_v57 = vpop.eup %10734  ;;  %v7189_v59 = vadd.f32 1e-05, %v7173_v30  ;;  %v7190_v39 = vadd.f32 1e-05, %v7174_v10 }
0x1101   : > { %v7159_v21 = vpop.xlane.xlu0 %7158  ;;  %v14144_v5 = vadd.f32 %v14085_v53, %v7239_v31  ;;  %v7219_v48 = vmul.f32 %v10735_v57, %v14050_v8  ;;  %v7240_v2 = vmul.f32 %v14077_v60, %v7218_v3 }
0x1102   : > { %10738 = vrsqrt.f32 %v7189_v59  ;;  %v7175_v54 = vmul.f32 0.0078125, %v7159_v21 }
0x1103   : > { %v7272_v32 = vpack.c.bf16 %v14144_v5, %v14141_v26  ;;  %v7241_v17 = vmul.f32 %v14077_v60, %v7219_v48  ;;  %10740 = vrsqrt.f32 %v7190_v39  ;;  %v14157_v46 = vadd.f32 %v14085_v53, %v7240_v2 }
0x1104   : > { %v7191_v51 = vadd.f32 1e-05, %v7175_v54 }
0x1105   : > { %7459 = vmatmul.mubr.bf16.gmra.mxu0 %v7272_v32  ;;  %v14154_v4 = vadd.f32 %v14085_v53, %v7241_v17 }
0x1106   : > { %10742 = vrsqrt.f32 %v7191_v51  ;;  %7468 = vmatprep.mubr.bf16.mxu0 %v15013_v42 }
0x1107   : > { %v7273_v9 = vpack.c.bf16 %v14154_v4, %v14157_v46 }
0x110b   : > { %v10737_v8 = vpop.eup %10736 }
0x110c   : > { %v7220_v50 = vmul.f32 %v10737_v8, %v14055_v28  ;;  %v10134_v28 = vld [vmem:[#allocation12 + $0xc0] sm:$0xff]  }
0x110d   : > { %7469 = vmatmul.mubr.bf16.gmra.mxu0 %v7273_v9  ;;  %9255 = vmatprep.subr.bf16.mxu1 %v10134_v28 }
0x110e   : > { %7478 = vmatprep.mubr.bf16.mxu0 %v15013_v42  ;;  %v7242_v33 = vmul.f32 %v14077_v60, %v7220_v50  ;;  %9256 = vmatpush3.bf16.msra.mxu1 %v10135_v19 }
0x110f   : > { %v10739_v35 = vpop.eup %10738 }
0x1110   : > { %v7221_v27 = vmul.f32 %v10739_v35, %v14060_v14  ;;  %v10741_v55 = vpop.eup %10740  ;;  %v14167_v20 = vadd.f32 %v14085_v53, %v7242_v33 }
0x1111   : > { %v7222_v41 = vmul.f32 %v10741_v55, %v14063_v45 }
0x1112   : > { %v7243_v61 = vmul.f32 %v14077_v60, %v7221_v27 }
0x1113   : > { %v10743_v49 = vpop.eup %10742  ;;  %v7244_v52 = vmul.f32 %v14077_v60, %v7222_v41 }
0x1114   : > { %v14170_v13 = vadd.f32 %v14085_v53, %v7243_v61  ;;  %v7223_v14 = vmul.f32 %v10743_v49, %v14070_v38 }
0x1115   : > { %v14183_v45 = vadd.f32 %v14085_v53, %v7244_v52 }
0x1116   : > { %v7274_v22 = vpack.c.bf16 %v14170_v13, %v14167_v20  ;;  %v7245_v7 = vmul.f32 %v14077_v60, %v7223_v14  ;;  %v15031_v60 = vld [vmem:[#allocation23_spill] sm:$0xff] }
0x1118   : > { %7479 = vmatmul.mubr.bf16.gmra.mxu0 %v7274_v22  ;;  %v14180_v12 = vadd.f32 %v14085_v53, %v7245_v7 }
0x1119   : > { %7488 = vmatprep.mubr.bf16.mxu0 %v15013_v42  ;;  %v14194_v42 = vrot.slane %v8729_v11, %v15031_v60 }
0x111a   : > { %v7275_v38 = vpack.c.bf16 %v14180_v12, %v14183_v45 }
0x1120   : > { %7489 = vmatmul.mubr.bf16.gmra.mxu0 %v7275_v38 }
0x1188   : > { %v7420_v34 = vpop.f32.mrf.mxu0 }
0x1189   : > { %v7421_v44 = vadd.f32 %v7420_v34, %v14194_v42 }
0x118a   : > { %v7422_v43 = vpop.f32.mrf.mxu0 }
0x118b   : > { %v7423_v53 = vadd.f32 %v7422_v43, %v14191_v18  ;;  %v7499_v59 = vmax.f32 %v7421_v44, 0.0 }
0x118c   : > { %v7424_v40 = vpop.f32.mrf.mxu0 }
0x118d   : > { %v7425_v6 = vadd.f32 %v7424_v40, %v14194_v42  ;;  %v7500_v31 = vmax.f32 %v7423_v53, 0.0 }
0x118e   : > { %v7426_v37 = vpop.f32.mrf.mxu0 }
0x118f   : > { %v7427_v25 = vadd.f32 %v7426_v37, %v14191_v18  ;;  %v7501_v30 = vmax.f32 %v7425_v6, 0.0 }
0x1190   : > { %v7430_v10 = vpop.f32.mrf.mxu0 }
0x1191   : > { %v7502_v57 = vmax.f32 %v7427_v25, 0.0  ;;  %v7531_v3 = vpack.c.bf16 %v7501_v30, %v7499_v59  ;;  %v7431_v17 = vadd.f32 %v7430_v10, %v14194_v42 }
0x1192   : > { %v7432_v39 = vpop.f32.mrf.mxu0 }
0x1193   : > { %v7532_v21 = vpack.c.bf16 %v7502_v57, %v7500_v31  ;;  %v7433_v54 = vadd.f32 %v7432_v39, %v14191_v18  ;;  %v7503_v15 = vmax.f32 %v7431_v17, 0.0 }
0x1194   : > { %v7434_v48 = vpop.f32.mrf.mxu0 }
0x1195   : > { %v7435_v32 = vadd.f32 %v7434_v48, %v14194_v42  ;;  %7716 = vmatprep.mubr.bf16.mxu1 %v7532_v21  ;;  %v7504_v16 = vmax.f32 %v7433_v54, 0.0 }
0x1196   : > { %v7436_v51 = vpop.f32.mrf.mxu0  ;;  %7717 = vmatmul.mubr.bf16.vlgmr.msra.gmra.mxu1 %v7531_v3 }
0x1197   : > { %v7437_v2 = vadd.f32 %v7436_v51, %v14191_v18  ;;  %v7505_v8 = vmax.f32 %v7435_v32, 0.0 }
0x1198   : > { %v7440_v9 = vpop.f32.mrf.mxu0 }
0x1199   : > { %v7506_v50 = vmax.f32 %v7437_v2, 0.0  ;;  %v7533_v27 = vpack.c.bf16 %v7505_v8, %v7503_v15  ;;  %v7441_v61 = vadd.f32 %v7440_v9, %v14194_v42 }
0x119a   : > { %v7442_v35 = vpop.f32.mrf.mxu0 }
0x119b   : > { %v7534_v62 = vpack.c.bf16 %v7506_v50, %v7504_v16  ;;  %v7443_v0 = vadd.f32 %v7442_v35, %v14191_v18  ;;  %v7507_v7 = vmax.f32 %v7441_v61, 0.0 }
0x119c   : > { %v7444_v33 = vpop.f32.mrf.mxu0 }
0x119d   : > { %v7445_v55 = vadd.f32 %v7444_v33, %v14194_v42  ;;  %7724 = vmatprep.mubr.bf16.mxu1 %v7534_v62  ;;  %v7508_v19 = vmax.f32 %v7443_v0, 0.0 }
0x119e   : > { %v7446_v49 = vpop.f32.mrf.mxu0  ;;  %7725 = vmatmul.mubr.bf16.gmra.mxu1 %v7533_v27 }
0x119f   : > { %v7447_v28 = vadd.f32 %v7446_v49, %v14191_v18  ;;  %v7509_v41 = vmax.f32 %v7445_v55, 0.0 }
0x11a0   : > { %v7450_v14 = vpop.f32.mrf.mxu0 }
0x11a1   : > { %v7510_v22 = vmax.f32 %v7447_v28, 0.0  ;;  %v7535_v11 = vpack.c.bf16 %v7509_v41, %v7507_v7  ;;  %v7451_v43 = vadd.f32 %v7450_v14, %v14194_v42 }
0x11a2   : > { %v7452_v52 = vpop.f32.mrf.mxu0 }
0x11a3   : > { %v7536_v38 = vpack.c.bf16 %v7510_v22, %v7508_v19  ;;  %v7453_v58 = vadd.f32 %v7452_v52, %v14191_v18  ;;  %v7511_v25 = vmax.f32 %v7451_v43, 0.0 }
0x11a4   : > { %v7454_v34 = vpop.f32.mrf.mxu0 }
0x11a5   : > { %v7455_v60 = vadd.f32 %v7454_v34, %v14194_v42  ;;  %7732 = vmatprep.mubr.bf16.mxu1 %v7536_v38  ;;  %v7512_v44 = vmax.f32 %v7453_v58, 0.0 }
0x11a6   : > { %v7456_v40 = vpop.f32.mrf.mxu0  ;;  %7733 = vmatmul.mubr.bf16.gmra.mxu1 %v7535_v11 }
0x11a7   : > { %v7457_v53 = vadd.f32 %v7456_v40, %v14191_v18  ;;  %v7513_v6 = vmax.f32 %v7455_v60, 0.0 }
0x11a9   : > { %v7514_v37 = vmax.f32 %v7457_v53, 0.0  ;;  %v7537_v10 = vpack.c.bf16 %v7513_v6, %v7511_v25 }
0x11ab   : > { %v7538_v30 = vpack.c.bf16 %v7514_v37, %v7512_v44 }
0x11ad   : > { %7740 = vmatprep.mubr.bf16.mxu1 %v7538_v30 }
0x11ae   : > { %7741 = vmatmul.mubr.bf16.gmra.mxu1 %v7537_v10 }
0x11c5   : > { %v7460_v31 = vpop.f32.mrf.mxu0 }
0x11c6   : > { %v7461_v3 = vadd.f32 %v7460_v31, %v14194_v42 }
0x11c7   : > { %v7462_v57 = vpop.f32.mrf.mxu0 }
0x11c8   : > { %v7463_v39 = vadd.f32 %v7462_v57, %v14191_v18  ;;  %v7515_v8 = vmax.f32 %v7461_v3, 0.0 }
0x11c9   : > { %v7464_v59 = vpop.f32.mrf.mxu0 }
0x11ca   : > { %v7465_v21 = vadd.f32 %v7464_v59, %v14194_v42  ;;  %v7516_v51 = vmax.f32 %v7463_v39, 0.0 }
0x11cb   : > { %v7466_v48 = vpop.f32.mrf.mxu0 }
0x11cc   : > { %v7467_v54 = vadd.f32 %v7466_v48, %v14191_v18  ;;  %v7517_v32 = vmax.f32 %v7465_v21, 0.0 }
0x11cd   : > { %v7470_v17 = vpop.f32.mrf.mxu0 }
0x11ce   : > { %v7518_v2 = vmax.f32 %v7467_v54, 0.0  ;;  %v7539_v50 = vpack.c.bf16 %v7517_v32, %v7515_v8  ;;  %v7471_v27 = vadd.f32 %v7470_v17, %v14194_v42 }
0x11cf   : > { %v7472_v9 = vpop.f32.mrf.mxu0 }
0x11d0   : > { %v7540_v16 = vpack.c.bf16 %v7518_v2, %v7516_v51  ;;  %v7473_v35 = vadd.f32 %v7472_v9, %v14191_v18  ;;  %v7519_v28 = vmax.f32 %v7471_v27, 0.0  ;;  %v14231_v2 = vld [vmem:[%s14715_s8 + $0x1] ss:$0 sm:$0xff] }
0x11d1   : > { %v7474_v15 = vpop.f32.mrf.mxu0 }
0x11d2   : > { %v7475_v62 = vadd.f32 %v7474_v15, %v14194_v42  ;;  %7748 = vmatprep.mubr.bf16.mxu1 %v7540_v16  ;;  %v7520_v61 = vmax.f32 %v7473_v35, 0.0 }
0x11d3   : > { %v7476_v33 = vpop.f32.mrf.mxu0  ;;  %7749 = vmatmul.mubr.bf16.gmra.mxu1 %v7539_v50 }
0x11d4   : > { %v7477_v0 = vadd.f32 %v7476_v33, %v14191_v18  ;;  %v7521_v55 = vmax.f32 %v7475_v62, 0.0 }
0x11d6   : > { %v7522_v49 = vmax.f32 %v7477_v0, 0.0  ;;  %v7541_v19 = vpack.c.bf16 %v7521_v55, %v7519_v28 }
0x11d8   : > { %v7542_v41 = vpack.c.bf16 %v7522_v49, %v7520_v61  ;;  %v7480_v14 = vpop.f32.mrf.mxu0 }
0x11d9   : > { %v7481_v11 = vadd.f32 %v7480_v14, %v14194_v42 }
0x11da   : > { %v7482_v22 = vpop.f32.mrf.mxu0  ;;  %7756 = vmatprep.mubr.bf16.mxu1 %v7542_v41 }
0x11db   : > { %7757 = vmatmul.mubr.bf16.gmra.mxu1 %v7541_v19  ;;  %v7483_v52 = vadd.f32 %v7482_v22, %v14191_v18  ;;  %v7523_v6 = vmax.f32 %v7481_v11, 0.0 }
0x11dc   : > { %v7484_v7 = vpop.f32.mrf.mxu0 }
0x11dd   : > { %v7485_v38 = vadd.f32 %v7484_v7, %v14194_v42  ;;  %v7524_v40 = vmax.f32 %v7483_v52, 0.0 }
0x11de   : > { %v7486_v34 = vpop.f32.mrf.mxu0 }
0x11df   : > { %v7487_v58 = vadd.f32 %v7486_v34, %v14191_v18  ;;  %v7525_v60 = vmax.f32 %v7485_v38, 0.0 }
0x11e0   : > { %v7490_v43 = vpop.f32.mrf.mxu0 }
0x11e1   : > { %v7526_v53 = vmax.f32 %v7487_v58, 0.0  ;;  %v7543_v25 = vpack.c.bf16 %v7525_v60, %v7523_v6  ;;  %v7491_v57 = vadd.f32 %v7490_v43, %v14194_v42 }
0x11e2   : > { %v7492_v44 = vpop.f32.mrf.mxu0 }
0x11e3   : > { %v7544_v37 = vpack.c.bf16 %v7526_v53, %v7524_v40  ;;  %v7493_v10 = vadd.f32 %v7492_v44, %v14191_v18  ;;  %v7527_v54 = vmax.f32 %v7491_v57, 0.0 }
0x11e4   : > { %v7494_v30 = vpop.f32.mrf.mxu0 }
0x11e5   : > { %v7495_v31 = vadd.f32 %v7494_v30, %v14194_v42  ;;  %7764 = vmatprep.mubr.bf16.mxu1 %v7544_v37  ;;  %v7528_v3 = vmax.f32 %v7493_v10, 0.0 }
0x11e6   : > { %v7496_v59 = vpop.f32.mrf.mxu0  ;;  %7765 = vmatmul.mubr.bf16.gmra.mxu1 %v7543_v25 }
0x11e7   : > { %v7497_v39 = vadd.f32 %v7496_v59, %v14191_v18  ;;  %v7529_v21 = vmax.f32 %v7495_v31, 0.0 }
0x11e9   : > { %v7530_v48 = vmax.f32 %v7497_v39, 0.0  ;;  %v7545_v17 = vpack.c.bf16 %v7529_v21, %v7527_v54 }
0x11eb   : > { %v7546_v32 = vpack.c.bf16 %v7530_v48, %v7528_v3 }
0x11ed   : > { %7772 = vmatprep.mubr.bf16.mxu1 %v7546_v32 }
0x11ee   : > { %7773 = vmatmul.mubr.bf16.gmra.mxu1 %v7545_v17 }
0x1256   : > { %v9257_v51 = vpop.f32.mrf.mxu1 }
0x1258   : > { %v9258_v8 = vpop.f32.mrf.mxu1 }
0x1259   : > { %v9259_v42 = vadd.f32 %v9258_v8, %v9257_v51 }
0x125a   : > { %v9260_v9 = vpop.f32.mrf.mxu1 }
0x125b   : > { %v7719_v16 = vadd.f32 %v9259_v42, %v14231_v2 }
0x125c   : > { %v9261_v18 = vpop.f32.mrf.mxu1 }
0x125d   : > { %v9262_v50 = vadd.f32 %v9261_v18, %v9260_v9  ;;  %v14235_v15 = vadd.f32 %v7719_v16, %v14089_v56 }
0x125e   : > { %v9263_v35 = vpop.f32.mrf.mxu1 }
0x125f   : > { %v7722_v62 = vadd.f32 %v9262_v50, %v14231_v2  ;;  %7801 = vadd.xlane.f32.xlu1 %v14235_v15 }
0x1260   : > { %v9264_v27 = vpop.f32.mrf.mxu1 }
0x1261   : > { %v9265_v33 = vadd.f32 %v9264_v27, %v9263_v35  ;;  %v14240_v0 = vadd.f32 %v7722_v62, %v14092_v1 }
0x1262   : > { %v9266_v55 = vpop.f32.mrf.mxu1 }
0x1263   : > { %v7727_v61 = vadd.f32 %v9265_v33, %v14231_v2  ;;  %7803 = vadd.xlane.f32.xlu0 %v14240_v0 }
0x1264   : > { %v9267_v49 = vpop.f32.mrf.mxu1 }
0x1265   : > { %v9268_v28 = vadd.f32 %v9267_v49, %v9266_v55  ;;  %v14245_v56 = vadd.f32 %v7727_v61, %v14102_v29 }
0x1266   : > { %v9269_v41 = vpop.f32.mrf.mxu1 }
0x1267   : > { %v7730_v14 = vadd.f32 %v9268_v28, %v14231_v2  ;;  %7805 = vadd.xlane.f32.xlu1 %v14245_v56 }
0x1268   : > { %v9270_v19 = vpop.f32.mrf.mxu1 }
0x1269   : > { %v9271_v22 = vadd.f32 %v9270_v19, %v9269_v41  ;;  %v14250_v1 = vadd.f32 %v7730_v14, %v14105_v47 }
0x126a   : > { %v9272_v7 = vpop.f32.mrf.mxu1 }
0x126b   : > { %v7735_v52 = vadd.f32 %v9271_v22, %v14231_v2  ;;  %7807 = vadd.xlane.f32.xlu0 %v14250_v1 }
0x126c   : > { %v9273_v38 = vpop.f32.mrf.mxu1 }
0x126d   : > { %v9274_v11 = vadd.f32 %v9273_v38, %v9272_v7  ;;  %v14255_v29 = vadd.f32 %v7735_v52, %v14115_v23 }
0x126e   : > { %v9275_v34 = vpop.f32.mrf.mxu1 }
0x126f   : > { %v7738_v58 = vadd.f32 %v9274_v11, %v14231_v2  ;;  %7809 = vadd.xlane.f32.xlu1 %v14255_v29 }
0x1270   : > { %v9276_v60 = vpop.f32.mrf.mxu1 }
0x1271   : > { %v9277_v43 = vadd.f32 %v9276_v60, %v9275_v34  ;;  %v14260_v47 = vadd.f32 %v7738_v58, %v14118_v36 }
0x1272   : > { %v9278_v40 = vpop.f32.mrf.mxu1 }
0x1273   : > { %v7743_v53 = vadd.f32 %v9277_v43, %v14231_v2  ;;  %7811 = vadd.xlane.f32.xlu0 %v14260_v47 }
0x1274   : > { %v9279_v6 = vpop.f32.mrf.mxu1 }
0x1275   : > { %v9280_v44 = vadd.f32 %v9279_v6, %v9278_v40  ;;  %v14265_v23 = vadd.f32 %v7743_v53, %v14131_v63 }
0x1277   : > { %v7746_v37 = vadd.f32 %v9280_v44, %v14231_v2  ;;  %7813 = vadd.xlane.f32.xlu1 %v14265_v23 }
0x1279   : > { %v14270_v25 = vadd.f32 %v7746_v37, %v14128_v24 }
0x127b   : > { %7815 = vadd.xlane.f32.xlu0 %v14270_v25 }
0x1293   : > { %v9281_v36 = vpop.f32.mrf.mxu1 }
0x1295   : > { %v9282_v30 = vpop.f32.mrf.mxu1 }
0x1296   : > { %v9283_v10 = vadd.f32 %v9282_v30, %v9281_v36 }
0x1297   : > { %v9284_v31 = vpop.f32.mrf.mxu1 }
0x1298   : > { %v7751_v57 = vadd.f32 %v9283_v10, %v14231_v2 }
0x1299   : > { %v9285_v59 = vpop.f32.mrf.mxu1 }
0x129a   : > { %v9286_v39 = vadd.f32 %v9285_v59, %v9284_v31  ;;  %v14275_v63 = vadd.f32 %v7751_v57, %v14141_v26 }
0x129b   : > { %v9287_v21 = vpop.f32.mrf.mxu1 }
0x129c   : > { %v7754_v3 = vadd.f32 %v9286_v39, %v14231_v2  ;;  %7817 = vadd.xlane.f32.xlu1 %v14275_v63 }
0x129d   : > { %v9288_v24 = vpop.f32.mrf.mxu1 }
0x129e   : > { %v9289_v48 = vadd.f32 %v9288_v24, %v9287_v21  ;;  %v14280_v54 = vadd.f32 %v7754_v3, %v14144_v5 }
0x129f   : > { %v9290_v32 = vpop.f32.mrf.mxu1 }
0x12a0   : > { %v7759_v17 = vadd.f32 %v9289_v48, %v14231_v2  ;;  %7819 = vadd.xlane.f32.xlu0 %v14280_v54 }
0x12a1   : > { %v9291_v51 = vpop.f32.mrf.mxu1 }
0x12a2   : > { %v9292_v8 = vadd.f32 %v9291_v51, %v9290_v32  ;;  %v14285_v26 = vadd.f32 %v7759_v17, %v14157_v46 }
0x12a4   : > { %v7762_v42 = vadd.f32 %v9292_v8, %v14231_v2  ;;  %7821 = vadd.xlane.f32.xlu1 %v14285_v26 }
0x12a6   : > { %v9293_v9 = vpop.f32.mrf.mxu1  ;;  %v14290_v16 = vadd.f32 %v7762_v42, %v14154_v4 }
0x12a8   : > { %7823 = vadd.xlane.f32.xlu0 %v14290_v16  ;;  %v9294_v5 = vpop.f32.mrf.mxu1 }
0x12a9   : > { %v9295_v18 = vadd.f32 %v9294_v5, %v9293_v9 }
0x12aa   : > { %v9296_v50 = vpop.f32.mrf.mxu1 }
0x12ab   : > { %v7767_v35 = vadd.f32 %v9295_v18, %v14231_v2 }
0x12ac   : > { %v9297_v62 = vpop.f32.mrf.mxu1 }
0x12ad   : > { %v9298_v27 = vadd.f32 %v9297_v62, %v9296_v50  ;;  %v14295_v46 = vadd.f32 %v7767_v35, %v14167_v20 }
0x12ae   : > { %v9299_v33 = vpop.f32.mrf.mxu1 }
0x12af   : > { %v7770_v55 = vadd.f32 %v9298_v27, %v14231_v2  ;;  %7825 = vadd.xlane.f32.xlu1 %v14295_v46 }
0x12b0   : > { %v9300_v61 = vpop.f32.mrf.mxu1 }
0x12b1   : > { %v9301_v4 = vadd.f32 %v9300_v61, %v9299_v33  ;;  %v14300_v49 = vadd.f32 %v7770_v55, %v14170_v13 }
0x12b2   : > { %v9302_v28 = vpop.f32.mrf.mxu1 }
0x12b3   : > { %v7775_v41 = vadd.f32 %v9301_v4, %v14231_v2  ;;  %7827 = vadd.xlane.f32.xlu0 %v14300_v49 }
0x12b4   : > { %v9303_v14 = vpop.f32.mrf.mxu1 }
0x12b5   : > { %v9304_v19 = vadd.f32 %v9303_v14, %v9302_v28  ;;  %v14305_v20 = vadd.f32 %v7775_v41, %v14183_v45 }
0x12b7   : > { %v7778_v22 = vadd.f32 %v9304_v19, %v14231_v2  ;;  %7829 = vadd.xlane.f32.xlu1 %v14305_v20 }
0x12b9   : > { %v14310_v7 = vadd.f32 %v7778_v22, %v14180_v12 }
0x12bb   : > { %7831 = vadd.xlane.f32.xlu0 %v14310_v7 }
0x12e8   : > { %v7802_v13 = vpop.xlane.xlu1 %7801 }
0x12e9   : > { %v7833_v52 = vmul.f32 0.0078125, %v7802_v13 }
0x12eb   : > { %v14314_v38 = vsub.f32 %v14235_v15, %v7833_v52 }
0x12ec   : > { %v7804_v11 = vpop.xlane.xlu0 %7803 }
0x12ed   : > { %v7834_v34 = vmul.f32 0.0078125, %v7804_v11  ;;  %v7865_v45 = vmul.f32 %v14314_v38, %v14314_v38 }
0x12ef   : > { %v14319_v58 = vsub.f32 %v14240_v0, %v7834_v34  ;;  %7881 = vadd.xlane.f32.xlu1 %v7865_v45 }
0x12f0   : > { %v7806_v2 = vpop.xlane.xlu1 %7805 }
0x12f1   : > { %v7835_v60 = vmul.f32 0.0078125, %v7806_v2  ;;  %v7866_v12 = vmul.f32 %v14319_v58, %v14319_v58 }
0x12f3   : > { %v14324_v43 = vsub.f32 %v14245_v56, %v7835_v60  ;;  %7883 = vadd.xlane.f32.xlu0 %v7866_v12 }
0x12f4   : > { %v7808_v15 = vpop.xlane.xlu0 %7807 }
0x12f5   : > { %v7836_v40 = vmul.f32 0.0078125, %v7808_v15  ;;  %v7867_v53 = vmul.f32 %v14324_v43, %v14324_v43 }
0x12f7   : > { %v14329_v6 = vsub.f32 %v14250_v1, %v7836_v40  ;;  %7885 = vadd.xlane.f32.xlu1 %v7867_v53 }
0x12f8   : > { %v7810_v0 = vpop.xlane.xlu1 %7809 }
0x12f9   : > { %v7837_v44 = vmul.f32 0.0078125, %v7810_v0  ;;  %v7868_v37 = vmul.f32 %v14329_v6, %v14329_v6 }
0x12fb   : > { %v14334_v36 = vsub.f32 %v14255_v29, %v7837_v44  ;;  %7887 = vadd.xlane.f32.xlu0 %v7868_v37 }
0x12fc   : > { %v7812_v56 = vpop.xlane.xlu0 %7811 }
0x12fd   : > { %v7838_v30 = vmul.f32 0.0078125, %v7812_v56  ;;  %v7869_v10 = vmul.f32 %v14334_v36, %v14334_v36 }
0x12ff   : > { %v14339_v31 = vsub.f32 %v14260_v47, %v7838_v30  ;;  %7889 = vadd.xlane.f32.xlu1 %v7869_v10  ;;  %v14396_v30 = vld [vmem:[%s14718_s11 + $0x1] ss:$0 sm:$0xff] }
0x1300   : > { %v7814_v1 = vpop.xlane.xlu1 %7813 }
0x1301   : > { %v7839_v57 = vmul.f32 0.0078125, %v7814_v1  ;;  %v7870_v59 = vmul.f32 %v14339_v31, %v14339_v31 }
0x1303   : > { %v14344_v39 = vsub.f32 %v14265_v23, %v7839_v57  ;;  %7891 = vadd.xlane.f32.xlu0 %v7870_v59  ;;  %v14402_v59 = vld [vmem:[%s14719_s12 + $0x1] ss:$0 sm:$0xff] }
0x1304   : > { %v7816_v29 = vpop.xlane.xlu0 %7815 }
0x1305   : > { %v7840_v21 = vmul.f32 0.0078125, %v7816_v29  ;;  %v7871_v3 = vmul.f32 %v14344_v39, %v14344_v39 }
0x1307   : > { %v14349_v24 = vsub.f32 %v14270_v25, %v7840_v21  ;;  %7893 = vadd.xlane.f32.xlu1 %v7871_v3 }
0x1309   : > { %v7872_v47 = vmul.f32 %v14349_v24, %v14349_v24 }
0x130b   : > { %7895 = vadd.xlane.f32.xlu0 %v7872_v47 }
0x1325   : > { %v7818_v48 = vpop.xlane.xlu1 %7817 }
0x1326   : > { %v7841_v32 = vmul.f32 0.0078125, %v7818_v48 }
0x1328   : > { %v14354_v17 = vsub.f32 %v14275_v63, %v7841_v32 }
0x1329   : > { %v7820_v23 = vpop.xlane.xlu0 %7819 }
0x132a   : > { %v7842_v51 = vmul.f32 0.0078125, %v7820_v23  ;;  %v7873_v8 = vmul.f32 %v14354_v17, %v14354_v17 }
0x132c   : > { %v14359_v42 = vsub.f32 %v14280_v54, %v7842_v51  ;;  %7897 = vadd.xlane.f32.xlu1 %v7873_v8 }
0x132d   : > { %v7822_v25 = vpop.xlane.xlu1 %7821 }
0x132e   : > { %v7843_v9 = vmul.f32 0.0078125, %v7822_v25  ;;  %v7874_v5 = vmul.f32 %v14359_v42, %v14359_v42 }
0x1330   : > { %v14364_v18 = vsub.f32 %v14285_v26, %v7843_v9  ;;  %7899 = vadd.xlane.f32.xlu0 %v7874_v5 }
0x1331   : > { %v7824_v63 = vpop.xlane.xlu0 %7823 }
0x1332   : > { %v7844_v50 = vmul.f32 0.0078125, %v7824_v63  ;;  %v7875_v35 = vmul.f32 %v14364_v18, %v14364_v18 }
0x1334   : > { %v14369_v62 = vsub.f32 %v14290_v16, %v7844_v50  ;;  %7901 = vadd.xlane.f32.xlu1 %v7875_v35 }
0x1336   : > { %v7876_v54 = vmul.f32 %v14369_v62, %v14369_v62 }
0x1338   : > { %7903 = vadd.xlane.f32.xlu0 %v7876_v54  ;;  %v7826_v27 = vpop.xlane.xlu1 %7825 }
0x1339   : > { %v7845_v33 = vmul.f32 0.0078125, %v7826_v27 }
0x133b   : > { %v14374_v55 = vsub.f32 %v14295_v46, %v7845_v33 }
0x133c   : > { %v7828_v26 = vpop.xlane.xlu0 %7827 }
0x133d   : > { %v7846_v61 = vmul.f32 0.0078125, %v7828_v26  ;;  %v7877_v4 = vmul.f32 %v14374_v55, %v14374_v55 }
0x133f   : > { %v14379_v28 = vsub.f32 %v14300_v49, %v7846_v61  ;;  %7905 = vadd.xlane.f32.xlu1 %v7877_v4 }
0x1340   : > { %v7830_v16 = vpop.xlane.xlu1 %7829 }
0x1341   : > { %v7847_v41 = vmul.f32 0.0078125, %v7830_v16  ;;  %v7878_v14 = vmul.f32 %v14379_v28, %v14379_v28 }
0x1343   : > { %v14384_v19 = vsub.f32 %v14305_v20, %v7847_v41  ;;  %7907 = vadd.xlane.f32.xlu0 %v7878_v14 }
0x1344   : > { %v7832_v46 = vpop.xlane.xlu0 %7831 }
0x1345   : > { %v7848_v22 = vmul.f32 0.0078125, %v7832_v46  ;;  %v7879_v13 = vmul.f32 %v14384_v19, %v14384_v19 }
0x1347   : > { %v14389_v52 = vsub.f32 %v14310_v7, %v7848_v22  ;;  %7909 = vadd.xlane.f32.xlu1 %v7879_v13 }
0x1349   : > { %v7880_v49 = vmul.f32 %v14389_v52, %v14389_v52 }
0x134b   : > { %7911 = vadd.xlane.f32.xlu0 %v7880_v49 }
0x1378   : > { %v7882_v11 = vpop.xlane.xlu1 %7881 }
0x1379   : > { %v7913_v34 = vmul.f32 0.0078125, %v7882_v11 }
0x137b   : > { %v7929_v45 = vadd.f32 1e-05, %v7913_v34 }
0x137c   : > { %v7884_v2 = vpop.xlane.xlu0 %7883 }
0x137d   : > { %10744 = vrsqrt.f32 %v7929_v45  ;;  %v7914_v20 = vmul.f32 0.0078125, %v7884_v2 }
0x137f   : > { %v7930_v60 = vadd.f32 1e-05, %v7914_v20 }
0x1380   : > { %v7886_v12 = vpop.xlane.xlu1 %7885 }
0x1381   : > { %10746 = vrsqrt.f32 %v7930_v60  ;;  %v7915_v15 = vmul.f32 0.0078125, %v7886_v12 }
0x1383   : > { %v7931_v40 = vadd.f32 1e-05, %v7915_v15 }
0x1384   : > { %v7888_v53 = vpop.xlane.xlu0 %7887 }
0x1385   : > { %10748 = vrsqrt.f32 %v7931_v40  ;;  %v7916_v7 = vmul.f32 0.0078125, %v7888_v53 }
0x1387   : > { %v7932_v0 = vadd.f32 1e-05, %v7916_v7 }
0x1388   : > { %v7890_v44 = vpop.xlane.xlu1 %7889 }
0x1389   : > { %10750 = vrsqrt.f32 %v7932_v0  ;;  %v7917_v37 = vmul.f32 0.0078125, %v7890_v44 }
0x138a   : > { %v10745_v56 = vpop.eup %10744 }
0x138b   : > { %v7933_v10 = vadd.f32 1e-05, %v7917_v37  ;;  %v7961_v1 = vmul.f32 %v10745_v56, %v14314_v38 }
0x138c   : > { %v7892_v57 = vpop.xlane.xlu0 %7891 }
0x138d   : > { %10752 = vrsqrt.f32 %v7933_v10  ;;  %v7918_v29 = vmul.f32 0.0078125, %v7892_v57  ;;  %v7983_v21 = vmul.f32 %v14396_v30, %v7961_v1 }
0x138e   : > { %v10747_v3 = vpop.eup %10746 }
0x138f   : > { %v7934_v47 = vadd.f32 1e-05, %v7918_v29  ;;  %v14406_v48 = vadd.f32 %v14402_v59, %v7983_v21  ;;  %v7962_v32 = vmul.f32 %v10747_v3, %v14319_v58 }
0x1390   : > { %v7894_v23 = vpop.xlane.xlu1 %7893 }
0x1391   : > { %10754 = vrsqrt.f32 %v7934_v47  ;;  %v7919_v38 = vmul.f32 0.0078125, %v7894_v23  ;;  %8023 = vadd.xlane.f32.xlu1 %v14406_v48  ;;  %v7984_v51 = vmul.f32 %v14396_v30, %v7962_v32 }
0x1392   : > { %v10749_v8 = vpop.eup %10748 }
0x1393   : > { %v7935_v25 = vadd.f32 1e-05, %v7919_v38  ;;  %v14412_v9 = vadd.f32 %v14402_v59, %v7984_v51  ;;  %v7963_v5 = vmul.f32 %v10749_v8, %v14324_v43 }
0x1394   : > { %v7896_v63 = vpop.xlane.xlu0 %7895 }
0x1395   : > { %10756 = vrsqrt.f32 %v7935_v25  ;;  %v7920_v50 = vmul.f32 0.0078125, %v7896_v63  ;;  %8025 = vadd.xlane.f32.xlu0 %v14412_v9  ;;  %v7985_v58 = vmul.f32 %v14396_v30, %v7963_v5 }
0x1396   : > { %v10751_v35 = vpop.eup %10750 }
0x1397   : > { %v7936_v54 = vadd.f32 1e-05, %v7920_v50  ;;  %v14418_v27 = vadd.f32 %v14402_v59, %v7985_v58  ;;  %v7964_v33 = vmul.f32 %v10751_v35, %v14329_v6 }
0x1399   : > { %10758 = vrsqrt.f32 %v7936_v54  ;;  %8027 = vadd.xlane.f32.xlu1 %v14418_v27  ;;  %v7986_v26 = vmul.f32 %v14396_v30, %v7964_v33 }
0x139a   : > { %v10753_v43 = vpop.eup %10752 }
0x139b   : > { %v14424_v61 = vadd.f32 %v14402_v59, %v7986_v26  ;;  %v7965_v4 = vmul.f32 %v10753_v43, %v14334_v36 }
0x139d   : > { %8029 = vadd.xlane.f32.xlu0 %v14424_v61  ;;  %v7987_v16 = vmul.f32 %v14396_v30, %v7965_v4 }
0x139e   : > { %v10755_v41 = vpop.eup %10754 }
0x139f   : > { %v14430_v14 = vadd.f32 %v14402_v59, %v7987_v16  ;;  %v7966_v6 = vmul.f32 %v10755_v41, %v14339_v31 }
0x13a1   : > { %8031 = vadd.xlane.f32.xlu1 %v14430_v14  ;;  %v7988_v46 = vmul.f32 %v14396_v30, %v7966_v6 }
0x13a2   : > { %v10757_v22 = vpop.eup %10756 }
0x13a3   : > { %v14436_v13 = vadd.f32 %v14402_v59, %v7988_v46  ;;  %v7967_v36 = vmul.f32 %v10757_v22, %v14344_v39 }
0x13a5   : > { %8033 = vadd.xlane.f32.xlu0 %v14436_v13  ;;  %v7989_v49 = vmul.f32 %v14396_v30, %v7967_v36 }
0x13a6   : > { %v10759_v11 = vpop.eup %10758 }
0x13a7   : > { %v14442_v34 = vadd.f32 %v14402_v59, %v7989_v49  ;;  %v7968_v31 = vmul.f32 %v10759_v11, %v14349_v24 }
0x13a9   : > { %8035 = vadd.xlane.f32.xlu1 %v14442_v34  ;;  %v7990_v45 = vmul.f32 %v14396_v30, %v7968_v31 }
0x13ab   : > { %v14448_v2 = vadd.f32 %v14402_v59, %v7990_v45 }
0x13ad   : > { %8037 = vadd.xlane.f32.xlu0 %v14448_v2 }
0x13b5   : > { %v7898_v39 = vpop.xlane.xlu1 %7897 }
0x13b6   : > { %v7921_v20 = vmul.f32 0.0078125, %v7898_v39 }
0x13b8   : > { %v7937_v60 = vadd.f32 1e-05, %v7921_v20 }
0x13b9   : > { %v7900_v12 = vpop.xlane.xlu0 %7899 }
0x13ba   : > { %10760 = vrsqrt.f32 %v7937_v60  ;;  %v7922_v15 = vmul.f32 0.0078125, %v7900_v12 }
0x13bc   : > { %v7938_v40 = vadd.f32 1e-05, %v7922_v15 }
0x13bd   : > { %v7902_v53 = vpop.xlane.xlu1 %7901 }
0x13be   : > { %10762 = vrsqrt.f32 %v7938_v40  ;;  %v7923_v7 = vmul.f32 0.0078125, %v7902_v53 }
0x13c0   : > { %v7939_v24 = vadd.f32 1e-05, %v7923_v7 }
0x13c1   : > { %v7904_v0 = vpop.xlane.xlu0 %7903 }
0x13c2   : > { %10764 = vrsqrt.f32 %v7939_v24  ;;  %v7924_v44 = vmul.f32 0.0078125, %v7904_v0 }
0x13c4   : > { %v7940_v37 = vadd.f32 1e-05, %v7924_v44 }
0x13c6   : > { %10766 = vrsqrt.f32 %v7940_v37 }
0x13c7   : > { %v10761_v56 = vpop.eup %10760 }
0x13c8   : > { %v7906_v10 = vpop.xlane.xlu1 %7905  ;;  %v7969_v1 = vmul.f32 %v10761_v56, %v14354_v17 }
0x13c9   : > { %v7925_v57 = vmul.f32 0.0078125, %v7906_v10 }
0x13ca   : > { %v7991_v29 = vmul.f32 %v14396_v30, %v7969_v1 }
0x13cb   : > { %v10763_v21 = vpop.eup %10762  ;;  %v7941_v3 = vadd.f32 1e-05, %v7925_v57 }
0x13cc   : > { %v7908_v47 = vpop.xlane.xlu0 %7907  ;;  %v14454_v32 = vadd.f32 %v14402_v59, %v7991_v29  ;;  %v7970_v23 = vmul.f32 %v10763_v21, %v14359_v42 }
0x13cd   : > { %10768 = vrsqrt.f32 %v7941_v3  ;;  %v7926_v38 = vmul.f32 0.0078125, %v7908_v47 }
0x13ce   : > { %8039 = vadd.xlane.f32.xlu1 %v14454_v32  ;;  %v7992_v51 = vmul.f32 %v14396_v30, %v7970_v23 }
0x13cf   : > { %v10765_v8 = vpop.eup %10764  ;;  %v7942_v25 = vadd.f32 1e-05, %v7926_v38 }
0x13d0   : > { %v7910_v17 = vpop.xlane.xlu1 %7909  ;;  %v14460_v5 = vadd.f32 %v14402_v59, %v7992_v51  ;;  %v7971_v63 = vmul.f32 %v10765_v8, %v14364_v18 }
0x13d1   : > { %10770 = vrsqrt.f32 %v7942_v25  ;;  %v7927_v50 = vmul.f32 0.0078125, %v7910_v17 }
0x13d2   : > { %8041 = vadd.xlane.f32.xlu0 %v14460_v5  ;;  %v7993_v42 = vmul.f32 %v14396_v30, %v7971_v63 }
0x13d3   : > { %v10767_v58 = vpop.eup %10766  ;;  %v7943_v35 = vadd.f32 1e-05, %v7927_v50 }
0x13d4   : > { %v7912_v54 = vpop.xlane.xlu0 %7911  ;;  %v14466_v33 = vadd.f32 %v14402_v59, %v7993_v42  ;;  %v7972_v26 = vmul.f32 %v10767_v58, %v14369_v62 }
0x13d5   : > { %10772 = vrsqrt.f32 %v7943_v35  ;;  %v7928_v43 = vmul.f32 0.0078125, %v7912_v54 }
0x13d6   : > { %8043 = vadd.xlane.f32.xlu1 %v14466_v33  ;;  %v7994_v18 = vmul.f32 %v14396_v30, %v7972_v26 }
0x13d7   : > { %v7944_v4 = vadd.f32 1e-05, %v7928_v43 }
0x13d8   : > { %v14472_v16 = vadd.f32 %v14402_v59, %v7994_v18 }
0x13d9   : > { %10774 = vrsqrt.f32 %v7944_v4 }
0x13da   : > { %v10769_v41 = vpop.eup %10768  ;;  %8045 = vadd.xlane.f32.xlu0 %v14472_v16 }
0x13db   : > { %v7973_v6 = vmul.f32 %v10769_v41, %v14374_v55 }
0x13dd   : > { %v7995_v46 = vmul.f32 %v14396_v30, %v7973_v6 }
0x13de   : > { %v10771_v22 = vpop.eup %10770 }
0x13df   : > { %v14478_v62 = vadd.f32 %v14402_v59, %v7995_v46  ;;  %v7974_v36 = vmul.f32 %v10771_v22, %v14379_v28 }
0x13e1   : > { %8047 = vadd.xlane.f32.xlu1 %v14478_v62  ;;  %v7996_v49 = vmul.f32 %v14396_v30, %v7974_v36 }
0x13e2   : > { %v10773_v11 = vpop.eup %10772 }
0x13e3   : > { %v14484_v31 = vadd.f32 %v14402_v59, %v7996_v49  ;;  %v7975_v45 = vmul.f32 %v10773_v11, %v14384_v19 }
0x13e5   : > { %8049 = vadd.xlane.f32.xlu0 %v14484_v31  ;;  %v7997_v55 = vmul.f32 %v14396_v30, %v7975_v45 }
0x13e6   : > { %v10775_v39 = vpop.eup %10774 }
0x13e7   : > { %v14490_v20 = vadd.f32 %v14402_v59, %v7997_v55  ;;  %v7976_v28 = vmul.f32 %v10775_v39, %v14389_v52 }
0x13e9   : > { %8051 = vadd.xlane.f32.xlu1 %v14490_v20  ;;  %v7998_v60 = vmul.f32 %v14396_v30, %v7976_v28 }
0x13eb   : > { %v14496_v12 = vadd.f32 %v14402_v59, %v7998_v60 }
0x13ed   : > { %8053 = vadd.xlane.f32.xlu0 %v14496_v12 }
0x141a   : > { %v8024_v19 = vpop.xlane.xlu1 %8023 }
0x141b   : > { %v8055_v15 = vmul.f32 0.0078125, %v8024_v19 }
0x141d   : > { %v14500_v40 = vsub.f32 %v14406_v48, %v8055_v15 }
0x141e   : > { %v8026_v53 = vpop.xlane.xlu0 %8025 }
0x141f   : > { %v8056_v7 = vmul.f32 0.0078125, %v8026_v53  ;;  %v8087_v24 = vmul.f32 %v14500_v40, %v14500_v40 }
0x1421   : > { %v14505_v52 = vsub.f32 %v14412_v9, %v8056_v7  ;;  %8103 = vadd.xlane.f32.xlu1 %v8087_v24 }
0x1422   : > { %v8028_v30 = vpop.xlane.xlu1 %8027 }
0x1423   : > { %v8057_v0 = vmul.f32 0.0078125, %v8028_v30  ;;  %v8088_v59 = vmul.f32 %v14505_v52, %v14505_v52 }
0x1425   : > { %v14510_v44 = vsub.f32 %v14418_v27, %v8057_v0  ;;  %8105 = vadd.xlane.f32.xlu0 %v8088_v59 }
0x1426   : > { %v8030_v48 = vpop.xlane.xlu0 %8029 }
0x1427   : > { %v8058_v37 = vmul.f32 0.0078125, %v8030_v48  ;;  %v8089_v56 = vmul.f32 %v14510_v44, %v14510_v44 }
0x1429   : > { %v14515_v10 = vsub.f32 %v14424_v61, %v8058_v37  ;;  %8107 = vadd.xlane.f32.xlu1 %v8089_v56 }
0x142a   : > { %v8032_v9 = vpop.xlane.xlu1 %8031 }
0x142b   : > { %v8059_v1 = vmul.f32 0.0078125, %v8032_v9  ;;  %v8090_v57 = vmul.f32 %v14515_v10, %v14515_v10 }
0x142d   : > { %v14520_v29 = vsub.f32 %v14430_v14, %v8059_v1  ;;  %8109 = vadd.xlane.f32.xlu0 %v8090_v57 }
0x142e   : > { %v8034_v27 = vpop.xlane.xlu0 %8033 }
0x142f   : > { %v8060_v21 = vmul.f32 0.0078125, %v8034_v27  ;;  %v8091_v3 = vmul.f32 %v14520_v29, %v14520_v29 }
0x1431   : > { %v14525_v47 = vsub.f32 %v14436_v13, %v8060_v21  ;;  %8111 = vadd.xlane.f32.xlu1 %v8091_v3  ;;  %v14582_v21 = vld [vmem:[%s15032_s26] ss:$0 sm:$0xff]  ;;  %s10988_s26 = scalar_lea.vmem %s10987_s25, 4096 }
0x1432   : > { %v8036_v61 = vpop.xlane.xlu1 %8035  ;;  %p10990_p9 = scmp.lt.s32.totalorder %s10988_s26, %s10982_s3 }
0x1433   : > { %v8061_v23 = vmul.f32 0.0078125, %v8036_v61  ;;  %v8092_v38 = vmul.f32 %v14525_v47, %v14525_v47 }
0x1434   : > { %p10991_p1 = por %p10990_p9, %p10989_p5 }
0x1435   : > { %v14530_v51 = vsub.f32 %v14442_v34, %v8061_v23  ;;  %8113 = vadd.xlane.f32.xlu0 %v8092_v38  ;;  %v14588_v23 = vld [vmem:[%s15033_s1] ss:$0 sm:$0xff] }
0x1436   : > { %v8038_v14 = vpop.xlane.xlu0 %8037  ;;  %p10992_p3 = pnand %p10991_p1, %p10985_p0 }
0x1437   : > { %v8062_v8 = vmul.f32 0.0078125, %v8038_v14  ;;  %v8093_v25 = vmul.f32 %v14530_v51, %v14530_v51 }
0x1439   : > { %v14535_v17 = vsub.f32 %v14448_v2, %v8062_v8  ;;  %8115 = vadd.xlane.f32.xlu1 %v8093_v25 }
0x143b   : > { %v8094_v13 = vmul.f32 %v14535_v17, %v14535_v17 }
0x143d   : > { %8117 = vadd.xlane.f32.xlu0 %v8094_v13 }
0x1457   : > { %v8040_v63 = vpop.xlane.xlu1 %8039 }
0x1458   : > { %v8063_v50 = vmul.f32 0.0078125, %v8040_v63 }
0x145a   : > { %v14540_v42 = vsub.f32 %v14454_v32, %v8063_v50 }
0x145b   : > { %v8042_v34 = vpop.xlane.xlu0 %8041 }
0x145c   : > { %v8064_v58 = vmul.f32 0.0078125, %v8042_v34  ;;  %v8095_v35 = vmul.f32 %v14540_v42, %v14540_v42 }
0x145e   : > { %v14545_v54 = vsub.f32 %v14460_v5, %v8064_v58  ;;  %8119 = vadd.xlane.f32.xlu1 %v8095_v35 }
0x145f   : > { %v8044_v2 = vpop.xlane.xlu1 %8043 }
0x1460   : > { %v8065_v26 = vmul.f32 0.0078125, %v8044_v2  ;;  %v8096_v43 = vmul.f32 %v14545_v54, %v14545_v54 }
0x1462   : > { %v14550_v18 = vsub.f32 %v14466_v33, %v8065_v26  ;;  %8121 = vadd.xlane.f32.xlu0 %v8096_v43 }
0x1463   : > { %v8046_v32 = vpop.xlane.xlu0 %8045 }
0x1464   : > { %v8066_v4 = vmul.f32 0.0078125, %v8046_v32  ;;  %v8097_v41 = vmul.f32 %v14550_v18, %v14550_v18 }
0x1466   : > { %v14555_v6 = vsub.f32 %v14472_v16, %v8066_v4  ;;  %8123 = vadd.xlane.f32.xlu1 %v8097_v41 }
0x1468   : > { %v8098_v5 = vmul.f32 %v14555_v6, %v14555_v6 }
0x146a   : > { %8125 = vadd.xlane.f32.xlu0 %v8098_v5  ;;  %v8048_v46 = vpop.xlane.xlu1 %8047 }
0x146b   : > { %v8067_v22 = vmul.f32 0.0078125, %v8048_v46 }
0x146d   : > { %v14560_v36 = vsub.f32 %v14478_v62, %v8067_v22 }
0x146e   : > { %v8050_v33 = vpop.xlane.xlu0 %8049 }
0x146f   : > { %v8068_v49 = vmul.f32 0.0078125, %v8050_v33  ;;  %v8099_v11 = vmul.f32 %v14560_v36, %v14560_v36 }
0x1471   : > { %v14565_v45 = vsub.f32 %v14484_v31, %v8068_v49  ;;  %8127 = vadd.xlane.f32.xlu1 %v8099_v11 }
0x1472   : > { %v8052_v16 = vpop.xlane.xlu1 %8051 }
0x1473   : > { %v8069_v55 = vmul.f32 0.0078125, %v8052_v16  ;;  %v8100_v39 = vmul.f32 %v14565_v45, %v14565_v45 }
0x1475   : > { %v14570_v28 = vsub.f32 %v14490_v20, %v8069_v55  ;;  %8129 = vadd.xlane.f32.xlu0 %v8100_v39 }
0x1476   : > { %v8054_v62 = vpop.xlane.xlu0 %8053 }
0x1477   : > { %v8070_v60 = vmul.f32 0.0078125, %v8054_v62  ;;  %v8101_v19 = vmul.f32 %v14570_v28, %v14570_v28 }
0x1479   : > { %v14575_v15 = vsub.f32 %v14496_v12, %v8070_v60  ;;  %8131 = vadd.xlane.f32.xlu1 %v8101_v19 }
0x147b   : > { %v8102_v31 = vmul.f32 %v14575_v15, %v14575_v15 }
0x147d   : > { %8133 = vadd.xlane.f32.xlu0 %v8102_v31 }
0x14aa   : > { %v8104_v53 = vpop.xlane.xlu1 %8103 }
0x14ab   : > { %v8135_v7 = vmul.f32 0.0078125, %v8104_v53 }
0x14ad   : > { %v8151_v24 = vadd.f32 1e-05, %v8135_v7 }
0x14ae   : > { %v8106_v30 = vpop.xlane.xlu0 %8105 }
0x14af   : > { %10776 = vrsqrt.f32 %v8151_v24  ;;  %v8136_v20 = vmul.f32 0.0078125, %v8106_v30 }
0x14b1   : > { %v8152_v0 = vadd.f32 1e-05, %v8136_v20 }
0x14b2   : > { %v8108_v59 = vpop.xlane.xlu1 %8107 }
0x14b3   : > { %10778 = vrsqrt.f32 %v8152_v0  ;;  %v8137_v48 = vmul.f32 0.0078125, %v8108_v59 }
0x14b5   : > { %v8153_v37 = vadd.f32 1e-05, %v8137_v48 }
0x14b6   : > { %v8110_v56 = vpop.xlane.xlu0 %8109 }
0x14b7   : > { %10780 = vrsqrt.f32 %v8153_v37  ;;  %v8138_v12 = vmul.f32 0.0078125, %v8110_v56 }
0x14b9   : > { %v8154_v9 = vadd.f32 1e-05, %v8138_v12 }
0x14ba   : > { %v8112_v1 = vpop.xlane.xlu1 %8111 }
0x14bb   : > { %10782 = vrsqrt.f32 %v8154_v9  ;;  %v8139_v57 = vmul.f32 0.0078125, %v8112_v1 }
0x14bc   : > { %v10777_v27 = vpop.eup %10776 }
0x14bd   : > { %v8183_v3 = vmul.f32 %v10777_v27, %v14500_v40  ;;  %v8155_v61 = vadd.f32 1e-05, %v8139_v57 }
0x14be   : > { %v8114_v38 = vpop.xlane.xlu0 %8113 }
0x14bf   : > { %v8205_v14 = vmul.f32 %v14582_v21, %v8183_v3  ;;  %10784 = vrsqrt.f32 %v8155_v61  ;;  %v8140_v8 = vmul.f32 0.0078125, %v8114_v38 }
0x14c0   : > { %v10779_v25 = vpop.eup %10778 }
0x14c1   : > { %v8227_v13 = vadd.f32 %v14588_v23, %v8205_v14  ;;  %v8184_v63 = vmul.f32 %v10779_v25, %v14505_v52  ;;  %v8156_v50 = vadd.f32 1e-05, %v8140_v8 }
0x14c2   : > { %v8116_v34 = vpop.xlane.xlu1 %8115 }
0x14c3   : > { %8243 = vst [vmem:[%s14595_s23] sm:$0xff] %v8227_v13  ;;  %v8206_v40 = vmul.f32 %v14582_v21, %v8184_v63  ;;  %10786 = vrsqrt.f32 %v8156_v50  ;;  %v8141_v58 = vmul.f32 0.0078125, %v8116_v34 }
0x14c4   : > { %v10781_v35 = vpop.eup %10780 }
0x14c5   : > { %v8228_v2 = vadd.f32 %v14588_v23, %v8206_v40  ;;  %v8185_v26 = vmul.f32 %v10781_v35, %v14510_v44  ;;  %v8157_v43 = vadd.f32 1e-05, %v8141_v58 }
0x14c6   : > { %v8118_v52 = vpop.xlane.xlu0 %8117 }
0x14c7   : > { %8244 = vst [vmem:[%s14595_s23 + $0x8] sm:$0xff] %v8228_v2  ;;  %v8207_v32 = vmul.f32 %v14582_v21, %v8185_v26  ;;  %10788 = vrsqrt.f32 %v8157_v43  ;;  %v8142_v4 = vmul.f32 0.0078125, %v8118_v52 }
0x14c8   : > { %v10783_v41 = vpop.eup %10782 }
0x14c9   : > { %v8229_v5 = vadd.f32 %v14588_v23, %v8207_v32  ;;  %v8186_v46 = vmul.f32 %v10783_v41, %v14515_v10  ;;  %v8158_v22 = vadd.f32 1e-05, %v8142_v4 }
0x14cb   : > { %8245 = vst [vmem:[%s14595_s23 + $0x10] sm:$0xff] %v8229_v5  ;;  %v8208_v33 = vmul.f32 %v14582_v21, %v8186_v46  ;;  %10790 = vrsqrt.f32 %v8158_v22 }
0x14cc   : > { %v10785_v44 = vpop.eup %10784 }
0x14cd   : > { %v8230_v49 = vadd.f32 %v14588_v23, %v8208_v33  ;;  %v8187_v11 = vmul.f32 %v10785_v44, %v14520_v29 }
0x14cf   : > { %8246 = vst [vmem:[%s14595_s23 + $0x18] sm:$0xff] %v8230_v49  ;;  %v8209_v16 = vmul.f32 %v14582_v21, %v8187_v11 }
0x14d0   : > { %v10787_v55 = vpop.eup %10786 }
0x14d1   : > { %v8231_v39 = vadd.f32 %v14588_v23, %v8209_v16  ;;  %v8188_v10 = vmul.f32 %v10787_v55, %v14525_v47 }
0x14d3   : > { %8247 = vst [vmem:[%s14595_s23 + $0x20] sm:$0xff] %v8231_v39  ;;  %v8210_v62 = vmul.f32 %v14582_v21, %v8188_v10 }
0x14d4   : > { %v10789_v60 = vpop.eup %10788 }
0x14d5   : > { %v8232_v19 = vadd.f32 %v14588_v23, %v8210_v62  ;;  %v8189_v31 = vmul.f32 %v10789_v60, %v14530_v51 }
0x14d7   : > { %8248 = vst [vmem:[%s14595_s23 + $0x28] sm:$0xff] %v8232_v19  ;;  %v8211_v29 = vmul.f32 %v14582_v21, %v8189_v31 }
0x14d8   : > { %v10791_v53 = vpop.eup %10790 }
0x14d9   : > { %v8233_v7 = vadd.f32 %v14588_v23, %v8211_v29  ;;  %v8190_v24 = vmul.f32 %v10791_v53, %v14535_v17 }
0x14db   : > { %8249 = vst [vmem:[%s14595_s23 + $0x30] sm:$0xff] %v8233_v7  ;;  %v8212_v30 = vmul.f32 %v14582_v21, %v8190_v24 }
0x14dd   : > { %v8234_v47 = vadd.f32 %v14588_v23, %v8212_v30 }
0x14df   : > { %8250 = vst [vmem:[%s14595_s23 + $0x38] sm:$0xff] %v8234_v47 }
0x14e7   : > { %v8120_v20 = vpop.xlane.xlu1 %8119 }
0x14e8   : > { %v8143_v0 = vmul.f32 0.0078125, %v8120_v20 }
0x14ea   : > { %v8159_v59 = vadd.f32 1e-05, %v8143_v0 }
0x14eb   : > { %v8122_v48 = vpop.xlane.xlu0 %8121 }
0x14ec   : > { %10792 = vrsqrt.f32 %v8159_v59  ;;  %v8144_v51 = vmul.f32 0.0078125, %v8122_v48 }
0x14ee   : > { %v8160_v37 = vadd.f32 1e-05, %v8144_v51 }
0x14ef   : > { %v8124_v56 = vpop.xlane.xlu1 %8123 }
0x14f0   : > { %10794 = vrsqrt.f32 %v8160_v37  ;;  %v8145_v12 = vmul.f32 0.0078125, %v8124_v56 }
0x14f2   : > { %v8161_v9 = vadd.f32 1e-05, %v8145_v12 }
0x14f3   : > { %v8126_v1 = vpop.xlane.xlu0 %8125 }
0x14f4   : > { %10796 = vrsqrt.f32 %v8161_v9  ;;  %v8146_v17 = vmul.f32 0.0078125, %v8126_v1 }
0x14f6   : > { %v8162_v57 = vadd.f32 1e-05, %v8146_v17 }
0x14f8   : > { %10798 = vrsqrt.f32 %v8162_v57 }
0x14f9   : > { %v10793_v27 = vpop.eup %10792 }
0x14fa   : > { %v8191_v3 = vmul.f32 %v10793_v27, %v14540_v42  ;;  %v8128_v61 = vpop.xlane.xlu1 %8127 }
0x14fb   : > { %v8147_v38 = vmul.f32 0.0078125, %v8128_v61 }
0x14fc   : > { %v8213_v14 = vmul.f32 %v14582_v21, %v8191_v3 }
0x14fd   : > { %v10795_v8 = vpop.eup %10794  ;;  %v8163_v25 = vadd.f32 1e-05, %v8147_v38 }
0x14fe   : > { %v8235_v13 = vadd.f32 %v14588_v23, %v8213_v14  ;;  %v8192_v63 = vmul.f32 %v10795_v8, %v14545_v54  ;;  %v8130_v50 = vpop.xlane.xlu0 %8129 }
0x14ff   : > { %10800 = vrsqrt.f32 %v8163_v25  ;;  %v8148_v34 = vmul.f32 0.0078125, %v8130_v50 }
0x1500   : > { %8251 = vst [vmem:[%s14595_s23 + $0x40] sm:$0xff] %v8235_v13  ;;  %v8214_v40 = vmul.f32 %v14582_v21, %v8192_v63 }
0x1501   : > { %v10797_v58 = vpop.eup %10796  ;;  %v8164_v42 = vadd.f32 1e-05, %v8148_v34 }
0x1502   : > { %v8236_v35 = vadd.f32 %v14588_v23, %v8214_v40  ;;  %v8193_v2 = vmul.f32 %v10797_v58, %v14550_v18  ;;  %v8132_v26 = vpop.xlane.xlu1 %8131 }
0x1503   : > { %10802 = vrsqrt.f32 %v8164_v42  ;;  %v8149_v43 = vmul.f32 0.0078125, %v8132_v26 }
0x1504   : > { %8252 = vst [vmem:[%s14595_s23 + $0x48] sm:$0xff] %v8236_v35  ;;  %v8215_v54 = vmul.f32 %v14582_v21, %v8193_v2 }
0x1505   : > { %v10799_v52 = vpop.eup %10798  ;;  %v8165_v32 = vadd.f32 1e-05, %v8149_v43 }
0x1506   : > { %v8237_v4 = vadd.f32 %v14588_v23, %v8215_v54  ;;  %v8194_v41 = vmul.f32 %v10799_v52, %v14555_v6  ;;  %v8134_v5 = vpop.xlane.xlu0 %8133 }
0x1507   : > { %10804 = vrsqrt.f32 %v8165_v32  ;;  %v8150_v46 = vmul.f32 0.0078125, %v8134_v5 }
0x1508   : > { %8253 = vst [vmem:[%s14595_s23 + $0x50] sm:$0xff] %v8237_v4  ;;  %v8216_v18 = vmul.f32 %v14582_v21, %v8194_v41 }
0x1509   : > { %v8166_v22 = vadd.f32 1e-05, %v8150_v46 }
0x150a   : > { %v8238_v33 = vadd.f32 %v14588_v23, %v8216_v18 }
0x150b   : > { %10806 = vrsqrt.f32 %v8166_v22 }
0x150c   : > { %v10801_v44 = vpop.eup %10800  ;;  %8254 = vst [vmem:[%s14595_s23 + $0x58] sm:$0xff] %v8238_v33 }
0x150d   : > { %v8195_v49 = vmul.f32 %v10801_v44, %v14560_v36 }
0x150f   : > { %v8217_v6 = vmul.f32 %v14582_v21, %v8195_v49 }
0x1510   : > { %v10803_v11 = vpop.eup %10802 }
0x1511   : > { %v8239_v16 = vadd.f32 %v14588_v23, %v8217_v6  ;;  %v8196_v55 = vmul.f32 %v10803_v11, %v14565_v45 }
0x1513   : > { %8255 = vst [vmem:[%s14595_s23 + $0x60] sm:$0xff] %v8239_v16  ;;  %v8218_v39 = vmul.f32 %v14582_v21, %v8196_v55 }
0x1514   : > { %v10805_v10 = vpop.eup %10804 }
0x1515   : > { %v8240_v62 = vadd.f32 %v14588_v23, %v8218_v39  ;;  %v8197_v60 = vmul.f32 %v10805_v10, %v14570_v28 }
0x1517   : > { %8256 = vst [vmem:[%s14595_s23 + $0x68] sm:$0xff] %v8240_v62  ;;  %v8219_v36 = vmul.f32 %v14582_v21, %v8197_v60 }
0x1518   : > { %v10807_v19 = vpop.eup %10806 }
0x1519   : > { %v8241_v31 = vadd.f32 %v14588_v23, %v8219_v36  ;;  %v8198_v29 = vmul.f32 %v10807_v19, %v14575_v15 }
0x151b   : > { %8257 = vst [vmem:[%s14595_s23 + $0x70] sm:$0xff] %v8241_v31  ;;  %v8220_v45 = vmul.f32 %v14582_v21, %v8198_v29 }
0x151d   : > { %v8242_v28 = vadd.f32 %v14588_v23, %v8220_v45 }
0x151f   : > { %8258 = vst [vmem:[%s14595_s23 + $0x78] sm:$0xff] %v8242_v28 }
0x1520   : > { %10995 = shalt.err (!%p10992_p3)
}
0x1521   : > { %s10996_s15 = scalar_lea.hbm %s14660_s30, 2048  ;;  %s11000_s23 = scalar_lea.hbm %s15034_s17, 4096 }
0x1522   : > { %p10997_p4 = scmp.ne.s32.totalorder %s14660_s30, %s10996_s15  ;;  %p11001_p2 = scmp.lt.s32.totalorder %s14660_s30, %s15034_s17 }
0x1523   : > { %p11002_p7 = scmp.lt.s32.totalorder %s11000_s23, %s10996_s15 }
0x1524   : > { %p10998_p12 = pnand %p10997_p4, %p15035_p11 }
0x1525   : > { %p11003_p8 = por %p11002_p7, %p11001_p2 }
0x1526   : > { %p10999_p6 = pneg %p10998_p12 }
0x1528   : > { %p11004_p10 = pnand %p11003_p8, %p10999_p6 }
0x152a   : > { %11007 = shalt.err (!%p11004_p10)
}
0x152b   : > { %s11079_s29 = smov 128   ;;  %s11080_s3 = smov 8  }
0x152c   : > { %9871 = dma.vmem_to_hbm [thread:$0]  (%p15035_p11), %s14662_s28, 2048, %s14660_s30, %s8260_s2, %s11079_s29, %s11079_s29, %s11080_s3  }
0x152d PF: > { %s8288_s24 = sand.u32 1, %s11046_s18   ;;  %p15036_p13 = scmp.ne.s32.totalorder %s14832_s27, 0 }
0x152e   : > { %p15037_p0 = scmp.ge.s32.totalorder %s11058_s21, 2  ;;  %s8289_s25 = scalar_lea.sflag [#allocation5], %s8288_s24 }
0x1530   : > { %p9894_p5 = pnand %p15037_p0, %p15036_p13 }
0x1532   : > { %p9895_p9 = pneg %p9894_p5 }
0x1534   : > { %11041 = dma.done.wait (%p9895_p9), %s8289_s25, 2048  }
0x1535   : > { %11043 = vsyncadd (%p9895_p9), %s8289_s25, 4294965248  ;;  %s15038_s26 = sld [smem:[#allocation20_spill]]  ;;  %p31_p1 = scmp.ge.s32.totalorder %s11262_s16, 4  }
0x1536   : > { %s15039_s18 = smov %s11050_s19  ;;  %s15040_s19 = smov %s11054_s20 }
0x1537   : > { %s15042_s21 = smov %s11262_s16  ;;  %33 = sbr.rel (!%p31_p1) target bundleno = 17 (0x11), region = 157 }
0x153b   : > { %s15041_s20 = smov %s15038_s26 }
0x153c   :  { %8294 = vsyncpa [#allocation4], 1 }
0x153d   :  { %8296 = vsyncpa [#allocation4 + $0x1], 1 }
0x153e   :  { %8297 = vsyncpa [#allocation7], 1 }
0x153f   :  { %8298 = vsyncpa [#allocation10], 1 }
0x1540   :  { %8299 = vsyncpa [#allocation13], 1 }
0x1541   :  { %8300 = vsyncpa [#allocation5], 1 }
0x1542   :  { %8302 = vsyncpa [#allocation5 + $0x1], 1 }

</bundles_post_ra>
